<compile_context>
chip_gen: v6e
topology: v6e:2x2x1
jax: 0.10.0
libtpu: 0.0.40
codegen_flags: <defaults>
</compile_context>

<pallas_src>
import functools

import jax
import jax.numpy as jnp
from jax.experimental import pallas as pl
from jax.experimental.pallas import tpu as pltpu

HIDDEN = 128      # GRU hidden size
GRU_IN = 9        # GRU input feature size
MAP_FLAT = 3200   # 5 * 5 * 128
ENC_OUT = 512     # map encoder output
JOIN_IN = 640     # 512 + 128
JOIN_OUT = 512


# ---------------------- fused matmul (+bias, +ReLU) kernel --------------------

def _linear_kernel(x_ref, w_ref, b_ref, o_ref, *, relu):
    """o = x @ w + b (f32 accumulation), optional fused ReLU."""
    acc = jnp.dot(x_ref[...], w_ref[...], preferred_element_type=jnp.float32)
    acc = acc + b_ref[...]
    if relu:
        acc = jnp.maximum(acc, 0.0)
    o_ref[...] = acc.astype(o_ref.dtype)


def _pick_block_m(m):
    """Split M into >=2 row tiles (multiple of 8, <=256) when possible so the
    'parallel' grid axis can shard across TensorCores; otherwise one full block."""
    if m <= 256 or m % 8:
        return m
    for bm in range(min(256, m // 2), 7, -1):
        if bm % 8 == 0 and m % bm == 0:
            return bm
    return m


def linear(x, w, b, *, relu=False, out_dtype=jnp.bfloat16):
    """x: (M, K) any float dtype, w: (K, N) bf16 (prepared), b: (1, N) f32 (prepared)."""
    M, K = x.shape
    N = w.shape[1]
    bm = _pick_block_m(M)
    grid = (M // bm,)
    return pl.pallas_call(
        functools.partial(_linear_kernel, relu=relu),
        grid=grid,
        in_specs=[pl.BlockSpec((bm, K), lambda i: (i, 0)),
                  pl.BlockSpec((K, N), lambda i: (0, 0)),
                  pl.BlockSpec((1, N), lambda i: (0, 0))],
        out_specs=pl.BlockSpec((bm, N), lambda i: (i, 0)),
        out_shape=jax.ShapeDtypeStruct((M, N), out_dtype),
        compiler_params=pltpu.CompilerParams(
            dimension_semantics=("parallel",)),
    )(x.astype(jnp.bfloat16), w, b)


# ------------------- fused 2-layer GRU + joiner + output kernel ---------------

def _gru_head_kernel(x_ref, glob_ref,
                     wih0_ref, whh0_ref, bih0_ref, bhh0_ref,
                     wih1_ref, whh1_ref, bih1_ref, bhh1_ref,
                     wjg_ref, wjp_ref, bj_ref, wout_ref, bout_ref,
                     o_ref, *, T, B):
    """PyTorch-semantics 2-layer GRU (gate order r,z,n; h0=0) fused with the
    joiner + ReLU + output head.

    x_ref    : (T*B, 9) bf16, rows in (t, b) order.
    glob_ref : (B, 512) bf16 map encoding.
    o_ref    : (T*B, output_dim) f32, rows in (t, b) order.
    """
    H = HIDDEN
    f32 = jnp.float32
    bf16 = jnp.bfloat16

    # Hoisted layer-0 input projection: one (T*B, 9) x (9, 3H) matmul.
    gi0_all = (jnp.dot(x_ref[...], wih0_ref[...], preferred_element_type=f32)
               + bih0_ref[...])

    # Joiner contribution of the map encoding: computed once per batch row.
    glob_j = jnp.dot(glob_ref[...], wjg_ref[...], preferred_element_type=f32)

    whh0 = whh0_ref[...]
    wih1 = wih1_ref[...]
    whh1 = whh1_ref[...]
    bhh0 = bhh0_ref[...]
    bih1 = bih1_ref[...]
    bhh1 = bhh1_ref[...]

    def gates(gi, gh, h):
        r = jax.nn.sigmoid(gi[:, :H] + gh[:, :H])
        z = jax.nn.sigmoid(gi[:, H:2 * H] + gh[:, H:2 * H])
        n = jnp.tanh(gi[:, 2 * H:] + r * gh[:, 2 * H:])
        return (1.0 - z) * n + z * h

    h0 = jnp.zeros((B, H), f32)
    h1 = jnp.zeros((B, H), f32)
    preds = []
    # T is small and static: fully unrolled time loop (static gi0 slices, lets the
    # scheduler interleave MXU / EUP / VPU work of adjacent steps).
    for t in range(T):
        gi0 = gi0_all[t * B:(t + 1) * B]
        gh0 = jnp.dot(h0.astype(bf16), whh0, preferred_element_type=f32) + bhh0
        h0 = gates(gi0, gh0, h0)
        h0b = h0.astype(bf16)
        gi1 = jnp.dot(h0b, wih1, preferred_element_type=f32) + bih1
        gh1 = jnp.dot(h1.astype(bf16), whh1, preferred_element_type=f32) + bhh1
        h1 = gates(gi1, gh1, h1)
        preds.append(h1)

    # Joiner (preds part) + ReLU + output, batched over all T*B rows at once.
    preds_all = jnp.concatenate(preds, axis=0).astype(bf16)      # (T*B, 128)
    glob_rep = jnp.concatenate([glob_j] * T, axis=0)             # (T*B, 512)
    hidden = (glob_rep
              + jnp.dot(preds_all, wjp_ref[...], preferred_element_type=f32)
              + bj_ref[...])
    hidden = jnp.maximum(hidden, 0.0).astype(bf16)
    out = jnp.dot(hidden, wout_ref[...], preferred_element_type=f32) + bout_ref[...]
    o_ref[...] = out.astype(o_ref.dtype)


def gru_head_forward(p, units_features, glob):
    """units_features: (B, T, 9), glob: (B, 512) bf16 -> (T, B, output_dim) f32."""
    B, T, _ = units_features.shape
    out_dim = p["output_w"].shape[1]
    x = jnp.transpose(units_features, (1, 0, 2)).reshape(T * B, GRU_IN)
    x = x.astype(jnp.bfloat16)
    out = pl.pallas_call(
        functools.partial(_gru_head_kernel, T=T, B=B),
        out_shape=jax.ShapeDtypeStruct((T * B, out_dim), jnp.float32),
    )(x, glob,
      p["gru0_w_ih"], p["gru0_w_hh"], p["gru0_b_ih"], p["gru0_b_hh"],
      p["gru1_w_ih"], p["gru1_w_hh"], p["gru1_b_ih"], p["gru1_b_hh"],
      p["joiner_w_glob"], p["joiner_w_pred"], p["joiner_b"],
      p["output_w"], p["output_b"])
    return out.reshape(T, B, out_dim)


# ------------------------------ Conv (im2col, NHWC) ---------------------------

def _im2col_nhwc(x, kh, kw, stride):
    """Glue: patches for NHWC input. Rows = (b, oh, ow); cols = (kh, kw, c)."""
    B, H, W, C = x.shape
    OH = (H - kh) // stride + 1
    OW = (W - kw) // stride + 1
    cols = []
    for i in range(kh):
        for j in range(kw):
            cols.append(x[:, i:i + stride * (OH - 1) + 1:stride,
                             j:j + stride * (OW - 1) + 1:stride, :])
    p = jnp.stack(cols, axis=3)                       # (B, OH, OW, kh*kw, C)
    p = p.reshape(B * OH * OW, kh * kw * C)
    return p, OH, OW


def map_encoder_forward(p, x_nhwc):
    """x_nhwc: (B, 30, 30, 10) -> (B, 512) bf16. Stays NHWC throughout."""
    B = x_nhwc.shape[0]
    patches, oh, ow = _im2col_nhwc(x_nhwc, 8, 8, 2)                    # (B*144, 640)
    y = linear(patches, p["conv1_w"], p["conv1_b"], relu=True)         # (B*144, 64)
    y = y.reshape(B, oh, ow, -1)
    patches, oh, ow = _im2col_nhwc(y, 4, 4, 2)                         # (B*25, 1024)
    y = linear(patches, p["conv2_w"], p["conv2_b"], relu=True)         # (B*25, 128)
    flat = y.reshape(B, MAP_FLAT)              # NHWC flatten: (h, w, c) ordering
    return linear(flat, p["ffn_map_w"], p["ffn_map_b"], relu=False)    # (B, 512)


# ------------------------------ Parameters ------------------------------------

def _uniform(key, shape, fan_in):
    bound = 1.0 / (fan_in ** 0.5)
    return jax.random.uniform(key, shape, jnp.float32, -bound, bound)


def init_luxrnet_params(key, output_dim):
    """Torch-style layouts (Conv2d (OC,IC,KH,KW); Linear/GRU weights stored
    matmul-ready (in, out); gate order r,z,n)."""
    keys = iter(jax.random.split(key, 24))
    p = {}
    p["conv1_w"] = _uniform(next(keys), (64, 10, 8, 8), 10 * 8 * 8)
    p["conv1_b"] = _uniform(next(keys), (64,), 10 * 8 * 8)
    p["conv2_w"] = _uniform(next(keys), (128, 64, 4, 4), 64 * 4 * 4)
    p["conv2_b"] = _uniform(next(keys), (128,), 64 * 4 * 4)
    # ffn_map stored (K=3200, N=512), rows in torch NCHW-flatten order (c, h, w)
    p["ffn_map_w"] = _uniform(next(keys), (MAP_FLAT, ENC_OUT), MAP_FLAT)
    p["ffn_map_b"] = _uniform(next(keys), (ENC_OUT,), MAP_FLAT)
    gru = []
    for layer in range(2):
        in_dim = GRU_IN if layer == 0 else HIDDEN
        gru.append({
            "w_ih": _uniform(next(keys), (in_dim, 3 * HIDDEN), HIDDEN),
            "w_hh": _uniform(next(keys), (HIDDEN, 3 * HIDDEN), HIDDEN),
            "b_ih": _uniform(next(keys), (3 * HIDDEN,), HIDDEN),
            "b_hh": _uniform(next(keys), (3 * HIDDEN,), HIDDEN),
        })
    p["gru"] = gru
    p["joiner_w"] = _uniform(next(keys), (JOIN_IN, JOIN_OUT), JOIN_IN)
    p["joiner_b"] = _uniform(next(keys), (JOIN_OUT,), JOIN_IN)
    p["output_w"] = _uniform(next(keys), (JOIN_OUT, output_dim), JOIN_OUT)
    p["output_b"] = _uniform(next(keys), (output_dim,), JOIN_OUT)
    return p


def prepare_params(p):
    """One-time conversion to kernel-ready layouts: bf16 matmul weights,
    NHWC-ordered im2col weights, (1, N) f32 biases, split joiner weight."""
    bf = jnp.bfloat16
    f32 = jnp.float32
    q = {}
    for name in ("conv1", "conv2"):
        w = p[name + "_w"]                               # (OC, IC, KH, KW)
        oc, ic, kh, kw = w.shape
        q[name + "_w"] = (w.transpose(2, 3, 1, 0)        # (KH, KW, IC, OC)
                          .reshape(kh * kw * ic, oc).astype(bf))
        q[name + "_b"] = p[name + "_b"].reshape(1, oc).astype(f32)
    # Permute ffn_map rows from torch (c, h, w) flatten order to NHWC (h, w, c).
    w = p["ffn_map_w"].reshape(128, 5, 5, ENC_OUT).transpose(1, 2, 0, 3)
    q["ffn_map_w"] = w.reshape(MAP_FLAT, ENC_OUT).astype(bf)
    q["ffn_map_b"] = p["ffn_map_b"].reshape(1, ENC_OUT).astype(f32)
    for layer in (0, 1):
        src = p["gru"][layer]
        q[f"gru{layer}_w_ih"] = src["w_ih"].astype(bf)
        q[f"gru{layer}_w_hh"] = src["w_hh"].astype(bf)
        q[f"gru{layer}_b_ih"] = src["b_ih"].reshape(1, 3 * HIDDEN).astype(f32)
        q[f"gru{layer}_b_hh"] = src["b_hh"].reshape(1, 3 * HIDDEN).astype(f32)
    # joiner input is cat(glob, preds): rows [:512] hit glob, rows [512:] hit preds.
    wj = p["joiner_w"]
    q["joiner_w_glob"] = wj[:ENC_OUT].astype(bf)
    q["joiner_w_pred"] = wj[ENC_OUT:].astype(bf)
    q["joiner_b"] = p["joiner_b"].reshape(1, JOIN_OUT).astype(f32)
    q["output_w"] = p["output_w"].astype(bf)
    q["output_b"] = p["output_b"].reshape(1, -1).astype(f32)
    return q


# ------------------------------- Forward pass ---------------------------------

def luxrnet_forward(p, global_features, units_features):
    x_nhwc = jnp.transpose(global_features, (0, 2, 3, 1))      # NCHW -> NHWC once
    glob = map_encoder_forward(p, x_nhwc)                      # (B, 512) bf16
    out_tbo = gru_head_forward(p, units_features, glob)        # (T, B, out_dim) f32
    return out_tbo


class DDQN:
    def __init__(self, output_dim, key):
        raw = init_luxrnet_params(key, output_dim)
        self.online = prepare_params(raw)
        # deepcopy of online -> identical (frozen) parameter values
        self.target = jax.tree_util.tree_map(jnp.array, self.online)
        self._forward = jax.jit(luxrnet_forward)

    def __call__(self, state, mode, seq_lenghts=None):
        global_features, units_features = state[0], state[1]
        if seq_lenghts is not None:
            # TODO(synk): pack_padded_sequence / pad_packed_sequence (variable-length
            # packed GRU) has no clean Pallas equivalent; only the unpacked path runs.
            raise NotImplementedError("packed sequences not supported")
        if mode == "online":
            out = self._forward(self.online, global_features, units_features)
        elif mode == "target":
            out = self._forward(self.target, global_features, units_features)
        else:
            return None
        # Same return structure as the PyTorch module: list of T (B, out_dim) slices.
        return [out[k] for k in range(out.shape[0])]


# ---------------------------------- Main --------------------------------------

if __name__ == "__main__":
    key = jax.random.PRNGKey(0)
    k_param, k_map, k_units = jax.random.split(key, 3)

    B, T, OUTPUT_DIM = 2, 8, 10
    global_features = jax.random.normal(k_map, (B, 10, 30, 30), jnp.float32)
    units_features = jax.random.normal(k_units, (B, T, GRU_IN), jnp.float32)

    model = DDQN(OUTPUT_DIM, k_param)
    outs_online = model((global_features, units_features), mode="online")
    outs_target = model((global_features, units_features), mode="target")

    for o in outs_online + outs_target:
        jax.block_until_ready(o)

    assert len(outs_online) == T and outs_online[0].shape == (B, OUTPUT_DIM)
    assert len(outs_target) == T and outs_target[0].shape == (B, OUTPUT_DIM)
    assert all(bool(jnp.all(jnp.isfinite(o))) for o in outs_online + outs_target)
    print("KERNEL_OK")
</pallas_src>

<mosaic_0001>
module attributes {stable_mosaic.version = 11 : i64} {
  func.func @_linear_kernel(%arg0: i32, %arg1: memref<144x640xbf16, #tpu.memory_space<vmem>>, %arg2: memref<640x64xbf16, #tpu.memory_space<vmem>>, %arg3: memref<1x64xf32, #tpu.memory_space<vmem>>, %arg4: memref<144x64xbf16, #tpu.memory_space<vmem>>) attributes {dimension_semantics = [#tpu.dimension_semantics<parallel>], iteration_bounds = array<i64: 2>, scalar_prefetch = 0 : i64, scratch_operands = 0 : i64, tpu.core_type = #tpu.core_type<tc>, window_params = [{transform_indices = @transform_0, window_bounds = array<i64: 144, 640>}, {pipeline_mode = #tpu.pipeline_mode<synchronous>, transform_indices = @transform_1, window_bounds = array<i64: 640, 64>}, {pipeline_mode = #tpu.pipeline_mode<synchronous>, transform_indices = @transform_2, window_bounds = array<i64: 1, 64>}, {transform_indices = @transform_3, window_bounds = array<i64: 144, 64>}]} {
    %c0 = arith.constant 0 : index
    %c0_0 = arith.constant 0 : index
    %0 = vector.load %arg1[%c0, %c0_0] : memref<144x640xbf16, #tpu.memory_space<vmem>>, vector<144x640xbf16>
    %c0_1 = arith.constant 0 : index
    %c0_2 = arith.constant 0 : index
    %1 = vector.load %arg2[%c0_1, %c0_2] : memref<640x64xbf16, #tpu.memory_space<vmem>>, vector<640x64xbf16>
    %cst = arith.constant dense<0.000000e+00> : vector<144x64xf32>
    %2 = tpu.matmul %0, %1, %cst {dimension_numbers = #tpu.dot_dimension_numbers<[1], [0], [0], [1], [0, 0, 1, 1], [], []>} : vector<144x640xbf16>, vector<640x64xbf16>, vector<144x64xf32> -> vector<144x64xf32>
    %c0_3 = arith.constant 0 : index
    %c0_4 = arith.constant 0 : index
    %3 = vector.load %arg3[%c0_3, %c0_4] : memref<1x64xf32, #tpu.memory_space<vmem>>, vector<1x64xf32>
    %4 = vector.broadcast %3 : vector<1x64xf32> to vector<144x64xf32>
    %5 = arith.addf %2, %4 : vector<144x64xf32>
    %cst_5 = arith.constant 0.000000e+00 : f32
    %6 = vector.broadcast %cst_5 : f32 to vector<144x64xf32>
    %7 = arith.maximumf %5, %6 : vector<144x64xf32>
    %8 = arith.truncf %7 : vector<144x64xf32> to vector<144x64xbf16>
    %c0_6 = arith.constant 0 : index
    %c0_7 = arith.constant 0 : index
    %9 = vector.load %arg4[%c0_6, %c0_7] : memref<144x64xbf16, #tpu.memory_space<vmem>>, vector<144x64xbf16>
    tpu.vector_store %arg4[%c0_6, %c0_7], %8 {strides = array<i32>} : memref<144x64xbf16, #tpu.memory_space<vmem>>, vector<144x64xbf16>,
    return
  }
  func.func @transform_0(%arg0: i32) -> (i32, i32) {
    %c0_i32 = arith.constant 0 : i32
    %c0_i32_0 = arith.constant 0 : i32
    return %arg0, %c0_i32 : i32, i32
  }
  func.func @transform_1(%arg0: i32) -> (i32, i32) {
    %c0_i32 = arith.constant 0 : i32
    %c0_i32_0 = arith.constant 0 : i32
    %c0_i32_1 = arith.constant 0 : i32
    return %c0_i32, %c0_i32_0 : i32, i32
  }
  func.func @transform_2(%arg0: i32) -> (i32, i32) {
    %c0_i32 = arith.constant 0 : i32
    %c0_i32_0 = arith.constant 0 : i32
    %c0_i32_1 = arith.constant 0 : i32
    return %c0_i32, %c0_i32_0 : i32, i32
  }
  func.func @transform_3(%arg0: i32) -> (i32, i32) {
    %c0_i32 = arith.constant 0 : i32
    %c0_i32_0 = arith.constant 0 : i32
    return %arg0, %c0_i32 : i32, i32
  }
}

module attributes {stable_mosaic.version = 11 : i64} {
  func.func @_linear_kernel(%arg0: i32, %arg1: memref<50x1024xbf16, #tpu.memory_space<vmem>>, %arg2: memref<1024x128xbf16, #tpu.memory_space<vmem>>, %arg3: memref<1x128xf32, #tpu.memory_space<vmem>>, %arg4: memref<50x128xbf16, #tpu.memory_space<vmem>>) attributes {dimension_semantics = [#tpu.dimension_semantics<parallel>], iteration_bounds = array<i64: 1>, scalar_prefetch = 0 : i64, scratch_operands = 0 : i64, tpu.core_type = #tpu.core_type<tc>, window_params = [{transform_indices = @transform_0, window_bounds = array<i64: 50, 1024>}, {pipeline_mode = #tpu.pipeline_mode<synchronous>, transform_indices = @transform_1, window_bounds = array<i64: 1024, 128>}, {pipeline_mode = #tpu.pipeline_mode<synchronous>, transform_indices = @transform_2, window_bounds = array<i64: 1, 128>}, {transform_indices = @transform_3, window_bounds = array<i64: 50, 128>}]} {
    %c0 = arith.constant 0 : index
    %c0_0 = arith.constant 0 : index
    %0 = vector.load %arg1[%c0, %c0_0] : memref<50x1024xbf16, #tpu.memory_space<vmem>>, vector<50x1024xbf16>
    %c0_1 = arith.constant 0 : index
    %c0_2 = arith.constant 0 : index
    %1 = vector.load %arg2[%c0_1, %c0_2] : memref<1024x128xbf16, #tpu.memory_space<vmem>>, vector<1024x128xbf16>
    %cst = arith.constant dense<0.000000e+00> : vector<50x128xf32>
    %2 = tpu.matmul %0, %1, %cst {dimension_numbers = #tpu.dot_dimension_numbers<[1], [0], [0], [1], [0, 0, 1, 1], [], []>} : vector<50x1024xbf16>, vector<1024x128xbf16>, vector<50x128xf32> -> vector<50x128xf32>
    %c0_3 = arith.constant 0 : index
    %c0_4 = arith.constant 0 : index
    %3 = vector.load %arg3[%c0_3, %c0_4] : memref<1x128xf32, #tpu.memory_space<vmem>>, vector<1x128xf32>
    %4 = vector.broadcast %3 : vector<1x128xf32> to vector<50x128xf32>
    %5 = arith.addf %2, %4 : vector<50x128xf32>
    %cst_5 = arith.constant 0.000000e+00 : f32
    %6 = vector.broadcast %cst_5 : f32 to vector<50x128xf32>
    %7 = arith.maximumf %5, %6 : vector<50x128xf32>
    %8 = arith.truncf %7 : vector<50x128xf32> to vector<50x128xbf16>
    %c0_6 = arith.constant 0 : index
    %c0_7 = arith.constant 0 : index
    %9 = vector.load %arg4[%c0_6, %c0_7] : memref<50x128xbf16, #tpu.memory_space<vmem>>, vector<50x128xbf16>
    tpu.vector_store %arg4[%c0_6, %c0_7], %8 {strides = array<i32>} : memref<50x128xbf16, #tpu.memory_space<vmem>>, vector<50x128xbf16>,
    return
  }
  func.func @transform_0(%arg0: i32) -> (i32, i32) {
    %c0_i32 = arith.constant 0 : i32
    %c0_i32_0 = arith.constant 0 : i32
    return %arg0, %c0_i32 : i32, i32
  }
  func.func @transform_1(%arg0: i32) -> (i32, i32) {
    %c0_i32 = arith.constant 0 : i32
    %c0_i32_0 = arith.constant 0 : i32
    %c0_i32_1 = arith.constant 0 : i32
    return %c0_i32, %c0_i32_0 : i32, i32
  }
  func.func @transform_2(%arg0: i32) -> (i32, i32) {
    %c0_i32 = arith.constant 0 : i32
    %c0_i32_0 = arith.constant 0 : i32
    %c0_i32_1 = arith.constant 0 : i32
    return %c0_i32, %c0_i32_0 : i32, i32
  }
  func.func @transform_3(%arg0: i32) -> (i32, i32) {
    %c0_i32 = arith.constant 0 : i32
    %c0_i32_0 = arith.constant 0 : i32
    return %arg0, %c0_i32 : i32, i32
  }
}

module attributes {stable_mosaic.version = 11 : i64} {
  func.func @_linear_kernel(%arg0: i32, %arg1: memref<2x3200xbf16, #tpu.memory_space<vmem>>, %arg2: memref<3200x512xbf16, #tpu.memory_space<vmem>>, %arg3: memref<1x512xf32, #tpu.memory_space<vmem>>, %arg4: memref<2x512xbf16, #tpu.memory_space<vmem>>) attributes {dimension_semantics = [#tpu.dimension_semantics<parallel>], iteration_bounds = array<i64: 1>, scalar_prefetch = 0 : i64, scratch_operands = 0 : i64, tpu.core_type = #tpu.core_type<tc>, window_params = [{transform_indices = @transform_0, window_bounds = array<i64: 2, 3200>}, {pipeline_mode = #tpu.pipeline_mode<synchronous>, transform_indices = @transform_1, window_bounds = array<i64: 3200, 512>}, {pipeline_mode = #tpu.pipeline_mode<synchronous>, transform_indices = @transform_2, window_bounds = array<i64: 1, 512>}, {transform_indices = @transform_3, window_bounds = array<i64: 2, 512>}]} {
    %c0 = arith.constant 0 : index
    %c0_0 = arith.constant 0 : index
    %0 = vector.load %arg1[%c0, %c0_0] : memref<2x3200xbf16, #tpu.memory_space<vmem>>, vector<2x3200xbf16>
    %c0_1 = arith.constant 0 : index
    %c0_2 = arith.constant 0 : index
    %1 = vector.load %arg2[%c0_1, %c0_2] : memref<3200x512xbf16, #tpu.memory_space<vmem>>, vector<3200x512xbf16>
    %cst = arith.constant dense<0.000000e+00> : vector<2x512xf32>
    %2 = tpu.matmul %0, %1, %cst {dimension_numbers = #tpu.dot_dimension_numbers<[1], [0], [0], [1], [0, 0, 1, 1], [], []>} : vector<2x3200xbf16>, vector<3200x512xbf16>, vector<2x512xf32> -> vector<2x512xf32>
    %c0_3 = arith.constant 0 : index
    %c0_4 = arith.constant 0 : index
    %3 = vector.load %arg3[%c0_3, %c0_4] : memref<1x512xf32, #tpu.memory_space<vmem>>, vector<1x512xf32>
    %4 = vector.broadcast %3 : vector<1x512xf32> to vector<2x512xf32>
    %5 = arith.addf %2, %4 : vector<2x512xf32>
    %6 = arith.truncf %5 : vector<2x512xf32> to vector<2x512xbf16>
    %c0_5 = arith.constant 0 : index
    %c0_6 = arith.constant 0 : index
    %7 = vector.load %arg4[%c0_5, %c0_6] : memref<2x512xbf16, #tpu.memory_space<vmem>>, vector<2x512xbf16>
    tpu.vector_store %arg4[%c0_5, %c0_6], %6 {strides = array<i32>} : memref<2x512xbf16, #tpu.memory_space<vmem>>, vector<2x512xbf16>,
    return
  }
  func.func @transform_0(%arg0: i32) -> (i32, i32) {
    %c0_i32 = arith.constant 0 : i32
    %c0_i32_0 = arith.constant 0 : i32
    return %arg0, %c0_i32 : i32, i32
  }
  func.func @transform_1(%arg0: i32) -> (i32, i32) {
    %c0_i32 = arith.constant 0 : i32
    %c0_i32_0 = arith.constant 0 : i32
    %c0_i32_1 = arith.constant 0 : i32
    return %c0_i32, %c0_i32_0 : i32, i32
  }
  func.func @transform_2(%arg0: i32) -> (i32, i32) {
    %c0_i32 = arith.constant 0 : i32
    %c0_i32_0 = arith.constant 0 : i32
    %c0_i32_1 = arith.constant 0 : i32
    return %c0_i32, %c0_i32_0 : i32, i32
  }
  func.func @transform_3(%arg0: i32) -> (i32, i32) {
    %c0_i32 = arith.constant 0 : i32
    %c0_i32_0 = arith.constant 0 : i32
    return %arg0, %c0_i32 : i32, i32
  }
}

module attributes {stable_mosaic.version = 11 : i64} {
  func.func @_gru_head_kernel(%arg0: memref<16x9xbf16, #tpu.memory_space<vmem>>, %arg1: memref<2x512xbf16, #tpu.memory_space<vmem>>, %arg2: memref<9x384xbf16, #tpu.memory_space<vmem>>, %arg3: memref<128x384xbf16, #tpu.memory_space<vmem>>, %arg4: memref<1x384xf32, #tpu.memory_space<vmem>>, %arg5: memref<1x384xf32, #tpu.memory_space<vmem>>, %arg6: memref<128x384xbf16, #tpu.memory_space<vmem>>, %arg7: memref<128x384xbf16, #tpu.memory_space<vmem>>, %arg8: memref<1x384xf32, #tpu.memory_space<vmem>>, %arg9: memref<1x384xf32, #tpu.memory_space<vmem>>, %arg10: memref<512x512xbf16, #tpu.memory_space<vmem>>, %arg11: memref<128x512xbf16, #tpu.memory_space<vmem>>, %arg12: memref<1x512xf32, #tpu.memory_space<vmem>>, %arg13: memref<512x10xbf16, #tpu.memory_space<vmem>>, %arg14: memref<1x10xf32, #tpu.memory_space<vmem>>, %arg15: memref<16x10xf32, #tpu.memory_space<vmem>>) attributes {dimension_semantics = [], scalar_prefetch = 0 : i64, scratch_operands = 0 : i64, tpu.core_type = #tpu.core_type<tc>} {
    %c0 = arith.constant 0 : index
    %c0_0 = arith.constant 0 : index
    %0 = vector.load %arg0[%c0, %c0_0] : memref<16x9xbf16, #tpu.memory_space<vmem>>, vector<16x9xbf16>
    %c0_1 = arith.constant 0 : index
    %c0_2 = arith.constant 0 : index
    %1 = vector.load %arg2[%c0_1, %c0_2] : memref<9x384xbf16, #tpu.memory_space<vmem>>, vector<9x384xbf16>
    %cst = arith.constant dense<0.000000e+00> : vector<16x384xf32>
    %2 = tpu.matmul %0, %1, %cst {dimension_numbers = #tpu.dot_dimension_numbers<[1], [0], [0], [1], [0, 0, 1, 1], [], []>} : vector<16x9xbf16>, vector<9x384xbf16>, vector<16x384xf32> -> vector<16x384xf32>
    %c0_3 = arith.constant 0 : index
    %c0_4 = arith.constant 0 : index
    %3 = vector.load %arg4[%c0_3, %c0_4] : memref<1x384xf32, #tpu.memory_space<vmem>>, vector<1x384xf32>
    %4 = vector.broadcast %3 : vector<1x384xf32> to vector<16x384xf32>
    %5 = arith.addf %2, %4 : vector<16x384xf32>
    %c0_5 = arith.constant 0 : index
    %c0_6 = arith.constant 0 : index
    %6 = vector.load %arg1[%c0_5, %c0_6] : memref<2x512xbf16, #tpu.memory_space<vmem>>, vector<2x512xbf16>
    %c0_7 = arith.constant 0 : index
    %c0_8 = arith.constant 0 : index
    %7 = vector.load %arg10[%c0_7, %c0_8] : memref<512x512xbf16, #tpu.memory_space<vmem>>, vector<512x512xbf16>
    %cst_9 = arith.constant dense<0.000000e+00> : vector<2x512xf32>
    %8 = tpu.matmul %6, %7, %cst_9 {dimension_numbers = #tpu.dot_dimension_numbers<[1], [0], [0], [1], [0, 0, 1, 1], [], []>} : vector<2x512xbf16>, vector<512x512xbf16>, vector<2x512xf32> -> vector<2x512xf32>
    %c0_10 = arith.constant 0 : index
    %c0_11 = arith.constant 0 : index
    %9 = vector.load %arg3[%c0_10, %c0_11] : memref<128x384xbf16, #tpu.memory_space<vmem>>, vector<128x384xbf16>
    %c0_12 = arith.constant 0 : index
    %c0_13 = arith.constant 0 : index
    %10 = vector.load %arg6[%c0_12, %c0_13] : memref<128x384xbf16, #tpu.memory_space<vmem>>, vector<128x384xbf16>
    %c0_14 = arith.constant 0 : index
    %c0_15 = arith.constant 0 : index
    %11 = vector.load %arg7[%c0_14, %c0_15] : memref<128x384xbf16, #tpu.memory_space<vmem>>, vector<128x384xbf16>
    %c0_16 = arith.constant 0 : index
    %c0_17 = arith.constant 0 : index
    %12 = vector.load %arg5[%c0_16, %c0_17] : memref<1x384xf32, #tpu.memory_space<vmem>>, vector<1x384xf32>
    %c0_18 = arith.constant 0 : index
    %c0_19 = arith.constant 0 : index
    %13 = vector.load %arg8[%c0_18, %c0_19] : memref<1x384xf32, #tpu.memory_space<vmem>>, vector<1x384xf32>
    %c0_20 = arith.constant 0 : index
    %c0_21 = arith.constant 0 : index
    %14 = vector.load %arg9[%c0_20, %c0_21] : memref<1x384xf32, #tpu.memory_space<vmem>>, vector<1x384xf32>
    %cst_22 = arith.constant 0.000000e+00 : f32
    %15 = vector.broadcast %cst_22 : f32 to vector<2x128xf32>
    %cst_23 = arith.constant 0.000000e+00 : f32
    %16 = vector.broadcast %cst_23 : f32 to vector<2x128xf32>
    %17 = vector.extract_strided_slice %5 {offsets = [0, 0], sizes = [2, 384], strides = [1, 1]} : vector<16x384xf32> to vector<2x384xf32>
    %18 = arith.truncf %15 : vector<2x128xf32> to vector<2x128xbf16>
    %cst_24 = arith.constant dense<0.000000e+00> : vector<2x384xf32>
    %19 = tpu.matmul %18, %9, %cst_24 {dimension_numbers = #tpu.dot_dimension_numbers<[1], [0], [0], [1], [0, 0, 1, 1], [], []>} : vector<2x128xbf16>, vector<128x384xbf16>, vector<2x384xf32> -> vector<2x384xf32>
    %20 = vector.broadcast %12 : vector<1x384xf32> to vector<2x384xf32>
    %21 = arith.addf %19, %20 : vector<2x384xf32>
    %22 = vector.extract_strided_slice %17 {offsets = [0, 0], sizes = [2, 128], strides = [1, 1]} : vector<2x384xf32> to vector<2x128xf32>
    %23 = vector.extract_strided_slice %21 {offsets = [0, 0], sizes = [2, 128], strides = [1, 1]} : vector<2x384xf32> to vector<2x128xf32>
    %24 = arith.addf %22, %23 : vector<2x128xf32>
    %25 = arith.negf %24 : vector<2x128xf32>
    %26 = math.exp %25 : vector<2x128xf32>
    %cst_25 = arith.constant 1.000000e+00 : f32
    %27 = vector.broadcast %cst_25 : f32 to vector<2x128xf32>
    %28 = arith.addf %27, %26 : vector<2x128xf32>
    %29 = arith.divf %27, %28 : vector<2x128xf32>
    %30 = vector.extract_strided_slice %17 {offsets = [0, 128], sizes = [2, 128], strides = [1, 1]} : vector<2x384xf32> to vector<2x128xf32>
    %31 = vector.extract_strided_slice %21 {offsets = [0, 128], sizes = [2, 128], strides = [1, 1]} : vector<2x384xf32> to vector<2x128xf32>
    %32 = arith.addf %30, %31 : vector<2x128xf32>
    %33 = arith.negf %32 : vector<2x128xf32>
    %34 = math.exp %33 : vector<2x128xf32>
    %cst_26 = arith.constant 1.000000e+00 : f32
    %35 = vector.broadcast %cst_26 : f32 to vector<2x128xf32>
    %36 = arith.addf %35, %34 : vector<2x128xf32>
    %37 = arith.divf %35, %36 : vector<2x128xf32>
    %38 = vector.extract_strided_slice %17 {offsets = [0, 256], sizes = [2, 128], strides = [1, 1]} : vector<2x384xf32> to vector<2x128xf32>
    %39 = vector.extract_strided_slice %21 {offsets = [0, 256], sizes = [2, 128], strides = [1, 1]} : vector<2x384xf32> to vector<2x128xf32>
    %40 = arith.mulf %29, %39 : vector<2x128xf32>
    %41 = arith.addf %38, %40 : vector<2x128xf32>
    %42 = math.tanh %41 : vector<2x128xf32>
    %cst_27 = arith.constant 1.000000e+00 : f32
    %43 = vector.broadcast %cst_27 : f32 to vector<2x128xf32>
    %44 = arith.subf %43, %37 : vector<2x128xf32>
    %45 = arith.mulf %44, %42 : vector<2x128xf32>
    %46 = arith.mulf %37, %15 : vector<2x128xf32>
    %47 = arith.addf %45, %46 : vector<2x128xf32>
    %48 = arith.truncf %47 : vector<2x128xf32> to vector<2x128xbf16>
    %cst_28 = arith.constant dense<0.000000e+00> : vector<2x384xf32>
    %49 = tpu.matmul %48, %10, %cst_28 {dimension_numbers = #tpu.dot_dimension_numbers<[1], [0], [0], [1], [0, 0, 1, 1], [], []>} : vector<2x128xbf16>, vector<128x384xbf16>, vector<2x384xf32> -> vector<2x384xf32>
    %50 = vector.broadcast %13 : vector<1x384xf32> to vector<2x384xf32>
    %51 = arith.addf %49, %50 : vector<2x384xf32>
    %52 = arith.truncf %16 : vector<2x128xf32> to vector<2x128xbf16>
    %cst_29 = arith.constant dense<0.000000e+00> : vector<2x384xf32>
    %53 = tpu.matmul %52, %11, %cst_29 {dimension_numbers = #tpu.dot_dimension_numbers<[1], [0], [0], [1], [0, 0, 1, 1], [], []>} : vector<2x128xbf16>, vector<128x384xbf16>, vector<2x384xf32> -> vector<2x384xf32>
    %54 = vector.broadcast %14 : vector<1x384xf32> to vector<2x384xf32>
    %55 = arith.addf %53, %54 : vector<2x384xf32>
    %56 = vector.extract_strided_slice %51 {offsets = [0, 0], sizes = [2, 128], strides = [1, 1]} : vector<2x384xf32> to vector<2x128xf32>
    %57 = vector.extract_strided_slice %55 {offsets = [0, 0], sizes = [2, 128], strides = [1, 1]} : vector<2x384xf32> to vector<2x128xf32>
    %58 = arith.addf %56, %57 : vector<2x128xf32>
    %59 = arith.negf %58 : vector<2x128xf32>
    %60 = math.exp %59 : vector<2x128xf32>
    %cst_30 = arith.constant 1.000000e+00 : f32
    %61 = vector.broadcast %cst_30 : f32 to vector<2x128xf32>
    %62 = arith.addf %61, %60 : vector<2x128xf32>
    %63 = arith.divf %61, %62 : vector<2x128xf32>
    %64 = vector.extract_strided_slice %51 {offsets = [0, 128], sizes = [2, 128], strides = [1, 1]} : vector<2x384xf32> to vector<2x128xf32>
    %65 = vector.extract_strided_slice %55 {offsets = [0, 128], sizes = [2, 128], strides = [1, 1]} : vector<2x384xf32> to vector<2x128xf32>
    %66 = arith.addf %64, %65 : vector<2x128xf32>
    %67 = arith.negf %66 : vector<2x128xf32>
    %68 = math.exp %67 : vector<2x128xf32>
    %cst_31 = arith.constant 1.000000e+00 : f32
    %69 = vector.broadcast %cst_31 : f32 to vector<2x128xf32>
    %70 = arith.addf %69, %68 : vector<2x128xf32>
    %71 = arith.divf %69, %70 : vector<2x128xf32>
    %72 = vector.extract_strided_slice %51 {offsets = [0, 256], sizes = [2, 128], strides = [1, 1]} : vector<2x384xf32> to vector<2x128xf32>
    %73 = vector.extract_strided_slice %55 {offsets = [0, 256], sizes = [2, 128], strides = [1, 1]} : vector<2x384xf32> to vector<2x128xf32>
    %74 = arith.mulf %63, %73 : vector<2x128xf32>
    %75 = arith.addf %72, %74 : vector<2x128xf32>
    %76 = math.tanh %75 : vector<2x128xf32>
    %cst_32 = arith.constant 1.000000e+00 : f32
    %77 = vector.broadcast %cst_32 : f32 to vector<2x128xf32>
    %78 = arith.subf %77, %71 : vector<2x128xf32>
    %79 = arith.mulf %78, %76 : vector<2x128xf32>
    %80 = arith.mulf %71, %16 : vector<2x128xf32>
    %81 = arith.addf %79, %80 : vector<2x128xf32>
    %82 = vector.extract_strided_slice %5 {offsets = [2, 0], sizes = [2, 384], strides = [1, 1]} : vector<16x384xf32> to vector<2x384xf32>
    %83 = arith.truncf %47 : vector<2x128xf32> to vector<2x128xbf16>
    %cst_33 = arith.constant dense<0.000000e+00> : vector<2x384xf32>
    %84 = tpu.matmul %83, %9, %cst_33 {dimension_numbers = #tpu.dot_dimension_numbers<[1], [0], [0], [1], [0, 0, 1, 1], [], []>} : vector<2x128xbf16>, vector<128x384xbf16>, vector<2x384xf32> -> vector<2x384xf32>
    %85 = vector.broadcast %12 : vector<1x384xf32> to vector<2x384xf32>
    %86 = arith.addf %84, %85 : vector<2x384xf32>
    %87 = vector.extract_strided_slice %82 {offsets = [0, 0], sizes = [2, 128], strides = [1, 1]} : vector<2x384xf32> to vector<2x128xf32>
    %88 = vector.extract_strided_slice %86 {offsets = [0, 0], sizes = [2, 128], strides = [1, 1]} : vector<2x384xf32> to vector<2x128xf32>
    %89 = arith.addf %87, %88 : vector<2x128xf32>
    %90 = arith.negf %89 : vector<2x128xf32>
    %91 = math.exp %90 : vector<2x128xf32>
    %cst_34 = arith.constant 1.000000e+00 : f32
    %92 = vector.broadcast %cst_34 : f32 to vector<2x128xf32>
    %93 = arith.addf %92, %91 : vector<2x128xf32>
    %94 = arith.divf %92, %93 : vector<2x128xf32>
    %95 = vector.extract_strided_slice %82 {offsets = [0, 128], sizes = [2, 128], strides = [1, 1]} : vector<2x384xf32> to vector<2x128xf32>
    %96 = vector.extract_strided_slice %86 {offsets = [0, 128], sizes = [2, 128], strides = [1, 1]} : vector<2x384xf32> to vector<2x128xf32>
    %97 = arith.addf %95, %96 : vector<2x128xf32>
    %98 = arith.negf %97 : vector<2x128xf32>
    %99 = math.exp %98 : vector<2x128xf32>
    %cst_35 = arith.constant 1.000000e+00 : f32
    %100 = vector.broadcast %cst_35 : f32 to vector<2x128xf32>
    %101 = arith.addf %100, %99 : vector<2x128xf32>
    %102 = arith.divf %100, %101 : vector<2x128xf32>
    %103 = vector.extract_strided_slice %82 {offsets = [0, 256], sizes = [2, 128], strides = [1, 1]} : vector<2x384xf32> to vector<2x128xf32>
    %104 = vector.extract_strided_slice %86 {offsets = [0, 256], sizes = [2, 128], strides = [1, 1]} : vector<2x384xf32> to vector<2x128xf32>
    %105 = arith.mulf %94, %104 : vector<2x128xf32>
    %106 = arith.addf %103, %105 : vector<2x128xf32>
    %107 = math.tanh %106 : vector<2x128xf32>
    %cst_36 = arith.constant 1.000000e+00 : f32
    %108 = vector.broadcast %cst_36 : f32 to vector<2x128xf32>
    %109 = arith.subf %108, %102 : vector<2x128xf32>
    %110 = arith.mulf %109, %107 : vector<2x128xf32>
    %111 = arith.mulf %102, %47 : vector<2x128xf32>
    %112 = arith.addf %110, %111 : vector<2x128xf32>
    %113 = arith.truncf %112 : vector<2x128xf32> to vector<2x128xbf16>
    %cst_37 = arith.constant dense<0.000000e+00> : vector<2x384xf32>
    %114 = tpu.matmul %113, %10, %cst_37 {dimension_numbers = #tpu.dot_dimension_numbers<[1], [0], [0], [1], [0, 0, 1, 1], [], []>} : vector<2x128xbf16>, vector<128x384xbf16>, vector<2x384xf32> -> vector<2x384xf32>
    %115 = vector.broadcast %13 : vector<1x384xf32> to vector<2x384xf32>
    %116 = arith.addf %114, %115 : vector<2x384xf32>
    %117 = arith.truncf %81 : vector<2x128xf32> to vector<2x128xbf16>
    %cst_38 = arith.constant dense<0.000000e+00> : vector<2x384xf32>
    %118 = tpu.matmul %117, %11, %cst_38 {dimension_numbers = #tpu.dot_dimension_numbers<[1], [0], [0], [1], [0, 0, 1, 1], [], []>} : vector<2x128xbf16>, vector<128x384xbf16>, vector<2x384xf32> -> vector<2x384xf32>
    %119 = vector.broadcast %14 : vector<1x384xf32> to vector<2x384xf32>
    %120 = arith.addf %118, %119 : vector<2x384xf32>
    %121 = vector.extract_strided_slice %116 {offsets = [0, 0], sizes = [2, 128], strides = [1, 1]} : vector<2x384xf32> to vector<2x128xf32>
    %122 = vector.extract_strided_slice %120 {offsets = [0, 0], sizes = [2, 128], strides = [1, 1]} : vector<2x384xf32> to vector<2x128xf32>
    %123 = arith.addf %121, %122 : vector<2x128xf32>
    %124 = arith.negf %123 : vector<2x128xf32>
    %125 = math.exp %124 : vector<2x128xf32>
    %cst_39 = arith.constant 1.000000e+00 : f32
    %126 = vector.broadcast %cst_39 : f32 to vector<2x128xf32>
    %127 = arith.addf %126, %125 : vector<2x128xf32>
    %128 = arith.divf %126, %127 : vector<2x128xf32>
    %129 = vector.extract_strided_slice %116 {offsets = [0, 128], sizes = [2, 128], strides = [1, 1]} : vector<2x384xf32> to vector<2x128xf32>
    %130 = vector.extract_strided_slice %120 {offsets = [0, 128], sizes = [2, 128], strides = [1, 1]} : vector<2x384xf32> to vector<2x128xf32>
    %131 = arith.addf %129, %130 : vector<2x128xf32>
    %132 = arith.negf %131 : vector<2x128xf32>
    %133 = math.exp %132 : vector<2x128xf32>
    %cst_40 = arith.constant 1.000000e+00 : f32
    %134 = vector.broadcast %cst_40 : f32 to vector<2x128xf32>
    %135 = arith.addf %134, %133 : vector<2x128xf32>
    %136 = arith.divf %134, %135 : vector<2x128xf32>
    %137 = vector.extract_strided_slice %116 {offsets = [0, 256], sizes = [2, 128], strides = [1, 1]} : vector<2x384xf32> to vector<2x128xf32>
    %138 = vector.extract_strided_slice %120 {offsets = [0, 256], sizes = [2, 128], strides = [1, 1]} : vector<2x384xf32> to vector<2x128xf32>
    %139 = arith.mulf %128, %138 : vector<2x128xf32>
    %140 = arith.addf %137, %139 : vector<2x128xf32>
    %141 = math.tanh %140 : vector<2x128xf32>
    %cst_41 = arith.constant 1.000000e+00 : f32
    %142 = vector.broadcast %cst_41 : f32 to vector<2x128xf32>
    %143 = arith.subf %142, %136 : vector<2x128xf32>
    %144 = arith.mulf %143, %141 : vector<2x128xf32>
    %145 = arith.mulf %136, %81 : vector<2x128xf32>
    %146 = arith.addf %144, %145 : vector<2x128xf32>
    %147 = vector.extract_strided_slice %5 {offsets = [4, 0], sizes = [2, 384], strides = [1, 1]} : vector<16x384xf32> to vector<2x384xf32>
    %148 = arith.truncf %112 : vector<2x128xf32> to vector<2x128xbf16>
    %cst_42 = arith.constant dense<0.000000e+00> : vector<2x384xf32>
    %149 = tpu.matmul %148, %9, %cst_42 {dimension_numbers = #tpu.dot_dimension_numbers<[1], [0], [0], [1], [0, 0, 1, 1], [], []>} : vector<2x128xbf16>, vector<128x384xbf16>, vector<2x384xf32> -> vector<2x384xf32>
    %150 = vector.broadcast %12 : vector<1x384xf32> to vector<2x384xf32>
    %151 = arith.addf %149, %150 : vector<2x384xf32>
    %152 = vector.extract_strided_slice %147 {offsets = [0, 0], sizes = [2, 128], strides = [1, 1]} : vector<2x384xf32> to vector<2x128xf32>
    %153 = vector.extract_strided_slice %151 {offsets = [0, 0], sizes = [2, 128], strides = [1, 1]} : vector<2x384xf32> to vector<2x128xf32>
    %154 = arith.addf %152, %153 : vector<2x128xf32>
    %155 = arith.negf %154 : vector<2x128xf32>
    %156 = math.exp %155 : vector<2x128xf32>
    %cst_43 = arith.constant 1.000000e+00 : f32
    %157 = vector.broadcast %cst_43 : f32 to vector<2x128xf32>
    %158 = arith.addf %157, %156 : vector<2x128xf32>
    %159 = arith.divf %157, %158 : vector<2x128xf32>
    %160 = vector.extract_strided_slice %147 {offsets = [0, 128], sizes = [2, 128], strides = [1, 1]} : vector<2x384xf32> to vector<2x128xf32>
    %161 = vector.extract_strided_slice %151 {offsets = [0, 128], sizes = [2, 128], strides = [1, 1]} : vector<2x384xf32> to vector<2x128xf32>
    %162 = arith.addf %160, %161 : vector<2x128xf32>
    %163 = arith.negf %162 : vector<2x128xf32>
    %164 = math.exp %163 : vector<2x128xf32>
    %cst_44 = arith.constant 1.000000e+00 : f32
    %165 = vector.broadcast %cst_44 : f32 to vector<2x128xf32>
    %166 = arith.addf %165, %164 : vector<2x128xf32>
    %167 = arith.divf %165, %166 : vector<2x128xf32>
    %168 = vector.extract_strided_slice %147 {offsets = [0, 256], sizes = [2, 128], strides = [1, 1]} : vector<2x384xf32> to vector<2x128xf32>
    %169 = vector.extract_strided_slice %151 {offsets = [0, 256], sizes = [2, 128], strides = [1, 1]} : vector<2x384xf32> to vector<2x128xf32>
    %170 = arith.mulf %159, %169 : vector<2x128xf32>
    %171 = arith.addf %168, %170 : vector<2x128xf32>
    %172 = math.tanh %171 : vector<2x128xf32>
    %cst_45 = arith.constant 1.000000e+00 : f32
    %173 = vector.broadcast %cst_45 : f32 to vector<2x128xf32>
    %174 = arith.subf %173, %167 : vector<2x128xf32>
    %175 = arith.mulf %174, %172 : vector<2x128xf32>
    %176 = arith.mulf %167, %112 : vector<2x128xf32>
    %177 = arith.addf %175, %176 : vector<2x128xf32>
    %178 = arith.truncf %177 : vector<2x128xf32> to vector<2x128xbf16>
    %cst_46 = arith.constant dense<0.000000e+00> : vector<2x384xf32>
    %179 = tpu.matmul %178, %10, %cst_46 {dimension_numbers = #tpu.dot_dimension_numbers<[1], [0], [0], [1], [0, 0, 1, 1], [], []>} : vector<2x128xbf16>, vector<128x384xbf16>, vector<2x384xf32> -> vector<2x384xf32>
    %180 = vector.broadcast %13 : vector<1x384xf32> to vector<2x384xf32>
    %181 = arith.addf %179, %180 : vector<2x384xf32>
    %182 = arith.truncf %146 : vector<2x128xf32> to vector<2x128xbf16>
    %cst_47 = arith.constant dense<0.000000e+00> : vector<2x384xf32>
    %183 = tpu.matmul %182, %11, %cst_47 {dimension_numbers = #tpu.dot_dimension_numbers<[1], [0], [0], [1], [0, 0, 1, 1], [], []>} : vector<2x128xbf16>, vector<128x384xbf16>, vector<2x384xf32> -> vector<2x384xf32>
    %184 = vector.broadcast %14 : vector<1x384xf32> to vector<2x384xf32>
    %185 = arith.addf %183, %184 : vector<2x384xf32>
    %186 = vector.extract_strided_slice %181 {offsets = [0, 0], sizes = [2, 128], strides = [1, 1]} : vector<2x384xf32> to vector<2x128xf32>
    %187 = vector.extract_strided_slice %185 {offsets = [0, 0], sizes = [2, 128], strides = [1, 1]} : vector<2x384xf32> to vector<2x128xf32>
    %188 = arith.addf %186, %187 : vector<2x128xf32>
    %189 = arith.negf %188 : vector<2x128xf32>
    %190 = math.exp %189 : vector<2x128xf32>
    %cst_48 = arith.constant 1.000000e+00 : f32
    %191 = vector.broadcast %cst_48 : f32 to vector<2x128xf32>
    %192 = arith.addf %191, %190 : vector<2x128xf32>
    %193 = arith.divf %191, %192 : vector<2x128xf32>
    %194 = vector.extract_strided_slice %181 {offsets = [0, 128], sizes = [2, 128], strides = [1, 1]} : vector<2x384xf32> to vector<2x128xf32>
    %195 = vector.extract_strided_slice %185 {offsets = [0, 128], sizes = [2, 128], strides = [1, 1]} : vector<2x384xf32> to vector<2x128xf32>
    %196 = arith.addf %194, %195 : vector<2x128xf32>
    %197 = arith.negf %196 : vector<2x128xf32>
    %198 = math.exp %197 : vector<2x128xf32>
    %cst_49 = arith.constant 1.000000e+00 : f32
    %199 = vector.broadcast %cst_49 : f32 to vector<2x128xf32>
    %200 = arith.addf %199, %198 : vector<2x128xf32>
    %201 = arith.divf %199, %200 : vector<2x128xf32>
    %202 = vector.extract_strided_slice %181 {offsets = [0, 256], sizes = [2, 128], strides = [1, 1]} : vector<2x384xf32> to vector<2x128xf32>
    %203 = vector.extract_strided_slice %185 {offsets = [0, 256], sizes = [2, 128], strides = [1, 1]} : vector<2x384xf32> to vector<2x128xf32>
    %204 = arith.mulf %193, %203 : vector<2x128xf32>
    %205 = arith.addf %202, %204 : vector<2x128xf32>
    %206 = math.tanh %205 : vector<2x128xf32>
    %cst_50 = arith.constant 1.000000e+00 : f32
    %207 = vector.broadcast %cst_50 : f32 to vector<2x128xf32>
    %208 = arith.subf %207, %201 : vector<2x128xf32>
    %209 = arith.mulf %208, %206 : vector<2x128xf32>
    %210 = arith.mulf %201, %146 : vector<2x128xf32>
    %211 = arith.addf %209, %210 : vector<2x128xf32>
    %212 = vector.extract_strided_slice %5 {offsets = [6, 0], sizes = [2, 384], strides = [1, 1]} : vector<16x384xf32> to vector<2x384xf32>
    %213 = arith.truncf %177 : vector<2x128xf32> to vector<2x128xbf16>
    %cst_51 = arith.constant dense<0.000000e+00> : vector<2x384xf32>
    %214 = tpu.matmul %213, %9, %cst_51 {dimension_numbers = #tpu.dot_dimension_numbers<[1], [0], [0], [1], [0, 0, 1, 1], [], []>} : vector<2x128xbf16>, vector<128x384xbf16>, vector<2x384xf32> -> vector<2x384xf32>
    %215 = vector.broadcast %12 : vector<1x384xf32> to vector<2x384xf32>
    %216 = arith.addf %214, %215 : vector<2x384xf32>
    %217 = vector.extract_strided_slice %212 {offsets = [0, 0], sizes = [2, 128], strides = [1, 1]} : vector<2x384xf32> to vector<2x128xf32>
    %218 = vector.extract_strided_slice %216 {offsets = [0, 0], sizes = [2, 128], strides = [1, 1]} : vector<2x384xf32> to vector<2x128xf32>
    %219 = arith.addf %217, %218 : vector<2x128xf32>
    %220 = arith.negf %219 : vector<2x128xf32>
    %221 = math.exp %220 : vector<2x128xf32>
    %cst_52 = arith.constant 1.000000e+00 : f32
    %222 = vector.broadcast %cst_52 : f32 to vector<2x128xf32>
    %223 = arith.addf %222, %221 : vector<2x128xf32>
    %224 = arith.divf %222, %223 : vector<2x128xf32>
    %225 = vector.extract_strided_slice %212 {offsets = [0, 128], sizes = [2, 128], strides = [1, 1]} : vector<2x384xf32> to vector<2x128xf32>
    %226 = vector.extract_strided_slice %216 {offsets = [0, 128], sizes = [2, 128], strides = [1, 1]} : vector<2x384xf32> to vector<2x128xf32>
    %227 = arith.addf %225, %226 : vector<2x128xf32>
    %228 = arith.negf %227 : vector<2x128xf32>
    %229 = math.exp %228 : vector<2x128xf32>
    %cst_53 = arith.constant 1.000000e+00 : f32
    %230 = vector.broadcast %cst_53 : f32 to vector<2x128xf32>
    %231 = arith.addf %230, %229 : vector<2x128xf32>
    %232 = arith.divf %230, %231 : vector<2x128xf32>
    %233 = vector.extract_strided_slice %212 {offsets = [0, 256], sizes = [2, 128], strides = [1, 1]} : vector<2x384xf32> to vector<2x128xf32>
    %234 = vector.extract_strided_slice %216 {offsets = [0, 256], sizes = [2, 128], strides = [1, 1]} : vector<2x384xf32> to vector<2x128xf32>
    %235 = arith.mulf %224, %234 : vector<2x128xf32>
    %236 = arith.addf %233, %235 : vector<2x128xf32>
    %237 = math.tanh %236 : vector<2x128xf32>
    %cst_54 = arith.constant 1.000000e+00 : f32
    %238 = vector.broadcast %cst_54 : f32 to vector<2x128xf32>
    %239 = arith.subf %238, %232 : vector<2x128xf32>
    %240 = arith.mulf %239, %237 : vector<2x128xf32>
    %241 = arith.mulf %232, %177 : vector<2x128xf32>
    %242 = arith.addf %240, %241 : vector<2x128xf32>
    %243 = arith.truncf %242 : vector<2x128xf32> to vector<2x128xbf16>
    %cst_55 = arith.constant dense<0.000000e+00> : vector<2x384xf32>
    %244 = tpu.matmul %243, %10, %cst_55 {dimension_numbers = #tpu.dot_dimension_numbers<[1], [0], [0], [1], [0, 0, 1, 1], [], []>} : vector<2x128xbf16>, vector<128x384xbf16>, vector<2x384xf32> -> vector<2x384xf32>
    %245 = vector.broadcast %13 : vector<1x384xf32> to vector<2x384xf32>
    %246 = arith.addf %244, %245 : vector<2x384xf32>
    %247 = arith.truncf %211 : vector<2x128xf32> to vector<2x128xbf16>
    %cst_56 = arith.constant dense<0.000000e+00> : vector<2x384xf32>
    %248 = tpu.matmul %247, %11, %cst_56 {dimension_numbers = #tpu.dot_dimension_numbers<[1], [0], [0], [1], [0, 0, 1, 1], [], []>} : vector<2x128xbf16>, vector<128x384xbf16>, vector<2x384xf32> -> vector<2x384xf32>
    %249 = vector.broadcast %14 : vector<1x384xf32> to vector<2x384xf32>
    %250 = arith.addf %248, %249 : vector<2x384xf32>
    %251 = vector.extract_strided_slice %246 {offsets = [0, 0], sizes = [2, 128], strides = [1, 1]} : vector<2x384xf32> to vector<2x128xf32>
    %252 = vector.extract_strided_slice %250 {offsets = [0, 0], sizes = [2, 128], strides = [1, 1]} : vector<2x384xf32> to vector<2x128xf32>
    %253 = arith.addf %251, %252 : vector<2x128xf32>
    %254 = arith.negf %253 : vector<2x128xf32>
    %255 = math.exp %254 : vector<2x128xf32>
    %cst_57 = arith.constant 1.000000e+00 : f32
    %256 = vector.broadcast %cst_57 : f32 to vector<2x128xf32>
    %257 = arith.addf %256, %255 : vector<2x128xf32>
    %258 = arith.divf %256, %257 : vector<2x128xf32>
    %259 = vector.extract_strided_slice %246 {offsets = [0, 128], sizes = [2, 128], strides = [1, 1]} : vector<2x384xf32> to vector<2x128xf32>
    %260 = vector.extract_strided_slice %250 {offsets = [0, 128], sizes = [2, 128], strides = [1, 1]} : vector<2x384xf32> to vector<2x128xf32>
    %261 = arith.addf %259, %260 : vector<2x128xf32>
    %262 = arith.negf %261 : vector<2x128xf32>
    %263 = math.exp %262 : vector<2x128xf32>
    %cst_58 = arith.constant 1.000000e+00 : f32
    %264 = vector.broadcast %cst_58 : f32 to vector<2x128xf32>
    %265 = arith.addf %264, %263 : vector<2x128xf32>
    %266 = arith.divf %264, %265 : vector<2x128xf32>
    %267 = vector.extract_strided_slice %246 {offsets = [0, 256], sizes = [2, 128], strides = [1, 1]} : vector<2x384xf32> to vector<2x128xf32>
    %268 = vector.extract_strided_slice %250 {offsets = [0, 256], sizes = [2, 128], strides = [1, 1]} : vector<2x384xf32> to vector<2x128xf32>
    %269 = arith.mulf %258, %268 : vector<2x128xf32>
    %270 = arith.addf %267, %269 : vector<2x128xf32>
    %271 = math.tanh %270 : vector<2x128xf32>
    %cst_59 = arith.constant 1.000000e+00 : f32
    %272 = vector.broadcast %cst_59 : f32 to vector<2x128xf32>
    %273 = arith.subf %272, %266 : vector<2x128xf32>
    %274 = arith.mulf %273, %271 : vector<2x128xf32>
    %275 = arith.mulf %266, %211 : vector<2x128xf32>
    %276 = arith.addf %274, %275 : vector<2x128xf32>
    %277 = vector.extract_strided_slice %5 {offsets = [8, 0], sizes = [2, 384], strides = [1, 1]} : vector<16x384xf32> to vector<2x384xf32>
    %278 = arith.truncf %242 : vector<2x128xf32> to vector<2x128xbf16>
    %cst_60 = arith.constant dense<0.000000e+00> : vector<2x384xf32>
    %279 = tpu.matmul %278, %9, %cst_60 {dimension_numbers = #tpu.dot_dimension_numbers<[1], [0], [0], [1], [0, 0, 1, 1], [], []>} : vector<2x128xbf16>, vector<128x384xbf16>, vector<2x384xf32> -> vector<2x384xf32>
    %280 = vector.broadcast %12 : vector<1x384xf32> to vector<2x384xf32>
    %281 = arith.addf %279, %280 : vector<2x384xf32>
    %282 = vector.extract_strided_slice %277 {offsets = [0, 0], sizes = [2, 128], strides = [1, 1]} : vector<2x384xf32> to vector<2x128xf32>
    %283 = vector.extract_strided_slice %281 {offsets = [0, 0], sizes = [2, 128], strides = [1, 1]} : vector<2x384xf32> to vector<2x128xf32>
    %284 = arith.addf %282, %283 : vector<2x128xf32>
    %285 = arith.negf %284 : vector<2x128xf32>
    %286 = math.exp %285 : vector<2x128xf32>
    %cst_61 = arith.constant 1.000000e+00 : f32
    %287 = vector.broadcast %cst_61 : f32 to vector<2x128xf32>
    %288 = arith.addf %287, %286 : vector<2x128xf32>
    %289 = arith.divf %287, %288 : vector<2x128xf32>
    %290 = vector.extract_strided_slice %277 {offsets = [0, 128], sizes = [2, 128], strides = [1, 1]} : vector<2x384xf32> to vector<2x128xf32>
    %291 = vector.extract_strided_slice %281 {offsets = [0, 128], sizes = [2, 128], strides = [1, 1]} : vector<2x384xf32> to vector<2x128xf32>
    %292 = arith.addf %290, %291 : vector<2x128xf32>
    %293 = arith.negf %292 : vector<2x128xf32>
    %294 = math.exp %293 : vector<2x128xf32>
    %cst_62 = arith.constant 1.000000e+00 : f32
    %295 = vector.broadcast %cst_62 : f32 to vector<2x128xf32>
    %296 = arith.addf %295, %294 : vector<2x128xf32>
    %297 = arith.divf %295, %296 : vector<2x128xf32>
    %298 = vector.extract_strided_slice %277 {offsets = [0, 256], sizes = [2, 128], strides = [1, 1]} : vector<2x384xf32> to vector<2x128xf32>
    %299 = vector.extract_strided_slice %281 {offsets = [0, 256], sizes = [2, 128], strides = [1, 1]} : vector<2x384xf32> to vector<2x128xf32>
    %300 = arith.mulf %289, %299 : vector<2x128xf32>
    %301 = arith.addf %298, %300 : vector<2x128xf32>
    %302 = math.tanh %301 : vector<2x128xf32>
    %cst_63 = arith.constant 1.000000e+00 : f32
    %303 = vector.broadcast %cst_63 : f32 to vector<2x128xf32>
    %304 = arith.subf %303, %297 : vector<2x128xf32>
    %305 = arith.mulf %304, %302 : vector<2x128xf32>
    %306 = arith.mulf %297, %242 : vector<2x128xf32>
    %307 = arith.addf %305, %306 : vector<2x128xf32>
    %308 = arith.truncf %307 : vector<2x128xf32> to vector<2x128xbf16>
    %cst_64 = arith.constant dense<0.000000e+00> : vector<2x384xf32>
    %309 = tpu.matmul %308, %10, %cst_64 {dimension_numbers = #tpu.dot_dimension_numbers<[1], [0], [0], [1], [0, 0, 1, 1], [], []>} : vector<2x128xbf16>, vector<128x384xbf16>, vector<2x384xf32> -> vector<2x384xf32>
    %310 = vector.broadcast %13 : vector<1x384xf32> to vector<2x384xf32>
    %311 = arith.addf %309, %310 : vector<2x384xf32>
    %312 = arith.truncf %276 : vector<2x128xf32> to vector<2x128xbf16>
    %cst_65 = arith.constant dense<0.000000e+00> : vector<2x384xf32>
    %313 = tpu.matmul %312, %11, %cst_65 {dimension_numbers = #tpu.dot_dimension_numbers<[1], [0], [0], [1], [0, 0, 1, 1], [], []>} : vector<2x128xbf16>, vector<128x384xbf16>, vector<2x384xf32> -> vector<2x384xf32>
    %314 = vector.broadcast %14 : vector<1x384xf32> to vector<2x384xf32>
    %315 = arith.addf %313, %314 : vector<2x384xf32>
    %316 = vector.extract_strided_slice %311 {offsets = [0, 0], sizes = [2, 128], strides = [1, 1]} : vector<2x384xf32> to vector<2x128xf32>
    %317 = vector.extract_strided_slice %315 {offsets = [0, 0], sizes = [2, 128], strides = [1, 1]} : vector<2x384xf32> to vector<2x128xf32>
    %318 = arith.addf %316, %317 : vector<2x128xf32>
    %319 = arith.negf %318 : vector<2x128xf32>
    %320 = math.exp %319 : vector<2x128xf32>
    %cst_66 = arith.constant 1.000000e+00 : f32
    %321 = vector.broadcast %cst_66 : f32 to vector<2x128xf32>
    %322 = arith.addf %321, %320 : vector<2x128xf32>
    %323 = arith.divf %321, %322 : vector<2x128xf32>
    %324 = vector.extract_strided_slice %311 {offsets = [0, 128], sizes = [2, 128], strides = [1, 1]} : vector<2x384xf32> to vector<2x128xf32>
    %325 = vector.extract_strided_slice %315 {offsets = [0, 128], sizes = [2, 128], strides = [1, 1]} : vector<2x384xf32> to vector<2x128xf32>
    %326 = arith.addf %324, %325 : vector<2x128xf32>
    %327 = arith.negf %326 : vector<2x128xf32>
    %328 = math.exp %327 : vector<2x128xf32>
    %cst_67 = arith.constant 1.000000e+00 : f32
    %329 = vector.broadcast %cst_67 : f32 to vector<2x128xf32>
    %330 = arith.addf %329, %328 : vector<2x128xf32>
    %331 = arith.divf %329, %330 : vector<2x128xf32>
    %332 = vector.extract_strided_slice %311 {offsets = [0, 256], sizes = [2, 128], strides = [1, 1]} : vector<2x384xf32> to vector<2x128xf32>
    %333 = vector.extract_strided_slice %315 {offsets = [0, 256], sizes = [2, 128], strides = [1, 1]} : vector<2x384xf32> to vector<2x128xf32>
    %334 = arith.mulf %323, %333 : vector<2x128xf32>
    %335 = arith.addf %332, %334 : vector<2x128xf32>
    %336 = math.tanh %335 : vector<2x128xf32>
    %cst_68 = arith.constant 1.000000e+00 : f32
    %337 = vector.broadcast %cst_68 : f32 to vector<2x128xf32>
    %338 = arith.subf %337, %331 : vector<2x128xf32>
    %339 = arith.mulf %338, %336 : vector<2x128xf32>
    %340 = arith.mulf %331, %276 : vector<2x128xf32>
    %341 = arith.addf %339, %340 : vector<2x128xf32>
    %342 = vector.extract_strided_slice %5 {offsets = [10, 0], sizes = [2, 384], strides = [1, 1]} : vector<16x384xf32> to vector<2x384xf32>
    %343 = arith.truncf %307 : vector<2x128xf32> to vector<2x128xbf16>
    %cst_69 = arith.constant dense<0.000000e+00> : vector<2x384xf32>
    %344 = tpu.matmul %343, %9, %cst_69 {dimension_numbers = #tpu.dot_dimension_numbers<[1], [0], [0], [1], [0, 0, 1, 1], [], []>} : vector<2x128xbf16>, vector<128x384xbf16>, vector<2x384xf32> -> vector<2x384xf32>
    %345 = vector.broadcast %12 : vector<1x384xf32> to vector<2x384xf32>
    %346 = arith.addf %344, %345 : vector<2x384xf32>
    %347 = vector.extract_strided_slice %342 {offsets = [0, 0], sizes = [2, 128], strides = [1, 1]} : vector<2x384xf32> to vector<2x128xf32>
    %348 = vector.extract_strided_slice %346 {offsets = [0, 0], sizes = [2, 128], strides = [1, 1]} : vector<2x384xf32> to vector<2x128xf32>
    %349 = arith.addf %347, %348 : vector<2x128xf32>
    %350 = arith.negf %349 : vector<2x128xf32>
    %351 = math.exp %350 : vector<2x128xf32>
    %cst_70 = arith.constant 1.000000e+00 : f32
    %352 = vector.broadcast %cst_70 : f32 to vector<2x128xf32>
    %353 = arith.addf %352, %351 : vector<2x128xf32>
    %354 = arith.divf %352, %353 : vector<2x128xf32>
    %355 = vector.extract_strided_slice %342 {offsets = [0, 128], sizes = [2, 128], strides = [1, 1]} : vector<2x384xf32> to vector<2x128xf32>
    %356 = vector.extract_strided_slice %346 {offsets = [0, 128], sizes = [2, 128], strides = [1, 1]} : vector<2x384xf32> to vector<2x128xf32>
    %357 = arith.addf %355, %356 : vector<2x128xf32>
    %358 = arith.negf %357 : vector<2x128xf32>
    %359 = math.exp %358 : vector<2x128xf32>
    %cst_71 = arith.constant 1.000000e+00 : f32
    %360 = vector.broadcast %cst_71 : f32 to vector<2x128xf32>
    %361 = arith.addf %360, %359 : vector<2x128xf32>
    %362 = arith.divf %360, %361 : vector<2x128xf32>
    %363 = vector.extract_strided_slice %342 {offsets = [0, 256], sizes = [2, 128], strides = [1, 1]} : vector<2x384xf32> to vector<2x128xf32>
    %364 = vector.extract_strided_slice %346 {offsets = [0, 256], sizes = [2, 128], strides = [1, 1]} : vector<2x384xf32> to vector<2x128xf32>
    %365 = arith.mulf %354, %364 : vector<2x128xf32>
    %366 = arith.addf %363, %365 : vector<2x128xf32>
    %367 = math.tanh %366 : vector<2x128xf32>
    %cst_72 = arith.constant 1.000000e+00 : f32
    %368 = vector.broadcast %cst_72 : f32 to vector<2x128xf32>
    %369 = arith.subf %368, %362 : vector<2x128xf32>
    %370 = arith.mulf %369, %367 : vector<2x128xf32>
    %371 = arith.mulf %362, %307 : vector<2x128xf32>
    %372 = arith.addf %370, %371 : vector<2x128xf32>
    %373 = arith.truncf %372 : vector<2x128xf32> to vector<2x128xbf16>
    %cst_73 = arith.constant dense<0.000000e+00> : vector<2x384xf32>
    %374 = tpu.matmul %373, %10, %cst_73 {dimension_numbers = #tpu.dot_dimension_numbers<[1], [0], [0], [1], [0, 0, 1, 1], [], []>} : vector<2x128xbf16>, vector<128x384xbf16>, vector<2x384xf32> -> vector<2x384xf32>
    %375 = vector.broadcast %13 : vector<1x384xf32> to vector<2x384xf32>
    %376 = arith.addf %374, %375 : vector<2x384xf32>
    %377 = arith.truncf %341 : vector<2x128xf32> to vector<2x128xbf16>
    %cst_74 = arith.constant dense<0.000000e+00> : vector<2x384xf32>
    %378 = tpu.matmul %377, %11, %cst_74 {dimension_numbers = #tpu.dot_dimension_numbers<[1], [0], [0], [1], [0, 0, 1, 1], [], []>} : vector<2x128xbf16>, vector<128x384xbf16>, vector<2x384xf32> -> vector<2x384xf32>
    %379 = vector.broadcast %14 : vector<1x384xf32> to vector<2x384xf32>
    %380 = arith.addf %378, %379 : vector<2x384xf32>
    %381 = vector.extract_strided_slice %376 {offsets = [0, 0], sizes = [2, 128], strides = [1, 1]} : vector<2x384xf32> to vector<2x128xf32>
    %382 = vector.extract_strided_slice %380 {offsets = [0, 0], sizes = [2, 128], strides = [1, 1]} : vector<2x384xf32> to vector<2x128xf32>
    %383 = arith.addf %381, %382 : vector<2x128xf32>
    %384 = arith.negf %383 : vector<2x128xf32>
    %385 = math.exp %384 : vector<2x128xf32>
    %cst_75 = arith.constant 1.000000e+00 : f32
    %386 = vector.broadcast %cst_75 : f32 to vector<2x128xf32>
    %387 = arith.addf %386, %385 : vector<2x128xf32>
    %388 = arith.divf %386, %387 : vector<2x128xf32>
    %389 = vector.extract_strided_slice %376 {offsets = [0, 128], sizes = [2, 128], strides = [1, 1]} : vector<2x384xf32> to vector<2x128xf32>
    %390 = vector.extract_strided_slice %380 {offsets = [0, 128], sizes = [2, 128], strides = [1, 1]} : vector<2x384xf32> to vector<2x128xf32>
    %391 = arith.addf %389, %390 : vector<2x128xf32>
    %392 = arith.negf %391 : vector<2x128xf32>
    %393 = math.exp %392 : vector<2x128xf32>
    %cst_76 = arith.constant 1.000000e+00 : f32
    %394 = vector.broadcast %cst_76 : f32 to vector<2x128xf32>
    %395 = arith.addf %394, %393 : vector<2x128xf32>
    %396 = arith.divf %394, %395 : vector<2x128xf32>
    %397 = vector.extract_strided_slice %376 {offsets = [0, 256], sizes = [2, 128], strides = [1, 1]} : vector<2x384xf32> to vector<2x128xf32>
    %398 = vector.extract_strided_slice %380 {offsets = [0, 256], sizes = [2, 128], strides = [1, 1]} : vector<2x384xf32> to vector<2x128xf32>
    %399 = arith.mulf %388, %398 : vector<2x128xf32>
    %400 = arith.addf %397, %399 : vector<2x128xf32>
    %401 = math.tanh %400 : vector<2x128xf32>
    %cst_77 = arith.constant 1.000000e+00 : f32
    %402 = vector.broadcast %cst_77 : f32 to vector<2x128xf32>
    %403 = arith.subf %402, %396 : vector<2x128xf32>
    %404 = arith.mulf %403, %401 : vector<2x128xf32>
    %405 = arith.mulf %396, %341 : vector<2x128xf32>
    %406 = arith.addf %404, %405 : vector<2x128xf32>
    %407 = vector.extract_strided_slice %5 {offsets = [12, 0], sizes = [2, 384], strides = [1, 1]} : vector<16x384xf32> to vector<2x384xf32>
    %408 = arith.truncf %372 : vector<2x128xf32> to vector<2x128xbf16>
    %cst_78 = arith.constant dense<0.000000e+00> : vector<2x384xf32>
    %409 = tpu.matmul %408, %9, %cst_78 {dimension_numbers = #tpu.dot_dimension_numbers<[1], [0], [0], [1], [0, 0, 1, 1], [], []>} : vector<2x128xbf16>, vector<128x384xbf16>, vector<2x384xf32> -> vector<2x384xf32>
    %410 = vector.broadcast %12 : vector<1x384xf32> to vector<2x384xf32>
    %411 = arith.addf %409, %410 : vector<2x384xf32>
    %412 = vector.extract_strided_slice %407 {offsets = [0, 0], sizes = [2, 128], strides = [1, 1]} : vector<2x384xf32> to vector<2x128xf32>
    %413 = vector.extract_strided_slice %411 {offsets = [0, 0], sizes = [2, 128], strides = [1, 1]} : vector<2x384xf32> to vector<2x128xf32>
    %414 = arith.addf %412, %413 : vector<2x128xf32>
    %415 = arith.negf %414 : vector<2x128xf32>
    %416 = math.exp %415 : vector<2x128xf32>
    %cst_79 = arith.constant 1.000000e+00 : f32
    %417 = vector.broadcast %cst_79 : f32 to vector<2x128xf32>
    %418 = arith.addf %417, %416 : vector<2x128xf32>
    %419 = arith.divf %417, %418 : vector<2x128xf32>
    %420 = vector.extract_strided_slice %407 {offsets = [0, 128], sizes = [2, 128], strides = [1, 1]} : vector<2x384xf32> to vector<2x128xf32>
    %421 = vector.extract_strided_slice %411 {offsets = [0, 128], sizes = [2, 128], strides = [1, 1]} : vector<2x384xf32> to vector<2x128xf32>
    %422 = arith.addf %420, %421 : vector<2x128xf32>
    %423 = arith.negf %422 : vector<2x128xf32>
    %424 = math.exp %423 : vector<2x128xf32>
    %cst_80 = arith.constant 1.000000e+00 : f32
    %425 = vector.broadcast %cst_80 : f32 to vector<2x128xf32>
    %426 = arith.addf %425, %424 : vector<2x128xf32>
    %427 = arith.divf %425, %426 : vector<2x128xf32>
    %428 = vector.extract_strided_slice %407 {offsets = [0, 256], sizes = [2, 128], strides = [1, 1]} : vector<2x384xf32> to vector<2x128xf32>
    %429 = vector.extract_strided_slice %411 {offsets = [0, 256], sizes = [2, 128], strides = [1, 1]} : vector<2x384xf32> to vector<2x128xf32>
    %430 = arith.mulf %419, %429 : vector<2x128xf32>
    %431 = arith.addf %428, %430 : vector<2x128xf32>
    %432 = math.tanh %431 : vector<2x128xf32>
    %cst_81 = arith.constant 1.000000e+00 : f32
    %433 = vector.broadcast %cst_81 : f32 to vector<2x128xf32>
    %434 = arith.subf %433, %427 : vector<2x128xf32>
    %435 = arith.mulf %434, %432 : vector<2x128xf32>
    %436 = arith.mulf %427, %372 : vector<2x128xf32>
    %437 = arith.addf %435, %436 : vector<2x128xf32>
    %438 = arith.truncf %437 : vector<2x128xf32> to vector<2x128xbf16>
    %cst_82 = arith.constant dense<0.000000e+00> : vector<2x384xf32>
    %439 = tpu.matmul %438, %10, %cst_82 {dimension_numbers = #tpu.dot_dimension_numbers<[1], [0], [0], [1], [0, 0, 1, 1], [], []>} : vector<2x128xbf16>, vector<128x384xbf16>, vector<2x384xf32> -> vector<2x384xf32>
    %440 = vector.broadcast %13 : vector<1x384xf32> to vector<2x384xf32>
    %441 = arith.addf %439, %440 : vector<2x384xf32>
    %442 = arith.truncf %406 : vector<2x128xf32> to vector<2x128xbf16>
    %cst_83 = arith.constant dense<0.000000e+00> : vector<2x384xf32>
    %443 = tpu.matmul %442, %11, %cst_83 {dimension_numbers = #tpu.dot_dimension_numbers<[1], [0], [0], [1], [0, 0, 1, 1], [], []>} : vector<2x128xbf16>, vector<128x384xbf16>, vector<2x384xf32> -> vector<2x384xf32>
    %444 = vector.broadcast %14 : vector<1x384xf32> to vector<2x384xf32>
    %445 = arith.addf %443, %444 : vector<2x384xf32>
    %446 = vector.extract_strided_slice %441 {offsets = [0, 0], sizes = [2, 128], strides = [1, 1]} : vector<2x384xf32> to vector<2x128xf32>
    %447 = vector.extract_strided_slice %445 {offsets = [0, 0], sizes = [2, 128], strides = [1, 1]} : vector<2x384xf32> to vector<2x128xf32>
    %448 = arith.addf %446, %447 : vector<2x128xf32>
    %449 = arith.negf %448 : vector<2x128xf32>
    %450 = math.exp %449 : vector<2x128xf32>
    %cst_84 = arith.constant 1.000000e+00 : f32
    %451 = vector.broadcast %cst_84 : f32 to vector<2x128xf32>
    %452 = arith.addf %451, %450 : vector<2x128xf32>
    %453 = arith.divf %451, %452 : vector<2x128xf32>
    %454 = vector.extract_strided_slice %441 {offsets = [0, 128], sizes = [2, 128], strides = [1, 1]} : vector<2x384xf32> to vector<2x128xf32>
    %455 = vector.extract_strided_slice %445 {offsets = [0, 128], sizes = [2, 128], strides = [1, 1]} : vector<2x384xf32> to vector<2x128xf32>
    %456 = arith.addf %454, %455 : vector<2x128xf32>
    %457 = arith.negf %456 : vector<2x128xf32>
    %458 = math.exp %457 : vector<2x128xf32>
    %cst_85 = arith.constant 1.000000e+00 : f32
    %459 = vector.broadcast %cst_85 : f32 to vector<2x128xf32>
    %460 = arith.addf %459, %458 : vector<2x128xf32>
    %461 = arith.divf %459, %460 : vector<2x128xf32>
    %462 = vector.extract_strided_slice %441 {offsets = [0, 256], sizes = [2, 128], strides = [1, 1]} : vector<2x384xf32> to vector<2x128xf32>
    %463 = vector.extract_strided_slice %445 {offsets = [0, 256], sizes = [2, 128], strides = [1, 1]} : vector<2x384xf32> to vector<2x128xf32>
    %464 = arith.mulf %453, %463 : vector<2x128xf32>
    %465 = arith.addf %462, %464 : vector<2x128xf32>
    %466 = math.tanh %465 : vector<2x128xf32>
    %cst_86 = arith.constant 1.000000e+00 : f32
    %467 = vector.broadcast %cst_86 : f32 to vector<2x128xf32>
    %468 = arith.subf %467, %461 : vector<2x128xf32>
    %469 = arith.mulf %468, %466 : vector<2x128xf32>
    %470 = arith.mulf %461, %406 : vector<2x128xf32>
    %471 = arith.addf %469, %470 : vector<2x128xf32>
    %472 = vector.extract_strided_slice %5 {offsets = [14, 0], sizes = [2, 384], strides = [1, 1]} : vector<16x384xf32> to vector<2x384xf32>
    %473 = arith.truncf %437 : vector<2x128xf32> to vector<2x128xbf16>
    %cst_87 = arith.constant dense<0.000000e+00> : vector<2x384xf32>
    %474 = tpu.matmul %473, %9, %cst_87 {dimension_numbers = #tpu.dot_dimension_numbers<[1], [0], [0], [1], [0, 0, 1, 1], [], []>} : vector<2x128xbf16>, vector<128x384xbf16>, vector<2x384xf32> -> vector<2x384xf32>
    %475 = vector.broadcast %12 : vector<1x384xf32> to vector<2x384xf32>
    %476 = arith.addf %474, %475 : vector<2x384xf32>
    %477 = vector.extract_strided_slice %472 {offsets = [0, 0], sizes = [2, 128], strides = [1, 1]} : vector<2x384xf32> to vector<2x128xf32>
    %478 = vector.extract_strided_slice %476 {offsets = [0, 0], sizes = [2, 128], strides = [1, 1]} : vector<2x384xf32> to vector<2x128xf32>
    %479 = arith.addf %477, %478 : vector<2x128xf32>
    %480 = arith.negf %479 : vector<2x128xf32>
    %481 = math.exp %480 : vector<2x128xf32>
    %cst_88 = arith.constant 1.000000e+00 : f32
    %482 = vector.broadcast %cst_88 : f32 to vector<2x128xf32>
    %483 = arith.addf %482, %481 : vector<2x128xf32>
    %484 = arith.divf %482, %483 : vector<2x128xf32>
    %485 = vector.extract_strided_slice %472 {offsets = [0, 128], sizes = [2, 128], strides = [1, 1]} : vector<2x384xf32> to vector<2x128xf32>
    %486 = vector.extract_strided_slice %476 {offsets = [0, 128], sizes = [2, 128], strides = [1, 1]} : vector<2x384xf32> to vector<2x128xf32>
    %487 = arith.addf %485, %486 : vector<2x128xf32>
    %488 = arith.negf %487 : vector<2x128xf32>
    %489 = math.exp %488 : vector<2x128xf32>
    %cst_89 = arith.constant 1.000000e+00 : f32
    %490 = vector.broadcast %cst_89 : f32 to vector<2x128xf32>
    %491 = arith.addf %490, %489 : vector<2x128xf32>
    %492 = arith.divf %490, %491 : vector<2x128xf32>
    %493 = vector.extract_strided_slice %472 {offsets = [0, 256], sizes = [2, 128], strides = [1, 1]} : vector<2x384xf32> to vector<2x128xf32>
    %494 = vector.extract_strided_slice %476 {offsets = [0, 256], sizes = [2, 128], strides = [1, 1]} : vector<2x384xf32> to vector<2x128xf32>
    %495 = arith.mulf %484, %494 : vector<2x128xf32>
    %496 = arith.addf %493, %495 : vector<2x128xf32>
    %497 = math.tanh %496 : vector<2x128xf32>
    %cst_90 = arith.constant 1.000000e+00 : f32
    %498 = vector.broadcast %cst_90 : f32 to vector<2x128xf32>
    %499 = arith.subf %498, %492 : vector<2x128xf32>
    %500 = arith.mulf %499, %497 : vector<2x128xf32>
    %501 = arith.mulf %492, %437 : vector<2x128xf32>
    %502 = arith.addf %500, %501 : vector<2x128xf32>
    %503 = arith.truncf %502 : vector<2x128xf32> to vector<2x128xbf16>
    %cst_91 = arith.constant dense<0.000000e+00> : vector<2x384xf32>
    %504 = tpu.matmul %503, %10, %cst_91 {dimension_numbers = #tpu.dot_dimension_numbers<[1], [0], [0], [1], [0, 0, 1, 1], [], []>} : vector<2x128xbf16>, vector<128x384xbf16>, vector<2x384xf32> -> vector<2x384xf32>
    %505 = vector.broadcast %13 : vector<1x384xf32> to vector<2x384xf32>
    %506 = arith.addf %504, %505 : vector<2x384xf32>
    %507 = arith.truncf %471 : vector<2x128xf32> to vector<2x128xbf16>
    %cst_92 = arith.constant dense<0.000000e+00> : vector<2x384xf32>
    %508 = tpu.matmul %507, %11, %cst_92 {dimension_numbers = #tpu.dot_dimension_numbers<[1], [0], [0], [1], [0, 0, 1, 1], [], []>} : vector<2x128xbf16>, vector<128x384xbf16>, vector<2x384xf32> -> vector<2x384xf32>
    %509 = vector.broadcast %14 : vector<1x384xf32> to vector<2x384xf32>
    %510 = arith.addf %508, %509 : vector<2x384xf32>
    %511 = vector.extract_strided_slice %506 {offsets = [0, 0], sizes = [2, 128], strides = [1, 1]} : vector<2x384xf32> to vector<2x128xf32>
    %512 = vector.extract_strided_slice %510 {offsets = [0, 0], sizes = [2, 128], strides = [1, 1]} : vector<2x384xf32> to vector<2x128xf32>
    %513 = arith.addf %511, %512 : vector<2x128xf32>
    %514 = arith.negf %513 : vector<2x128xf32>
    %515 = math.exp %514 : vector<2x128xf32>
    %cst_93 = arith.constant 1.000000e+00 : f32
    %516 = vector.broadcast %cst_93 : f32 to vector<2x128xf32>
    %517 = arith.addf %516, %515 : vector<2x128xf32>
    %518 = arith.divf %516, %517 : vector<2x128xf32>
    %519 = vector.extract_strided_slice %506 {offsets = [0, 128], sizes = [2, 128], strides = [1, 1]} : vector<2x384xf32> to vector<2x128xf32>
    %520 = vector.extract_strided_slice %510 {offsets = [0, 128], sizes = [2, 128], strides = [1, 1]} : vector<2x384xf32> to vector<2x128xf32>
    %521 = arith.addf %519, %520 : vector<2x128xf32>
    %522 = arith.negf %521 : vector<2x128xf32>
    %523 = math.exp %522 : vector<2x128xf32>
    %cst_94 = arith.constant 1.000000e+00 : f32
    %524 = vector.broadcast %cst_94 : f32 to vector<2x128xf32>
    %525 = arith.addf %524, %523 : vector<2x128xf32>
    %526 = arith.divf %524, %525 : vector<2x128xf32>
    %527 = vector.extract_strided_slice %506 {offsets = [0, 256], sizes = [2, 128], strides = [1, 1]} : vector<2x384xf32> to vector<2x128xf32>
    %528 = vector.extract_strided_slice %510 {offsets = [0, 256], sizes = [2, 128], strides = [1, 1]} : vector<2x384xf32> to vector<2x128xf32>
    %529 = arith.mulf %518, %528 : vector<2x128xf32>
    %530 = arith.addf %527, %529 : vector<2x128xf32>
    %531 = math.tanh %530 : vector<2x128xf32>
    %cst_95 = arith.constant 1.000000e+00 : f32
    %532 = vector.broadcast %cst_95 : f32 to vector<2x128xf32>
    %533 = arith.subf %532, %526 : vector<2x128xf32>
    %534 = arith.mulf %533, %531 : vector<2x128xf32>
    %535 = arith.mulf %526, %471 : vector<2x128xf32>
    %536 = arith.addf %534, %535 : vector<2x128xf32>
    %537 = tpu.concatenate %81, %146, %211, %276, %341, %406, %471, %536 in 0 : vector<2x128xf32>, vector<2x128xf32>, vector<2x128xf32>, vector<2x128xf32>, vector<2x128xf32>, vector<2x128xf32>, vector<2x128xf32>, vector<2x128xf32> -> vector<16x128xf32>
    %538 = arith.truncf %537 : vector<16x128xf32> to vector<16x128xbf16>
    %539 = tpu.concatenate %8, %8, %8, %8, %8, %8, %8, %8 in 0 : vector<2x512xf32>, vector<2x512xf32>, vector<2x512xf32>, vector<2x512xf32>, vector<2x512xf32>, vector<2x512xf32>, vector<2x512xf32>, vector<2x512xf32> -> vector<16x512xf32>
    %c0_96 = arith.constant 0 : index
    %c0_97 = arith.constant 0 : index
    %540 = vector.load %arg11[%c0_96, %c0_97] : memref<128x512xbf16, #tpu.memory_space<vmem>>, vector<128x512xbf16>
    %cst_98 = arith.constant dense<0.000000e+00> : vector<16x512xf32>
    %541 = tpu.matmul %538, %540, %cst_98 {dimension_numbers = #tpu.dot_dimension_numbers<[1], [0], [0], [1], [0, 0, 1, 1], [], []>} : vector<16x128xbf16>, vector<128x512xbf16>, vector<16x512xf32> -> vector<16x512xf32>
    %542 = arith.addf %539, %541 : vector<16x512xf32>
    %c0_99 = arith.constant 0 : index
    %c0_100 = arith.constant 0 : index
    %543 = vector.load %arg12[%c0_99, %c0_100] : memref<1x512xf32, #tpu.memory_space<vmem>>, vector<1x512xf32>
    %544 = vector.broadcast %543 : vector<1x512xf32> to vector<16x512xf32>
    %545 = arith.addf %542, %544 : vector<16x512xf32>
    %cst_101 = arith.constant 0.000000e+00 : f32
    %546 = vector.broadcast %cst_101 : f32 to vector<16x512xf32>
    %547 = arith.maximumf %545, %546 : vector<16x512xf32>
    %548 = arith.truncf %547 : vector<16x512xf32> to vector<16x512xbf16>
    %c0_102 = arith.constant 0 : index
    %c0_103 = arith.constant 0 : index
    %549 = vector.load %arg13[%c0_102, %c0_103] : memref<512x10xbf16, #tpu.memory_space<vmem>>, vector<512x10xbf16>
    %cst_104 = arith.constant dense<0.000000e+00> : vector<16x10xf32>
    %550 = tpu.matmul %548, %549, %cst_104 {dimension_numbers = #tpu.dot_dimension_numbers<[1], [0], [0], [1], [0, 0, 1, 1], [], []>} : vector<16x512xbf16>, vector<512x10xbf16>, vector<16x10xf32> -> vector<16x10xf32>
    %c0_105 = arith.constant 0 : index
    %c0_106 = arith.constant 0 : index
    %551 = vector.load %arg14[%c0_105, %c0_106] : memref<1x10xf32, #tpu.memory_space<vmem>>, vector<1x10xf32>
    %552 = vector.broadcast %551 : vector<1x10xf32> to vector<16x10xf32>
    %553 = arith.addf %550, %552 : vector<16x10xf32>
    %c0_107 = arith.constant 0 : index
    %c0_108 = arith.constant 0 : index
    %554 = vector.load %arg15[%c0_107, %c0_108] : memref<16x10xf32, #tpu.memory_space<vmem>>, vector<16x10xf32>
    tpu.vector_store %arg15[%c0_107, %c0_108], %553 {strides = array<i32>} : memref<16x10xf32, #tpu.memory_space<vmem>>, vector<16x10xf32>,
    return
  }
}

</mosaic_0001>

<bundles_post_ra>
// kernel: luxrnet_forward.4
= control target key start
LH: loop header
LB: loop body
LE: loop exit
PB: predicated region body
PF: predicated region fallthrough
CT: control target
= control target key end

     0   :  { %s1773_s12 = smov 0   ;;  %s2105_s0 = inlined_call_operand.vmem [shape: bf16[288,640], index: 0, kind: input, shape index: {}]   ;;  %s2106_s1 = inlined_call_operand.vmem [shape: bf16[640,64], index: 1, kind: input, shape index: {}]   ;;  %s2107_s2 = inlined_call_operand.vmem [shape: f32[1,64], index: 2, kind: input, shape index: {}]   ;;  %s2108_s3 = inlined_call_operand.vmem [shape: bf16[288,64], index: 3, kind: output, shape index: {}]  }
   0x1 LB: > { %s1273_s13 = sadd.s32 4294967295, %s1749_s12   ;;  %p1277_p0 = scmp.ge.s32.totalorder %s1749_s12, 1  ;;  %s1749_s12 = sphi %s1773_s12, %s13_s12  }
   0x2   : > { %p139_p1 = scmp.lt.s32.totalorder %s1749_s12, 3 }
   0x4   : > { %p140_p2 = pnand %p1277_p0, %p139_p1 }
   0x5   : > { %s164_s16 = smul.u32 (!%p140_p2), 18, %s1273_s13 }
   0x6   : > { %143 = sbr.rel (%p140_p2) target bundleno = 358 (0x166), region = 32 }
   0x7   : > { %p165_p3 = scmp.lt.s32.totalorder (!%p140_p2), %s164_s16, 35 }
   0xb   : > { %v1640_v0 = vld [vmem:[%s2106_s1 + $0x78] sm:$0xff]   ;;  %v1642_v2 = vld [vmem:[%s2106_s1 + $0x70] sm:$0xff]   ;;  %v1644_v4 = vld [vmem:[%s2106_s1 + $0x68] sm:$0xff]   ;;  %s2110_s16 = smov (!%p165_p3, %s164_s16), 35  ;;  %v1751_v24 = vmov 0.0   ;;  %vm1752_vm0 = vmmov 0  }
   0xc   : > { %v1641_v1 = vld [vmem:[%s2106_s1 + $0x38] sm:$0xff]   ;;  %1613 = vmatprep.subr.bf16.mxu1 %v1640_v0  ;;  %1404 = vmatprep.subr.bf16.mxu0 %v1640_v0  ;;  %v1643_v3 = vld [vmem:[%s2106_s1 + $0x30] sm:$0xff]   ;;  %v1645_v5 = vld [vmem:[%s2106_s1 + $0x28] sm:$0xff]   ;;  %s1629_s29 = smul.u32 20, %s2110_s16  ;;  %s1279_s27 = sshll.u32 %s2110_s16, 2  ;;  %vm1198_vm1 = vcmask 519168  }
   0xd   : > { %1621 = vmatpush3.bf16.msra.mxu1 %v1641_v1  ;;  %1405 = vmatpush3.bf16.msra.mxu0 %v1641_v1  ;;  %v1646_v6 = vld [vmem:[%s2106_s1 + $0x60] sm:$0xff]   ;;  %v1648_v8 = vld [vmem:[%s2106_s1 + $0x58] sm:$0xff]   ;;  %v1650_v10 = vld [vmem:[%s2106_s1 + $0x50] sm:$0xff]   ;;  %s2032_s30 = scalar_lea.vmem %s2108_s3, %s1279_s27 }
   0xe   : > { %1614 = vmatprep.subr.bf16.mxu1 %v1642_v2  ;;  %1406 = vmatprep.subr.bf16.mxu0 %v1642_v2  ;;  %v1647_v7 = vld [vmem:[%s2106_s1 + $0x20] sm:$0xff]   ;;  %s1814_s9 = scalar_lea.vmem %s2105_s0, %s1629_s29  ;;  %v1649_v9 = vld [vmem:[%s2106_s1 + $0x18] sm:$0xff]   ;;  %v1651_v12 = vld [vmem:[%s2106_s1 + $0x10] sm:$0xff]  }
   0xf   : > { %v1658_v11 = vld [vmem:[%s1814_s9 + $0xa4] ss:$20 sps:$4 sm:$0xff]   ;;  %v1652_v13 = vld [vmem:[%s2106_s1 + $0x48] sm:$0xff]   ;;  %v1656_v18 = vld [vmem:[%s1814_s9 + $0xa0] ss:$20 sps:$4 sm:$0xff]  }
  0x10   : > { %857 = vmatprep.mubr.bf16.mxu1 %v1658_v11  ;;  %v1653_v14 = vld [vmem:[%s2106_s1 + $0x8] sm:$0xff]   ;;  %v1667_v15 = vld [vmem:[%s1814_s9 + $0x4] ss:$20 sps:$4 sm:$0xff]   ;;  %v1665_v21 = vld [vmem:[%s1814_s9] ss:$20 sps:$4 sm:$0xff]  }
  0x11   : > { %1622 = vmatpush3.bf16.msra.mxu1 %v1643_v3  ;;  %1407 = vmatpush3.bf16.msra.mxu0 %v1643_v3  ;;  %v1654_v16 = vld [vmem:[%s2106_s1 + $0x40] sm:$0xff]   ;;  %v1659_v19 = vld [vmem:[%s2106_s1 + $0xf8] sm:$0xff]   ;;  %v1661_v23 = vld [vmem:[%s2106_s1 + $0xf0] sm:$0xff]  }
  0x12   : > { %1615 = vmatprep.subr.bf16.mxu1 %v1644_v4  ;;  %1408 = vmatprep.subr.bf16.mxu0 %v1644_v4  ;;  %v1655_v17 = vld [vmem:[%s2106_s1] sm:$0xff]   ;;  %v1660_v20 = vld [vmem:[%s2106_s1 + $0xb8] sm:$0xff]   ;;  %v1662_v27 = vld [vmem:[%s2106_s1 + $0xb0] sm:$0xff]  }
  0x13   : > { %825 = vmatprep.mubr.bf16.mxu0 %v1667_v15  ;;  %v1663_v22 = vld [vmem:[%s1814_s9 + $0xcc] ss:$20 sps:$4 sm:$0xff]   ;;  %v1670_v25 = vld [vmem:[%s2106_s1 + $0x138] sm:$0xff]   ;;  %v1672_v30 = vld [vmem:[%s2106_s1 + $0x130] sm:$0xff]  }
  0x14   : > { %v1676_v26 = vld [vmem:[%s1814_s9 + $0x2c] ss:$20 sps:$4 sm:$0xff]   ;;  %v1668_v29 = vld [vmem:[%s1814_s9 + $0xc8] ss:$20 sps:$4 sm:$0xff]   ;;  %v1678_v40 = vld [vmem:[%s1814_s9 + $0xf0] ss:$20 sps:$4 sm:$0xff]  }
  0x15   : > { %1623 = vmatpush3.bf16.msra.mxu1 %v1645_v5  ;;  %1409 = vmatpush3.bf16.msra.mxu0 %v1645_v5  ;;  %v1669_v28 = vld [vmem:[%s2106_s1 + $0xe8] sm:$0xff]   ;;  %v1675_v34 = vld [vmem:[%s2106_s1 + $0xe0] sm:$0xff]   ;;  %v1682_v38 = vld [vmem:[%s2106_s1 + $0xd8] sm:$0xff]  }
  0x16   : > { %1616 = vmatprep.subr.bf16.mxu1 %v1646_v6  ;;  %1410 = vmatprep.subr.bf16.mxu0 %v1646_v6  ;;  %v1671_v31 = vld [vmem:[%s2106_s1 + $0xa8] sm:$0xff]   ;;  %v1679_v37 = vld [vmem:[%s2106_s1 + $0xa0] sm:$0xff]   ;;  %v1683_v42 = vld [vmem:[%s2106_s1 + $0x98] sm:$0xff]  }
  0x17   : > { %v1673_v32 = vld [vmem:[%s1814_s9 + $0xf4] ss:$20 sps:$4 sm:$0xff]   ;;  %v1684_v39 = vld [vmem:[%s2106_s1 + $0x120] sm:$0xff]   ;;  %v1685_v43 = vld [vmem:[%s1814_s9 + $0x11c] ss:$20 sps:$4 sm:$0xff]  }
  0x18   : > { %v1680_v33 = vld [vmem:[%s1814_s9 + $0x28] ss:$20 sps:$4 sm:$0xff]   ;;  %v1690_v41 = vld [vmem:[%s1814_s9 + $0x50] ss:$20 sps:$4 sm:$0xff]   ;;  %v1689_v49 = vld [vmem:[%s1814_s9 + $0x118] ss:$20 sps:$4 sm:$0xff]  }
  0x19   : > { %1624 = vmatpush3.bf16.msra.mxu1 %v1647_v7  ;;  %1411 = vmatpush3.bf16.msra.mxu0 %v1647_v7  ;;  %v1681_v35 = vld [vmem:[%s2106_s1 + $0x128] sm:$0xff]   ;;  %v1691_v44 = vld [vmem:[%s2106_s1 + $0xd0] sm:$0xff]   ;;  %v1693_v45 = vld [vmem:[%s2106_s1 + $0x118] sm:$0xff]  }
  0x1a   : > { %1617 = vmatprep.subr.bf16.mxu1 %v1648_v8  ;;  %1412 = vmatprep.subr.bf16.mxu0 %v1648_v8  ;;  %v1687_v36 = vld [vmem:[%s1814_s9 + $0x54] ss:$20 sps:$4 sm:$0xff]   ;;  %v1699_v46 = vld [vmem:[%s1814_s9 + $0x7c] ss:$20 sps:$4 sm:$0xff]   ;;  %v1696_v51 = vld [vmem:[%s1814_s9 + $0x144] ss:$20 sps:$4 sm:$0xff]  }
  0x1b   : > { %v1692_v47 = vld [vmem:[%s2106_s1 + $0x90] sm:$0xff]   ;;  %v1694_v48 = vld [vmem:[%s2106_s1 + $0xc8] sm:$0xff]   ;;  %v1704_v55 = vld [vmem:[%s2106_s1 + $0xc0] sm:$0xff]  }
  0x1c   : > { %v1695_v50 = vld [vmem:[%s2106_s1 + $0x110] sm:$0xff]   ;;  %v1702_v52 = vld [vmem:[%s1814_s9 + $0x78] ss:$20 sps:$4 sm:$0xff]   ;;  %v1705_v56 = vld [vmem:[%s2106_s1 + $0x80] sm:$0xff]  }
  0x1d   : > { %1625 = vmatpush3.bf16.msra.mxu1 %v1649_v9  ;;  %1413 = vmatpush3.bf16.msra.mxu0 %v1649_v9  ;;  %v1698_v53 = vld [vmem:[%s2106_s1 + $0x88] sm:$0xff]   ;;  %v1706_v57 = vld [vmem:[%s2106_s1 + $0x100] sm:$0xff]   ;;  %v1715_v1 = vld [vmem:[%s1814_s9 + $0x5c] ss:$20 sps:$4 sm:$0xff]  }
  0x1e   : > { %1618 = vmatprep.subr.bf16.mxu1 %v1650_v10  ;;  %1414 = vmatprep.subr.bf16.mxu0 %v1650_v10  ;;  %v1703_v54 = vld [vmem:[%s2106_s1 + $0x108] sm:$0xff]   ;;  %v1701_v58 = vld [vmem:[%s1814_s9 + $0x140] ss:$20 sps:$4 sm:$0xff]   ;;  %v1710_v60 = vld [vmem:[%s1814_s9 + $0x10] ss:$20 sps:$4 sm:$0xff]  }
  0x1f   : > { %v1709_v59 = vld [vmem:[%s1814_s9 + $0xc] ss:$20 sps:$4 sm:$0xff]   ;;  %v1707_v61 = vld [vmem:[%s1814_s9 + $0x8] ss:$20 sps:$4 sm:$0xff]   ;;  %v1713_v0 = vld [vmem:[%s1814_s9 + $0x30] ss:$20 sps:$4 sm:$0xff]  }
  0x20   : > { %v1711_v62 = vld [vmem:[%s1814_s9 + $0x34] ss:$20 sps:$4 sm:$0xff]   ;;  %v1714_v63 = vld [vmem:[%s1814_s9 + $0x38] ss:$20 sps:$4 sm:$0xff]   ;;  %v1726_v8 = vld [vmem:[%s1814_s9 + $0xb0] ss:$20 sps:$4 sm:$0xff]  }
  0x21   : > { %1626 = vmatpush3.bf16.msra.mxu1 %v1651_v12  ;;  %1415 = vmatpush3.bf16.msra.mxu0 %v1651_v12  ;;  %v1718_v2 = vld [vmem:[%s1814_s9 + $0x60] ss:$20 sps:$4 sm:$0xff]   ;;  %v1717_v3 = vld [vmem:[%s1814_s9 + $0x58] ss:$20 sps:$4 sm:$0xff]   ;;  %v1722_v5 = vld [vmem:[%s1814_s9 + $0x88] ss:$20 sps:$4 sm:$0xff]  }
  0x22   : > { %1619 = vmatprep.subr.bf16.mxu1 %v1652_v13  ;;  %1416 = vmatprep.subr.bf16.mxu0 %v1652_v13  ;;  %v1719_v4 = vld [vmem:[%s1814_s9 + $0x84] ss:$20 sps:$4 sm:$0xff]   ;;  %v1721_v6 = vld [vmem:[%s1814_s9 + $0x80] ss:$20 sps:$4 sm:$0xff]   ;;  %v1725_v9 = vld [vmem:[%s1814_s9 + $0xa8] ss:$20 sps:$4 sm:$0xff]  }
  0x23   : > { %v1723_v7 = vld [vmem:[%s1814_s9 + $0xac] ss:$20 sps:$4 sm:$0xff]   ;;  %v1727_v10 = vld [vmem:[%s1814_s9 + $0xd4] ss:$20 sps:$4 sm:$0xff]   ;;  %v1729_v12 = vld [vmem:[%s1814_s9 + $0xd0] ss:$20 sps:$4 sm:$0xff]  }
  0x24   : > { %v1730_v11 = vld [vmem:[%s1814_s9 + $0xd8] ss:$20 sps:$4 sm:$0xff]   ;;  %v1731_v13 = vld [vmem:[%s1814_s9 + $0xfc] ss:$20 sps:$4 sm:$0xff]  }
  0x25   : > { %1627 = vmatpush3.bf16.msra.mxu1 %v1653_v14  ;;  %1417 = vmatpush3.bf16.msra.mxu0 %v1653_v14  ;;  %v1734_v14 = vld [vmem:[%s1814_s9 + $0x100] ss:$20 sps:$4 sm:$0xff]   ;;  %v1733_v15 = vld [vmem:[%s1814_s9 + $0xf8] ss:$20 sps:$4 sm:$0xff]  }
  0x26   : > { %1620 = vmatprep.subr.bf16.mxu1 %v1654_v16  ;;  %1418 = vmatprep.subr.bf16.mxu0 %v1654_v16  ;;  %v1735_v16 = vld [vmem:[%s1814_s9 + $0x124] ss:$20 sps:$4 sm:$0xff]  }
  0x29   : > { %1628 = vmatpush3.bf16.msra.mxu1 %v1655_v17  ;;  %1419 = vmatpush3.bf16.msra.mxu0 %v1655_v17  ;;  %v1738_v17 = vld [vmem:[%s1814_s9 + $0x128] ss:$20 sps:$4 sm:$0xff]  }
  0x2a   : > { %1474 = vmatprep.subr.bf16.mxu1 %v1659_v19  ;;  %1561 = vmatprep.subr.bf16.mxu0 %v1751_v24  ;;  %v1739_v19 = vld [vmem:[%s1814_s9 + $0x14c] ss:$20 sps:$4 sm:$0xff]  }
  0x2c   : > { %858 = vmatmul.mubr.bf16.vlgmr.msra.gmra.mxu1 %v1656_v18  ;;  %826 = vmatmul.mubr.bf16.vlgmr.msra.gmra.mxu0 %v1665_v21  ;;  %v1737_v18 = vld [vmem:[%s1814_s9 + $0x120] ss:$20 sps:$4 sm:$0xff]   ;;  %v1741_v21 = vld [vmem:[%s1814_s9 + $0x148] ss:$20 sps:$4 sm:$0xff]  }
  0x2d   : > { %1475 = vmatpush3.bf16.msra.mxu1 %v1660_v20  ;;  %865 = vmatprep.mubr.bf16.mxu1 %v1663_v22  ;;  %v1742_v20 = vld [vmem:[%s1814_s9 + $0x150] ss:$20 sps:$4 sm:$0xff]  }
  0x2e   : > { %1476 = vmatprep.subr.bf16.mxu1 %v1661_v23  ;;  %1562 = vmatpush3.bf16.msra.mxu0 %v1670_v25 }
  0x2f   : > { %1563 = vmatprep.subr.bf16.mxu0 %v1751_v24  ;;  %833 = vmatprep.mubr.bf16.mxu0 %v1676_v26 }
  0x31   : > { %1477 = vmatpush3.bf16.msra.mxu1 %v1662_v27 }
  0x32   : > { %1478 = vmatprep.subr.bf16.mxu1 %v1669_v28  ;;  %1564 = vmatpush3.bf16.msra.mxu0 %v1672_v30 }
  0x33   : > { %1565 = vmatprep.subr.bf16.mxu0 %v1751_v24 }
  0x34   : > { %866 = vmatmul.mubr.bf16.gmra.mxu1 %v1668_v29  ;;  %834 = vmatmul.mubr.bf16.gmra.mxu0 %v1680_v33 }
  0x35   : > { %1479 = vmatpush3.bf16.msra.mxu1 %v1671_v31  ;;  %873 = vmatprep.mubr.bf16.mxu1 %v1673_v32 }
  0x36   : > { %1480 = vmatprep.subr.bf16.mxu1 %v1675_v34  ;;  %1566 = vmatpush3.bf16.msra.mxu0 %v1681_v35 }
  0x37   : > { %1567 = vmatprep.subr.bf16.mxu0 %v1751_v24  ;;  %841 = vmatprep.mubr.bf16.mxu0 %v1687_v36 }
  0x39   : > { %1481 = vmatpush3.bf16.msra.mxu1 %v1679_v37 }
  0x3a   : > { %1482 = vmatprep.subr.bf16.mxu1 %v1682_v38  ;;  %1568 = vmatpush3.bf16.msra.mxu0 %v1684_v39 }
  0x3b   : > { %1569 = vmatprep.subr.bf16.mxu0 %v1751_v24 }
  0x3c   : > { %874 = vmatmul.mubr.bf16.gmra.mxu1 %v1678_v40  ;;  %842 = vmatmul.mubr.bf16.gmra.mxu0 %v1690_v41 }
  0x3d   : > { %1483 = vmatpush3.bf16.msra.mxu1 %v1683_v42  ;;  %881 = vmatprep.mubr.bf16.mxu1 %v1685_v43 }
  0x3e   : > { %1484 = vmatprep.subr.bf16.mxu1 %v1691_v44  ;;  %1570 = vmatpush3.bf16.msra.mxu0 %v1693_v45 }
  0x3f   : > { %1571 = vmatprep.subr.bf16.mxu0 %v1751_v24  ;;  %849 = vmatprep.mubr.bf16.mxu0 %v1699_v46 }
  0x41   : > { %1485 = vmatpush3.bf16.msra.mxu1 %v1692_v47 }
  0x42   : > { %1486 = vmatprep.subr.bf16.mxu1 %v1694_v48  ;;  %1572 = vmatpush3.bf16.msra.mxu0 %v1695_v50 }
  0x43   : > { %1573 = vmatprep.subr.bf16.mxu0 %v1751_v24 }
  0x44   : > { %882 = vmatmul.mubr.bf16.gmra.mxu1 %v1689_v49  ;;  %850 = vmatmul.mubr.bf16.gmra.mxu0 %v1702_v52 }
  0x45   : > { %889 = vmatprep.mubr.bf16.mxu1 %v1696_v51  ;;  %1487 = vmatpush3.bf16.msra.mxu1 %v1698_v53 }
  0x46   : > { %1574 = vmatpush3.bf16.msra.mxu0 %v1703_v54  ;;  %1488 = vmatprep.subr.bf16.mxu1 %v1704_v55 }
  0x47   : > { %1575 = vmatprep.subr.bf16.mxu0 %v1751_v24  ;;  %1577 = vmatprep.mubr.msk.bf16.mxu0 %vm1752_vm0, %v1751_v24 }
  0x49   : > { %1489 = vmatpush3.bf16.msra.mxu1 %v1705_v56 }
  0x4a   : > { %1576 = vmatpush3.bf16.msra.mxu0 %v1706_v57 }
  0x4c   : > { %890 = vmatmul.mubr.bf16.gmra.mxu1 %v1701_v58 }
  0x4d   : > { %930 = vmatprep.mubr.bf16.mxu1 %v1709_v59  ;;  %1578 = vmatmul.mubr.bf16.vlgmr.msra.gmra.mxu0 %v1710_v60 }
  0x4e   : > { %1581 = vmatprep.mubr.msk.bf16.mxu0 %vm1752_vm0, %v1751_v24 }
  0x54   : > { %931 = vmatmul.mubr.bf16.vlgmr.msra.gmra.mxu1 %v1707_v61 }
  0x55   : > { %938 = vmatprep.mubr.bf16.mxu1 %v1711_v62  ;;  %1582 = vmatmul.mubr.bf16.gmra.mxu0 %v1714_v63 }
  0x56   : > { %1585 = vmatprep.mubr.msk.bf16.mxu0 %vm1752_vm0, %v1751_v24 }
  0x5c   : > { %939 = vmatmul.mubr.bf16.gmra.mxu1 %v1713_v0 }
  0x5d   : > { %946 = vmatprep.mubr.bf16.mxu1 %v1715_v1  ;;  %1586 = vmatmul.mubr.bf16.gmra.mxu0 %v1718_v2 }
  0x5e   : > { %1589 = vmatprep.mubr.msk.bf16.mxu0 %vm1752_vm0, %v1751_v24 }
  0x64   : > { %947 = vmatmul.mubr.bf16.gmra.mxu1 %v1717_v3  ;;  %v2017_v3 = vld [vmem:[%s2107_s2] ss:$0 sm:$0xff] }
  0x65   : > { %954 = vmatprep.mubr.bf16.mxu1 %v1719_v4  ;;  %1590 = vmatmul.mubr.bf16.gmra.mxu0 %v1722_v5 }
  0x66   : > { %1593 = vmatprep.mubr.msk.bf16.mxu0 %vm1752_vm0, %v1751_v24 }
  0x6c   : > { %955 = vmatmul.mubr.bf16.gmra.mxu1 %v1721_v6 }
  0x6d   : > { %962 = vmatprep.mubr.bf16.mxu1 %v1723_v7  ;;  %1594 = vmatmul.mubr.bf16.gmra.mxu0 %v1726_v8 }
  0x6e   : > { %1597 = vmatprep.mubr.msk.bf16.mxu0 %vm1752_vm0, %v1751_v24 }
  0x74   : > { %963 = vmatmul.mubr.bf16.gmra.mxu1 %v1725_v9 }
  0x75   : > { %970 = vmatprep.mubr.bf16.mxu1 %v1727_v10  ;;  %1598 = vmatmul.mubr.bf16.gmra.mxu0 %v1730_v11 }
  0x76   : > { %1601 = vmatprep.mubr.msk.bf16.mxu0 %vm1752_vm0, %v1751_v24 }
  0x7c   : > { %971 = vmatmul.mubr.bf16.gmra.mxu1 %v1729_v12 }
  0x7d   : > { %978 = vmatprep.mubr.bf16.mxu1 %v1731_v13  ;;  %1602 = vmatmul.mubr.bf16.gmra.mxu0 %v1734_v14 }
  0x7e   : > { %1605 = vmatprep.mubr.msk.bf16.mxu0 %vm1752_vm0, %v1751_v24 }
  0x84   : > { %979 = vmatmul.mubr.bf16.gmra.mxu1 %v1733_v15 }
  0x85   : > { %986 = vmatprep.mubr.bf16.mxu1 %v1735_v16  ;;  %1606 = vmatmul.mubr.bf16.gmra.mxu0 %v1738_v17 }
  0x86   : > { %1609 = vmatprep.mubr.msk.bf16.mxu0 %vm1752_vm0, %v1751_v24 }
  0x8c   : > { %987 = vmatmul.mubr.bf16.gmra.mxu1 %v1737_v18 }
  0x8d   : > { %994 = vmatprep.mubr.bf16.mxu1 %v1739_v19  ;;  %1610 = vmatmul.mubr.bf16.gmra.mxu0 %v1742_v20 }
  0x94   : > { %995 = vmatmul.mubr.bf16.gmra.mxu1 %v1741_v21 }
  0xec   : > { %v1444_v22 = vpop.f32.mrf.mxu1  ;;  %v1420_v23 = vpop.f32.mrf.mxu0 }
  0xee   : > { %v1445_v25 = vpop.f32.mrf.mxu1  ;;  %v1421_v26 = vpop.f32.mrf.mxu0 }
  0xef   : > { %v1980_v27 = vadd.f32 %v1445_v25, %v1444_v22  ;;  %v1422_v8 = vadd.f32 %v1421_v26, %v1420_v23 }
  0xf0   : > { %v1447_v28 = vpop.f32.mrf.mxu1  ;;  %v1423_v29 = vpop.f32.mrf.mxu0 }
  0xf1   : > { %v828_v15 = vadd.f32 %v1422_v8, %v2017_v3 }
  0xf2   : > { %v1448_v30 = vpop.f32.mrf.mxu1  ;;  %v1424_v31 = vpop.f32.mrf.mxu0 }
  0xf3   : > { %v1982_v32 = vadd.f32 %v1448_v30, %v1447_v28  ;;  %v1425_v16 = vadd.f32 %v1424_v31, %v1423_v29 }
  0xf4   : > { %v1450_v24 = vpop.f32.mrf.mxu1  ;;  %v1426_v33 = vpop.f32.mrf.mxu0 }
  0xf5   : > { %v831_v23 = vadd.f32 %v1425_v16, %v2017_v3 }
  0xf6   : > { %v1451_v34 = vpop.f32.mrf.mxu1  ;;  %v1427_v35 = vpop.f32.mrf.mxu0 }
  0xf7   : > { %v1984_v36 = vadd.f32 %v1451_v34, %v1450_v24  ;;  %v1428_v22 = vadd.f32 %v1427_v35, %v1426_v33 }
  0xf8   : > { %v1453_v37 = vpop.f32.mrf.mxu1  ;;  %v1986_v38 = vpop.f32.mrf.mxu0 }
  0xfa   : > { %v1454_v39 = vpop.f32.mrf.mxu1  ;;  %v1430_v40 = vpop.f32.mrf.mxu0 }
  0xfb   : > { %v1988_v41 = vadd.f32 %v1454_v39, %v1453_v37  ;;  %v1431_v31 = vadd.f32 %v1430_v40, %v1986_v38 }
  0xfc   : > { %v1456_v42 = vpop.f32.mrf.mxu1  ;;  %v1990_v43 = vpop.f32.mrf.mxu0 }
  0xfe   : > { %v1457_v44 = vpop.f32.mrf.mxu1  ;;  %v1992_v45 = vpop.f32.mrf.mxu0 }
  0xff   : > { %v1994_v46 = vadd.f32 %v1457_v44, %v1456_v42  ;;  %v836_v42 = vadd.f32 %v1428_v22, %v2017_v3 }
 0x100   : > { %v1459_v47 = vpop.f32.mrf.mxu1  ;;  %v1996_v48 = vpop.f32.mrf.mxu0 }
 0x102   : > { %v1460_v49 = vpop.f32.mrf.mxu1  ;;  %v1998_v50 = vpop.f32.mrf.mxu0 }
 0x103   : > { %v2000_v51 = vadd.f32 %v1460_v49, %v1459_v47 }
 0x104   : > { %v1462_v52 = vpop.f32.mrf.mxu1  ;;  %v2002_v53 = vpop.f32.mrf.mxu0 }
 0x106   : > { %v1463_v54 = vpop.f32.mrf.mxu1  ;;  %v2004_v55 = vpop.f32.mrf.mxu0 }
 0x107   : > { %v2006_v56 = vadd.f32 %v1463_v54, %v1462_v52 }
 0x108   : > { %v1465_v57 = vpop.f32.mrf.mxu1  ;;  %v2008_v58 = vpop.f32.mrf.mxu0 }
 0x10a   : > { %v1466_v59 = vpop.f32.mrf.mxu1  ;;  %v2010_v60 = vpop.f32.mrf.mxu0 }
 0x10b   : > { %v2012_v61 = vadd.f32 %v1466_v59, %v1465_v57  ;;  %v1434_v59 = vadd.f32 %v1992_v45, %v1990_v43  ;;  %v1437_v43 = vadd.f32 %v1998_v50, %v1996_v48 }
 0x10c   : > { %v1468_v62 = vpop.f32.mrf.mxu1 }
 0x10d   : > { %v1037_v63 = vpop.f32.mrf.mxu0  ;;  %v844_v8 = vadd.f32 %v1434_v59, %v2017_v3 }
 0x10e   : > { %v1469_v0 = vpop.f32.mrf.mxu1 }
 0x10f   : > { %v1470_v1 = vadd.f32 %v1469_v0, %v1468_v62  ;;  %v1579_v2 = vpop.f32.mrf.mxu0 }
 0x110   : > { %v1471_v4 = vpop.f32.mrf.mxu1 }
 0x111   : > { %v2020_v5 = vadd.f32 %v1470_v1, %v2017_v3  ;;  %v1040_v6 = vpop.f32.mrf.mxu0 }
 0x112   : > { %v1472_v7 = vpop.f32.mrf.mxu1 }
 0x113   : > { %v1473_v9 = vadd.f32 %v1472_v7, %v1471_v4  ;;  %v1580_v10 = vpop.f32.mrf.mxu0 }
 0x114   : > { %v1490_v11 = vpop.f32.mrf.mxu1 }
 0x115   : > { %v2023_v12 = vadd.f32 %v1473_v9, %v2017_v3  ;;  %v1045_v13 = vpop.f32.mrf.mxu0 }
 0x116   : > { %v1491_v14 = vpop.f32.mrf.mxu1 }
 0x117   : > { %v1492_v17 = vadd.f32 %v1491_v14, %v1490_v11  ;;  %v1583_v18 = vpop.f32.mrf.mxu0 }
 0x118   : > { %v1493_v19 = vpop.f32.mrf.mxu1  ;;  %v1440_v18 = vadd.f32 %v2004_v55, %v2002_v53  ;;  %v1443_v53 = vadd.f32 %v2010_v60, %v2008_v58 }
 0x119   : > { %v933_v20 = vadd.f32 %v1492_v17, %v828_v15  ;;  %v1048_v21 = vpop.f32.mrf.mxu0 }
 0x11a   : > { %v1494_v25 = vpop.f32.mrf.mxu1 }
 0x11b   : > { %v1038_v26 = vadd.f32 %v1037_v63, %v933_v20  ;;  %v1495_v28 = vadd.f32 %v1494_v25, %v1493_v19  ;;  %v1584_v30 = vpop.f32.mrf.mxu0  ;;  %v839_v63 = vadd.f32 %v1431_v31, %v2017_v3  ;;  %v847_v20 = vadd.f32 %v1437_v43, %v2017_v3 }
 0x11c   : > { %v1496_v24 = vpop.f32.mrf.mxu1  ;;  %v852_v30 = vadd.f32 %v1440_v18, %v2017_v3 }
 0x11d   : > { %v1108_v34 = vmax.f32 %v1038_v26, 0.0  ;;  %v936_v37 = vadd.f32 %v1495_v28, %v831_v23  ;;  %v1053_v39 = vpop.f32.mrf.mxu0 }
 0x11e   : > { %v1497_v29 = vpop.f32.mrf.mxu1 }
 0x11f   : > { %v1386_v33 = vpack.c.bf16 %v1108_v34, %v1108_v34  ;;  %v1041_v35 = vadd.f32 %v1040_v6, %v936_v37  ;;  %v1498_v44 = vadd.f32 %v1497_v29, %v1496_v24  ;;  %v1587_v47 = vpop.f32.mrf.mxu0 }
 0x120   : > { %v1499_v49 = vpop.f32.mrf.mxu1 }
 0x121   : > { %1199 = vst.msk [vmem:[%s2032_s30] sm:$0xf] %vm1198_vm1, %v1386_v33  ;;  %v1109_v52 = vmax.f32 %v1041_v35, 0.0  ;;  %v941_v54 = vadd.f32 %v1498_v44, %v836_v42  ;;  %v1056_v57 = vpop.f32.mrf.mxu0  ;;  %v855_v44 = vadd.f32 %v1443_v53, %v2017_v3 }
 0x122   : > { %v1500_v62 = vpop.f32.mrf.mxu1 }
 0x123   : > { %v1387_v0 = vpack.c.bf16 %v1109_v52, %v1109_v52  ;;  %v1046_v1 = vadd.f32 %v1045_v13, %v941_v54  ;;  %v1501_v38 = vadd.f32 %v1500_v62, %v1499_v49  ;;  %v1588_v40 = vpop.f32.mrf.mxu0 }
 0x124   : > { %v1502_v2 = vpop.f32.mrf.mxu1 }
 0x125   : > { %1200 = vst.msk [vmem:[%s2032_s30 + $0x4] sm:$0xf] %vm1198_vm1, %v1387_v0  ;;  %v1110_v4 = vmax.f32 %v1046_v1, 0.0  ;;  %v944_v6 = vadd.f32 %v1501_v38, %v839_v63  ;;  %v1061_v7 = vpop.f32.mrf.mxu0  ;;  %v860_v63 = vadd.f32 %v1980_v27, %v2017_v3 }
 0x126   : > { %v1503_v9 = vpop.f32.mrf.mxu1 }
 0x127   : > { %v1388_v45 = vpack.c.bf16 %v1110_v4, %v1110_v4  ;;  %v1049_v10 = vadd.f32 %v1048_v21, %v944_v6  ;;  %v1504_v11 = vadd.f32 %v1503_v9, %v1502_v2  ;;  %v1591_v13 = vpop.f32.mrf.mxu0  ;;  %v863_v9 = vadd.f32 %v1982_v32, %v2017_v3 }
 0x128   : > { %v1505_v14 = vpop.f32.mrf.mxu1 }
 0x129   : > { %1201 = vst.msk [vmem:[%s2032_s30 + $0x8] sm:$0xf] %vm1198_vm1, %v1388_v45  ;;  %v1111_v15 = vmax.f32 %v1049_v10, 0.0  ;;  %v949_v16 = vadd.f32 %v1504_v11, %v844_v8  ;;  %v1064_v17 = vpop.f32.mrf.mxu0 }
 0x12a   : > { %v1506_v19 = vpop.f32.mrf.mxu1 }
 0x12b   : > { %v1389_v22 = vpack.c.bf16 %v1111_v15, %v1111_v15  ;;  %v1054_v25 = vadd.f32 %v1053_v39, %v949_v16  ;;  %v1507_v48 = vadd.f32 %v1506_v19, %v1505_v14  ;;  %v1592_v50 = vpop.f32.mrf.mxu0 }
 0x12c   : > { %v1508_v21 = vpop.f32.mrf.mxu1 }
 0x12d   : > { %1202 = vst.msk [vmem:[%s2032_s30 + $0xc] sm:$0xf] %vm1198_vm1, %v1389_v22  ;;  %v1112_v23 = vmax.f32 %v1054_v25, 0.0  ;;  %v952_v26 = vadd.f32 %v1507_v48, %v847_v20  ;;  %v1069_v28 = vpop.f32.mrf.mxu0 }
 0x12e   : > { %v1509_v24 = vpop.f32.mrf.mxu1 }
 0x12f   : > { %v1390_v55 = vpack.c.bf16 %v1112_v23, %v1112_v23  ;;  %v1057_v34 = vadd.f32 %v1056_v57, %v952_v26  ;;  %v1510_v37 = vadd.f32 %v1509_v24, %v1508_v21  ;;  %v1595_v39 = vpop.f32.mrf.mxu0  ;;  %v871_v23 = vadd.f32 %v1988_v41, %v2017_v3 }
 0x130   : > { %v1511_v42 = vpop.f32.mrf.mxu1  ;;  %v876_v39 = vadd.f32 %v1994_v46, %v2017_v3 }
 0x131   : > { %1203 = vst.msk [vmem:[%s2032_s30 + $0x10] sm:$0xf] %vm1198_vm1, %v1390_v55  ;;  %v1113_v29 = vmax.f32 %v1057_v34, 0.0  ;;  %v957_v31 = vadd.f32 %v1510_v37, %v852_v30  ;;  %v1072_v33 = vpop.f32.mrf.mxu0 }
 0x132   : > { %v1512_v35 = vpop.f32.mrf.mxu1 }
 0x133   : > { %v1391_v47 = vpack.c.bf16 %v1113_v29, %v1113_v29  ;;  %v1062_v49 = vadd.f32 %v1061_v7, %v957_v31  ;;  %v1513_v52 = vadd.f32 %v1512_v35, %v1511_v42  ;;  %v1596_v54 = vpop.f32.mrf.mxu0 }
 0x134   : > { %v1514_v58 = vpop.f32.mrf.mxu1 }
 0x135   : > { %1204 = vst.msk [vmem:[%s2032_s30 + $0x14] sm:$0xf] %vm1198_vm1, %v1391_v47  ;;  %v1114_v60 = vmax.f32 %v1062_v49, 0.0  ;;  %v960_v57 = vadd.f32 %v1513_v52, %v855_v44  ;;  %v1077_v59 = vpop.f32.mrf.mxu0  ;;  %v879_v52 = vadd.f32 %v2000_v51, %v2017_v3 }
 0x136   : > { %v1515_v62 = vpop.f32.mrf.mxu1 }
 0x137   : > { %v1392_v0 = vpack.c.bf16 %v1114_v60, %v1114_v60  ;;  %v1065_v1 = vadd.f32 %v1064_v17, %v960_v57  ;;  %v1516_v38 = vadd.f32 %v1515_v62, %v1514_v58  ;;  %v1599_v40 = vpop.f32.mrf.mxu0  ;;  %v868_v17 = vadd.f32 %v1984_v36, %v2017_v3 }
 0x138   : > { %v1517_v2 = vpop.f32.mrf.mxu1 }
 0x139   : > { %1205 = vst.msk [vmem:[%s2032_s30 + $0x18] sm:$0xf] %vm1198_vm1, %v1392_v0  ;;  %v1115_v4 = vmax.f32 %v1065_v1, 0.0  ;;  %v965_v6 = vadd.f32 %v1516_v38, %v860_v63  ;;  %v1080_v7 = vpop.f32.mrf.mxu0  ;;  %v884_v1 = vadd.f32 %v2006_v56, %v2017_v3 }
 0x13a   : > { %v1518_v8 = vpop.f32.mrf.mxu1 }
 0x13b   : > { %v1393_v43 = vpack.c.bf16 %v1115_v4, %v1115_v4  ;;  %v1070_v45 = vadd.f32 %v1069_v28, %v965_v6  ;;  %v1519_v10 = vadd.f32 %v1518_v8, %v1517_v2  ;;  %v1600_v27 = vpop.f32.mrf.mxu0 }
 0x13c   : > { %v1520_v11 = vpop.f32.mrf.mxu1 }
 0x13d   : > { %1206 = vst.msk [vmem:[%s2032_s30 + $0x1c] sm:$0xf] %vm1198_vm1, %v1393_v43  ;;  %v1116_v13 = vmax.f32 %v1070_v45, 0.0  ;;  %v968_v14 = vadd.f32 %v1519_v10, %v863_v9  ;;  %v1085_v15 = vpop.f32.mrf.mxu0  ;;  %v887_v43 = vadd.f32 %v2012_v61, %v2017_v3 }
 0x13e   : > { %v1521_v16 = vpop.f32.mrf.mxu1 }
 0x13f   : > { %v1394_v18 = vpack.c.bf16 %v1116_v13, %v1116_v13  ;;  %v1073_v19 = vadd.f32 %v1072_v33, %v968_v14  ;;  %v1522_v20 = vadd.f32 %v1521_v16, %v1520_v11  ;;  %v1603_v32 = vpop.f32.mrf.mxu0 }
 0x140   : > { %v1523_v22 = vpop.f32.mrf.mxu1 }
 0x141   : > { %1207 = vst.msk [vmem:[%s2032_s30 + $0x20] sm:$0xf] %vm1198_vm1, %v1394_v18  ;;  %v1117_v25 = vmax.f32 %v1073_v19, 0.0  ;;  %v973_v48 = vadd.f32 %v1522_v20, %v868_v17  ;;  %v1088_v50 = vpop.f32.mrf.mxu0 }
 0x142   : > { %v1524_v21 = vpop.f32.mrf.mxu1 }
 0x143   : > { %v1395_v26 = vpack.c.bf16 %v1117_v25, %v1117_v25  ;;  %v1078_v28 = vadd.f32 %v1077_v59, %v973_v48  ;;  %v1525_v30 = vadd.f32 %v1524_v21, %v1523_v22  ;;  %v1604_v36 = vpop.f32.mrf.mxu0 }
 0x144   : > { %v1526_v24 = vpop.f32.mrf.mxu1 }
 0x145   : > { %1208 = vst.msk [vmem:[%s2032_s30 + $0x24] sm:$0xf] %vm1198_vm1, %v1395_v26  ;;  %v1118_v53 = vmax.f32 %v1078_v28, 0.0  ;;  %v976_v55 = vadd.f32 %v1525_v30, %v871_v23  ;;  %v1093_v34 = vpop.f32.mrf.mxu0 }
 0x146   : > { %v1527_v37 = vpop.f32.mrf.mxu1 }
 0x147   : > { %v1396_v42 = vpack.c.bf16 %v1118_v53, %v1118_v53  ;;  %v1081_v29 = vadd.f32 %v1080_v7, %v976_v55  ;;  %v1528_v31 = vadd.f32 %v1527_v37, %v1526_v24  ;;  %v1607_v41 = vpop.f32.mrf.mxu0 }
 0x148   : > { %v1529_v33 = vpop.f32.mrf.mxu1 }
 0x149   : > { %1209 = vst.msk [vmem:[%s2032_s30 + $0x28] sm:$0xf] %vm1198_vm1, %v1396_v42  ;;  %v1119_v35 = vmax.f32 %v1081_v29, 0.0  ;;  %v981_v44 = vadd.f32 %v1528_v31, %v876_v39  ;;  %v1096_v47 = vpop.f32.mrf.mxu0 }
 0x14a   : > { %v1530_v49 = vpop.f32.mrf.mxu1 }
 0x14b   : > { %v1397_v54 = vpack.c.bf16 %v1119_v35, %v1119_v35  ;;  %v1086_v58 = vadd.f32 %v1085_v15, %v981_v44  ;;  %v1531_v60 = vadd.f32 %v1530_v49, %v1529_v33  ;;  %v1608_v46 = vpop.f32.mrf.mxu0 }
 0x14c   : > { %v1532_v57 = vpop.f32.mrf.mxu1 }
 0x14d   : > { %1210 = vst.msk [vmem:[%s2032_s30 + $0x2c] sm:$0xf] %vm1198_vm1, %v1397_v54  ;;  %v1120_v59 = vmax.f32 %v1086_v58, 0.0  ;;  %v984_v62 = vadd.f32 %v1531_v60, %v879_v52  ;;  %v1101_v63 = vpop.f32.mrf.mxu0 }
 0x14e   : > { %v1533_v0 = vpop.f32.mrf.mxu1 }
 0x14f   : > { %v1398_v38 = vpack.c.bf16 %v1120_v59, %v1120_v59  ;;  %v1089_v40 = vadd.f32 %v1088_v50, %v984_v62  ;;  %v1534_v2 = vadd.f32 %v1533_v0, %v1532_v57  ;;  %v1611_v51 = vpop.f32.mrf.mxu0 }
 0x150   : > { %v1535_v4 = vpop.f32.mrf.mxu1 }
 0x151   : > { %1211 = vst.msk [vmem:[%s2032_s30 + $0x30] sm:$0xf] %vm1198_vm1, %v1398_v38  ;;  %v1121_v6 = vmax.f32 %v1089_v40, 0.0  ;;  %v989_v7 = vadd.f32 %v1534_v2, %v884_v1  ;;  %v1104_v8 = vpop.f32.mrf.mxu0 }
 0x152   : > { %v1536_v9 = vpop.f32.mrf.mxu1 }
 0x153   : > { %v1399_v45 = vpack.c.bf16 %v1121_v6, %v1121_v6  ;;  %v1094_v10 = vadd.f32 %v1093_v34, %v989_v7  ;;  %v1537_v27 = vadd.f32 %v1536_v9, %v1535_v4  ;;  %v1612_v56 = vpop.f32.mrf.mxu0 }
 0x154   : > { %v1538_v11 = vpop.f32.mrf.mxu1 }
 0x155   : > { %1212 = vst.msk [vmem:[%s2032_s30 + $0x34] sm:$0xf] %vm1198_vm1, %v1399_v45  ;;  %v1122_v13 = vmax.f32 %v1094_v10, 0.0  ;;  %v992_v14 = vadd.f32 %v1537_v27, %v887_v43 }
 0x156   : > { %v1539_v15 = vpop.f32.mrf.mxu1 }
 0x157   : > { %v1400_v16 = vpack.c.bf16 %v1122_v13, %v1122_v13  ;;  %v1097_v17 = vadd.f32 %v1096_v47, %v992_v14  ;;  %v1540_v18 = vadd.f32 %v1539_v15, %v1538_v11 }
 0x158   : > { %v1541_v19 = vpop.f32.mrf.mxu1 }
 0x159   : > { %1213 = vst.msk [vmem:[%s2032_s30 + $0x38] sm:$0xf] %vm1198_vm1, %v1400_v16  ;;  %v1123_v61 = vmax.f32 %v1097_v17, 0.0  ;;  %v997_v3 = vadd.f32 %v1540_v18, %v2020_v5 }
 0x15a   : > { %v1542_v20 = vpop.f32.mrf.mxu1 }
 0x15b   : > { %v1401_v32 = vpack.c.bf16 %v1123_v61, %v1123_v61  ;;  %v1102_v22 = vadd.f32 %v1101_v63, %v997_v3  ;;  %v1543_v25 = vadd.f32 %v1542_v20, %v1541_v19 }
 0x15d   : > { %1214 = vst.msk [vmem:[%s2032_s30 + $0x3c] sm:$0xf] %vm1198_vm1, %v1401_v32  ;;  %v1124_v48 = vmax.f32 %v1102_v22, 0.0  ;;  %v1000_v50 = vadd.f32 %v1543_v25, %v2023_v12 }
 0x15f   : > { %v1402_v21 = vpack.c.bf16 %v1124_v48, %v1124_v48  ;;  %v1105_v23 = vadd.f32 %v1104_v8, %v1000_v50 }
 0x161   : > { %1215 = vst.msk [vmem:[%s2032_s30 + $0x40] sm:$0xf] %vm1198_vm1, %v1402_v21  ;;  %v1125_v26 = vmax.f32 %v1105_v23, 0.0 }
 0x163   : > { %v1403_v28 = vpack.c.bf16 %v1125_v26, %v1125_v26 }
 0x165   : > { %1216 = vst.msk [vmem:[%s2032_s30 + $0x44] sm:$0xf] %vm1198_vm1, %v1403_v28 }
 0x166 PF: > { %s13_s12 = sadd.s32 1, %s1749_s12  }
 0x167   : > { %p10_p4 = scmp.ge.s32.totalorder %s13_s12, 4  }
 0x169   :  { %12 = sbr.rel (!%p10_p4) target bundleno = 1 (0x1), region = 62 }

// kernel: luxrnet_forward.5
= control target key start
LH: loop header
LB: loop body
LE: loop exit
PB: predicated region body
PF: predicated region fallthrough
CT: control target
= control target key end

     0   :  { %s1717_s1 = inlined_call_operand.vmem [shape: bf16[1024,128], index: 1, kind: input, shape index: {}]   ;;  %s1718_s0 = inlined_call_operand.vmem [shape: bf16[50,1024], index: 0, kind: input, shape index: {}]   ;;  %s1719_s2 = inlined_call_operand.vmem [shape: f32[1,128], index: 2, kind: input, shape index: {}]   ;;  %s1720_s3 = inlined_call_operand.vmem [shape: bf16[50,128], index: 3, kind: output, shape index: {}]  }
   0x1   :  { %v1301_v0 = vld [vmem:[%s1717_s1 + $0x78] sm:$0xff]   ;;  %v1305_v4 = vld [vmem:[%s1717_s1 + $0x70] sm:$0xff]   ;;  %v1309_v8 = vld [vmem:[%s1717_s1 + $0x68] sm:$0xff]  }
   0x2   :  { %v1302_v1 = vld [vmem:[%s1717_s1 + $0xf8] sm:$0xff]   ;;  %1141 = vmatprep.subr.bf16.mxu0 %v1301_v0  ;;  %v1306_v5 = vld [vmem:[%s1717_s1 + $0xf0] sm:$0xff]   ;;  %v1310_v9 = vld [vmem:[%s1717_s1 + $0xe8] sm:$0xff]  }
   0x3   :  { %v1303_v2 = vld [vmem:[%s1717_s1 + $0x38] sm:$0xff]   ;;  %1181 = vmatprep.subr.bf16.mxu1 %v1302_v1  ;;  %v1307_v6 = vld [vmem:[%s1717_s1 + $0x30] sm:$0xff]   ;;  %v1311_v10 = vld [vmem:[%s1717_s1 + $0x28] sm:$0xff]  }
   0x4   :  { %v1304_v3 = vld [vmem:[%s1717_s1 + $0xb8] sm:$0xff]   ;;  %1142 = vmatpush3.bf16.msra.mxu0 %v1303_v2  ;;  %v1308_v7 = vld [vmem:[%s1717_s1 + $0xb0] sm:$0xff]   ;;  %v1312_v11 = vld [vmem:[%s1717_s1 + $0xa8] sm:$0xff]  }
   0x5   :  { %1182 = vmatpush3.bf16.msra.mxu1 %v1304_v3  ;;  %1143 = vmatprep.subr.bf16.mxu0 %v1305_v4  ;;  %v1313_v12 = vld [vmem:[%s1717_s1 + $0x60] sm:$0xff]   ;;  %v1317_v16 = vld [vmem:[%s1717_s1 + $0x58] sm:$0xff]   ;;  %v1321_v20 = vld [vmem:[%s1717_s1 + $0x50] sm:$0xff]  }
   0x6   :  { %1183 = vmatprep.subr.bf16.mxu1 %v1306_v5  ;;  %v1314_v13 = vld [vmem:[%s1717_s1 + $0xe0] sm:$0xff]   ;;  %v1318_v17 = vld [vmem:[%s1717_s1 + $0xd8] sm:$0xff]   ;;  %v1322_v21 = vld [vmem:[%s1717_s1 + $0xd0] sm:$0xff]  }
   0x7   :  { %v1315_v14 = vld [vmem:[%s1717_s1 + $0x20] sm:$0xff]   ;;  %v1319_v18 = vld [vmem:[%s1717_s1 + $0x18] sm:$0xff]   ;;  %v1323_v22 = vld [vmem:[%s1717_s1 + $0x10] sm:$0xff]  }
   0x8   :  { %1144 = vmatpush3.bf16.msra.mxu0 %v1307_v6  ;;  %v1316_v15 = vld [vmem:[%s1717_s1 + $0xa0] sm:$0xff]   ;;  %v1320_v19 = vld [vmem:[%s1717_s1 + $0x98] sm:$0xff]   ;;  %v1324_v23 = vld [vmem:[%s1717_s1 + $0x90] sm:$0xff]  }
   0x9   :  { %1184 = vmatpush3.bf16.msra.mxu1 %v1308_v7  ;;  %1145 = vmatprep.subr.bf16.mxu0 %v1309_v8  ;;  %v1325_v24 = vld [vmem:[%s1717_s1 + $0x48] sm:$0xff]   ;;  %v1329_v28 = vld [vmem:[%s1717_s1 + $0x40] sm:$0xff]   ;;  %v1333_v40 = vld [vmem:[%s1717_s1 + $0x178] sm:$0xff]  }
   0xa   :  { %1185 = vmatprep.subr.bf16.mxu1 %v1310_v9  ;;  %v1326_v25 = vld [vmem:[%s1717_s1 + $0xc8] sm:$0xff]   ;;  %v1330_v29 = vld [vmem:[%s1717_s1 + $0xc0] sm:$0xff]   ;;  %v1334_v41 = vld [vmem:[%s1717_s1 + $0x1f8] sm:$0xff]  }
   0xb   :  { %v1327_v26 = vld [vmem:[%s1717_s1 + $0x8] sm:$0xff]   ;;  %v1331_v30 = vld [vmem:[%s1717_s1] sm:$0xff]   ;;  %v1335_v42 = vld [vmem:[%s1717_s1 + $0x138] sm:$0xff]  }
   0xc   :  { %1146 = vmatpush3.bf16.msra.mxu0 %v1311_v10  ;;  %v1328_v27 = vld [vmem:[%s1717_s1 + $0x88] sm:$0xff]   ;;  %v1332_v31 = vld [vmem:[%s1717_s1 + $0x80] sm:$0xff]   ;;  %v1336_v43 = vld [vmem:[%s1717_s1 + $0x1b8] sm:$0xff]  }
   0xd   :  { %1186 = vmatpush3.bf16.msra.mxu1 %v1312_v11  ;;  %1147 = vmatprep.subr.bf16.mxu0 %v1313_v12  ;;  %v15_v32 = vld [vmem:[%s1718_s0] sm:$0xff]  ;;  %v16_v34 = vld [vmem:[%s1718_s0 + $0x8] sm:$0xff]  ;;  %v1337_v44 = vld [vmem:[%s1717_s1 + $0x170] sm:$0xff]  }
   0xe   :  { %1187 = vmatprep.subr.bf16.mxu1 %v1314_v13  ;;  %v19_v33 = vld [vmem:[%s1718_s0 + $0x20] sm:$0xff]  ;;  %v20_v37 = vld [vmem:[%s1718_s0 + $0x28] sm:$0xff]  ;;  %v1338_v45 = vld [vmem:[%s1717_s1 + $0x1f0] sm:$0xff]  }
   0xf   :  { %v1014_v35 = vcombine.low %v15_v32, %v19_v33  ;;  %v1015_v36 = vcombine.high %v15_v32, %v19_v33  ;;  %v1016_v38 = vcombine.low %v16_v34, %v20_v37  ;;  %v1017_v39 = vcombine.high %v16_v34, %v20_v37  ;;  %v1339_v46 = vld [vmem:[%s1717_s1 + $0x130] sm:$0xff]   ;;  %v23_v48 = vld [vmem:[%s1718_s0 + $0x40] sm:$0xff]  ;;  %v24_v51 = vld [vmem:[%s1718_s0 + $0x48] sm:$0xff] }
  0x10   :  { %1148 = vmatpush3.bf16.msra.mxu0 %v1315_v14  ;;  %v1340_v47 = vld [vmem:[%s1717_s1 + $0x1b0] sm:$0xff]   ;;  %v27_v49 = vld [vmem:[%s1718_s0 + $0x60] sm:$0xff]  ;;  %v28_v52 = vld [vmem:[%s1718_s0 + $0x68] sm:$0xff] }
  0x11   :  { %1188 = vmatpush3.bf16.msra.mxu1 %v1316_v15  ;;  %1149 = vmatprep.subr.bf16.mxu0 %v1317_v16  ;;  %v1023_v50 = vcombine.high %v23_v48, %v27_v49  ;;  %v1022_v53 = vcombine.low %v23_v48, %v27_v49  ;;  %v1025_v54 = vcombine.high %v24_v51, %v28_v52  ;;  %v1341_v56 = vld [vmem:[%s1717_s1 + $0x168] sm:$0xff]   ;;  %v1345_v60 = vld [vmem:[%s1717_s1 + $0x160] sm:$0xff]   ;;  %v1349_v8 = vld [vmem:[%s1717_s1 + $0x158] sm:$0xff]  }
  0x12   :  { %1189 = vmatprep.subr.bf16.mxu1 %v1318_v17  ;;  %742 = vmatprep.mubr.bf16.mxu0 %v1015_v36  ;;  %v1024_v55 = vcombine.low %v24_v51, %v28_v52  ;;  %v1342_v57 = vld [vmem:[%s1717_s1 + $0x1e8] sm:$0xff]   ;;  %v1346_v61 = vld [vmem:[%s1717_s1 + $0x1e0] sm:$0xff]   ;;  %v1350_v9 = vld [vmem:[%s1717_s1 + $0x1d8] sm:$0xff]  }
  0x13   :  { %806 = vmatprep.mubr.bf16.mxu1 %v1017_v39  ;;  %v1343_v58 = vld [vmem:[%s1717_s1 + $0x128] sm:$0xff]   ;;  %v1347_v62 = vld [vmem:[%s1717_s1 + $0x120] sm:$0xff]   ;;  %v1351_v10 = vld [vmem:[%s1717_s1 + $0x118] sm:$0xff]  }
  0x14   :  { %1150 = vmatpush3.bf16.msra.mxu0 %v1319_v18  ;;  %v1344_v59 = vld [vmem:[%s1717_s1 + $0x1a8] sm:$0xff]   ;;  %v1348_v63 = vld [vmem:[%s1717_s1 + $0x1a0] sm:$0xff]   ;;  %v1352_v11 = vld [vmem:[%s1717_s1 + $0x198] sm:$0xff]  }
  0x15   :  { %1190 = vmatpush3.bf16.msra.mxu1 %v1320_v19  ;;  %1151 = vmatprep.subr.bf16.mxu0 %v1321_v20  ;;  %v31_v0 = vld [vmem:[%s1718_s0 + $0x80] sm:$0xff]  ;;  %v32_v2 = vld [vmem:[%s1718_s0 + $0x88] sm:$0xff]  ;;  %v1353_v12 = vld [vmem:[%s1717_s1 + $0x150] sm:$0xff]  }
  0x16   :  { %1191 = vmatprep.subr.bf16.mxu1 %v1322_v21  ;;  %v35_v1 = vld [vmem:[%s1718_s0 + $0xa0] sm:$0xff]  ;;  %v36_v3 = vld [vmem:[%s1718_s0 + $0xa8] sm:$0xff]  ;;  %v1354_v13 = vld [vmem:[%s1717_s1 + $0x1d0] sm:$0xff]  }
  0x17   :  { %v1031_v4 = vcombine.high %v31_v0, %v35_v1  ;;  %v1033_v5 = vcombine.high %v32_v2, %v36_v3  ;;  %v1030_v6 = vcombine.low %v31_v0, %v35_v1  ;;  %v1032_v7 = vcombine.low %v32_v2, %v36_v3  ;;  %v1355_v14 = vld [vmem:[%s1717_s1 + $0x110] sm:$0xff]   ;;  %v39_v16 = vld [vmem:[%s1718_s0 + $0xc0] sm:$0x11]  ;;  %v40_v17 = vld [vmem:[%s1718_s0 + $0xc8] sm:$0x11] }
  0x18   :  { %1152 = vmatpush3.bf16.msra.mxu0 %v1323_v22  ;;  %v1356_v15 = vld [vmem:[%s1717_s1 + $0x190] sm:$0xff]   ;;  %v1039_v18 = vcombine.high %v39_v16, %v39_v16  ;;  %v1041_v19 = vcombine.high %v40_v17, %v40_v17  ;;  %v1038_v20 = vcombine.low %v39_v16, %v39_v16  ;;  %v1361_v21 = vld [vmem:[%s1717_s1 + $0x148] sm:$0xff]   ;;  %v1040_v22 = vcombine.low %v40_v17, %v40_v17  ;;  %v18_v32 = vld [vmem:[%s1718_s0 + $0x18] sm:$0xff] }
  0x19   :  { %1192 = vmatpush3.bf16.msra.mxu1 %v1324_v23  ;;  %1153 = vmatprep.subr.bf16.mxu0 %v1325_v24  ;;  %v1362_v23 = vld [vmem:[%s1717_s1 + $0x1c8] sm:$0xff]   ;;  %v22_v33 = vld [vmem:[%s1718_s0 + $0x38] sm:$0xff]  ;;  %v25_v37 = vld [vmem:[%s1718_s0 + $0x50] sm:$0xff] }
  0x1a   :  { %1193 = vmatprep.subr.bf16.mxu1 %v1326_v25  ;;  %v1363_v24 = vld [vmem:[%s1717_s1 + $0x108] sm:$0xff]   ;;  %v1020_v36 = vcombine.low %v18_v32, %v22_v33  ;;  %v26_v39 = vld [vmem:[%s1718_s0 + $0x58] sm:$0xff]  ;;  %v41_v52 = vld [vmem:[%s1718_s0 + $0xd0] sm:$0x11] }
  0x1b   :  { %v1364_v25 = vld [vmem:[%s1717_s1 + $0x188] sm:$0xff]  }
  0x1c   :  { %1154 = vmatpush3.bf16.msra.mxu0 %v1327_v26  ;;  %v1365_v26 = vld [vmem:[%s1717_s1 + $0x140] sm:$0xff]  }
  0x1d   :  { %1194 = vmatpush3.bf16.msra.mxu1 %v1328_v27  ;;  %1155 = vmatprep.subr.bf16.mxu0 %v1329_v28  ;;  %v1366_v27 = vld [vmem:[%s1717_s1 + $0x1c0] sm:$0xff]  }
  0x1e   :  { %1195 = vmatprep.subr.bf16.mxu1 %v1330_v29  ;;  %v1367_v28 = vld [vmem:[%s1717_s1 + $0x100] sm:$0xff]  }
  0x1f   :  { %v1368_v29 = vld [vmem:[%s1717_s1 + $0x180] sm:$0xff]  }
  0x20   :  { %1156 = vmatpush3.bf16.msra.mxu0 %v1331_v30  ;;  %v17_v30 = vld [vmem:[%s1718_s0 + $0x10] sm:$0xff] }
  0x21   :  { %1196 = vmatpush3.bf16.msra.mxu1 %v1332_v31  ;;  %1221 = vmatprep.subr.bf16.mxu0 %v1333_v40  ;;  %v21_v31 = vld [vmem:[%s1718_s0 + $0x30] sm:$0xff]  ;;  %v1021_v40 = vcombine.high %v18_v32, %v22_v33 }
  0x22   :  { %1261 = vmatprep.subr.bf16.mxu1 %v1334_v41  ;;  %v1018_v34 = vcombine.low %v17_v30, %v21_v31 }
  0x23   :  { %743 = vmatmul.mubr.bf16.vlgmr.msra.gmra.mxu0 %v1014_v35  ;;  %v1019_v35 = vcombine.high %v17_v30, %v21_v31 }
  0x24   :  { %807 = vmatmul.mubr.bf16.vlgmr.msra.gmra.mxu1 %v1016_v38  ;;  %1222 = vmatpush3.bf16.msra.mxu0 %v1335_v42  ;;  %v29_v38 = vld [vmem:[%s1718_s0 + $0x70] sm:$0xff]  ;;  %v30_v42 = vld [vmem:[%s1718_s0 + $0x78] sm:$0xff] }
  0x25   :  { %1262 = vmatpush3.bf16.msra.mxu1 %v1336_v43  ;;  %1223 = vmatprep.subr.bf16.mxu0 %v1337_v44  ;;  %v1027_v41 = vcombine.high %v25_v37, %v29_v38  ;;  %v1029_v43 = vcombine.high %v26_v39, %v30_v42  ;;  %v33_v44 = vld [vmem:[%s1718_s0 + $0x90] sm:$0xff]  ;;  %v1026_v48 = vcombine.low %v25_v37, %v29_v38 }
  0x26   :  { %1263 = vmatprep.subr.bf16.mxu1 %v1338_v45  ;;  %750 = vmatprep.mubr.bf16.mxu0 %v1023_v50  ;;  %v37_v45 = vld [vmem:[%s1718_s0 + $0xb0] sm:$0xff]  ;;  %v1028_v49 = vcombine.low %v26_v39, %v30_v42 }
  0x27   :  { %814 = vmatprep.mubr.bf16.mxu1 %v1025_v54  ;;  %v1035_v50 = vcombine.high %v33_v44, %v37_v45  ;;  %v1034_v54 = vcombine.low %v33_v44, %v37_v45 }
  0x28   :  { %1224 = vmatpush3.bf16.msra.mxu0 %v1339_v46  ;;  %v34_v46 = vld [vmem:[%s1718_s0 + $0x98] sm:$0xff] }
  0x29   :  { %1264 = vmatpush3.bf16.msra.mxu1 %v1340_v47  ;;  %1225 = vmatprep.subr.bf16.mxu0 %v1341_v56  ;;  %v38_v47 = vld [vmem:[%s1718_s0 + $0xb8] sm:$0xff]  ;;  %v1043_v56 = vcombine.high %v41_v52, %v41_v52 }
  0x2a   :  { %1265 = vmatprep.subr.bf16.mxu1 %v1342_v57  ;;  %v1037_v51 = vcombine.high %v34_v46, %v38_v47 }
  0x2b   :  { %751 = vmatmul.mubr.bf16.gmra.mxu0 %v1022_v53  ;;  %v42_v53 = vld [vmem:[%s1718_s0 + $0xd8] sm:$0x11] }
  0x2c   :  { %815 = vmatmul.mubr.bf16.gmra.mxu1 %v1024_v55  ;;  %1226 = vmatpush3.bf16.msra.mxu0 %v1343_v58  ;;  %v1036_v55 = vcombine.low %v34_v46, %v38_v47  ;;  %v1045_v57 = vcombine.high %v42_v53, %v42_v53  ;;  %v1042_v58 = vcombine.low %v41_v52, %v41_v52 }
  0x2d   :  { %1266 = vmatpush3.bf16.msra.mxu1 %v1344_v59  ;;  %1227 = vmatprep.subr.bf16.mxu0 %v1345_v60  ;;  %v1044_v59 = vcombine.low %v42_v53, %v42_v53 }
  0x2e   :  { %1267 = vmatprep.subr.bf16.mxu1 %v1346_v61  ;;  %758 = vmatprep.mubr.bf16.mxu0 %v1031_v4 }
  0x2f   :  { %822 = vmatprep.mubr.bf16.mxu1 %v1033_v5 }
  0x30   :  { %1228 = vmatpush3.bf16.msra.mxu0 %v1347_v62 }
  0x31   :  { %1268 = vmatpush3.bf16.msra.mxu1 %v1348_v63  ;;  %1229 = vmatprep.subr.bf16.mxu0 %v1349_v8 }
  0x32   :  { %1269 = vmatprep.subr.bf16.mxu1 %v1350_v9 }
  0x33   :  { %759 = vmatmul.mubr.bf16.gmra.mxu0 %v1030_v6 }
  0x34   :  { %823 = vmatmul.mubr.bf16.gmra.mxu1 %v1032_v7  ;;  %1230 = vmatpush3.bf16.msra.mxu0 %v1351_v10 }
  0x35   :  { %1270 = vmatpush3.bf16.msra.mxu1 %v1352_v11  ;;  %1231 = vmatprep.subr.bf16.mxu0 %v1353_v12 }
  0x36   :  { %1271 = vmatprep.subr.bf16.mxu1 %v1354_v13  ;;  %766 = vmatprep.mubr.bf16.mxu0 %v1039_v18 }
  0x37   :  { %830 = vmatprep.mubr.bf16.mxu1 %v1041_v19 }
  0x38   :  { %1232 = vmatpush3.bf16.msra.mxu0 %v1355_v14 }
  0x39   :  { %1272 = vmatpush3.bf16.msra.mxu1 %v1356_v15  ;;  %1233 = vmatprep.subr.bf16.mxu0 %v1361_v21 }
  0x3a   :  { %1273 = vmatprep.subr.bf16.mxu1 %v1362_v23 }
  0x3b   :  { %767 = vmatmul.mubr.bf16.gmra.mxu0 %v1038_v20 }
  0x3c   :  { %831 = vmatmul.mubr.bf16.gmra.mxu1 %v1040_v22  ;;  %1234 = vmatpush3.bf16.msra.mxu0 %v1363_v24 }
  0x3d   :  { %1274 = vmatpush3.bf16.msra.mxu1 %v1364_v25  ;;  %1235 = vmatprep.subr.bf16.mxu0 %v1365_v26 }
  0x3e   :  { %1275 = vmatprep.subr.bf16.mxu1 %v1366_v27  ;;  %870 = vmatprep.mubr.bf16.mxu0 %v1019_v35  ;;  %v1688_v27 = vld [vmem:[%s1719_s2] ss:$0 sm:$0xff] }
  0x3f   :  { %934 = vmatprep.mubr.bf16.mxu1 %v1021_v40 }
  0x40   :  { %1236 = vmatpush3.bf16.msra.mxu0 %v1367_v28 }
  0x41   :  { %1276 = vmatpush3.bf16.msra.mxu1 %v1368_v29 }
  0x43   :  { %871 = vmatmul.mubr.bf16.vlgmr.msra.gmra.mxu0 %v1018_v34 }
  0x44   :  { %935 = vmatmul.mubr.bf16.vlgmr.msra.gmra.mxu1 %v1020_v36  ;;  %878 = vmatprep.mubr.bf16.mxu0 %v1027_v41 }
  0x45   :  { %942 = vmatprep.mubr.bf16.mxu1 %v1029_v43 }
  0x4b   :  { %879 = vmatmul.mubr.bf16.gmra.mxu0 %v1026_v48 }
  0x4c   :  { %943 = vmatmul.mubr.bf16.gmra.mxu1 %v1028_v49  ;;  %886 = vmatprep.mubr.bf16.mxu0 %v1035_v50 }
  0x4d   :  { %950 = vmatprep.mubr.bf16.mxu1 %v1037_v51 }
  0x53   :  { %887 = vmatmul.mubr.bf16.gmra.mxu0 %v1034_v54 }
  0x54   :  { %951 = vmatmul.mubr.bf16.gmra.mxu1 %v1036_v55  ;;  %894 = vmatprep.mubr.bf16.mxu0 %v1043_v56 }
  0x55   :  { %958 = vmatprep.mubr.bf16.mxu1 %v1045_v57 }
  0x5b   :  { %895 = vmatmul.mubr.bf16.gmra.mxu0 %v1042_v58 }
  0x5c   :  { %959 = vmatmul.mubr.bf16.gmra.mxu1 %v1044_v59 }
  0xe3   :  { %v1157_v60 = vpop.f32.mrf.mxu0 }
  0xe4   :  { %v1197_v61 = vpop.f32.mrf.mxu1 }
  0xe5   :  { %v1158_v62 = vpop.f32.mrf.mxu0 }
  0xe6   :  { %v1198_v63 = vpop.f32.mrf.mxu1  ;;  %v1159_v24 = vadd.f32 %v1158_v62, %v1157_v60 }
  0xe7   :  { %v1160_v0 = vpop.f32.mrf.mxu0  ;;  %v1199_v33 = vadd.f32 %v1198_v63, %v1197_v61 }
  0xe8   :  { %v1200_v1 = vpop.f32.mrf.mxu1  ;;  %v745_v30 = vadd.f32 %v1159_v24, %v1688_v27 }
  0xe9   :  { %v1161_v2 = vpop.f32.mrf.mxu0 }
  0xea   :  { %v1201_v3 = vpop.f32.mrf.mxu1  ;;  %v1162_v31 = vadd.f32 %v1161_v2, %v1160_v0  ;;  %v809_v36 = vadd.f32 %v1199_v33, %v745_v30 }
  0xeb   :  { %v1163_v4 = vpop.f32.mrf.mxu0  ;;  %v1202_v42 = vadd.f32 %v1201_v3, %v1200_v1 }
  0xec   :  { %v1203_v5 = vpop.f32.mrf.mxu1  ;;  %v748_v37 = vadd.f32 %v1162_v31, %v1688_v27 }
  0xed   :  { %v1164_v6 = vpop.f32.mrf.mxu0 }
  0xee   :  { %v1204_v7 = vpop.f32.mrf.mxu1  ;;  %v1165_v38 = vadd.f32 %v1164_v6, %v1163_v4  ;;  %v812_v47 = vadd.f32 %v1202_v42, %v748_v37 }
  0xef   :  { %v1166_v8 = vpop.f32.mrf.mxu0  ;;  %v1205_v53 = vadd.f32 %v1204_v7, %v1203_v5 }
  0xf0   :  { %v1206_v9 = vpop.f32.mrf.mxu1  ;;  %v753_v48 = vadd.f32 %v1165_v38, %v1688_v27 }
  0xf1   :  { %v1167_v10 = vpop.f32.mrf.mxu0 }
  0xf2   :  { %v1207_v11 = vpop.f32.mrf.mxu1  ;;  %v1168_v45 = vadd.f32 %v1167_v10, %v1166_v8  ;;  %v817_v60 = vadd.f32 %v1205_v53, %v753_v48 }
  0xf3   :  { %v1169_v12 = vpop.f32.mrf.mxu0  ;;  %v1208_v1 = vadd.f32 %v1207_v11, %v1206_v9 }
  0xf4   :  { %v1669_v13 = vpop.f32.mrf.mxu1  ;;  %v756_v58 = vadd.f32 %v1168_v45, %v1688_v27 }
  0xf5   :  { %v1170_v14 = vpop.f32.mrf.mxu0 }
  0xf6   :  { %v1671_v15 = vpop.f32.mrf.mxu1  ;;  %v1171_v61 = vadd.f32 %v1170_v14, %v1169_v12  ;;  %v820_v10 = vadd.f32 %v1208_v1, %v756_v58 }
  0xf7   :  { %v1172_v16 = vpop.f32.mrf.mxu0  ;;  %v1211_v12 = vadd.f32 %v1671_v15, %v1669_v13 }
  0xf8   :  { %v1673_v17 = vpop.f32.mrf.mxu1  ;;  %v761_v24 = vadd.f32 %v1171_v61, %v1688_v27 }
  0xf9   :  { %v1173_v18 = vpop.f32.mrf.mxu0 }
  0xfa   :  { %v1675_v19 = vpop.f32.mrf.mxu1  ;;  %v1174_v5 = vadd.f32 %v1173_v18, %v1172_v16 }
  0xfb   :  { %v1677_v20 = vpop.f32.mrf.mxu0  ;;  %v1214_v13 = vadd.f32 %v1675_v19, %v1673_v17 }
  0xfc   :  { %v1679_v21 = vpop.f32.mrf.mxu1  ;;  %v764_v16 = vadd.f32 %v1174_v5, %v1688_v27 }
  0xfd   :  { %v1681_v22 = vpop.f32.mrf.mxu0 }
  0xfe   :  { %v1683_v23 = vpop.f32.mrf.mxu1  ;;  %v1177_v33 = vadd.f32 %v1681_v22, %v1677_v20 }
  0xff   :  { %v1178_v25 = vpop.f32.mrf.mxu0  ;;  %v1217_v22 = vadd.f32 %v1683_v23, %v1679_v21 }
 0x100   :  { %v1218_v26 = vpop.f32.mrf.mxu1 }
 0x101   :  { %v1179_v28 = vpop.f32.mrf.mxu0 }
 0x102   :  { %v1219_v29 = vpop.f32.mrf.mxu1 }
 0x103   :  { %v1237_v32 = vpop.f32.mrf.mxu0 }
 0x104   :  { %v1277_v34 = vpop.f32.mrf.mxu1 }
 0x105   :  { %v1238_v35 = vpop.f32.mrf.mxu0 }
 0x106   :  { %v1239_v39 = vadd.f32 %v1238_v35, %v1237_v32  ;;  %v1278_v40 = vpop.f32.mrf.mxu1  ;;  %v825_v32 = vadd.f32 %v1211_v12, %v761_v24 }
 0x107   :  { %v1240_v41 = vpop.f32.mrf.mxu0  ;;  %v1279_v49 = vadd.f32 %v1278_v40, %v1277_v34 }
 0x108   :  { %v873_v43 = vadd.f32 %v1239_v39, %v809_v36  ;;  %v1280_v44 = vpop.f32.mrf.mxu1 }
 0x109   :  { %v1241_v46 = vpop.f32.mrf.mxu0 }
 0x10a   :  { %v1242_v50 = vadd.f32 %v1241_v46, %v1240_v41  ;;  %v1281_v51 = vpop.f32.mrf.mxu1  ;;  %v937_v54 = vadd.f32 %v1279_v49, %v873_v43  ;;  %v828_v41 = vadd.f32 %v1214_v13, %v764_v16  ;;  %v769_v43 = vadd.f32 %v1177_v33, %v1688_v27 }
 0x10b   :  { %v1243_v52 = vpop.f32.mrf.mxu0  ;;  %v1282_v56 = vadd.f32 %v1281_v51, %v1280_v44 }
 0x10c   :  { %v876_v55 = vadd.f32 %v1242_v50, %v812_v47  ;;  %v1283_v57 = vpop.f32.mrf.mxu1  ;;  %v966_v3 = vmax.f32 %v937_v54, 0.0  ;;  %v833_v51 = vadd.f32 %v1217_v22, %v769_v43 }
 0x10d   :  { %v1244_v59 = vpop.f32.mrf.mxu0 }
 0x10e   :  { %v940_v62 = vadd.f32 %v1282_v56, %v876_v55  ;;  %v1245_v63 = vadd.f32 %v1244_v59, %v1243_v52  ;;  %v1284_v0 = vpop.f32.mrf.mxu1 }
 0x10f   :  { %v1246_v2 = vpop.f32.mrf.mxu0  ;;  %v1285_v26 = vadd.f32 %v1284_v0, %v1283_v57 }
 0x110   :  { %v967_v4 = vmax.f32 %v940_v62, 0.0  ;;  %v881_v6 = vadd.f32 %v1245_v63, %v817_v60  ;;  %v1286_v8 = vpop.f32.mrf.mxu1 }
 0x111   :  { %v1247_v7 = vpop.f32.mrf.mxu0 }
 0x112   :  { %v1127_v25 = vpack.c.bf16 %v967_v4, %v966_v3  ;;  %v1248_v28 = vadd.f32 %v1247_v7, %v1246_v2  ;;  %v1287_v29 = vpop.f32.mrf.mxu1  ;;  %v945_v9 = vadd.f32 %v1285_v26, %v881_v6 }
 0x113   :  { %v1249_v30 = vpop.f32.mrf.mxu0  ;;  %v1288_v14 = vadd.f32 %v1287_v29, %v1286_v8 }
 0x114   :  { %1128 = vst [vmem:[%s1720_s3] sm:$0xff] %v1127_v25   ;;  %v884_v11 = vadd.f32 %v1248_v28, %v820_v10  ;;  %v1289_v31 = vpop.f32.mrf.mxu1  ;;  %v968_v37 = vmax.f32 %v945_v9, 0.0 }
 0x115   :  { %v1250_v18 = vpop.f32.mrf.mxu0 }
 0x116   :  { %v948_v34 = vadd.f32 %v1288_v14, %v884_v11  ;;  %v1251_v35 = vadd.f32 %v1250_v18, %v1249_v30  ;;  %v1290_v36 = vpop.f32.mrf.mxu1 }
 0x117   :  { %v1252_v15 = vpop.f32.mrf.mxu0  ;;  %v1291_v45 = vadd.f32 %v1290_v36, %v1289_v31 }
 0x118   :  { %v969_v38 = vmax.f32 %v948_v34, 0.0  ;;  %v889_v39 = vadd.f32 %v1251_v35, %v825_v32  ;;  %v1292_v40 = vpop.f32.mrf.mxu1 }
 0x119   :  { %v1253_v42 = vpop.f32.mrf.mxu0 }
 0x11a   :  { %v1132_v44 = vpack.c.bf16 %v969_v38, %v968_v37  ;;  %v1254_v46 = vadd.f32 %v1253_v42, %v1252_v15  ;;  %v1293_v47 = vpop.f32.mrf.mxu1  ;;  %v953_v17 = vadd.f32 %v1291_v45, %v889_v39 }
 0x11b   :  { %v1255_v20 = vpop.f32.mrf.mxu0  ;;  %v1294_v48 = vadd.f32 %v1293_v47, %v1292_v40 }
 0x11c   :  { %1139 = vst [vmem:[%s1720_s3 + $0x8] sm:$0xff] %v1132_v44   ;;  %v892_v19 = vadd.f32 %v1254_v46, %v828_v41  ;;  %v1295_v49 = vpop.f32.mrf.mxu1  ;;  %v970_v55 = vmax.f32 %v953_v17, 0.0 }
 0x11d   :  { %v1256_v50 = vpop.f32.mrf.mxu0 }
 0x11e   :  { %v956_v52 = vadd.f32 %v1294_v48, %v892_v19  ;;  %v1257_v27 = vadd.f32 %v1256_v50, %v1255_v20  ;;  %v1296_v53 = vpop.f32.mrf.mxu1 }
 0x11f   :  { %v1258_v54 = vpop.f32.mrf.mxu0  ;;  %v1297_v58 = vadd.f32 %v1296_v53, %v1295_v49 }
 0x120   :  { %v971_v56 = vmax.f32 %v956_v52, 0.0  ;;  %v897_v57 = vadd.f32 %v1257_v27, %v833_v51  ;;  %v1298_v59 = vpop.f32.mrf.mxu1 }
 0x121   :  { %v1259_v21 = vpop.f32.mrf.mxu0 }
 0x122   :  { %v1137_v23 = vpack.c.bf16 %v971_v56, %v970_v55  ;;  %v961_v60 = vadd.f32 %v1297_v58, %v897_v57  ;;  %v1299_v61 = vpop.f32.mrf.mxu1 }
 0x124   :  { %1140 = vst [vmem:[%s1720_s3 + $0x10] sm:$0xff] %v1137_v23   ;;  %v972_v62 = vmax.f32 %v961_v60, 0.0 }
 0x126   :  { %v1123_v63 = vpack.c.bf16 %v972_v62, %v972_v62 }
 0x128   :  { %1008 = vst [vmem:[%s1720_s3 + $0x18] sm:$0x1] %v1123_v63 }

// kernel: luxrnet_forward.7
= control target key start
LH: loop header
LB: loop body
LE: loop exit
PB: predicated region body
PF: predicated region fallthrough
CT: control target
= control target key end

     0   :  { %vm97_vm0 = vcmask 1043456   ;;  %vm98_vm1 = vcmask 1044480   ;;  %v6593_v1 = vmov 65535   ;;  %v9614_v3 = vmov 0.0   ;;  %s9578_s0 = inlined_call_operand.vmem [shape: bf16[16,9], index: 0, kind: input, shape index: {}]   ;;  %s9579_s1 = inlined_call_operand.vmem [shape: bf16[2,512], index: 1, kind: input, shape index: {}]   ;;  %s9580_s2 = inlined_call_operand.vmem [shape: bf16[9,384], index: 2, kind: input, shape index: {}]   ;;  %s9581_s3 = inlined_call_operand.vmem [shape: bf16[128,384], index: 3, kind: input, shape index: {}]   ;;  %s9582_s4 = inlined_call_operand.vmem [shape: f32[1,384], index: 4, kind: input, shape index: {}]   ;;  %s9583_s5 = inlined_call_operand.vmem [shape: f32[1,384], index: 5, kind: input, shape index: {}]   ;;  %s9584_s6 = inlined_call_operand.vmem [shape: bf16[128,384], index: 6, kind: input, shape index: {}]   ;;  %s9585_s7 = inlined_call_operand.vmem [shape: bf16[128,384], index: 7, kind: input, shape index: {}]   ;;  %s9586_s8 = inlined_call_operand.vmem [shape: f32[1,384], index: 8, kind: input, shape index: {}]   ;;  %s9587_s9 = inlined_call_operand.vmem [shape: f32[1,384], index: 9, kind: input, shape index: {}]   ;;  %s9588_s10 = inlined_call_operand.vmem [shape: bf16[512,512], index: 10, kind: input, shape index: {}]   ;;  %s9589_s11 = inlined_call_operand.vmem [shape: bf16[128,512], index: 11, kind: input, shape index: {}]   ;;  %s9590_s12 = inlined_call_operand.vmem [shape: f32[1,512], index: 12, kind: input, shape index: {}]   ;;  %s9591_s13 = inlined_call_operand.vmem [shape: bf16[512,10], index: 13, kind: input, shape index: {}]   ;;  %s9592_s14 = inlined_call_operand.vmem [shape: f32[1,10], index: 14, kind: input, shape index: {}]   ;;  %s9593_s15 = inlined_call_operand.hbm [shape: f32[16,10], index: 15, kind: output, shape index: {}]  }
   0x1   :  { %v5894_v0 = vld [vmem:[%s9580_s2 + $0x4] ss:$12 sps:$4 sm:$0x1f]   ;;  %v99_v2 = vsel %vm97_vm0, 4294967295, %v6593_v1  ;;  %5400 = vmatprep.subr.bf16.mxu1 %v9614_v3  ;;  %v9594_v9 = vmov 0   ;;  %vm6596_vm2 = vmmov 0   ;;  %v60_v48 = vlaneseq }
   0x2   :  { %v5896_v4 = vld [vmem:[%s9580_s2] ss:$12 sps:$4 sm:$0x1f]   ;;  %v100_v5 = vsel %vm98_vm1, %v99_v2, 0  ;;  %142 = vmatprep.mubr.bf16.mxu0 %v9594_v9  ;;  %5402 = vmatprep.mubr.msk.bf16.mxu1 %vm6596_vm2, %v9614_v3  ;;  %v5901_v13 = vld [vmem:[%s9588_s10 + $0xe4] ss:$16 sps:$4 sm:$0xff]  }
   0x3   :  { %v5897_v6 = vld [vmem:[%s9580_s2 + $0x8] ss:$12 sps:$4 sm:$0x1f]   ;;  %v105_v7 = vand.u32 %v5894_v0, %v100_v5  ;;  %v102_v8 = vand.u32 %v5896_v4, %v100_v5  ;;  %v5898_v10 = vld [vmem:[%s9578_s0] sm:$0xff]   ;;  %vm93_vm3 = vcmask 72704   ;;  %v6818_v55 = vshrl.u32 %v60_v48, 7 }
   0x4   :  { %v108_v11 = vand.u32 %v5897_v6, %v100_v5  ;;  %v5899_v12 = vld [vmem:[%s9588_s10 + $0xe0] ss:$16 sps:$4 sm:$0xff]   ;;  %v5904_v15 = vld [vmem:[%s9588_s10 + $0x2e4] ss:$16 sps:$4 sm:$0xff]   ;;  %v6597_v49 = vmov 1966171168  }
   0x5   :  { %124 = vmatprep.subr.bf16.mxu0 %v105_v7  ;;  %v5902_v14 = vld [vmem:[%s9588_s10 + $0x2e0] ss:$16 sps:$4 sm:$0xff]   ;;  %v5907_v16 = vld [vmem:[%s9588_s10 + $0xc4] ss:$16 sps:$4 sm:$0xff]   ;;  %v333_v50 = vunpack.c.l.s4 %v6597_v49  ;;  %9770 = vst [vmem:[#allocation5_spill] sm:$0xff] %v6818_v55 }
   0x6   :  { %125 = vmatpush1.bf16.msra.mxu0 %v102_v8  ;;  %5401 = vmatpush3.bf16.msra.mxu1 %v108_v11  ;;  %v5910_v17 = vld [vmem:[%s9588_s10 + $0x2c4] ss:$16 sps:$4 sm:$0xff]   ;;  %v5905_v18 = vld [vmem:[%s9588_s10 + $0xc0] ss:$16 sps:$4 sm:$0xff]   ;;  %v6025_v48 = vld [vmem:[%s9588_s10 + $0x48] ss:$16 sps:$4 sm:$0xff]  }
   0x7   :  { %992 = vmatprep.subr.bf16.mxu0 %v5901_v13  ;;  %1033 = vmatprep.subr.bf16.mxu1 %v5904_v15  ;;  %v5908_v19 = vld [vmem:[%s9588_s10 + $0x2c0] ss:$16 sps:$4 sm:$0xff]   ;;  %v5913_v20 = vld [vmem:[%s9588_s10 + $0xa4] ss:$16 sps:$4 sm:$0xff]   ;;  %v334_v56 = vunpack.c.0.s8 %v333_v50  ;;  %v6028_v49 = vld [vmem:[%s9588_s10 + $0x248] ss:$16 sps:$4 sm:$0xff]  }
   0x8   :  { %v5916_v21 = vld [vmem:[%s9588_s10 + $0x2a4] ss:$16 sps:$4 sm:$0xff]   ;;  %v5911_v22 = vld [vmem:[%s9588_s10 + $0xa0] ss:$16 sps:$4 sm:$0xff]   ;;  %v6033_v50 = vld [vmem:[%s9588_s10 + $0x2c] ss:$16 sps:$4 sm:$0xff]  }
   0x9   :  { %4838 = vmatmul.mubr.msk.bf16.vlgmr.msra.gmra.mxu0 %vm93_vm3, %v5898_v10  ;;  %5403 = vmatmul.mubr.msk.bf16.vlgmr.msra.gmra.mxu1 %vm93_vm3, %v5898_v10  ;;  %v5914_v23 = vld [vmem:[%s9588_s10 + $0x2a0] ss:$16 sps:$4 sm:$0xff]   ;;  %v5919_v24 = vld [vmem:[%s9588_s10 + $0x84] ss:$16 sps:$4 sm:$0xff]   ;;  %v337_v63 = vsub.s32 %v334_v56, %v6818_v55  ;;  %v6042_v56 = vld [vmem:[%s9588_s10 + $0x20c] ss:$16 sps:$4 sm:$0xff]  }
   0xa   :  { %993 = vmatpush1.bf16.msra.mxu0 %v5899_v12  ;;  %1034 = vmatpush1.bf16.msra.mxu1 %v5902_v14  ;;  %v5922_v25 = vld [vmem:[%s9588_s10 + $0x284] ss:$16 sps:$4 sm:$0xff]   ;;  %v5917_v26 = vld [vmem:[%s9588_s10 + $0x80] ss:$16 sps:$4 sm:$0xff]  }
   0xb   :  { %994 = vmatprep.subr.bf16.mxu0 %v5907_v16  ;;  %1035 = vmatprep.subr.bf16.mxu1 %v5910_v17  ;;  %v5920_v27 = vld [vmem:[%s9588_s10 + $0x280] ss:$16 sps:$4 sm:$0xff]   ;;  %v5925_v28 = vld [vmem:[%s9588_s10 + $0x64] ss:$16 sps:$4 sm:$0xff]  }
   0xc   :  { %v5928_v29 = vld [vmem:[%s9588_s10 + $0x264] ss:$16 sps:$4 sm:$0xff]   ;;  %v5923_v30 = vld [vmem:[%s9588_s10 + $0x60] ss:$16 sps:$4 sm:$0xff]  }
   0xd   :  { %v5926_v31 = vld [vmem:[%s9588_s10 + $0x260] ss:$16 sps:$4 sm:$0xff]   ;;  %v5931_v32 = vld [vmem:[%s9588_s10 + $0x44] ss:$16 sps:$4 sm:$0xff]  }
   0xe   :  { %995 = vmatpush1.bf16.msra.mxu0 %v5905_v18  ;;  %1036 = vmatpush1.bf16.msra.mxu1 %v5908_v19  ;;  %v5934_v33 = vld [vmem:[%s9588_s10 + $0x244] ss:$16 sps:$4 sm:$0xff]   ;;  %v5929_v34 = vld [vmem:[%s9588_s10 + $0x40] ss:$16 sps:$4 sm:$0xff]  }
   0xf   :  { %996 = vmatprep.subr.bf16.mxu0 %v5913_v20  ;;  %1037 = vmatprep.subr.bf16.mxu1 %v5916_v21  ;;  %v5932_v35 = vld [vmem:[%s9588_s10 + $0x240] ss:$16 sps:$4 sm:$0xff]   ;;  %v5937_v36 = vld [vmem:[%s9588_s10 + $0x24] ss:$16 sps:$4 sm:$0xff]  }
  0x10   :  { %v5940_v37 = vld [vmem:[%s9588_s10 + $0x224] ss:$16 sps:$4 sm:$0xff]   ;;  %v5935_v38 = vld [vmem:[%s9588_s10 + $0x20] ss:$16 sps:$4 sm:$0xff]  }
  0x11   :  { %v5938_v39 = vld [vmem:[%s9588_s10 + $0x220] ss:$16 sps:$4 sm:$0xff]   ;;  %v5943_v40 = vld [vmem:[%s9588_s10 + $0x4] ss:$16 sps:$4 sm:$0xff]  }
  0x12   :  { %997 = vmatpush1.bf16.msra.mxu0 %v5911_v22  ;;  %1038 = vmatpush1.bf16.msra.mxu1 %v5914_v23  ;;  %v5946_v41 = vld [vmem:[%s9588_s10 + $0x204] ss:$16 sps:$4 sm:$0xff]   ;;  %v5941_v42 = vld [vmem:[%s9588_s10] ss:$16 sps:$4 sm:$0xff]  }
  0x13   :  { %998 = vmatprep.subr.bf16.mxu0 %v5919_v24  ;;  %1039 = vmatprep.subr.bf16.mxu1 %v5922_v25  ;;  %v5944_v43 = vld [vmem:[%s9588_s10 + $0x200] ss:$16 sps:$4 sm:$0xff]   ;;  %v5949_v44 = vld [vmem:[%s9588_s10 + $0x1e4] ss:$16 sps:$4 sm:$0xff]   ;;  %v5997_v25 = vld [vmem:[%s9588_s10 + $0xec] ss:$16 sps:$4 sm:$0xff]  }
  0x14   :  { %v5952_v45 = vld [vmem:[%s9588_s10 + $0x3e4] ss:$16 sps:$4 sm:$0xff]   ;;  %v5947_v46 = vld [vmem:[%s9588_s10 + $0x1e0] ss:$16 sps:$4 sm:$0xff]  }
  0x15   :  { %v5950_v47 = vld [vmem:[%s9588_s10 + $0x3e0] ss:$16 sps:$4 sm:$0xff]   ;;  %v5955_v51 = vld [vmem:[%s9588_s10 + $0x1c4] ss:$16 sps:$4 sm:$0xff]  }
  0x16   :  { %999 = vmatpush1.bf16.msra.mxu0 %v5917_v26  ;;  %1040 = vmatpush1.bf16.msra.mxu1 %v5920_v27  ;;  %v5958_v52 = vld [vmem:[%s9588_s10 + $0x3c4] ss:$16 sps:$4 sm:$0xff]   ;;  %v5953_v53 = vld [vmem:[%s9588_s10 + $0x1c0] ss:$16 sps:$4 sm:$0xff]   ;;  %v6000_v26 = vld [vmem:[%s9588_s10 + $0x2ec] ss:$16 sps:$4 sm:$0xff]  }
  0x17   :  { %1000 = vmatprep.subr.bf16.mxu0 %v5925_v28  ;;  %1041 = vmatprep.subr.bf16.mxu1 %v5928_v29  ;;  %v5956_v54 = vld [vmem:[%s9588_s10 + $0x3c0] ss:$16 sps:$4 sm:$0xff]   ;;  %v5961_v57 = vld [vmem:[%s9588_s10 + $0x1a4] ss:$16 sps:$4 sm:$0xff]   ;;  %v5995_v28 = vld [vmem:[%s9588_s10 + $0xe8] ss:$16 sps:$4 sm:$0xff]  }
  0x18   :  { %v5964_v58 = vld [vmem:[%s9588_s10 + $0x3a4] ss:$16 sps:$4 sm:$0xff]   ;;  %v5959_v59 = vld [vmem:[%s9588_s10 + $0x1a0] ss:$16 sps:$4 sm:$0xff]   ;;  %v5998_v29 = vld [vmem:[%s9588_s10 + $0x2e8] ss:$16 sps:$4 sm:$0xff]  }
  0x19   :  { %v5962_v60 = vld [vmem:[%s9588_s10 + $0x3a0] ss:$16 sps:$4 sm:$0xff]   ;;  %v5967_v61 = vld [vmem:[%s9588_s10 + $0x184] ss:$16 sps:$4 sm:$0xff]  }
  0x1a   :  { %1001 = vmatpush1.bf16.msra.mxu0 %v5923_v30  ;;  %1042 = vmatpush1.bf16.msra.mxu1 %v5926_v31  ;;  %v5970_v62 = vld [vmem:[%s9588_s10 + $0x384] ss:$16 sps:$4 sm:$0xff]   ;;  %v4840_v0 = vld.sshfl [vmem:[%s9579_s1] sm:$0x33 pattern:$0x75316420] }
  0x1b   :  { %1002 = vmatprep.subr.bf16.mxu0 %v5931_v32  ;;  %1043 = vmatprep.subr.bf16.mxu1 %v5934_v33  ;;  %v331_v1 = vcombine.high %v4840_v0, %v4840_v0  ;;  %v5965_v2 = vld [vmem:[%s9588_s10 + $0x180] ss:$16 sps:$4 sm:$0xff]   ;;  %v5973_v5 = vld [vmem:[%s9588_s10 + $0x164] ss:$16 sps:$4 sm:$0xff]   ;;  %v6893_v23 = vrot.slane %v4840_v0, %v337_v63  ;;  %v6003_v30 = vld [vmem:[%s9588_s10 + $0xcc] ss:$16 sps:$4 sm:$0xff]  }
  0x1c   :  { %v5968_v4 = vld [vmem:[%s9588_s10 + $0x380] ss:$16 sps:$4 sm:$0xff]   ;;  %v5976_v7 = vld [vmem:[%s9588_s10 + $0x364] ss:$16 sps:$4 sm:$0xff]   ;;  %v6006_v31 = vld [vmem:[%s9588_s10 + $0x2cc] ss:$16 sps:$4 sm:$0xff]  }
  0x1d   :  { %v345_v6 = vrot.slane %v331_v1, %v337_v63  ;;  %v5971_v10 = vld [vmem:[%s9588_s10 + $0x160] ss:$16 sps:$4 sm:$0xff]   ;;  %v5979_v12 = vld [vmem:[%s9588_s10 + $0x144] ss:$16 sps:$4 sm:$0xff]   ;;  %v6906_v27 = vcombine.high %v6893_v23, %v6893_v23  ;;  %v6001_v32 = vld [vmem:[%s9588_s10 + $0xc8] ss:$16 sps:$4 sm:$0xff]  }
  0x1e   :  { %1003 = vmatpush1.bf16.msra.mxu0 %v5929_v34  ;;  %1044 = vmatpush1.bf16.msra.mxu1 %v5932_v35  ;;  %v5974_v11 = vld [vmem:[%s9588_s10 + $0x360] ss:$16 sps:$4 sm:$0xff]   ;;  %v5982_v13 = vld [vmem:[%s9588_s10 + $0x344] ss:$16 sps:$4 sm:$0xff]   ;;  %v6004_v33 = vld [vmem:[%s9588_s10 + $0x2c8] ss:$16 sps:$4 sm:$0xff]  }
  0x1f   :  { %1004 = vmatprep.subr.bf16.mxu0 %v5937_v36  ;;  %1045 = vmatprep.subr.bf16.mxu1 %v5940_v37  ;;  %v347_v8 = vcombine.high %v345_v6, %v345_v6  ;;  %v5977_v14 = vld [vmem:[%s9588_s10 + $0x140] ss:$16 sps:$4 sm:$0xff]   ;;  %v5985_v16 = vld [vmem:[%s9588_s10 + $0x124] ss:$16 sps:$4 sm:$0xff]   ;;  %v6009_v34 = vld [vmem:[%s9588_s10 + $0xac] ss:$16 sps:$4 sm:$0xff]  }
  0x20   :  { %1024 = vmatprep.mubr.bf16.mxu0 %v345_v6  ;;  %v5980_v15 = vld [vmem:[%s9588_s10 + $0x340] ss:$16 sps:$4 sm:$0xff]   ;;  %v5988_v17 = vld [vmem:[%s9588_s10 + $0x324] ss:$16 sps:$4 sm:$0xff]   ;;  %v6012_v35 = vld [vmem:[%s9588_s10 + $0x2ac] ss:$16 sps:$4 sm:$0xff]  }
  0x21   :  { %1065 = vmatprep.mubr.bf16.mxu1 %v347_v8  ;;  %v5983_v18 = vld [vmem:[%s9588_s10 + $0x120] ss:$16 sps:$4 sm:$0xff]   ;;  %v5991_v20 = vld [vmem:[%s9588_s10 + $0x104] ss:$16 sps:$4 sm:$0xff]   ;;  %v6007_v36 = vld [vmem:[%s9588_s10 + $0xa8] ss:$16 sps:$4 sm:$0xff]  }
  0x22   :  { %1005 = vmatpush1.bf16.msra.mxu0 %v5935_v38  ;;  %1046 = vmatpush1.bf16.msra.mxu1 %v5938_v39  ;;  %v5986_v19 = vld [vmem:[%s9588_s10 + $0x320] ss:$16 sps:$4 sm:$0xff]   ;;  %v5994_v21 = vld [vmem:[%s9588_s10 + $0x304] ss:$16 sps:$4 sm:$0xff]   ;;  %v6010_v37 = vld [vmem:[%s9588_s10 + $0x2a8] ss:$16 sps:$4 sm:$0xff]  }
  0x23   :  { %1006 = vmatprep.subr.bf16.mxu0 %v5943_v40  ;;  %1047 = vmatprep.subr.bf16.mxu1 %v5946_v41  ;;  %v5989_v22 = vld [vmem:[%s9588_s10 + $0x100] ss:$16 sps:$4 sm:$0xff]   ;;  %v6015_v38 = vld [vmem:[%s9588_s10 + $0x8c] ss:$16 sps:$4 sm:$0xff]   ;;  %v6013_v40 = vld [vmem:[%s9588_s10 + $0x88] ss:$16 sps:$4 sm:$0xff]  }
  0x24   :  { %v5992_v24 = vld [vmem:[%s9588_s10 + $0x300] ss:$16 sps:$4 sm:$0xff]   ;;  %v6018_v39 = vld [vmem:[%s9588_s10 + $0x28c] ss:$16 sps:$4 sm:$0xff]   ;;  %v6016_v41 = vld [vmem:[%s9588_s10 + $0x288] ss:$16 sps:$4 sm:$0xff]  }
  0x25   :  { %v6051_v63 = vld [vmem:[%s9588_s10 + $0x1cc] ss:$16 sps:$4 sm:$0xff]   ;;  %v6049_v1 = vld [vmem:[%s9588_s10 + $0x1c8] ss:$16 sps:$4 sm:$0xff]  }
  0x26   :  { %1007 = vmatpush1.bf16.msra.mxu0 %v5941_v42  ;;  %1048 = vmatpush1.bf16.msra.mxu1 %v5944_v43  ;;  %v6021_v42 = vld [vmem:[%s9588_s10 + $0x6c] ss:$16 sps:$4 sm:$0xff]  }
  0x27   :  { %1008 = vmatprep.subr.bf16.mxu0 %v5949_v44  ;;  %1049 = vmatprep.subr.bf16.mxu1 %v5952_v45  ;;  %v6024_v43 = vld [vmem:[%s9588_s10 + $0x26c] ss:$16 sps:$4 sm:$0xff]   ;;  %v6019_v44 = vld [vmem:[%s9588_s10 + $0x68] ss:$16 sps:$4 sm:$0xff]  }
  0x28   :  { %v6022_v45 = vld [vmem:[%s9588_s10 + $0x268] ss:$16 sps:$4 sm:$0xff]   ;;  %v6054_v0 = vld [vmem:[%s9588_s10 + $0x3cc] ss:$16 sps:$4 sm:$0xff]  }
  0x2a   :  { %1009 = vmatpush2.bf16.msra.mxu0 %v5947_v46  ;;  %1050 = vmatpush2.bf16.msra.mxu1 %v5950_v47  ;;  %v6027_v46 = vld [vmem:[%s9588_s10 + $0x4c] ss:$16 sps:$4 sm:$0xff]  }
  0x2b   :  { %1010 = vmatprep.subr.bf16.mxu0 %v5955_v51  ;;  %1051 = vmatprep.subr.bf16.mxu1 %v5958_v52  ;;  %v6030_v47 = vld [vmem:[%s9588_s10 + $0x24c] ss:$16 sps:$4 sm:$0xff]   ;;  %v6031_v52 = vld [vmem:[%s9588_s10 + $0x28] ss:$16 sps:$4 sm:$0xff]  }
  0x2c   :  { %v6036_v51 = vld [vmem:[%s9588_s10 + $0x22c] ss:$16 sps:$4 sm:$0xff]  }
  0x2e   :  { %1011 = vmatpush2.bf16.msra.mxu0 %v5953_v53  ;;  %1052 = vmatpush2.bf16.msra.mxu1 %v5956_v54  ;;  %v6034_v53 = vld [vmem:[%s9588_s10 + $0x228] ss:$16 sps:$4 sm:$0xff]   ;;  %v6039_v54 = vld [vmem:[%s9588_s10 + $0xc] ss:$16 sps:$4 sm:$0xff]  }
  0x2f   :  { %1012 = vmatprep.subr.bf16.mxu0 %v5961_v57  ;;  %1053 = vmatprep.subr.bf16.mxu1 %v5964_v58  ;;  %v6037_v57 = vld [vmem:[%s9588_s10 + $0x8] ss:$16 sps:$4 sm:$0xff]  }
  0x30   :  { %v6040_v58 = vld [vmem:[%s9588_s10 + $0x208] ss:$16 sps:$4 sm:$0xff]  }
  0x32   :  { %1013 = vmatpush2.bf16.msra.mxu0 %v5959_v59  ;;  %1054 = vmatpush2.bf16.msra.mxu1 %v5962_v60  ;;  %v6045_v59 = vld [vmem:[%s9588_s10 + $0x1ec] ss:$16 sps:$4 sm:$0xff]  }
  0x33   :  { %1014 = vmatprep.subr.bf16.mxu0 %v5967_v61  ;;  %1055 = vmatprep.subr.bf16.mxu1 %v5970_v62  ;;  %v6048_v60 = vld [vmem:[%s9588_s10 + $0x3ec] ss:$16 sps:$4 sm:$0xff]   ;;  %v6043_v61 = vld [vmem:[%s9588_s10 + $0x1e8] ss:$16 sps:$4 sm:$0xff]  }
  0x34   :  { %v6046_v62 = vld [vmem:[%s9588_s10 + $0x3e8] ss:$16 sps:$4 sm:$0xff]  }
  0x36   :  { %1015 = vmatpush2.bf16.msra.mxu0 %v5965_v2  ;;  %1056 = vmatpush2.bf16.msra.mxu1 %v5968_v4  ;;  %v6052_v2 = vld [vmem:[%s9588_s10 + $0x3c8] ss:$16 sps:$4 sm:$0xff]   ;;  %v6057_v4 = vld [vmem:[%s9588_s10 + $0x1ac] ss:$16 sps:$4 sm:$0xff]  }
  0x37   :  { %1016 = vmatprep.subr.bf16.mxu0 %v5973_v5  ;;  %1057 = vmatprep.subr.bf16.mxu1 %v5976_v7  ;;  %v6060_v5 = vld [vmem:[%s9588_s10 + $0x3ac] ss:$16 sps:$4 sm:$0xff]   ;;  %v6058_v7 = vld [vmem:[%s9588_s10 + $0x3a8] ss:$16 sps:$4 sm:$0xff]  }
  0x3a   :  { %1017 = vmatpush2.bf16.msra.mxu0 %v5971_v10  ;;  %1058 = vmatpush2.bf16.msra.mxu1 %v5974_v11  ;;  %v6066_v10 = vld [vmem:[%s9588_s10 + $0x38c] ss:$16 sps:$4 sm:$0xff]   ;;  %v6061_v11 = vld [vmem:[%s9588_s10 + $0x188] ss:$16 sps:$4 sm:$0xff]  }
  0x3b   :  { %1018 = vmatprep.subr.bf16.mxu0 %v5979_v12  ;;  %1059 = vmatprep.subr.bf16.mxu1 %v5982_v13  ;;  %v6064_v12 = vld [vmem:[%s9588_s10 + $0x388] ss:$16 sps:$4 sm:$0xff]   ;;  %v6069_v13 = vld [vmem:[%s9588_s10 + $0x16c] ss:$16 sps:$4 sm:$0xff]  }
  0x3e   :  { %1019 = vmatpush2.bf16.msra.mxu0 %v5977_v14  ;;  %1060 = vmatpush2.bf16.msra.mxu1 %v5980_v15  ;;  %v6072_v14 = vld [vmem:[%s9588_s10 + $0x36c] ss:$16 sps:$4 sm:$0xff]   ;;  %v6067_v15 = vld [vmem:[%s9588_s10 + $0x168] ss:$16 sps:$4 sm:$0xff]  }
  0x3f   :  { %1020 = vmatprep.subr.bf16.mxu0 %v5985_v16  ;;  %1061 = vmatprep.subr.bf16.mxu1 %v5988_v17  ;;  %v6070_v16 = vld [vmem:[%s9588_s10 + $0x368] ss:$16 sps:$4 sm:$0xff]   ;;  %v6075_v17 = vld [vmem:[%s9588_s10 + $0x14c] ss:$16 sps:$4 sm:$0xff]  }
  0x42   :  { %1021 = vmatpush2.bf16.msra.mxu0 %v5983_v18  ;;  %1062 = vmatpush2.bf16.msra.mxu1 %v5986_v19  ;;  %v6078_v18 = vld [vmem:[%s9588_s10 + $0x34c] ss:$16 sps:$4 sm:$0xff]   ;;  %v6073_v19 = vld [vmem:[%s9588_s10 + $0x148] ss:$16 sps:$4 sm:$0xff]  }
  0x43   :  { %1022 = vmatprep.subr.bf16.mxu0 %v5991_v20  ;;  %1063 = vmatprep.subr.bf16.mxu1 %v5994_v21  ;;  %v6076_v20 = vld [vmem:[%s9588_s10 + $0x348] ss:$16 sps:$4 sm:$0xff]   ;;  %v6081_v21 = vld [vmem:[%s9588_s10 + $0x12c] ss:$16 sps:$4 sm:$0xff]  }
  0x46   :  { %1023 = vmatpush2.bf16.msra.mxu0 %v5989_v22  ;;  %1064 = vmatpush2.bf16.msra.mxu1 %v5992_v24  ;;  %v6084_v22 = vld [vmem:[%s9588_s10 + $0x32c] ss:$16 sps:$4 sm:$0xff]   ;;  %v6079_v24 = vld [vmem:[%s9588_s10 + $0x128] ss:$16 sps:$4 sm:$0xff]  }
  0x47   :  { %1074 = vmatprep.subr.bf16.mxu0 %v5997_v25  ;;  %1115 = vmatprep.subr.bf16.mxu1 %v6000_v26  ;;  %v6082_v25 = vld [vmem:[%s9588_s10 + $0x328] ss:$16 sps:$4 sm:$0xff]   ;;  %v6087_v26 = vld [vmem:[%s9588_s10 + $0x10c] ss:$16 sps:$4 sm:$0xff]  }
  0x49   :  { %1025 = vmatmul.mubr.bf16.vlgmr.msra.gmra.mxu0 %v6893_v23  ;;  %1066 = vmatmul.mubr.bf16.vlgmr.msra.gmra.mxu1 %v6906_v27 }
  0x4a   :  { %1075 = vmatpush1.bf16.msra.mxu0 %v5995_v28  ;;  %1116 = vmatpush1.bf16.msra.mxu1 %v5998_v29  ;;  %v6090_v28 = vld [vmem:[%s9588_s10 + $0x30c] ss:$16 sps:$4 sm:$0xff]   ;;  %v6085_v29 = vld [vmem:[%s9588_s10 + $0x108] ss:$16 sps:$4 sm:$0xff]  }
  0x4b   :  { %1076 = vmatprep.subr.bf16.mxu0 %v6003_v30  ;;  %1117 = vmatprep.subr.bf16.mxu1 %v6006_v31  ;;  %v6088_v30 = vld [vmem:[%s9588_s10 + $0x308] ss:$16 sps:$4 sm:$0xff]  }
  0x4c   :  { %1106 = vmatprep.mubr.bf16.mxu0 %v345_v6  ;;  %1147 = vmatprep.mubr.bf16.mxu1 %v347_v8  ;;  %v6055_v6 = vld [vmem:[%s9588_s10 + $0x1a8] ss:$16 sps:$4 sm:$0xff]   ;;  %v6063_v8 = vld [vmem:[%s9588_s10 + $0x18c] ss:$16 sps:$4 sm:$0xff]  }
  0x4d   :  { %v7099_v31 = vld [vmem:[%s9581_s3 + $0xac] ss:$12 sps:$4 sm:$0xff]  }
  0x4e   :  { %1077 = vmatpush1.bf16.msra.mxu0 %v6001_v32  ;;  %1118 = vmatpush1.bf16.msra.mxu1 %v6004_v33  ;;  %v7104_v32 = vld [vmem:[%s9581_s3 + $0xa8] ss:$12 sps:$4 sm:$0xff]   ;;  %v7109_v33 = vld [vmem:[%s9581_s3 + $0xb0] ss:$12 sps:$4 sm:$0xff]  }
  0x4f   :  { %1078 = vmatprep.subr.bf16.mxu0 %v6009_v34  ;;  %1119 = vmatprep.subr.bf16.mxu1 %v6012_v35  ;;  %v7114_v34 = vld [vmem:[%s9581_s3 + $0x94] ss:$12 sps:$4 sm:$0xff]   ;;  %v7121_v35 = vld [vmem:[%s9581_s3 + $0x90] ss:$12 sps:$4 sm:$0xff]  }
  0x52   :  { %1079 = vmatpush1.bf16.msra.mxu0 %v6007_v36  ;;  %1120 = vmatpush1.bf16.msra.mxu1 %v6010_v37  ;;  %v7126_v36 = vld [vmem:[%s9581_s3 + $0x98] ss:$12 sps:$4 sm:$0xff]   ;;  %v7133_v37 = vld [vmem:[%s9581_s3 + $0x7c] ss:$12 sps:$4 sm:$0xff]  }
  0x53   :  { %1080 = vmatprep.subr.bf16.mxu0 %v6015_v38  ;;  %1121 = vmatprep.subr.bf16.mxu1 %v6018_v39  ;;  %v7142_v38 = vld [vmem:[%s9581_s3 + $0x78] ss:$12 sps:$4 sm:$0xff]   ;;  %v7164_v39 = vld [vmem:[%s9581_s3 + $0x60] ss:$12 sps:$4 sm:$0xff]  }
  0x56   :  { %1081 = vmatpush1.bf16.msra.mxu0 %v6013_v40  ;;  %1122 = vmatpush1.bf16.msra.mxu1 %v6016_v41  ;;  %v7169_v40 = vld [vmem:[%s9581_s3 + $0x68] ss:$12 sps:$4 sm:$0xff]   ;;  %v7174_v41 = vld [vmem:[%s9581_s3 + $0x4c] ss:$12 sps:$4 sm:$0xff]  }
  0x57   :  { %1082 = vmatprep.subr.bf16.mxu0 %v6021_v42  ;;  %1123 = vmatprep.subr.bf16.mxu1 %v6024_v43  ;;  %v7183_v42 = vld [vmem:[%s9581_s3 + $0x48] ss:$12 sps:$4 sm:$0xff]   ;;  %v7188_v43 = vld [vmem:[%s9581_s3 + $0x50] ss:$12 sps:$4 sm:$0xff]  }
  0x5a   :  { %1083 = vmatpush1.bf16.msra.mxu0 %v6019_v44  ;;  %1124 = vmatpush1.bf16.msra.mxu1 %v6022_v45  ;;  %v7193_v44 = vld [vmem:[%s9581_s3 + $0x34] ss:$12 sps:$4 sm:$0xff]   ;;  %v7202_v45 = vld [vmem:[%s9581_s3 + $0x30] ss:$12 sps:$4 sm:$0xff]  }
  0x5b   :  { %1084 = vmatprep.subr.bf16.mxu0 %v6027_v46  ;;  %1125 = vmatprep.subr.bf16.mxu1 %v6030_v47  ;;  %v7207_v46 = vld [vmem:[%s9581_s3 + $0x38] ss:$12 sps:$4 sm:$0xff]   ;;  %v7215_v47 = vld [vmem:[%s9581_s3 + $0x1c] ss:$12 sps:$4 sm:$0xff]  }
  0x5e   :  { %1085 = vmatpush1.bf16.msra.mxu0 %v6025_v48  ;;  %1126 = vmatpush1.bf16.msra.mxu1 %v6028_v49  ;;  %v7221_v48 = vld [vmem:[%s9581_s3 + $0x18] ss:$12 sps:$4 sm:$0xff]  }
  0x5f   :  { %1086 = vmatprep.subr.bf16.mxu0 %v6033_v50  ;;  %1127 = vmatprep.subr.bf16.mxu1 %v6036_v51  ;;  %v7226_v49 = vld [vmem:[%s9581_s3 + $0x4] ss:$12 sps:$4 sm:$0xff]   ;;  %v7231_v50 = vld [vmem:[%s9581_s3 + $0x20] ss:$12 sps:$4 sm:$0xff]  }
  0x60   :  { %v7240_v51 = vld [vmem:[%s9581_s3] ss:$12 sps:$4 sm:$0xff]  }
  0x62   :  { %1087 = vmatpush1.bf16.msra.mxu0 %v6031_v52  ;;  %1128 = vmatpush1.bf16.msra.mxu1 %v6034_v53  ;;  %v7245_v52 = vld [vmem:[%s9581_s3 + $0x8] ss:$12 sps:$4 sm:$0xff]  }
  0x63   :  { %1088 = vmatprep.subr.bf16.mxu0 %v6039_v54  ;;  %1129 = vmatprep.subr.bf16.mxu1 %v6042_v56 }
  0x66   :  { %1089 = vmatpush1.bf16.msra.mxu0 %v6037_v57  ;;  %1130 = vmatpush1.bf16.msra.mxu1 %v6040_v58 }
  0x67   :  { %1090 = vmatprep.subr.bf16.mxu0 %v6045_v59  ;;  %1131 = vmatprep.subr.bf16.mxu1 %v6048_v60 }
  0x6a   :  { %1091 = vmatpush2.bf16.msra.mxu0 %v6043_v61  ;;  %1132 = vmatpush2.bf16.msra.mxu1 %v6046_v62 }
  0x6b   :  { %1092 = vmatprep.subr.bf16.mxu0 %v6051_v63  ;;  %1133 = vmatprep.subr.bf16.mxu1 %v6054_v0 }
  0x6e   :  { %1093 = vmatpush2.bf16.msra.mxu0 %v6049_v1  ;;  %1134 = vmatpush2.bf16.msra.mxu1 %v6052_v2 }
  0x6f   :  { %1094 = vmatprep.subr.bf16.mxu0 %v6057_v4  ;;  %1135 = vmatprep.subr.bf16.mxu1 %v6060_v5 }
  0x72   :  { %1095 = vmatpush2.bf16.msra.mxu0 %v6055_v6  ;;  %1136 = vmatpush2.bf16.msra.mxu1 %v6058_v7 }
  0x73   :  { %1096 = vmatprep.subr.bf16.mxu0 %v6063_v8  ;;  %1137 = vmatprep.subr.bf16.mxu1 %v6066_v10 }
  0x76   :  { %1097 = vmatpush2.bf16.msra.mxu0 %v6061_v11  ;;  %1138 = vmatpush2.bf16.msra.mxu1 %v6064_v12 }
  0x77   :  { %1098 = vmatprep.subr.bf16.mxu0 %v6069_v13  ;;  %1139 = vmatprep.subr.bf16.mxu1 %v6072_v14 }
  0x7a   :  { %1099 = vmatpush2.bf16.msra.mxu0 %v6067_v15  ;;  %1140 = vmatpush2.bf16.msra.mxu1 %v6070_v16 }
  0x7b   :  { %1100 = vmatprep.subr.bf16.mxu0 %v6075_v17  ;;  %1141 = vmatprep.subr.bf16.mxu1 %v6078_v18 }
  0x7e   :  { %1101 = vmatpush2.bf16.msra.mxu0 %v6073_v19  ;;  %1142 = vmatpush2.bf16.msra.mxu1 %v6076_v20 }
  0x7f   :  { %1102 = vmatprep.subr.bf16.mxu0 %v6081_v21  ;;  %1143 = vmatprep.subr.bf16.mxu1 %v6084_v22 }
  0x82   :  { %1103 = vmatpush2.bf16.msra.mxu0 %v6079_v24  ;;  %1144 = vmatpush2.bf16.msra.mxu1 %v6082_v25 }
  0x83   :  { %1104 = vmatprep.subr.bf16.mxu0 %v6087_v26  ;;  %1145 = vmatprep.subr.bf16.mxu1 %v6090_v28 }
  0x86   :  { %1105 = vmatpush2.bf16.msra.mxu0 %v6085_v29  ;;  %1146 = vmatpush2.bf16.msra.mxu1 %v6088_v30 }
  0x87   :  { %1399 = vmatprep.subr.bf16.mxu0 %v7099_v31  ;;  %5406 = vmatprep.subr.bf16.mxu1 %v9614_v3 }
  0x89   :  { %1107 = vmatmul.mubr.bf16.vlgmr.msra.gmra.mxu0 %v6893_v23  ;;  %1148 = vmatmul.mubr.bf16.vlgmr.msra.gmra.mxu1 %v6906_v27  ;;  %v7148_v23 = vld [vmem:[%s9581_s3 + $0x80] ss:$12 sps:$4 sm:$0xff]   ;;  %v7155_v27 = vld [vmem:[%s9581_s3 + $0x64] ss:$12 sps:$4 sm:$0xff]  }
  0x8a   :  { %1400 = vmatpush1.bf16.msra.mxu0 %v7104_v32  ;;  %5407 = vmatpush3.bf16.msra.mxu1 %v7109_v33 }
  0x8b   :  { %1401 = vmatprep.subr.bf16.mxu0 %v7114_v34  ;;  %1431 = vmatprep.mubr.bf16.mxu0 %v9594_v9 }
  0x8c   :  { %5408 = vmatprep.subr.bf16.mxu1 %v9614_v3  ;;  %5422 = vmatprep.mubr.msk.bf16.mxu1 %vm6596_vm2, %v9614_v3 }
  0x8e   :  { %1402 = vmatpush1.bf16.msra.mxu0 %v7121_v35  ;;  %5409 = vmatpush3.bf16.msra.mxu1 %v7126_v36 }
  0x8f   :  { %1403 = vmatprep.subr.bf16.mxu0 %v7133_v37  ;;  %5410 = vmatprep.subr.bf16.mxu1 %v9614_v3 }
  0x92   :  { %1404 = vmatpush1.bf16.msra.mxu0 %v7142_v38  ;;  %5411 = vmatpush3.bf16.msra.mxu1 %v7148_v23 }
  0x93   :  { %1405 = vmatprep.subr.bf16.mxu0 %v7155_v27  ;;  %5412 = vmatprep.subr.bf16.mxu1 %v9614_v3 }
  0x96   :  { %1406 = vmatpush1.bf16.msra.mxu0 %v7164_v39  ;;  %5413 = vmatpush3.bf16.msra.mxu1 %v7169_v40 }
  0x97   :  { %1407 = vmatprep.subr.bf16.mxu0 %v7174_v41  ;;  %5414 = vmatprep.subr.bf16.mxu1 %v9614_v3 }
  0x9a   :  { %1408 = vmatpush1.bf16.msra.mxu0 %v7183_v42  ;;  %5415 = vmatpush3.bf16.msra.mxu1 %v7188_v43 }
  0x9b   :  { %1409 = vmatprep.subr.bf16.mxu0 %v7193_v44  ;;  %5416 = vmatprep.subr.bf16.mxu1 %v9614_v3 }
  0x9e   :  { %1410 = vmatpush1.bf16.msra.mxu0 %v7202_v45  ;;  %5417 = vmatpush3.bf16.msra.mxu1 %v7207_v46 }
  0x9f   :  { %1411 = vmatprep.subr.bf16.mxu0 %v7215_v47  ;;  %5418 = vmatprep.subr.bf16.mxu1 %v9614_v3 }
  0xa2   :  { %1412 = vmatpush1.bf16.msra.mxu0 %v7221_v48  ;;  %5419 = vmatpush3.bf16.msra.mxu1 %v7231_v50 }
  0xa3   :  { %1413 = vmatprep.subr.bf16.mxu0 %v7226_v49  ;;  %5420 = vmatprep.subr.bf16.mxu1 %v9614_v3 }
  0xa4   :  { %20 = vsyncpa [#allocation3], 0  ;;  %v7260_v53 = vsub.s32 2, %v6818_v55  ;;  %v7263_v54 = vsub.s32 0, %v6818_v55  ;;  %v7268_v56 = vld [vmem:[%s9582_s4] sm:$0x7] }
  0xa5   :  { %v7293_v5 = vld [vmem:[%s9584_s6 + $0xac] ss:$12 sps:$4 sm:$0xff]   ;;  %v7298_v6 = vld [vmem:[%s9584_s6 + $0xa8] ss:$12 sps:$4 sm:$0xff]   ;;  %v7303_v7 = vld [vmem:[%s9584_s6 + $0xb0] ss:$12 sps:$4 sm:$0xff]  }
  0xa6   :  { %1414 = vmatpush1.bf16.msra.mxu0 %v7240_v51  ;;  %5421 = vmatpush3.bf16.msra.mxu1 %v7245_v52  ;;  %9771 = vst [vmem:[#allocation6_spill] sm:$0xff] %v7260_v53  ;;  %9772 = vst [vmem:[#allocation7_spill] sm:$0xff] %v7263_v54  ;;  %v7276_v59 = vrot.slane %v7268_v56, %v7260_v53  ;;  %v7282_v62 = vrot.slane %v7268_v56, %v7263_v54  ;;  %v7313_v10 = vld [vmem:[%s9584_s6 + $0x94] ss:$12 sps:$4 sm:$0xff]   ;;  %v7319_v11 = vld [vmem:[%s9584_s6 + $0x90] ss:$12 sps:$4 sm:$0xff]  }
  0xa7   :  { %5426 = vmatprep.subr.bf16.mxu1 %v9614_v3  ;;  %9775 = vst [vmem:[#allocation10_spill] sm:$0xff] %v7303_v7  ;;  %1646 = vmatprep.subr.bf16.mxu0 %v7293_v5  ;;  %9777 = vst [vmem:[#allocation12_spill] sm:$0xff] %v7313_v10  ;;  %v7324_v12 = vld [vmem:[%s9584_s6 + $0x98] ss:$12 sps:$4 sm:$0xff]   ;;  %v7334_v18 = vld [vmem:[%s9584_s6 + $0x7c] ss:$12 sps:$4 sm:$0xff]  }
  0xa8   :  { %9778 = vst [vmem:[#allocation13_spill] sm:$0xff] %v7319_v11  ;;  %9779 = vst [vmem:[#allocation14_spill] sm:$0xff] %v7324_v12  ;;  %v7342_v20 = vld [vmem:[%s9584_s6 + $0x78] ss:$12 sps:$4 sm:$0xff]   ;;  %v7347_v21 = vld [vmem:[%s9584_s6 + $0x80] ss:$12 sps:$4 sm:$0xff]  }
  0xa9   :  { %1432 = vmatmul.mubr.bf16.vlgmr.msra.gmra.mxu0 %v9594_v9  ;;  %5423 = vmatmul.mubr.bf16.vlgmr.msra.gmra.mxu1 %v9594_v9  ;;  %9781 = vst [vmem:[#allocation16_spill] sm:$0xff] %v7334_v18  ;;  %9783 = vst [vmem:[#allocation18_spill] sm:$0xff] %v7342_v20  ;;  %v7355_v28 = vld [vmem:[%s9584_s6 + $0x64] ss:$12 sps:$4 sm:$0xff]   ;;  %v7361_v29 = vld [vmem:[%s9584_s6 + $0x60] ss:$12 sps:$4 sm:$0xff]  }
  0xaa   :  { %1678 = vmatprep.mubr.bf16.mxu0 %v9594_v9  ;;  %5442 = vmatprep.mubr.msk.bf16.mxu1 %vm6596_vm2, %v9614_v3  ;;  %9784 = vst [vmem:[#allocation19_spill] sm:$0xff] %v7347_v21  ;;  %9785 = vst [vmem:[#allocation20_spill] sm:$0xff] %v7355_v28  ;;  %v7366_v30 = vld [vmem:[%s9584_s6 + $0x68] ss:$12 sps:$4 sm:$0xff]   ;;  %v7448_v9 = vld [vmem:[%s9585_s7 + $0xac] ss:$12 sps:$4 sm:$0xff]  }
  0xab   :  { %1647 = vmatpush1.bf16.msra.mxu0 %v7298_v6  ;;  %5427 = vmatpush3.bf16.msra.mxu1 %v7303_v7  ;;  %9786 = vst [vmem:[#allocation21_spill] sm:$0xff] %v7361_v29  ;;  %9787 = vst [vmem:[#allocation22_spill] sm:$0xff] %v7366_v30  ;;  %vm4093_vm4 = vcmask 1041408   ;;  %vm4096_vm5 = vcmask 1045504   ;;  %vm4815_vm6 = vcmask 80896   ;;  %s6598_s4 = smov [#allocation2]  }
  0xac   :  { %5428 = vmatprep.subr.bf16.mxu1 %v9614_v3  ;;  %1648 = vmatprep.subr.bf16.mxu0 %v7313_v10  ;;  %9800 = vst [vmem:[#allocation35_spill] sm:$0xff] %v7448_v9  ;;  %s4823_s29 = sshll.u32 %s6598_s4, 4  ;;  %s4824_s29 = int_to_ptr.vmem [resolvable:$true] %s4823_s29 }
  0xad   :  { %p6576_p1 = scmp.lt.s32.totalorder %s4824_s29, %s4824_s29 }
  0xaf   :  { %1649 = vmatpush1.bf16.msra.mxu0 %v7319_v11  ;;  %5429 = vmatpush3.bf16.msra.mxu1 %v7324_v12 }
  0xb0   :  { %5430 = vmatprep.subr.bf16.mxu1 %v9614_v3  ;;  %1650 = vmatprep.subr.bf16.mxu0 %v7334_v18 }
  0xb3   :  { %1651 = vmatpush1.bf16.msra.mxu0 %v7342_v20  ;;  %5431 = vmatpush3.bf16.msra.mxu1 %v7347_v21 }
  0xb4   :  { %5432 = vmatprep.subr.bf16.mxu1 %v9614_v3  ;;  %1652 = vmatprep.subr.bf16.mxu0 %v7355_v28 }
  0xb7   :  { %1653 = vmatpush1.bf16.msra.mxu0 %v7361_v29  ;;  %5433 = vmatpush3.bf16.msra.mxu1 %v7366_v30 }
  0xb8   :  { %5434 = vmatprep.subr.bf16.mxu1 %v9614_v3 }
  0xc9   :  { %v7270_v57 = vpop.f32.mrf.mxu0  ;;  %v7272_v58 = vpop.f32.mrf.mxu1 }
  0xcb   :  { %v7278_v60 = vpop.f32.mrf.mxu0  ;;  %v5404_v61 = vpop.f32.mrf.mxu1 }
  0xcc   :  { %v7374_v61 = vld [vmem:[%s9584_s6 + $0x4c] ss:$12 sps:$4 sm:$0xff]  }
  0xcd   :  { %v148_v63 = vpop.f32.mrf.mxu0  ;;  %v190_v0 = vpop.f32.mrf.mxu1  ;;  %9788 = vst [vmem:[#allocation23_spill] sm:$0xff] %v7374_v61  ;;  %1654 = vmatprep.subr.bf16.mxu0 %v7374_v61 }
  0xce   :  { %v7285_v1 = vadd.f32 %v148_v63, %v7282_v62  ;;  %v7288_v2 = vadd.f32 %v190_v0, %v7276_v59  ;;  %v7379_v63 = vld [vmem:[%s9584_s6 + $0x48] ss:$12 sps:$4 sm:$0xff]   ;;  %v7384_v0 = vld [vmem:[%s9584_s6 + $0x50] ss:$12 sps:$4 sm:$0xff]  }
  0xcf   :  { %v5405_v4 = vpop.f32.mrf.mxu1  ;;  %v7308_v8 = vpop.f32.mrf.mxu0  ;;  %9789 = vst [vmem:[#allocation24_spill] sm:$0xff] %v7379_v63  ;;  %9790 = vst [vmem:[#allocation25_spill] sm:$0xff] %v7384_v0  ;;  %1655 = vmatpush1.bf16.msra.mxu0 %v7379_v63  ;;  %5435 = vmatpush3.bf16.msra.mxu1 %v7384_v0 }
  0xd0   :  { %9773 = vst [vmem:[#allocation8_spill] sm:$0xff] %v7285_v1  ;;  %9774 = vst [vmem:[#allocation9_spill] sm:$0xff] %v7288_v2  ;;  %v7390_v4 = vld [vmem:[%s9584_s6 + $0x34] ss:$12 sps:$4 sm:$0xff]   ;;  %5436 = vmatprep.subr.bf16.mxu1 %v9614_v3 }
  0xd1   :  { %9776 = vst [vmem:[#allocation11_spill] sm:$0xff] %v7308_v8  ;;  %9791 = vst [vmem:[#allocation26_spill] sm:$0xff] %v7390_v4  ;;  %1656 = vmatprep.subr.bf16.mxu0 %v7390_v4 }
 0x109   :  { %v1026_v13 = vpop.f32.mrf.mxu0  ;;  %v1067_v14 = vpop.f32.mrf.mxu1 }
 0x10a   :  { %v7327_v15 = vadd.f32 %v1067_v14, %v1026_v13  ;;  %v7398_v13 = vld [vmem:[%s9584_s6 + $0x30] ss:$12 sps:$4 sm:$0xff]   ;;  %v7403_v14 = vld [vmem:[%s9584_s6 + $0x38] ss:$12 sps:$4 sm:$0xff]  }
 0x10b   :  { %v1028_v16 = vpop.f32.mrf.mxu0  ;;  %v1069_v17 = vpop.f32.mrf.mxu1  ;;  %9792 = vst [vmem:[#allocation27_spill] sm:$0xff] %v7398_v13  ;;  %9793 = vst [vmem:[#allocation28_spill] sm:$0xff] %v7403_v14  ;;  %1657 = vmatpush1.bf16.msra.mxu0 %v7398_v13  ;;  %5437 = vmatpush3.bf16.msra.mxu1 %v7403_v14 }
 0x10c   :  { %9780 = vst [vmem:[#allocation15_spill] sm:$0xff] %v7327_v15  ;;  %v7337_v19 = vadd.f32 %v1069_v17, %v1028_v16  ;;  %v7410_v16 = vld [vmem:[%s9584_s6 + $0x1c] ss:$12 sps:$4 sm:$0xff]   ;;  %v7417_v17 = vld [vmem:[%s9584_s6 + $0x18] ss:$12 sps:$4 sm:$0xff]   ;;  %5438 = vmatprep.subr.bf16.mxu1 %v9614_v3 }
 0x10d   :  { %v1030_v22 = vpop.f32.mrf.mxu0  ;;  %v1071_v24 = vpop.f32.mrf.mxu1  ;;  %9794 = vst [vmem:[#allocation29_spill] sm:$0xff] %v7410_v16  ;;  %9795 = vst [vmem:[#allocation30_spill] sm:$0xff] %v7417_v17  ;;  %1658 = vmatprep.subr.bf16.mxu0 %v7410_v16 }
 0x10e   :  { %9782 = vst [vmem:[#allocation17_spill] sm:$0xff] %v7337_v19  ;;  %v7422_v22 = vld [vmem:[%s9584_s6 + $0x20] ss:$12 sps:$4 sm:$0xff]   ;;  %v7429_v24 = vld [vmem:[%s9584_s6 + $0x4] ss:$12 sps:$4 sm:$0xff]  }
 0x10f   :  { %v1031_v25 = vpop.f32.mrf.mxu0  ;;  %v1072_v26 = vpop.f32.mrf.mxu1  ;;  %9796 = vst [vmem:[#allocation31_spill] sm:$0xff] %v7422_v22  ;;  %9797 = vst [vmem:[#allocation32_spill] sm:$0xff] %v7429_v24  ;;  %1659 = vmatpush1.bf16.msra.mxu0 %v7417_v17  ;;  %5439 = vmatpush3.bf16.msra.mxu1 %v7422_v22 }
 0x110   :  { %v7436_v25 = vld [vmem:[%s9584_s6] ss:$12 sps:$4 sm:$0xff]   ;;  %v7441_v26 = vld [vmem:[%s9584_s6 + $0x8] ss:$12 sps:$4 sm:$0xff]   ;;  %1660 = vmatprep.subr.bf16.mxu0 %v7429_v24  ;;  %5440 = vmatprep.subr.bf16.mxu1 %v9614_v3 }
 0x111   :  { %9798 = vst [vmem:[#allocation33_spill] sm:$0xff] %v7436_v25  ;;  %9799 = vst [vmem:[#allocation34_spill] sm:$0xff] %v7441_v26 }
 0x113   :  { %1661 = vmatpush1.bf16.msra.mxu0 %v7436_v25  ;;  %5441 = vmatpush3.bf16.msra.mxu1 %v7441_v26  ;;  %v1252_v26 = vld [vmem:[%s9583_s5] sm:$0x7] }
 0x114   :  { %1871 = vmatprep.subr.bf16.mxu0 %v7448_v9  ;;  %5446 = vmatprep.subr.bf16.mxu1 %v9614_v3  ;;  %v7462_v9 = vrot.slane %v1252_v26, %v7263_v54  ;;  %v7465_v3 = vsub.s32 1, %v6818_v55 }
 0x116   :  { %9803 = vst [vmem:[#allocation38_spill] sm:$0xff] %v7462_v9  ;;  %9804 = vst [vmem:[#allocation39_spill] sm:$0xff] %v7465_v3 }
 0x149   :  { %v1108_v19 = vpop.f32.mrf.mxu0  ;;  %v1149_v15 = vpop.f32.mrf.mxu1 }
 0x14a   :  { %v7454_v2 = vadd.f32 %v1149_v15, %v1108_v19 }
 0x14b   :  { %v1110_v8 = vpop.f32.mrf.mxu0  ;;  %v1151_v1 = vpop.f32.mrf.mxu1 }
 0x14c   :  { %9801 = vst [vmem:[#allocation36_spill] sm:$0xff] %v7454_v2  ;;  %v7456_v24 = vadd.f32 %v1151_v1, %v1110_v8  ;;  %v7469_v1 = vadd.f32 %v7270_v57, %v7282_v62  ;;  %v7472_v8 = vrot.slane %v1252_v26, %v7465_v3 }
 0x14d   :  { %v1112_v22 = vpop.f32.mrf.mxu0  ;;  %v1153_v17 = vpop.f32.mrf.mxu1 }
 0x14e   :  { %9802 = vst [vmem:[#allocation37_spill] sm:$0xff] %v7456_v24  ;;  %v7477_v22 = vrot.slane %v7268_v56, %v7465_v3 }
 0x14f   :  { %v1113_v16 = vpop.f32.mrf.mxu0  ;;  %v1154_v14 = vpop.f32.mrf.mxu1 }
 0x150   :  { %9805 = vst [vmem:[#allocation40_spill] sm:$0xff] %v7477_v22  ;;  %v7483_v13 = vadd.f32 %v7278_v60, %v7477_v22  ;;  %v7492_v60 = vadd.f32 %v7272_v58, %v7276_v59  ;;  %v7505_v58 = vld [vmem:[%s9585_s7 + $0xb0] ss:$12 sps:$4 sm:$0xff]   ;;  %v7583_v22 = vld [vmem:[%s9585_s7 + $0x48] ss:$12 sps:$4 sm:$0xff]  }
 0x151   :  { %9812 = vst [vmem:[#allocation45_spill] sm:$0xff] %v7583_v22 }
 0x169   :  { %v1433_v15 = vpop.f32.mrf.mxu0  ;;  %v1474_v19 = vpop.f32.mrf.mxu1 }
 0x16a   :  { %v1434_v14 = vadd.f32 %v1433_v15, %v7462_v9 }
 0x16b   :  { %v1435_v16 = vpop.f32.mrf.mxu0  ;;  %v5424_v17 = vpop.f32.mrf.mxu1 }
 0x16c   :  { %v1480_v55 = vadd.f32 %v1434_v14, %v7469_v1  ;;  %v1436_v25 = vadd.f32 %v1435_v16, %v7472_v8 }
 0x16d   :  { %v1437_v24 = vpop.f32.mrf.mxu0  ;;  %v1477_v2 = vpop.f32.mrf.mxu1 }
 0x16e   :  { %v4993_v54 = vmul.f32 -1.442695, %v1480_v55  ;;  %v1487_v15 = vadd.f32 %v1436_v25, %v7483_v13  ;;  %v7487_v24 = vrot.slane %v1252_v26, %v7260_v53 }
 0x16f   :  { %v1438_v57 = vpop.f32.mrf.mxu0  ;;  %v5425_v62 = vpop.f32.mrf.mxu1 }
 0x170   :  { %6267 = vpow2.f32 %v4993_v54  ;;  %v4994_v17 = vmul.f32 -1.442695, %v1487_v15  ;;  %v1475_v14 = vadd.f32 %v1474_v19, %v7487_v24  ;;  %v7500_v19 = vld [vmem:[%s9585_s7 + $0xa8] ss:$12 sps:$4 sm:$0xff]  }
 0x172   :  { %6269 = vpow2.f32 %v4994_v17 }
 0x17d   :  { %v6268_v56 = vpop.eup %6267 }
 0x17e   :  { %v1484_v9 = vadd.f32 1.0, %v6268_v56  ;;  %v7514_v56 = vld [vmem:[%s9585_s7 + $0x94] ss:$12 sps:$4 sm:$0xff]  }
 0x17f   :  { %v6270_v55 = vpop.eup %6269 }
 0x180   :  { %6271 = vrcp.f32 %v1484_v9  ;;  %v1491_v2 = vadd.f32 1.0, %v6270_v55  ;;  %v7523_v55 = vld [vmem:[%s9585_s7 + $0x90] ss:$12 sps:$4 sm:$0xff]  }
 0x182   :  { %6273 = vrcp.f32 %v1491_v2  ;;  %v7528_v2 = vld [vmem:[%s9585_s7 + $0x98] ss:$12 sps:$4 sm:$0xff]  }
 0x18d   :  { %v6272_v16 = vpop.eup %6271 }
 0x18e   :  { %v1494_v54 = vmul.f32 %v6272_v16, %v1475_v14  ;;  %v9806_v14 = vmov 0.0   ;;  %v7535_v16 = vld [vmem:[%s9585_s7 + $0x7c] ss:$12 sps:$4 sm:$0xff]  }
 0x18f   :  { %v6274_v57 = vpop.eup %6273 }
 0x190   :  { %v1495_v25 = vadd.f32 %v1494_v54, %v7492_v60  ;;  %v1497_v62 = vsub.f32 1.0, %v6274_v57  ;;  %v1499_v26 = vmul.f32 0.0, %v6274_v57  ;;  %v9807_v54 = vmov 0   ;;  %v7550_v57 = vld [vmem:[%s9585_s7 + $0x80] ss:$12 sps:$4 sm:$0xff]  }
 0x192   :  { %6275 = vtanh.f32 %v1495_v25  ;;  %v7545_v25 = vld [vmem:[%s9585_s7 + $0x78] ss:$12 sps:$4 sm:$0xff]  }
 0x19f   :  { %v6276_v9 = vpop.eup %6275 }
 0x1a0   :  { %v1498_v15 = vmul.f32 %v6276_v9, %v1497_v62  ;;  %v7557_v62 = vld [vmem:[%s9585_s7 + $0x64] ss:$12 sps:$4 sm:$0xff]   ;;  %v7564_v9 = vld [vmem:[%s9585_s7 + $0x60] ss:$12 sps:$4 sm:$0xff]  }
 0x1a1   :  { %9808 = vst [vmem:[#allocation41_spill] sm:$0xff] %v7557_v62  ;;  %9809 = vst [vmem:[#allocation42_spill] sm:$0xff] %v7564_v9 }
 0x1a2   :  { %v7495_v17 = vadd.f32 %v1499_v26, %v1498_v15  ;;  %v7569_v15 = vld [vmem:[%s9585_s7 + $0x68] ss:$12 sps:$4 sm:$0xff]   ;;  %v7576_v26 = vld [vmem:[%s9585_s7 + $0x4c] ss:$12 sps:$4 sm:$0xff]  }
 0x1a3   :  { %9810 = vst [vmem:[#allocation43_spill] sm:$0xff] %v7569_v15  ;;  %9811 = vst [vmem:[#allocation44_spill] sm:$0xff] %v7576_v26 }
 0x1a4   :  { %v7509_v59 = vpack.c.bf16 %v7495_v17, %v7495_v17 }
 0x1a6   :  { %1679 = vmatmul.mubr.bf16.vlgmr.msra.gmra.mxu0 %v7509_v59  ;;  %5443 = vmatmul.mubr.bf16.vlgmr.msra.gmra.mxu1 %v7509_v59 }
 0x1a7   :  { %1872 = vmatpush1.bf16.msra.mxu0 %v7500_v19  ;;  %5447 = vmatpush3.bf16.msra.mxu1 %v7505_v58 }
 0x1a8   :  { %1873 = vmatprep.subr.bf16.mxu0 %v7514_v56  ;;  %5448 = vmatprep.subr.bf16.mxu1 %v9806_v14 }
 0x1a9   :  { %1903 = vmatprep.mubr.bf16.mxu0 %v9807_v54  ;;  %5462 = vmatprep.mubr.msk.bf16.mxu1 %vm6596_vm2, %v9806_v14 }
 0x1ab   :  { %1874 = vmatpush1.bf16.msra.mxu0 %v7523_v55  ;;  %5449 = vmatpush3.bf16.msra.mxu1 %v7528_v2 }
 0x1ac   :  { %1875 = vmatprep.subr.bf16.mxu0 %v7535_v16  ;;  %5450 = vmatprep.subr.bf16.mxu1 %v9806_v14 }
 0x1af   :  { %1876 = vmatpush1.bf16.msra.mxu0 %v7545_v25  ;;  %5451 = vmatpush3.bf16.msra.mxu1 %v7550_v57 }
 0x1b0   :  { %1877 = vmatprep.subr.bf16.mxu0 %v7557_v62  ;;  %5452 = vmatprep.subr.bf16.mxu1 %v9806_v14  ;;  %v7588_v62 = vld [vmem:[%s9585_s7 + $0x50] ss:$12 sps:$4 sm:$0xff]  }
 0x1b1   :  { %9813 = vst [vmem:[#allocation46_spill] sm:$0xff] %v7588_v62 }
 0x1b3   :  { %1878 = vmatpush1.bf16.msra.mxu0 %v7564_v9  ;;  %5453 = vmatpush3.bf16.msra.mxu1 %v7569_v15  ;;  %v7595_v9 = vld [vmem:[%s9585_s7 + $0x34] ss:$12 sps:$4 sm:$0xff]   ;;  %v7602_v15 = vld [vmem:[%s9585_s7 + $0x30] ss:$12 sps:$4 sm:$0xff]  }
 0x1b4   :  { %1879 = vmatprep.subr.bf16.mxu0 %v7576_v26  ;;  %5454 = vmatprep.subr.bf16.mxu1 %v9806_v14  ;;  %9814 = vst [vmem:[#allocation47_spill] sm:$0xff] %v7595_v9  ;;  %9815 = vst [vmem:[#allocation48_spill] sm:$0xff] %v7602_v15  ;;  %v7607_v26 = vld [vmem:[%s9585_s7 + $0x38] ss:$12 sps:$4 sm:$0xff]  }
 0x1b5   :  { %9816 = vst [vmem:[#allocation49_spill] sm:$0xff] %v7607_v26 }
 0x1b7   :  { %1880 = vmatpush1.bf16.msra.mxu0 %v7583_v22  ;;  %5455 = vmatpush3.bf16.msra.mxu1 %v7588_v62  ;;  %v7614_v22 = vld [vmem:[%s9585_s7 + $0x1c] ss:$12 sps:$4 sm:$0xff]   ;;  %v7621_v62 = vld [vmem:[%s9585_s7 + $0x18] ss:$12 sps:$4 sm:$0xff]  }
 0x1b8   :  { %1881 = vmatprep.subr.bf16.mxu0 %v7595_v9  ;;  %5456 = vmatprep.subr.bf16.mxu1 %v9806_v14  ;;  %9817 = vst [vmem:[#allocation50_spill] sm:$0xff] %v7614_v22  ;;  %v7626_v9 = vld [vmem:[%s9585_s7 + $0x20] ss:$12 sps:$4 sm:$0xff]  }
 0x1bb   :  { %1882 = vmatpush1.bf16.msra.mxu0 %v7602_v15  ;;  %5457 = vmatpush3.bf16.msra.mxu1 %v7607_v26  ;;  %v7633_v15 = vld [vmem:[%s9585_s7 + $0x4] ss:$12 sps:$4 sm:$0xff]   ;;  %v7640_v26 = vld [vmem:[%s9585_s7] ss:$12 sps:$4 sm:$0xff]  }
 0x1bc   :  { %1883 = vmatprep.subr.bf16.mxu0 %v7614_v22  ;;  %5458 = vmatprep.subr.bf16.mxu1 %v9806_v14  ;;  %v7645_v22 = vld [vmem:[%s9585_s7 + $0x8] ss:$12 sps:$4 sm:$0xff]  }
 0x1bf   :  { %1884 = vmatpush1.bf16.msra.mxu0 %v7621_v62  ;;  %5459 = vmatpush3.bf16.msra.mxu1 %v7626_v9 }
 0x1c0   :  { %1885 = vmatprep.subr.bf16.mxu0 %v7633_v15  ;;  %5460 = vmatprep.subr.bf16.mxu1 %v9806_v14 }
 0x1c3   :  { %1886 = vmatpush1.bf16.msra.mxu0 %v7640_v26  ;;  %5461 = vmatpush3.bf16.msra.mxu1 %v7645_v22 }
 0x1c4   :  { %1973 = vmatprep.subr.bf16.mxu0 %v7099_v31  ;;  %5466 = vmatprep.subr.bf16.mxu1 %v9806_v14  ;;  %v9818_v31 = vld [vmem:[#allocation27_spill] sm:$0xff] }
 0x1c6   :  { %1904 = vmatmul.mubr.bf16.vlgmr.msra.gmra.mxu0 %v9807_v54  ;;  %5463 = vmatmul.mubr.bf16.vlgmr.msra.gmra.mxu1 %v9807_v54 }
 0x1c7   :  { %1974 = vmatpush1.bf16.msra.mxu0 %v7104_v32  ;;  %5467 = vmatpush3.bf16.msra.mxu1 %v7109_v33  ;;  %v9819_v32 = vld [vmem:[#allocation28_spill] sm:$0xff]  ;;  %v9820_v33 = vld [vmem:[#allocation29_spill] sm:$0xff] }
 0x1c8   :  { %1975 = vmatprep.subr.bf16.mxu0 %v7114_v34  ;;  %5468 = vmatprep.subr.bf16.mxu1 %v9806_v14  ;;  %v9821_v34 = vld [vmem:[#allocation30_spill] sm:$0xff] }
 0x1c9   :  { %2005 = vmatprep.mubr.bf16.mxu0 %v9807_v54  ;;  %5482 = vmatprep.mubr.msk.bf16.mxu1 %vm6596_vm2, %v9806_v14 }
 0x1cb   :  { %1976 = vmatpush1.bf16.msra.mxu0 %v7121_v35  ;;  %5469 = vmatpush3.bf16.msra.mxu1 %v7126_v36  ;;  %v9822_v35 = vld [vmem:[#allocation31_spill] sm:$0xff]  ;;  %v9823_v36 = vld [vmem:[#allocation32_spill] sm:$0xff] }
 0x1cc   :  { %1977 = vmatprep.subr.bf16.mxu0 %v7133_v37  ;;  %5470 = vmatprep.subr.bf16.mxu1 %v9806_v14  ;;  %v9824_v37 = vld [vmem:[#allocation33_spill] sm:$0xff] }
 0x1cf   :  { %1978 = vmatpush1.bf16.msra.mxu0 %v7142_v38  ;;  %5471 = vmatpush3.bf16.msra.mxu1 %v7148_v23  ;;  %v9825_v38 = vld [vmem:[#allocation34_spill] sm:$0xff]  ;;  %v9826_v23 = vld [vmem:[#allocation35_spill] sm:$0xff] }
 0x1d0   :  { %1979 = vmatprep.subr.bf16.mxu0 %v7155_v27  ;;  %5472 = vmatprep.subr.bf16.mxu1 %v9806_v14 }
 0x1d3   :  { %1980 = vmatpush1.bf16.msra.mxu0 %v7164_v39  ;;  %5473 = vmatpush3.bf16.msra.mxu1 %v7169_v40 }
 0x1d4   :  { %1981 = vmatprep.subr.bf16.mxu0 %v7174_v41  ;;  %5474 = vmatprep.subr.bf16.mxu1 %v9806_v14 }
 0x1d7   :  { %1982 = vmatpush1.bf16.msra.mxu0 %v7183_v42  ;;  %5475 = vmatpush3.bf16.msra.mxu1 %v7188_v43 }
 0x1d8   :  { %1983 = vmatprep.subr.bf16.mxu0 %v7193_v44  ;;  %5476 = vmatprep.subr.bf16.mxu1 %v9806_v14 }
 0x1db   :  { %1984 = vmatpush1.bf16.msra.mxu0 %v7202_v45  ;;  %5477 = vmatpush3.bf16.msra.mxu1 %v7207_v46 }
 0x1dc   :  { %1985 = vmatprep.subr.bf16.mxu0 %v7215_v47  ;;  %5478 = vmatprep.subr.bf16.mxu1 %v9806_v14 }
 0x1df   :  { %1986 = vmatpush1.bf16.msra.mxu0 %v7221_v48  ;;  %5479 = vmatpush3.bf16.msra.mxu1 %v7231_v50 }
 0x1e0   :  { %1987 = vmatprep.subr.bf16.mxu0 %v7226_v49  ;;  %5480 = vmatprep.subr.bf16.mxu1 %v9806_v14 }
 0x1e3   :  { %1988 = vmatpush1.bf16.msra.mxu0 %v7240_v51  ;;  %5481 = vmatpush3.bf16.msra.mxu1 %v7245_v52 }
 0x1e4   :  { %2091 = vmatprep.subr.bf16.mxu0 %v7293_v5  ;;  %5486 = vmatprep.subr.bf16.mxu1 %v9806_v14 }
 0x1e6   :  { %2006 = vmatmul.mubr.bf16.vlgmr.msra.gmra.mxu0 %v7509_v59  ;;  %5483 = vmatmul.mubr.bf16.vlgmr.msra.gmra.mxu1 %v7509_v59 }
 0x1e7   :  { %2092 = vmatpush1.bf16.msra.mxu0 %v7298_v6  ;;  %5487 = vmatpush3.bf16.msra.mxu1 %v7303_v7 }
 0x1e8   :  { %2093 = vmatprep.subr.bf16.mxu0 %v7313_v10  ;;  %5488 = vmatprep.subr.bf16.mxu1 %v9806_v14 }
 0x1e9   :  { %2123 = vmatprep.mubr.bf16.mxu0 %v9807_v54  ;;  %5502 = vmatprep.mubr.msk.bf16.mxu1 %vm6596_vm2, %v9806_v14 }
 0x1eb   :  { %2094 = vmatpush1.bf16.msra.mxu0 %v7319_v11  ;;  %5489 = vmatpush3.bf16.msra.mxu1 %v7324_v12 }
 0x1ec   :  { %2095 = vmatprep.subr.bf16.mxu0 %v7334_v18  ;;  %5490 = vmatprep.subr.bf16.mxu1 %v9806_v14 }
 0x1ef   :  { %2096 = vmatpush1.bf16.msra.mxu0 %v7342_v20  ;;  %5491 = vmatpush3.bf16.msra.mxu1 %v7347_v21 }
 0x1f0   :  { %2097 = vmatprep.subr.bf16.mxu0 %v7355_v28  ;;  %5492 = vmatprep.subr.bf16.mxu1 %v9806_v14 }
 0x1f3   :  { %2098 = vmatpush1.bf16.msra.mxu0 %v7361_v29  ;;  %5493 = vmatpush3.bf16.msra.mxu1 %v7366_v30 }
 0x1f4   :  { %2099 = vmatprep.subr.bf16.mxu0 %v7374_v61  ;;  %5494 = vmatprep.subr.bf16.mxu1 %v9806_v14 }
 0x1f7   :  { %2100 = vmatpush1.bf16.msra.mxu0 %v7379_v63  ;;  %5495 = vmatpush3.bf16.msra.mxu1 %v7384_v0 }
 0x1f8   :  { %2101 = vmatprep.subr.bf16.mxu0 %v7390_v4  ;;  %5496 = vmatprep.subr.bf16.mxu1 %v9806_v14 }
 0x1fb   :  { %2102 = vmatpush1.bf16.msra.mxu0 %v9818_v31  ;;  %5497 = vmatpush3.bf16.msra.mxu1 %v9819_v32 }
 0x1fc   :  { %2103 = vmatprep.subr.bf16.mxu0 %v9820_v33  ;;  %5498 = vmatprep.subr.bf16.mxu1 %v9806_v14 }
 0x1ff   :  { %2104 = vmatpush1.bf16.msra.mxu0 %v9821_v34  ;;  %5499 = vmatpush3.bf16.msra.mxu1 %v9822_v35 }
 0x200   :  { %2105 = vmatprep.subr.bf16.mxu0 %v9823_v36  ;;  %5500 = vmatprep.subr.bf16.mxu1 %v9806_v14  ;;  %v1253_v36 = vld [vmem:[%s9586_s8] sm:$0x7] }
 0x203   :  { %2106 = vmatpush1.bf16.msra.mxu0 %v9824_v37  ;;  %5501 = vmatpush3.bf16.msra.mxu1 %v9825_v38  ;;  %v1254_v38 = vld [vmem:[%s9587_s9] sm:$0x7] }
 0x204   :  { %2173 = vmatprep.subr.bf16.mxu0 %v9826_v23  ;;  %5506 = vmatprep.subr.bf16.mxu1 %v9806_v14  ;;  %v9827_v37 = vld [vmem:[#allocation7_spill] sm:$0xff] }
 0x205   :  { %v7734_v23 = vrot.slane %v1253_v36, %v9827_v37  ;;  %v7737_v0 = vrot.slane %v1254_v38, %v9827_v37 }
 0x207   :  { %9828 = vst [vmem:[#allocation51_spill] sm:$0xff] %v7734_v23  ;;  %9829 = vst [vmem:[#allocation52_spill] sm:$0xff] %v7737_v0 }
 0x266   :  { %v1680_v27 = vpop.f32.mrf.mxu0  ;;  %v1721_v59 = vpop.f32.mrf.mxu1 }
 0x268   :  { %v1682_v33 = vpop.f32.mrf.mxu0  ;;  %v5444_v32 = vpop.f32.mrf.mxu1 }
 0x269   :  { %v7740_v32 = vrot.slane %v1253_v36, %v7465_v3 }
 0x26a   :  { %v1684_v31 = vpop.f32.mrf.mxu0  ;;  %v1724_v34 = vpop.f32.mrf.mxu1 }
 0x26b   :  { %v1683_v29 = vadd.f32 %v1682_v33, %v7740_v32 }
 0x26c   :  { %v1685_v4 = vpop.f32.mrf.mxu0  ;;  %v5445_v35 = vpop.f32.mrf.mxu1 }
 0x26d   :  { %v7743_v4 = vrot.slane %v1254_v38, %v7465_v3  ;;  %v1681_v35 = vadd.f32 %v1680_v27, %v7734_v23 }
 0x286   :  { %v1905_v31 = vpop.f32.mrf.mxu0  ;;  %v1946_v34 = vpop.f32.mrf.mxu1 }
 0x287   :  { %v1906_v63 = vadd.f32 %v1905_v31, %v7737_v0  ;;  %v7750_v31 = vrot.slane %v1254_v38, %v7260_v53 }
 0x288   :  { %v1907_v61 = vpop.f32.mrf.mxu0  ;;  %v5464_v30 = vpop.f32.mrf.mxu1 }
 0x289   :  { %v1952_v28 = vadd.f32 %v1906_v63, %v1681_v35  ;;  %v1908_v37 = vadd.f32 %v1907_v61, %v7743_v4  ;;  %9830 = vst [vmem:[#allocation53_spill] sm:$0xff] %v7750_v31  ;;  %v7753_v61 = vrot.slane %v1253_v36, %v7260_v53 }
 0x28a   :  { %v1909_v21 = vpop.f32.mrf.mxu0  ;;  %v1949_v20 = vpop.f32.mrf.mxu1 }
 0x28b   :  { %v5043_v18 = vmul.f32 -1.442695, %v1952_v28  ;;  %v1959_v12 = vadd.f32 %v1908_v37, %v1683_v29  ;;  %v1947_v21 = vadd.f32 %v1946_v34, %v7750_v31  ;;  %v1722_v38 = vadd.f32 %v1721_v59, %v7753_v61 }
 0x28c   :  { %v1910_v11 = vpop.f32.mrf.mxu0  ;;  %v5465_v3 = vpop.f32.mrf.mxu1 }
 0x28d   :  { %6277 = vpow2.f32 %v5043_v18  ;;  %v5044_v10 = vmul.f32 -1.442695, %v1959_v12  ;;  %v9831_v11 = vld [vmem:[#allocation38_spill] sm:$0xff] }
 0x28f   :  { %6279 = vpow2.f32 %v5044_v10 }
 0x29a   :  { %v6278_v7 = vpop.eup %6277 }
 0x29b   :  { %v1956_v27 = vadd.f32 1.0, %v6278_v7 }
 0x29c   :  { %v6280_v30 = vpop.eup %6279 }
 0x29d   :  { %6281 = vrcp.f32 %v1956_v27  ;;  %v1963_v20 = vadd.f32 1.0, %v6280_v30 }
 0x29f   :  { %6283 = vrcp.f32 %v1963_v20 }
 0x2a6   :  { %v2007_v33 = vpop.f32.mrf.mxu0  ;;  %v2048_v63 = vpop.f32.mrf.mxu1 }
 0x2a7   :  { %v2008_v3 = vadd.f32 %v2007_v33, %v9831_v11 }
 0x2a8   :  { %v2009_v18 = vpop.f32.mrf.mxu0  ;;  %v5484_v12 = vpop.f32.mrf.mxu1 }
 0x2a9   :  { %v2055_v10 = vrot.slane %v2008_v3, 6  ;;  %v2010_v7 = vadd.f32 %v2009_v18, %v7472_v8 }
 0x2aa   :  { %v6282_v28 = vpop.eup %6281  ;;  %v2011_v29 = vpop.f32.mrf.mxu0 }
 0x2ab   :  { %v2051_v37 = vpop.f32.mrf.mxu1  ;;  %v1966_v35 = vmul.f32 %v6282_v28, %v1947_v21  ;;  %v2057_v36 = vadd.f32 %v2055_v10, %v7469_v1  ;;  %v2065_v31 = vrot.slane %v2010_v7, 6 }
 0x2ac   :  { %v2012_v27 = vpop.f32.mrf.mxu0  ;;  %v6284_v12 = vpop.eup %6283 }
 0x2ad   :  { %v5485_v30 = vpop.f32.mrf.mxu1  ;;  %v1967_v53 = vadd.f32 %v1966_v35, %v1722_v38  ;;  %v5045_v34 = vmul.f32 -1.442695, %v2057_v36  ;;  %v2067_v33 = vadd.f32 %v2065_v31, %v7483_v13  ;;  %v1969_v18 = vsub.f32 1.0, %v6284_v12 }
 0x2ae   :  { %v1971_v20 = vmul.f32 0.0, %v6284_v12  ;;  %v2049_v38 = vadd.f32 %v2048_v63, %v7487_v24  ;;  %v2083_v30 = vrot.slane %v7495_v17, 6  ;;  %v9833_v17 = vld [vmem:[#allocation41_spill] sm:$0xff] }
 0x2af   :  { %6285 = vtanh.f32 %v1967_v53  ;;  %v5046_v3 = vmul.f32 -1.442695, %v2067_v33 }
 0x2b0   :  { %6287 = vpow2.f32 %v5045_v34  ;;  %v2075_v53 = vrot.slane %v2049_v38, 6  ;;  %v9839_v38 = vld [vmem:[#allocation47_spill] sm:$0xff] }
 0x2b1   :  { %6289 = vpow2.f32 %v5046_v3 }
 0x2bc   :  { %v6286_v29 = vpop.eup %6285 }
 0x2bd   :  { %v6288_v37 = vpop.eup %6287  ;;  %v1970_v59 = vmul.f32 %v6286_v29, %v1969_v18 }
 0x2be   :  { %v2061_v21 = vadd.f32 1.0, %v6288_v37  ;;  %v6290_v10 = vpop.eup %6289  ;;  %v9834_v37 = vld [vmem:[#allocation42_spill] sm:$0xff] }
 0x2bf   :  { %v7761_v28 = vadd.f32 %v1971_v20, %v1970_v59  ;;  %v2071_v7 = vadd.f32 1.0, %v6290_v10  ;;  %v9835_v59 = vld [vmem:[#allocation43_spill] sm:$0xff]  ;;  %v9836_v20 = vld [vmem:[#allocation44_spill] sm:$0xff]  ;;  %v9838_v10 = vld [vmem:[#allocation46_spill] sm:$0xff] }
 0x2c0   :  { %6291 = vrcp.f32 %v2061_v21  ;;  %v9837_v21 = vld [vmem:[#allocation45_spill] sm:$0xff] }
 0x2c1   :  { %9832 = vst [vmem:[#allocation38_spill] sm:$0xff] %v7761_v28  ;;  %6293 = vrcp.f32 %v2071_v7  ;;  %v9840_v7 = vld [vmem:[#allocation48_spill] sm:$0xff] }
 0x2cd   :  { %v6292_v35 = vpop.eup %6291 }
 0x2ce   :  { %v2077_v36 = vmul.f32 %v6292_v35, %v2075_v53  ;;  %v6294_v27 = vpop.eup %6293  ;;  %v9841_v53 = vld [vmem:[#allocation49_spill] sm:$0xff]  ;;  %v9842_v35 = vld [vmem:[#allocation50_spill] sm:$0xff] }
 0x2cf   :  { %v2080_v34 = vsub.f32 1.0, %v6294_v27  ;;  %v2085_v12 = vmul.f32 %v6294_v27, %v2083_v30  ;;  %v7819_v27 = vld [vmem:[%s9581_s3 + $0xa8] ss:$12 sps:$4 sm:$0xff]   ;;  %v7825_v30 = vld [vmem:[%s9581_s3 + $0xb0] ss:$12 sps:$4 sm:$0xff]  }
 0x2d0   :  { %v2078_v31 = vadd.f32 %v2077_v36, %v7492_v60  ;;  %v2172_v36 = vpack.c.bf16 %v7761_v28, %v7761_v28 }
 0x2d2   :  { %6295 = vtanh.f32 %v2078_v31  ;;  %v7812_v31 = vld [vmem:[%s9581_s3 + $0xac] ss:$12 sps:$4 sm:$0xff]  }
 0x2df   :  { %v6296_v33 = vpop.eup %6295 }
 0x2e0   :  { %v2081_v3 = vmul.f32 %v6296_v33, %v2080_v34  ;;  %v7831_v34 = vld [vmem:[%s9581_s3 + $0x94] ss:$12 sps:$4 sm:$0xff]   ;;  %v7841_v33 = vld [vmem:[%s9581_s3 + $0x90] ss:$12 sps:$4 sm:$0xff]  }
 0x2e2   :  { %v7766_v18 = vadd.f32 %v2085_v12, %v2081_v3  ;;  %v7847_v3 = vld [vmem:[%s9581_s3 + $0x98] ss:$12 sps:$4 sm:$0xff]   ;;  %v7853_v12 = vld [vmem:[%s9581_s3 + $0x7c] ss:$12 sps:$4 sm:$0xff]  }
 0x2e3   :  { %9843 = vst [vmem:[#allocation41_spill] sm:$0xff] %v7853_v12 }
 0x2e4   :  { %v2087_v63 = vpack.c.bf16 %v7766_v18, %v7766_v18 }
 0x2e6   :  { %v7770_v29 = vrot.slane %v2087_v63, 1  ;;  %v7860_v63 = vld [vmem:[%s9581_s3 + $0x78] ss:$12 sps:$4 sm:$0xff]  }
 0x2e7   :  { %9844 = vst [vmem:[#allocation42_spill] sm:$0xff] %v7860_v63 }
 0x2e8   :  { %2124 = vmatmul.mubr.bf16.vlgmr.msra.gmra.mxu0 %v7770_v29  ;;  %5503 = vmatmul.mubr.bf16.vlgmr.msra.gmra.mxu1 %v7770_v29 }
 0x2e9   :  { %2174 = vmatpush1.bf16.msra.mxu0 %v7500_v19  ;;  %5507 = vmatpush3.bf16.msra.mxu1 %v7505_v58 }
 0x2ea   :  { %2175 = vmatprep.subr.bf16.mxu0 %v7514_v56  ;;  %5508 = vmatprep.subr.bf16.mxu1 %v9806_v14 }
 0x2eb   :  { %2205 = vmatprep.mubr.bf16.mxu0 %v9807_v54  ;;  %5522 = vmatprep.mubr.msk.bf16.mxu1 %vm6596_vm2, %v9806_v14 }
 0x2ed   :  { %2176 = vmatpush1.bf16.msra.mxu0 %v7523_v55  ;;  %5509 = vmatpush3.bf16.msra.mxu1 %v7528_v2 }
 0x2ee   :  { %2177 = vmatprep.subr.bf16.mxu0 %v7535_v16  ;;  %5510 = vmatprep.subr.bf16.mxu1 %v9806_v14 }
 0x2f1   :  { %2178 = vmatpush1.bf16.msra.mxu0 %v7545_v25  ;;  %5511 = vmatpush3.bf16.msra.mxu1 %v7550_v57 }
 0x2f2   :  { %2179 = vmatprep.subr.bf16.mxu0 %v9833_v17  ;;  %5512 = vmatprep.subr.bf16.mxu1 %v9806_v14 }
 0x2f5   :  { %2180 = vmatpush1.bf16.msra.mxu0 %v9834_v37  ;;  %5513 = vmatpush3.bf16.msra.mxu1 %v9835_v59 }
 0x2f6   :  { %2181 = vmatprep.subr.bf16.mxu0 %v9836_v20  ;;  %5514 = vmatprep.subr.bf16.mxu1 %v9806_v14 }
 0x2f9   :  { %2182 = vmatpush1.bf16.msra.mxu0 %v9837_v21  ;;  %5515 = vmatpush3.bf16.msra.mxu1 %v9838_v10 }
 0x2fa   :  { %2183 = vmatprep.subr.bf16.mxu0 %v9839_v38  ;;  %5516 = vmatprep.subr.bf16.mxu1 %v9806_v14 }
 0x2fd   :  { %2184 = vmatpush1.bf16.msra.mxu0 %v9840_v7  ;;  %5517 = vmatpush3.bf16.msra.mxu1 %v9841_v53 }
 0x2fe   :  { %2185 = vmatprep.subr.bf16.mxu0 %v9842_v35  ;;  %5518 = vmatprep.subr.bf16.mxu1 %v9806_v14 }
 0x301   :  { %2186 = vmatpush1.bf16.msra.mxu0 %v7621_v62  ;;  %5519 = vmatpush3.bf16.msra.mxu1 %v7626_v9 }
 0x302   :  { %2187 = vmatprep.subr.bf16.mxu0 %v7633_v15  ;;  %5520 = vmatprep.subr.bf16.mxu1 %v9806_v14 }
 0x305   :  { %2188 = vmatpush1.bf16.msra.mxu0 %v7640_v26  ;;  %5521 = vmatpush3.bf16.msra.mxu1 %v7645_v22 }
 0x306   :  { %2275 = vmatprep.subr.bf16.mxu0 %v7812_v31  ;;  %5526 = vmatprep.subr.bf16.mxu1 %v9806_v14 }
 0x308   :  { %2206 = vmatmul.mubr.bf16.vlgmr.msra.gmra.mxu0 %v2172_v36  ;;  %5523 = vmatmul.mubr.bf16.vlgmr.msra.gmra.mxu1 %v2172_v36  ;;  %v7866_v36 = vld [vmem:[%s9581_s3 + $0x80] ss:$12 sps:$4 sm:$0xff]  }
 0x309   :  { %2276 = vmatpush1.bf16.msra.mxu0 %v7819_v27  ;;  %5527 = vmatpush3.bf16.msra.mxu1 %v7825_v30  ;;  %9845 = vst [vmem:[#allocation43_spill] sm:$0xff] %v7866_v36 }
 0x30a   :  { %2277 = vmatprep.subr.bf16.mxu0 %v7831_v34  ;;  %5528 = vmatprep.subr.bf16.mxu1 %v9806_v14 }
 0x30b   :  { %2307 = vmatprep.mubr.bf16.mxu0 %v9807_v54  ;;  %5542 = vmatprep.mubr.msk.bf16.mxu1 %vm6596_vm2, %v9806_v14 }
 0x30d   :  { %2278 = vmatpush1.bf16.msra.mxu0 %v7841_v33  ;;  %5529 = vmatpush3.bf16.msra.mxu1 %v7847_v3 }
 0x30e   :  { %2279 = vmatprep.subr.bf16.mxu0 %v7853_v12  ;;  %5530 = vmatprep.subr.bf16.mxu1 %v9806_v14  ;;  %v7872_v12 = vld [vmem:[%s9581_s3 + $0x64] ss:$12 sps:$4 sm:$0xff]  }
 0x30f   :  { %9846 = vst [vmem:[#allocation44_spill] sm:$0xff] %v7872_v12 }
 0x311   :  { %2280 = vmatpush1.bf16.msra.mxu0 %v7860_v63  ;;  %5531 = vmatpush3.bf16.msra.mxu1 %v7866_v36 }
 0x312   :  { %2281 = vmatprep.subr.bf16.mxu0 %v7872_v12  ;;  %5532 = vmatprep.subr.bf16.mxu1 %v9806_v14 }
 0x315   :  { %2282 = vmatpush1.bf16.msra.mxu0 %v7164_v39  ;;  %5533 = vmatpush3.bf16.msra.mxu1 %v7169_v40  ;;  %v9847_v39 = vld [vmem:[#allocation10_spill] sm:$0xff]  ;;  %v9848_v40 = vld [vmem:[#allocation12_spill] sm:$0xff] }
 0x316   :  { %2283 = vmatprep.subr.bf16.mxu0 %v7174_v41  ;;  %5534 = vmatprep.subr.bf16.mxu1 %v9806_v14  ;;  %v9849_v41 = vld [vmem:[#allocation13_spill] sm:$0xff] }
 0x319   :  { %2284 = vmatpush1.bf16.msra.mxu0 %v7183_v42  ;;  %5535 = vmatpush3.bf16.msra.mxu1 %v7188_v43  ;;  %v9850_v42 = vld [vmem:[#allocation14_spill] sm:$0xff]  ;;  %v9851_v43 = vld [vmem:[#allocation16_spill] sm:$0xff] }
 0x31a   :  { %2285 = vmatprep.subr.bf16.mxu0 %v7193_v44  ;;  %5536 = vmatprep.subr.bf16.mxu1 %v9806_v14  ;;  %v9852_v44 = vld [vmem:[#allocation18_spill] sm:$0xff] }
 0x31d   :  { %2286 = vmatpush1.bf16.msra.mxu0 %v7202_v45  ;;  %5537 = vmatpush3.bf16.msra.mxu1 %v7207_v46  ;;  %v9853_v45 = vld [vmem:[#allocation19_spill] sm:$0xff]  ;;  %v9854_v46 = vld [vmem:[#allocation20_spill] sm:$0xff] }
 0x31e   :  { %2287 = vmatprep.subr.bf16.mxu0 %v7215_v47  ;;  %5538 = vmatprep.subr.bf16.mxu1 %v9806_v14  ;;  %v9855_v47 = vld [vmem:[#allocation21_spill] sm:$0xff] }
 0x321   :  { %2288 = vmatpush1.bf16.msra.mxu0 %v7221_v48  ;;  %5539 = vmatpush3.bf16.msra.mxu1 %v7231_v50  ;;  %v9856_v48 = vld [vmem:[#allocation22_spill] sm:$0xff]  ;;  %v9858_v50 = vld [vmem:[#allocation24_spill] sm:$0xff] }
 0x322   :  { %2289 = vmatprep.subr.bf16.mxu0 %v7226_v49  ;;  %5540 = vmatprep.subr.bf16.mxu1 %v9806_v14  ;;  %v9857_v49 = vld [vmem:[#allocation23_spill] sm:$0xff] }
 0x325   :  { %2290 = vmatpush1.bf16.msra.mxu0 %v7240_v51  ;;  %5541 = vmatpush3.bf16.msra.mxu1 %v7245_v52  ;;  %v9859_v51 = vld [vmem:[#allocation25_spill] sm:$0xff]  ;;  %v9860_v52 = vld [vmem:[#allocation26_spill] sm:$0xff] }
 0x326   :  { %2393 = vmatprep.subr.bf16.mxu0 %v7293_v5  ;;  %5546 = vmatprep.subr.bf16.mxu1 %v9806_v14  ;;  %v9861_v5 = vld [vmem:[#allocation27_spill] sm:$0xff] }
 0x328   :  { %2308 = vmatmul.mubr.bf16.vlgmr.msra.gmra.mxu0 %v7770_v29  ;;  %5543 = vmatmul.mubr.bf16.vlgmr.msra.gmra.mxu1 %v7770_v29  ;;  %v9863_v29 = vld [vmem:[#allocation29_spill] sm:$0xff] }
 0x329   :  { %2394 = vmatpush1.bf16.msra.mxu0 %v7298_v6  ;;  %5547 = vmatpush3.bf16.msra.mxu1 %v9847_v39  ;;  %v9862_v6 = vld [vmem:[#allocation28_spill] sm:$0xff]  ;;  %v9864_v39 = vld [vmem:[#allocation30_spill] sm:$0xff] }
 0x32a   :  { %2395 = vmatprep.subr.bf16.mxu0 %v9848_v40  ;;  %5548 = vmatprep.subr.bf16.mxu1 %v9806_v14  ;;  %v9865_v40 = vld [vmem:[#allocation31_spill] sm:$0xff] }
 0x32b   :  { %2425 = vmatprep.mubr.bf16.mxu0 %v9807_v54  ;;  %5562 = vmatprep.mubr.msk.bf16.mxu1 %vm6596_vm2, %v9806_v14 }
 0x32d   :  { %2396 = vmatpush1.bf16.msra.mxu0 %v9849_v41  ;;  %5549 = vmatpush3.bf16.msra.mxu1 %v9850_v42  ;;  %v9866_v41 = vld [vmem:[#allocation32_spill] sm:$0xff]  ;;  %v9867_v42 = vld [vmem:[#allocation33_spill] sm:$0xff] }
 0x32e   :  { %2397 = vmatprep.subr.bf16.mxu0 %v9851_v43  ;;  %5550 = vmatprep.subr.bf16.mxu1 %v9806_v14  ;;  %v9868_v43 = vld [vmem:[#allocation34_spill] sm:$0xff] }
 0x331   :  { %2398 = vmatpush1.bf16.msra.mxu0 %v9852_v44  ;;  %5551 = vmatpush3.bf16.msra.mxu1 %v9853_v45  ;;  %v9869_v44 = vld [vmem:[#allocation35_spill] sm:$0xff] }
 0x332   :  { %2399 = vmatprep.subr.bf16.mxu0 %v9854_v46  ;;  %5552 = vmatprep.subr.bf16.mxu1 %v9806_v14 }
 0x335   :  { %2400 = vmatpush1.bf16.msra.mxu0 %v9855_v47  ;;  %5553 = vmatpush3.bf16.msra.mxu1 %v9856_v48 }
 0x336   :  { %2401 = vmatprep.subr.bf16.mxu0 %v9857_v49  ;;  %5554 = vmatprep.subr.bf16.mxu1 %v9806_v14 }
 0x339   :  { %2402 = vmatpush1.bf16.msra.mxu0 %v9858_v50  ;;  %5555 = vmatpush3.bf16.msra.mxu1 %v9859_v51 }
 0x33a   :  { %2403 = vmatprep.subr.bf16.mxu0 %v9860_v52  ;;  %5556 = vmatprep.subr.bf16.mxu1 %v9806_v14 }
 0x33d   :  { %2404 = vmatpush1.bf16.msra.mxu0 %v9861_v5  ;;  %5557 = vmatpush3.bf16.msra.mxu1 %v9862_v6 }
 0x33e   :  { %2405 = vmatprep.subr.bf16.mxu0 %v9863_v29  ;;  %5558 = vmatprep.subr.bf16.mxu1 %v9806_v14 }
 0x341   :  { %2406 = vmatpush1.bf16.msra.mxu0 %v9864_v39  ;;  %5559 = vmatpush3.bf16.msra.mxu1 %v9865_v40 }
 0x342   :  { %2407 = vmatprep.subr.bf16.mxu0 %v9866_v41  ;;  %5560 = vmatprep.subr.bf16.mxu1 %v9806_v14 }
 0x345   :  { %2408 = vmatpush1.bf16.msra.mxu0 %v9867_v42  ;;  %5561 = vmatpush3.bf16.msra.mxu1 %v9868_v43 }
 0x346   :  { %2475 = vmatprep.subr.bf16.mxu0 %v9869_v44  ;;  %5566 = vmatprep.subr.bf16.mxu1 %v9806_v14 }
 0x3a8   :  { %v2125_v45 = vpop.f32.mrf.mxu0  ;;  %v2166_v46 = vpop.f32.mrf.mxu1 }
 0x3a9   :  { %v2126_v29 = vadd.f32 %v2125_v45, %v7734_v23 }
 0x3aa   :  { %v2127_v47 = vpop.f32.mrf.mxu0  ;;  %v5504_v48 = vpop.f32.mrf.mxu1 }
 0x3ab   :  { %v2128_v42 = vadd.f32 %v2127_v47, %v7740_v32 }
 0x3ac   :  { %v2129_v49 = vpop.f32.mrf.mxu0  ;;  %v2169_v50 = vpop.f32.mrf.mxu1 }
 0x3ae   :  { %v2130_v51 = vpop.f32.mrf.mxu0  ;;  %v5505_v52 = vpop.f32.mrf.mxu1 }
 0x3c8   :  { %v2207_v5 = vpop.f32.mrf.mxu0  ;;  %v2248_v6 = vpop.f32.mrf.mxu1 }
 0x3c9   :  { %v2208_v39 = vadd.f32 %v2207_v5, %v7737_v0 }
 0x3ca   :  { %v2209_v40 = vpop.f32.mrf.mxu0  ;;  %v5524_v41 = vpop.f32.mrf.mxu1 }
 0x3cb   :  { %v2254_v43 = vadd.f32 %v2208_v39, %v2126_v29  ;;  %v2210_v44 = vadd.f32 %v2209_v40, %v7743_v4 }
 0x3cc   :  { %v2211_v12 = vpop.f32.mrf.mxu0  ;;  %v2251_v36 = vpop.f32.mrf.mxu1 }
 0x3cd   :  { %v5047_v48 = vmul.f32 -1.442695, %v2254_v43  ;;  %v2261_v49 = vadd.f32 %v2210_v44, %v2128_v42  ;;  %v9870_v12 = vld [vmem:[#allocation53_spill] sm:$0xff] }
 0x3ce   :  { %v2212_v50 = vpop.f32.mrf.mxu0  ;;  %v5525_v51 = vpop.f32.mrf.mxu1  ;;  %v2249_v36 = vadd.f32 %v2248_v6, %v9870_v12 }
 0x3cf   :  { %6297 = vpow2.f32 %v5047_v48  ;;  %v5048_v52 = vmul.f32 -1.442695, %v2261_v49  ;;  %v2167_v49 = vadd.f32 %v2166_v46, %v7753_v61 }
 0x3d1   :  { %6299 = vpow2.f32 %v5048_v52 }
 0x3dc   :  { %v6298_v63 = vpop.eup %6297 }
 0x3dd   :  { %v2258_v45 = vadd.f32 1.0, %v6298_v63 }
 0x3de   :  { %v6300_v5 = vpop.eup %6299 }
 0x3df   :  { %6301 = vrcp.f32 %v2258_v45  ;;  %v2265_v23 = vadd.f32 1.0, %v6300_v5 }
 0x3e1   :  { %6303 = vrcp.f32 %v2265_v23 }
 0x3e8   :  { %v2309_v0 = vpop.f32.mrf.mxu0  ;;  %v2350_v41 = vpop.f32.mrf.mxu1 }
 0x3e9   :  { %v2310_v47 = vadd.f32 %v2309_v0, %v9831_v11 }
 0x3ea   :  { %v2311_v29 = vpop.f32.mrf.mxu0  ;;  %v5544_v39 = vpop.f32.mrf.mxu1 }
 0x3eb   :  { %v2357_v40 = vrot.slane %v2310_v47, 4  ;;  %v2312_v43 = vadd.f32 %v2311_v29, %v7472_v8 }
 0x3ec   :  { %v6302_v42 = vpop.eup %6301  ;;  %v2313_v44 = vpop.f32.mrf.mxu0 }
 0x3ed   :  { %v2353_v48 = vpop.f32.mrf.mxu1  ;;  %v2268_v63 = vmul.f32 %v6302_v42, %v2249_v36  ;;  %v2359_v50 = vadd.f32 %v2357_v40, %v7469_v1  ;;  %v2367_v5 = vrot.slane %v2312_v43, 4  ;;  %v2351_v43 = vadd.f32 %v2350_v41, %v7487_v24 }
 0x3ee   :  { %v2314_v51 = vpop.f32.mrf.mxu0  ;;  %v6304_v39 = vpop.eup %6303 }
 0x3ef   :  { %v5545_v52 = vpop.f32.mrf.mxu1  ;;  %v2269_v45 = vadd.f32 %v2268_v63, %v2167_v49  ;;  %v5049_v0 = vmul.f32 -1.442695, %v2359_v50  ;;  %v2369_v6 = vadd.f32 %v2367_v5, %v7483_v13  ;;  %v2271_v29 = vsub.f32 1.0, %v6304_v39 }
 0x3f0   :  { %v2273_v23 = vmul.f32 %v6304_v39, %v7761_v28  ;;  %v2377_v63 = vrot.slane %v2351_v43, 4  ;;  %v8169_v43 = vld [vmem:[%s9584_s6 + $0x60] ss:$12 sps:$4 sm:$0xff]  }
 0x3f1   :  { %6305 = vtanh.f32 %v2269_v45  ;;  %v5050_v47 = vmul.f32 -1.442695, %v2369_v6  ;;  %9892 = vst [vmem:[#allocation24_spill] sm:$0xff] %v8169_v43 }
 0x3f2   :  { %6307 = vpow2.f32 %v5049_v0  ;;  %v2385_v0 = vrot.slane %v7766_v18, 6  ;;  %v8062_v18 = vld [vmem:[%s9581_s3 + $0x1c] ss:$12 sps:$4 sm:$0xff]  }
 0x3f3   :  { %6309 = vpow2.f32 %v5050_v47  ;;  %9876 = vst [vmem:[#allocation46_spill] sm:$0xff] %v8062_v18 }
 0x3fe   :  { %v6306_v44 = vpop.eup %6305 }
 0x3ff   :  { %v6308_v48 = vpop.eup %6307  ;;  %v2272_v46 = vmul.f32 %v6306_v44, %v2271_v29 }
 0x400   :  { %v2363_v36 = vadd.f32 1.0, %v6308_v48  ;;  %v6310_v42 = vpop.eup %6309  ;;  %v8137_v48 = vld [vmem:[%s9584_s6 + $0x98] ss:$12 sps:$4 sm:$0xff]  }
 0x401   :  { %v7944_v40 = vadd.f32 %v2273_v23, %v2272_v46  ;;  %v2373_v49 = vadd.f32 1.0, %v6310_v42  ;;  %9887 = vst [vmem:[#allocation19_spill] sm:$0xff] %v8137_v48  ;;  %v8143_v46 = vld [vmem:[%s9584_s6 + $0x7c] ss:$12 sps:$4 sm:$0xff]   ;;  %v8150_v23 = vld [vmem:[%s9584_s6 + $0x78] ss:$12 sps:$4 sm:$0xff]  }
 0x402   :  { %6311 = vrcp.f32 %v2363_v36  ;;  %9888 = vst [vmem:[#allocation20_spill] sm:$0xff] %v8143_v46  ;;  %9889 = vst [vmem:[#allocation21_spill] sm:$0xff] %v8150_v23  ;;  %v8156_v36 = vld [vmem:[%s9584_s6 + $0x80] ss:$12 sps:$4 sm:$0xff]   ;;  %v8162_v42 = vld [vmem:[%s9584_s6 + $0x64] ss:$12 sps:$4 sm:$0xff]  }
 0x403   :  { %9871 = vst [vmem:[#allocation45_spill] sm:$0xff] %v7944_v40  ;;  %6313 = vrcp.f32 %v2373_v49  ;;  %9890 = vst [vmem:[#allocation22_spill] sm:$0xff] %v8156_v36  ;;  %v8175_v49 = vld [vmem:[%s9584_s6 + $0x68] ss:$12 sps:$4 sm:$0xff]  }
 0x404   :  { %9891 = vst [vmem:[#allocation23_spill] sm:$0xff] %v8162_v42  ;;  %9893 = vst [vmem:[#allocation25_spill] sm:$0xff] %v8175_v49 }
 0x40f   :  { %v6312_v50 = vpop.eup %6311 }
 0x410   :  { %v2379_v51 = vmul.f32 %v6312_v50, %v2377_v63  ;;  %v6314_v45 = vpop.eup %6313  ;;  %v8181_v63 = vld [vmem:[%s9584_s6 + $0x4c] ss:$12 sps:$4 sm:$0xff]   ;;  %v8188_v50 = vld [vmem:[%s9584_s6 + $0x48] ss:$12 sps:$4 sm:$0xff]  }
 0x411   :  { %v2382_v5 = vsub.f32 1.0, %v6314_v45  ;;  %v2387_v39 = vmul.f32 %v6314_v45, %v2385_v0  ;;  %9894 = vst [vmem:[#allocation26_spill] sm:$0xff] %v8181_v63  ;;  %9895 = vst [vmem:[#allocation27_spill] sm:$0xff] %v8188_v50  ;;  %v8207_v45 = vld [vmem:[%s9584_s6 + $0x30] ss:$12 sps:$4 sm:$0xff]  }
 0x412   :  { %v2380_v52 = vadd.f32 %v2379_v51, %v7492_v60  ;;  %v8194_v51 = vld [vmem:[%s9584_s6 + $0x50] ss:$12 sps:$4 sm:$0xff]   ;;  %9898 = vst [vmem:[#allocation30_spill] sm:$0xff] %v8207_v45  ;;  %v8213_v0 = vld [vmem:[%s9584_s6 + $0x38] ss:$12 sps:$4 sm:$0xff]  }
 0x413   :  { %9896 = vst [vmem:[#allocation28_spill] sm:$0xff] %v8194_v51  ;;  %9899 = vst [vmem:[#allocation31_spill] sm:$0xff] %v8213_v0 }
 0x414   :  { %6315 = vtanh.f32 %v2380_v52  ;;  %v8200_v52 = vld [vmem:[%s9584_s6 + $0x34] ss:$12 sps:$4 sm:$0xff]  }
 0x415   :  { %9897 = vst [vmem:[#allocation29_spill] sm:$0xff] %v8200_v52 }
 0x421   :  { %v6316_v6 = vpop.eup %6315 }
 0x422   :  { %v2383_v47 = vmul.f32 %v6316_v6, %v2382_v5  ;;  %v8219_v5 = vld [vmem:[%s9584_s6 + $0x1c] ss:$12 sps:$4 sm:$0xff]   ;;  %v8226_v6 = vld [vmem:[%s9584_s6 + $0x18] ss:$12 sps:$4 sm:$0xff]  }
 0x423   :  { %9900 = vst [vmem:[#allocation32_spill] sm:$0xff] %v8219_v5  ;;  %9901 = vst [vmem:[#allocation33_spill] sm:$0xff] %v8226_v6 }
 0x424   :  { %v7949_v29 = vadd.f32 %v2387_v39, %v2383_v47  ;;  %v8232_v47 = vld [vmem:[%s9584_s6 + $0x20] ss:$12 sps:$4 sm:$0xff]   ;;  %v8238_v39 = vld [vmem:[%s9584_s6 + $0x4] ss:$12 sps:$4 sm:$0xff]  }
 0x425   :  { %9902 = vst [vmem:[#allocation34_spill] sm:$0xff] %v8232_v47  ;;  %9903 = vst [vmem:[#allocation35_spill] sm:$0xff] %v8238_v39 }
 0x426   :  { %v2389_v41 = vpack.c.bf16 %v7949_v29, %v7949_v29 }
 0x428   :  { %v7953_v44 = vrot.slane %v2389_v41, 2  ;;  %v8245_v41 = vld [vmem:[%s9584_s6] ss:$12 sps:$4 sm:$0xff]  }
 0x429   :  { %9904 = vst [vmem:[#allocation53_spill] sm:$0xff] %v8245_v41 }
 0x42a   :  { %2426 = vmatmul.mubr.bf16.vlgmr.msra.gmra.mxu0 %v7953_v44  ;;  %5563 = vmatmul.mubr.bf16.vlgmr.msra.gmra.mxu1 %v7953_v44 }
 0x42b   :  { %2476 = vmatpush1.bf16.msra.mxu0 %v7500_v19  ;;  %5567 = vmatpush3.bf16.msra.mxu1 %v7505_v58  ;;  %v2474_v19 = vpack.c.bf16 %v7944_v40, %v7944_v40  ;;  %v9873_v58 = vld [vmem:[#allocation42_spill] sm:$0xff] }
 0x42c   :  { %2477 = vmatprep.subr.bf16.mxu0 %v7514_v56  ;;  %5568 = vmatprep.subr.bf16.mxu1 %v9806_v14  ;;  %v9874_v56 = vld [vmem:[#allocation43_spill] sm:$0xff] }
 0x42d   :  { %2507 = vmatprep.mubr.bf16.mxu0 %v9807_v54  ;;  %5582 = vmatprep.mubr.msk.bf16.mxu1 %vm6596_vm2, %v9806_v14 }
 0x42f   :  { %2478 = vmatpush1.bf16.msra.mxu0 %v7523_v55  ;;  %5569 = vmatpush3.bf16.msra.mxu1 %v7528_v2  ;;  %v9875_v55 = vld [vmem:[#allocation44_spill] sm:$0xff] }
 0x430   :  { %2479 = vmatprep.subr.bf16.mxu0 %v7535_v16  ;;  %5570 = vmatprep.subr.bf16.mxu1 %v9806_v14  ;;  %v8012_v2 = vld [vmem:[%s9581_s3 + $0x60] ss:$12 sps:$4 sm:$0xff]   ;;  %v8018_v16 = vld [vmem:[%s9581_s3 + $0x68] ss:$12 sps:$4 sm:$0xff]  }
 0x433   :  { %2480 = vmatpush1.bf16.msra.mxu0 %v7545_v25  ;;  %5571 = vmatpush3.bf16.msra.mxu1 %v7550_v57  ;;  %v8024_v25 = vld [vmem:[%s9581_s3 + $0x4c] ss:$12 sps:$4 sm:$0xff]   ;;  %v8031_v57 = vld [vmem:[%s9581_s3 + $0x48] ss:$12 sps:$4 sm:$0xff]  }
 0x434   :  { %2481 = vmatprep.subr.bf16.mxu0 %v9833_v17  ;;  %5572 = vmatprep.subr.bf16.mxu1 %v9806_v14  ;;  %v8069_v17 = vld [vmem:[%s9581_s3 + $0x18] ss:$12 sps:$4 sm:$0xff]  }
 0x435   :  { %9877 = vst [vmem:[#allocation47_spill] sm:$0xff] %v8069_v17 }
 0x437   :  { %2482 = vmatpush1.bf16.msra.mxu0 %v9834_v37  ;;  %5573 = vmatpush3.bf16.msra.mxu1 %v9835_v59  ;;  %v8075_v37 = vld [vmem:[%s9581_s3 + $0x20] ss:$12 sps:$4 sm:$0xff]   ;;  %v8081_v59 = vld [vmem:[%s9581_s3 + $0x4] ss:$12 sps:$4 sm:$0xff]  }
 0x438   :  { %2483 = vmatprep.subr.bf16.mxu0 %v9836_v20  ;;  %5574 = vmatprep.subr.bf16.mxu1 %v9806_v14  ;;  %9878 = vst [vmem:[#allocation48_spill] sm:$0xff] %v8075_v37  ;;  %9879 = vst [vmem:[#allocation49_spill] sm:$0xff] %v8081_v59  ;;  %v8088_v20 = vld [vmem:[%s9581_s3] ss:$12 sps:$4 sm:$0xff]  }
 0x439   :  { %9880 = vst [vmem:[#allocation50_spill] sm:$0xff] %v8088_v20 }
 0x43b   :  { %2484 = vmatpush1.bf16.msra.mxu0 %v9837_v21  ;;  %5575 = vmatpush3.bf16.msra.mxu1 %v9838_v10  ;;  %v8094_v21 = vld [vmem:[%s9581_s3 + $0x8] ss:$12 sps:$4 sm:$0xff]   ;;  %v8100_v10 = vld [vmem:[%s9584_s6 + $0xac] ss:$12 sps:$4 sm:$0xff]  }
 0x43c   :  { %2485 = vmatprep.subr.bf16.mxu0 %v9839_v38  ;;  %5576 = vmatprep.subr.bf16.mxu1 %v9806_v14  ;;  %9881 = vst [vmem:[#allocation10_spill] sm:$0xff] %v8094_v21  ;;  %9882 = vst [vmem:[#allocation12_spill] sm:$0xff] %v8100_v10  ;;  %v8109_v38 = vld [vmem:[%s9584_s6 + $0xa8] ss:$12 sps:$4 sm:$0xff]  }
 0x43d   :  { %9883 = vst [vmem:[#allocation13_spill] sm:$0xff] %v8109_v38 }
 0x43f   :  { %2486 = vmatpush1.bf16.msra.mxu0 %v9840_v7  ;;  %5577 = vmatpush3.bf16.msra.mxu1 %v9841_v53  ;;  %v8115_v7 = vld [vmem:[%s9584_s6 + $0xb0] ss:$12 sps:$4 sm:$0xff]   ;;  %v8121_v53 = vld [vmem:[%s9584_s6 + $0x94] ss:$12 sps:$4 sm:$0xff]  }
 0x440   :  { %2487 = vmatprep.subr.bf16.mxu0 %v9842_v35  ;;  %5578 = vmatprep.subr.bf16.mxu1 %v9806_v14  ;;  %9884 = vst [vmem:[#allocation14_spill] sm:$0xff] %v8115_v7  ;;  %9885 = vst [vmem:[#allocation16_spill] sm:$0xff] %v8121_v53  ;;  %v8131_v35 = vld [vmem:[%s9584_s6 + $0x90] ss:$12 sps:$4 sm:$0xff]  }
 0x441   :  { %9886 = vst [vmem:[#allocation18_spill] sm:$0xff] %v8131_v35 }
 0x443   :  { %2488 = vmatpush1.bf16.msra.mxu0 %v7621_v62  ;;  %5579 = vmatpush3.bf16.msra.mxu1 %v7626_v9  ;;  %v8037_v62 = vld [vmem:[%s9581_s3 + $0x50] ss:$12 sps:$4 sm:$0xff]   ;;  %v8043_v9 = vld [vmem:[%s9581_s3 + $0x34] ss:$12 sps:$4 sm:$0xff]  }
 0x444   :  { %2489 = vmatprep.subr.bf16.mxu0 %v7633_v15  ;;  %5580 = vmatprep.subr.bf16.mxu1 %v9806_v14  ;;  %v8050_v15 = vld [vmem:[%s9581_s3 + $0x30] ss:$12 sps:$4 sm:$0xff]  }
 0x447   :  { %2490 = vmatpush1.bf16.msra.mxu0 %v7640_v26  ;;  %5581 = vmatpush3.bf16.msra.mxu1 %v7645_v22  ;;  %v9872_v22 = vld [vmem:[#allocation41_spill] sm:$0xff]  ;;  %v8056_v26 = vld [vmem:[%s9581_s3 + $0x38] ss:$12 sps:$4 sm:$0xff]  }
 0x448   :  { %2577 = vmatprep.subr.bf16.mxu0 %v7812_v31  ;;  %5586 = vmatprep.subr.bf16.mxu1 %v9806_v14 }
 0x44a   :  { %2508 = vmatmul.mubr.bf16.vlgmr.msra.gmra.mxu0 %v2474_v19  ;;  %5583 = vmatmul.mubr.bf16.vlgmr.msra.gmra.mxu1 %v2474_v19  ;;  %v8257_v19 = vld [vmem:[%s9585_s7 + $0xac] ss:$12 sps:$4 sm:$0xff]  }
 0x44b   :  { %2578 = vmatpush1.bf16.msra.mxu0 %v7819_v27  ;;  %5587 = vmatpush3.bf16.msra.mxu1 %v7825_v30  ;;  %9906 = vst [vmem:[#allocation42_spill] sm:$0xff] %v8257_v19 }
 0x44c   :  { %2579 = vmatprep.subr.bf16.mxu0 %v7831_v34  ;;  %5588 = vmatprep.subr.bf16.mxu1 %v9806_v14 }
 0x44d   :  { %2609 = vmatprep.mubr.bf16.mxu0 %v9807_v54  ;;  %5602 = vmatprep.mubr.msk.bf16.mxu1 %vm6596_vm2, %v9806_v14 }
 0x44f   :  { %2580 = vmatpush1.bf16.msra.mxu0 %v7841_v33  ;;  %5589 = vmatpush3.bf16.msra.mxu1 %v7847_v3 }
 0x450   :  { %2581 = vmatprep.subr.bf16.mxu0 %v9872_v22  ;;  %5590 = vmatprep.subr.bf16.mxu1 %v9806_v14 }
 0x453   :  { %2582 = vmatpush1.bf16.msra.mxu0 %v9873_v58  ;;  %5591 = vmatpush3.bf16.msra.mxu1 %v9874_v56 }
 0x454   :  { %2583 = vmatprep.subr.bf16.mxu0 %v9875_v55  ;;  %5592 = vmatprep.subr.bf16.mxu1 %v9806_v14 }
 0x457   :  { %2584 = vmatpush1.bf16.msra.mxu0 %v8012_v2  ;;  %5593 = vmatpush3.bf16.msra.mxu1 %v8018_v16 }
 0x458   :  { %2585 = vmatprep.subr.bf16.mxu0 %v8024_v25  ;;  %5594 = vmatprep.subr.bf16.mxu1 %v9806_v14 }
 0x45b   :  { %2586 = vmatpush1.bf16.msra.mxu0 %v8031_v57  ;;  %5595 = vmatpush3.bf16.msra.mxu1 %v8037_v62 }
 0x45c   :  { %2587 = vmatprep.subr.bf16.mxu0 %v8043_v9  ;;  %5596 = vmatprep.subr.bf16.mxu1 %v9806_v14 }
 0x45f   :  { %2588 = vmatpush1.bf16.msra.mxu0 %v8050_v15  ;;  %5597 = vmatpush3.bf16.msra.mxu1 %v8056_v26 }
 0x460   :  { %2589 = vmatprep.subr.bf16.mxu0 %v8062_v18  ;;  %5598 = vmatprep.subr.bf16.mxu1 %v9806_v14 }
 0x463   :  { %2590 = vmatpush1.bf16.msra.mxu0 %v8069_v17  ;;  %5599 = vmatpush3.bf16.msra.mxu1 %v8075_v37 }
 0x464   :  { %2591 = vmatprep.subr.bf16.mxu0 %v8081_v59  ;;  %5600 = vmatprep.subr.bf16.mxu1 %v9806_v14 }
 0x467   :  { %2592 = vmatpush1.bf16.msra.mxu0 %v8088_v20  ;;  %5601 = vmatpush3.bf16.msra.mxu1 %v8094_v21 }
 0x468   :  { %2695 = vmatprep.subr.bf16.mxu0 %v8100_v10  ;;  %5606 = vmatprep.subr.bf16.mxu1 %v9806_v14 }
 0x46a   :  { %2610 = vmatmul.mubr.bf16.vlgmr.msra.gmra.mxu0 %v7953_v44  ;;  %5603 = vmatmul.mubr.bf16.vlgmr.msra.gmra.mxu1 %v7953_v44  ;;  %v8251_v44 = vld [vmem:[%s9584_s6 + $0x8] ss:$12 sps:$4 sm:$0xff]  }
 0x46b   :  { %2696 = vmatpush1.bf16.msra.mxu0 %v8109_v38  ;;  %5607 = vmatpush3.bf16.msra.mxu1 %v8115_v7  ;;  %9905 = vst [vmem:[#allocation41_spill] sm:$0xff] %v8251_v44 }
 0x46c   :  { %2697 = vmatprep.subr.bf16.mxu0 %v8121_v53  ;;  %5608 = vmatprep.subr.bf16.mxu1 %v9806_v14 }
 0x46d   :  { %2727 = vmatprep.mubr.bf16.mxu0 %v9807_v54  ;;  %5622 = vmatprep.mubr.msk.bf16.mxu1 %vm6596_vm2, %v9806_v14 }
 0x46f   :  { %2698 = vmatpush1.bf16.msra.mxu0 %v8131_v35  ;;  %5609 = vmatpush3.bf16.msra.mxu1 %v8137_v48 }
 0x470   :  { %2699 = vmatprep.subr.bf16.mxu0 %v8143_v46  ;;  %5610 = vmatprep.subr.bf16.mxu1 %v9806_v14 }
 0x473   :  { %2700 = vmatpush1.bf16.msra.mxu0 %v8150_v23  ;;  %5611 = vmatpush3.bf16.msra.mxu1 %v8156_v36 }
 0x474   :  { %2701 = vmatprep.subr.bf16.mxu0 %v8162_v42  ;;  %5612 = vmatprep.subr.bf16.mxu1 %v9806_v14 }
 0x477   :  { %2702 = vmatpush1.bf16.msra.mxu0 %v8169_v43  ;;  %5613 = vmatpush3.bf16.msra.mxu1 %v8175_v49 }
 0x478   :  { %2703 = vmatprep.subr.bf16.mxu0 %v8181_v63  ;;  %5614 = vmatprep.subr.bf16.mxu1 %v9806_v14  ;;  %v9908_v63 = vld [vmem:[#allocation52_spill] sm:$0xff] }
 0x47b   :  { %2704 = vmatpush1.bf16.msra.mxu0 %v8188_v50  ;;  %5615 = vmatpush3.bf16.msra.mxu1 %v8194_v51 }
 0x47c   :  { %2705 = vmatprep.subr.bf16.mxu0 %v8200_v52  ;;  %5616 = vmatprep.subr.bf16.mxu1 %v9806_v14 }
 0x47f   :  { %2706 = vmatpush1.bf16.msra.mxu0 %v8207_v45  ;;  %5617 = vmatpush3.bf16.msra.mxu1 %v8213_v0 }
 0x480   :  { %2707 = vmatprep.subr.bf16.mxu0 %v8219_v5  ;;  %5618 = vmatprep.subr.bf16.mxu1 %v9806_v14 }
 0x483   :  { %2708 = vmatpush1.bf16.msra.mxu0 %v8226_v6  ;;  %5619 = vmatpush3.bf16.msra.mxu1 %v8232_v47 }
 0x484   :  { %2709 = vmatprep.subr.bf16.mxu0 %v8238_v39  ;;  %5620 = vmatprep.subr.bf16.mxu1 %v9806_v14 }
 0x487   :  { %2710 = vmatpush1.bf16.msra.mxu0 %v8245_v41  ;;  %5621 = vmatpush3.bf16.msra.mxu1 %v8251_v44  ;;  %v9907_v44 = vld [vmem:[#allocation51_spill] sm:$0xff] }
 0x488   :  { %2777 = vmatprep.subr.bf16.mxu0 %v8257_v19  ;;  %5626 = vmatprep.subr.bf16.mxu1 %v9806_v14 }
 0x4ea   :  { %v2427_v28 = vpop.f32.mrf.mxu0  ;;  %v2468_v39 = vpop.f32.mrf.mxu1 }
 0x4eb   :  { %v2428_v50 = vadd.f32 %v2427_v28, %v9907_v44 }
 0x4ec   :  { %v2429_v47 = vpop.f32.mrf.mxu0  ;;  %v5564_v41 = vpop.f32.mrf.mxu1 }
 0x4ed   :  { %v2430_v19 = vadd.f32 %v2429_v47, %v7740_v32 }
 0x4ee   :  { %v2431_v6 = vpop.f32.mrf.mxu0  ;;  %v2471_v5 = vpop.f32.mrf.mxu1 }
 0x4f0   :  { %v2432_v0 = vpop.f32.mrf.mxu0  ;;  %v5565_v45 = vpop.f32.mrf.mxu1 }
 0x50a   :  { %v2509_v52 = vpop.f32.mrf.mxu0  ;;  %v2550_v51 = vpop.f32.mrf.mxu1 }
 0x50b   :  { %v2510_v49 = vadd.f32 %v2509_v52, %v9908_v63 }
 0x50c   :  { %v2511_v43 = vpop.f32.mrf.mxu0  ;;  %v5584_v42 = vpop.f32.mrf.mxu1 }
 0x50d   :  { %v2556_v36 = vadd.f32 %v2510_v49, %v2428_v50  ;;  %v2512_v23 = vadd.f32 %v2511_v43, %v7743_v4 }
 0x50e   :  { %v2513_v46 = vpop.f32.mrf.mxu0  ;;  %v2553_v48 = vpop.f32.mrf.mxu1 }
 0x50f   :  { %v5051_v41 = vmul.f32 -1.442695, %v2556_v36  ;;  %v2563_v6 = vadd.f32 %v2512_v23, %v2430_v19  ;;  %v2551_v48 = vadd.f32 %v2550_v51, %v9870_v12 }
 0x510   :  { %v2514_v5 = vpop.f32.mrf.mxu0  ;;  %v5585_v0 = vpop.f32.mrf.mxu1 }
 0x511   :  { %6317 = vpow2.f32 %v5051_v41  ;;  %v5052_v45 = vmul.f32 -1.442695, %v2563_v6  ;;  %v2469_v41 = vadd.f32 %v2468_v39, %v7753_v61 }
 0x513   :  { %6319 = vpow2.f32 %v5052_v45 }
 0x51e   :  { %v6318_v35 = vpop.eup %6317 }
 0x51f   :  { %v2560_v28 = vadd.f32 1.0, %v6318_v35 }
 0x520   :  { %v6320_v52 = vpop.eup %6319 }
 0x521   :  { %6321 = vrcp.f32 %v2560_v28  ;;  %v2567_v44 = vadd.f32 1.0, %v6320_v52 }
 0x523   :  { %6323 = vrcp.f32 %v2567_v44 }
 0x52a   :  { %v2611_v63 = vpop.f32.mrf.mxu0  ;;  %v2652_v42 = vpop.f32.mrf.mxu1 }
 0x52b   :  { %v2612_v49 = vadd.f32 %v2611_v63, %v9831_v11 }
 0x52c   :  { %v2613_v50 = vpop.f32.mrf.mxu0  ;;  %v5604_v43 = vpop.f32.mrf.mxu1 }
 0x52d   :  { %v2659_v46 = vrot.slane %v2612_v49, 2  ;;  %v2614_v36 = vadd.f32 %v2613_v50, %v7472_v8 }
 0x52e   :  { %v6322_v23 = vpop.eup %6321  ;;  %v2615_v47 = vpop.f32.mrf.mxu0 }
 0x52f   :  { %v2655_v19 = vpop.f32.mrf.mxu1  ;;  %v2570_v35 = vmul.f32 %v6322_v23, %v2551_v48  ;;  %v2661_v6 = vadd.f32 %v2659_v46, %v7469_v1  ;;  %v2669_v28 = vrot.slane %v2614_v36, 2  ;;  %v2653_v23 = vadd.f32 %v2652_v42, %v7487_v24 }
 0x530   :  { %v2616_v5 = vpop.f32.mrf.mxu0  ;;  %v6324_v49 = vpop.eup %6323 }
 0x531   :  { %v5605_v0 = vpop.f32.mrf.mxu1  ;;  %v2571_v45 = vadd.f32 %v2570_v35, %v2469_v41  ;;  %v5053_v63 = vmul.f32 -1.442695, %v2661_v6  ;;  %v2671_v51 = vadd.f32 %v2669_v28, %v7483_v13  ;;  %v2573_v50 = vsub.f32 1.0, %v6324_v49 }
 0x532   :  { %v2575_v44 = vmul.f32 %v6324_v49, %v7944_v40  ;;  %v2679_v19 = vrot.slane %v2653_v23, 2  ;;  %v2687_v5 = vrot.slane %v7949_v29, 6  ;;  %v8294_v29 = vld [vmem:[%s9585_s7 + $0xb0] ss:$12 sps:$4 sm:$0xff]   ;;  %v8300_v49 = vld [vmem:[%s9585_s7 + $0x94] ss:$12 sps:$4 sm:$0xff]  }
 0x533   :  { %6325 = vtanh.f32 %v2571_v45  ;;  %v5054_v52 = vmul.f32 -1.442695, %v2671_v51  ;;  %v8354_v23 = vld [vmem:[%s9585_s7 + $0x68] ss:$12 sps:$4 sm:$0xff]  }
 0x534   :  { %6327 = vpow2.f32 %v5053_v63 }
 0x535   :  { %6329 = vpow2.f32 %v5054_v52 }
 0x540   :  { %v6326_v43 = vpop.eup %6325 }
 0x541   :  { %v6328_v47 = vpop.eup %6327  ;;  %v2574_v39 = vmul.f32 %v6326_v43, %v2573_v50  ;;  %v8310_v50 = vld [vmem:[%s9585_s7 + $0x90] ss:$12 sps:$4 sm:$0xff]   ;;  %v8316_v43 = vld [vmem:[%s9585_s7 + $0x98] ss:$12 sps:$4 sm:$0xff]  }
 0x542   :  { %v2665_v48 = vadd.f32 1.0, %v6328_v47  ;;  %v6330_v46 = vpop.eup %6329  ;;  %v8322_v47 = vld [vmem:[%s9585_s7 + $0x7c] ss:$12 sps:$4 sm:$0xff]  }
 0x543   :  { %v8272_v1 = vadd.f32 %v2575_v44, %v2574_v39  ;;  %v2675_v36 = vadd.f32 1.0, %v6330_v46  ;;  %v8329_v39 = vld [vmem:[%s9585_s7 + $0x78] ss:$12 sps:$4 sm:$0xff]   ;;  %v8335_v44 = vld [vmem:[%s9585_s7 + $0x80] ss:$12 sps:$4 sm:$0xff]  }
 0x544   :  { %6331 = vrcp.f32 %v2665_v48  ;;  %v8341_v48 = vld [vmem:[%s9585_s7 + $0x64] ss:$12 sps:$4 sm:$0xff]   ;;  %v8348_v46 = vld [vmem:[%s9585_s7 + $0x60] ss:$12 sps:$4 sm:$0xff]  }
 0x545   :  { %9909 = vst [vmem:[#allocation43_spill] sm:$0xff] %v8272_v1  ;;  %6333 = vrcp.f32 %v2675_v36  ;;  %v8360_v36 = vld [vmem:[%s9585_s7 + $0x4c] ss:$12 sps:$4 sm:$0xff]   ;;  %v2776_v40 = vpack.c.bf16 %v8272_v1, %v8272_v1 }
 0x551   :  { %v6332_v41 = vpop.eup %6331 }
 0x552   :  { %v2681_v13 = vmul.f32 %v6332_v41, %v2679_v19  ;;  %v6334_v6 = vpop.eup %6333  ;;  %v8367_v19 = vld [vmem:[%s9585_s7 + $0x48] ss:$12 sps:$4 sm:$0xff]   ;;  %v8373_v41 = vld [vmem:[%s9585_s7 + $0x50] ss:$12 sps:$4 sm:$0xff]  }
 0x553   :  { %v2684_v0 = vsub.f32 1.0, %v6334_v6  ;;  %v2689_v28 = vmul.f32 %v6334_v6, %v2687_v5  ;;  %v8392_v6 = vld [vmem:[%s9585_s7 + $0x38] ss:$12 sps:$4 sm:$0xff]   ;;  %v8398_v5 = vld [vmem:[%s9585_s7 + $0x1c] ss:$12 sps:$4 sm:$0xff]  }
 0x554   :  { %v2682_v35 = vadd.f32 %v2681_v13, %v7492_v60  ;;  %v8288_v60 = vld [vmem:[%s9585_s7 + $0xa8] ss:$12 sps:$4 sm:$0xff]  }
 0x555   :  { %v8379_v13 = vld [vmem:[%s9585_s7 + $0x34] ss:$12 sps:$4 sm:$0xff]  }
 0x556   :  { %6335 = vtanh.f32 %v2682_v35  ;;  %v8386_v35 = vld [vmem:[%s9585_s7 + $0x30] ss:$12 sps:$4 sm:$0xff]  }
 0x563   :  { %v6336_v45 = vpop.eup %6335 }
 0x564   :  { %v2685_v63 = vmul.f32 %v6336_v45, %v2684_v0  ;;  %v8405_v0 = vld [vmem:[%s9585_s7 + $0x18] ss:$12 sps:$4 sm:$0xff]   ;;  %v8411_v45 = vld [vmem:[%s9585_s7 + $0x20] ss:$12 sps:$4 sm:$0xff]  }
 0x566   :  { %v8277_v51 = vadd.f32 %v2689_v28, %v2685_v63  ;;  %v8417_v63 = vld [vmem:[%s9585_s7 + $0x4] ss:$12 sps:$4 sm:$0xff]   ;;  %v8424_v28 = vld [vmem:[%s9585_s7] ss:$12 sps:$4 sm:$0xff]  }
 0x568   :  { %v2691_v42 = vpack.c.bf16 %v8277_v51, %v8277_v51 }
 0x56a   :  { %v8281_v52 = vrot.slane %v2691_v42, 3  ;;  %v8430_v42 = vld [vmem:[%s9585_s7 + $0x8] ss:$12 sps:$4 sm:$0xff]  }
 0x56c   :  { %2728 = vmatmul.mubr.bf16.vlgmr.msra.gmra.mxu0 %v8281_v52  ;;  %5623 = vmatmul.mubr.bf16.vlgmr.msra.gmra.mxu1 %v8281_v52 }
 0x56d   :  { %2778 = vmatpush1.bf16.msra.mxu0 %v8288_v60  ;;  %5627 = vmatpush3.bf16.msra.mxu1 %v8294_v29 }
 0x56e   :  { %2779 = vmatprep.subr.bf16.mxu0 %v8300_v49  ;;  %5628 = vmatprep.subr.bf16.mxu1 %v9806_v14 }
 0x56f   :  { %2809 = vmatprep.mubr.bf16.mxu0 %v9807_v54  ;;  %5642 = vmatprep.mubr.msk.bf16.mxu1 %vm6596_vm2, %v9806_v14 }
 0x571   :  { %2780 = vmatpush1.bf16.msra.mxu0 %v8310_v50  ;;  %5629 = vmatpush3.bf16.msra.mxu1 %v8316_v43 }
 0x572   :  { %2781 = vmatprep.subr.bf16.mxu0 %v8322_v47  ;;  %5630 = vmatprep.subr.bf16.mxu1 %v9806_v14 }
 0x575   :  { %2782 = vmatpush1.bf16.msra.mxu0 %v8329_v39  ;;  %5631 = vmatpush3.bf16.msra.mxu1 %v8335_v44 }
 0x576   :  { %2783 = vmatprep.subr.bf16.mxu0 %v8341_v48  ;;  %5632 = vmatprep.subr.bf16.mxu1 %v9806_v14 }
 0x579   :  { %2784 = vmatpush1.bf16.msra.mxu0 %v8348_v46  ;;  %5633 = vmatpush3.bf16.msra.mxu1 %v8354_v23 }
 0x57a   :  { %2785 = vmatprep.subr.bf16.mxu0 %v8360_v36  ;;  %5634 = vmatprep.subr.bf16.mxu1 %v9806_v14 }
 0x57d   :  { %2786 = vmatpush1.bf16.msra.mxu0 %v8367_v19  ;;  %5635 = vmatpush3.bf16.msra.mxu1 %v8373_v41 }
 0x57e   :  { %2787 = vmatprep.subr.bf16.mxu0 %v8379_v13  ;;  %5636 = vmatprep.subr.bf16.mxu1 %v9806_v14 }
 0x581   :  { %2788 = vmatpush1.bf16.msra.mxu0 %v8386_v35  ;;  %5637 = vmatpush3.bf16.msra.mxu1 %v8392_v6 }
 0x582   :  { %2789 = vmatprep.subr.bf16.mxu0 %v8398_v5  ;;  %5638 = vmatprep.subr.bf16.mxu1 %v9806_v14 }
 0x585   :  { %2790 = vmatpush1.bf16.msra.mxu0 %v8405_v0  ;;  %5639 = vmatpush3.bf16.msra.mxu1 %v8411_v45 }
 0x586   :  { %2791 = vmatprep.subr.bf16.mxu0 %v8417_v63  ;;  %5640 = vmatprep.subr.bf16.mxu1 %v9806_v14 }
 0x589   :  { %2792 = vmatpush1.bf16.msra.mxu0 %v8424_v28  ;;  %5641 = vmatpush3.bf16.msra.mxu1 %v8430_v42 }
 0x58a   :  { %2879 = vmatprep.subr.bf16.mxu0 %v7812_v31  ;;  %5646 = vmatprep.subr.bf16.mxu1 %v9806_v14  ;;  %v9910_v31 = vld [vmem:[#allocation18_spill] sm:$0xff] }
 0x58c   :  { %2810 = vmatmul.mubr.bf16.vlgmr.msra.gmra.mxu0 %v2776_v40  ;;  %5643 = vmatmul.mubr.bf16.vlgmr.msra.gmra.mxu1 %v2776_v40  ;;  %v9916_v40 = vld [vmem:[#allocation24_spill] sm:$0xff] }
 0x58d   :  { %2880 = vmatpush1.bf16.msra.mxu0 %v7819_v27  ;;  %5647 = vmatpush3.bf16.msra.mxu1 %v7825_v30  ;;  %v9911_v27 = vld [vmem:[#allocation19_spill] sm:$0xff]  ;;  %v9912_v30 = vld [vmem:[#allocation20_spill] sm:$0xff] }
 0x58e   :  { %2881 = vmatprep.subr.bf16.mxu0 %v7831_v34  ;;  %5648 = vmatprep.subr.bf16.mxu1 %v9806_v14  ;;  %v9913_v34 = vld [vmem:[#allocation21_spill] sm:$0xff] }
 0x58f   :  { %2911 = vmatprep.mubr.bf16.mxu0 %v9807_v54  ;;  %5662 = vmatprep.mubr.msk.bf16.mxu1 %vm6596_vm2, %v9806_v14 }
 0x591   :  { %2882 = vmatpush1.bf16.msra.mxu0 %v7841_v33  ;;  %5649 = vmatpush3.bf16.msra.mxu1 %v7847_v3  ;;  %v9914_v33 = vld [vmem:[#allocation22_spill] sm:$0xff]  ;;  %v9915_v3 = vld [vmem:[#allocation23_spill] sm:$0xff] }
 0x592   :  { %2883 = vmatprep.subr.bf16.mxu0 %v9872_v22  ;;  %5650 = vmatprep.subr.bf16.mxu1 %v9806_v14  ;;  %v9917_v22 = vld [vmem:[#allocation25_spill] sm:$0xff] }
 0x595   :  { %2884 = vmatpush1.bf16.msra.mxu0 %v9873_v58  ;;  %5651 = vmatpush3.bf16.msra.mxu1 %v9874_v56  ;;  %v9918_v58 = vld [vmem:[#allocation26_spill] sm:$0xff]  ;;  %v9919_v56 = vld [vmem:[#allocation27_spill] sm:$0xff] }
 0x596   :  { %2885 = vmatprep.subr.bf16.mxu0 %v9875_v55  ;;  %5652 = vmatprep.subr.bf16.mxu1 %v9806_v14  ;;  %v9920_v55 = vld [vmem:[#allocation28_spill] sm:$0xff] }
 0x599   :  { %2886 = vmatpush1.bf16.msra.mxu0 %v8012_v2  ;;  %5653 = vmatpush3.bf16.msra.mxu1 %v8018_v16 }
 0x59a   :  { %2887 = vmatprep.subr.bf16.mxu0 %v8024_v25  ;;  %5654 = vmatprep.subr.bf16.mxu1 %v9806_v14 }
 0x59d   :  { %2888 = vmatpush1.bf16.msra.mxu0 %v8031_v57  ;;  %5655 = vmatpush3.bf16.msra.mxu1 %v8037_v62 }
 0x59e   :  { %2889 = vmatprep.subr.bf16.mxu0 %v8043_v9  ;;  %5656 = vmatprep.subr.bf16.mxu1 %v9806_v14 }
 0x5a1   :  { %2890 = vmatpush1.bf16.msra.mxu0 %v8050_v15  ;;  %5657 = vmatpush3.bf16.msra.mxu1 %v8056_v26 }
 0x5a2   :  { %2891 = vmatprep.subr.bf16.mxu0 %v8062_v18  ;;  %5658 = vmatprep.subr.bf16.mxu1 %v9806_v14 }
 0x5a5   :  { %2892 = vmatpush1.bf16.msra.mxu0 %v8069_v17  ;;  %5659 = vmatpush3.bf16.msra.mxu1 %v8075_v37 }
 0x5a6   :  { %2893 = vmatprep.subr.bf16.mxu0 %v8081_v59  ;;  %5660 = vmatprep.subr.bf16.mxu1 %v9806_v14 }
 0x5a9   :  { %2894 = vmatpush1.bf16.msra.mxu0 %v8088_v20  ;;  %5661 = vmatpush3.bf16.msra.mxu1 %v8094_v21 }
 0x5aa   :  { %2985 = vmatprep.subr.bf16.mxu0 %v8100_v10  ;;  %5666 = vmatprep.subr.bf16.mxu1 %v9806_v14  ;;  %v9932_v10 = vld [vmem:[#allocation52_spill] sm:$0xff] }
 0x5ac   :  { %2912 = vmatmul.mubr.bf16.vlgmr.msra.gmra.mxu0 %v8281_v52  ;;  %5663 = vmatmul.mubr.bf16.vlgmr.msra.gmra.mxu1 %v8281_v52  ;;  %v9921_v52 = vld [vmem:[#allocation29_spill] sm:$0xff] }
 0x5ad   :  { %2986 = vmatpush1.bf16.msra.mxu0 %v8109_v38  ;;  %5667 = vmatpush3.bf16.msra.mxu1 %v8115_v7  ;;  %v9931_v7 = vld [vmem:[#allocation51_spill] sm:$0xff] }
 0x5ae   :  { %2987 = vmatprep.subr.bf16.mxu0 %v8121_v53  ;;  %5668 = vmatprep.subr.bf16.mxu1 %v9806_v14 }
 0x5af   :  { %3017 = vmatprep.mubr.bf16.mxu0 %v9807_v54  ;;  %5682 = vmatprep.mubr.msk.bf16.mxu1 %vm6596_vm2, %v9806_v14 }
 0x5b1   :  { %2988 = vmatpush1.bf16.msra.mxu0 %v9910_v31  ;;  %5669 = vmatpush3.bf16.msra.mxu1 %v9911_v27 }
 0x5b2   :  { %2989 = vmatprep.subr.bf16.mxu0 %v9912_v30  ;;  %5670 = vmatprep.subr.bf16.mxu1 %v9806_v14 }
 0x5b5   :  { %2990 = vmatpush1.bf16.msra.mxu0 %v9913_v34  ;;  %5671 = vmatpush3.bf16.msra.mxu1 %v9914_v33  ;;  %v9922_v33 = vld [vmem:[#allocation30_spill] sm:$0xff]  ;;  %v9924_v34 = vld [vmem:[#allocation32_spill] sm:$0xff] }
 0x5b6   :  { %2991 = vmatprep.subr.bf16.mxu0 %v9915_v3  ;;  %5672 = vmatprep.subr.bf16.mxu1 %v9806_v14  ;;  %v9923_v3 = vld [vmem:[#allocation31_spill] sm:$0xff] }
 0x5b9   :  { %2992 = vmatpush1.bf16.msra.mxu0 %v9916_v40  ;;  %5673 = vmatpush3.bf16.msra.mxu1 %v9917_v22  ;;  %v9925_v22 = vld [vmem:[#allocation33_spill] sm:$0xff]  ;;  %v9927_v40 = vld [vmem:[#allocation35_spill] sm:$0xff] }
 0x5ba   :  { %2993 = vmatprep.subr.bf16.mxu0 %v9918_v58  ;;  %5674 = vmatprep.subr.bf16.mxu1 %v9806_v14  ;;  %v9926_v58 = vld [vmem:[#allocation34_spill] sm:$0xff] }
 0x5bd   :  { %2994 = vmatpush1.bf16.msra.mxu0 %v9919_v56  ;;  %5675 = vmatpush3.bf16.msra.mxu1 %v9920_v55  ;;  %v9928_v55 = vld [vmem:[#allocation53_spill] sm:$0xff]  ;;  %v9930_v56 = vld [vmem:[#allocation42_spill] sm:$0xff] }
 0x5be   :  { %2995 = vmatprep.subr.bf16.mxu0 %v9921_v52  ;;  %5676 = vmatprep.subr.bf16.mxu1 %v9806_v14  ;;  %v9929_v52 = vld [vmem:[#allocation41_spill] sm:$0xff] }
 0x5c1   :  { %2996 = vmatpush1.bf16.msra.mxu0 %v9922_v33  ;;  %5677 = vmatpush3.bf16.msra.mxu1 %v9923_v3 }
 0x5c2   :  { %2997 = vmatprep.subr.bf16.mxu0 %v9924_v34  ;;  %5678 = vmatprep.subr.bf16.mxu1 %v9806_v14 }
 0x5c5   :  { %2998 = vmatpush1.bf16.msra.mxu0 %v9925_v22  ;;  %5679 = vmatpush3.bf16.msra.mxu1 %v9926_v58 }
 0x5c6   :  { %2999 = vmatprep.subr.bf16.mxu0 %v9927_v40  ;;  %5680 = vmatprep.subr.bf16.mxu1 %v9806_v14 }
 0x5c9   :  { %3000 = vmatpush1.bf16.msra.mxu0 %v9928_v55  ;;  %5681 = vmatpush3.bf16.msra.mxu1 %v9929_v52 }
 0x5ca   :  { %3067 = vmatprep.subr.bf16.mxu0 %v9930_v56  ;;  %5686 = vmatprep.subr.bf16.mxu1 %v9806_v14 }
 0x62c   :  { %v2729_v3 = vpop.f32.mrf.mxu0  ;;  %v2770_v34 = vpop.f32.mrf.mxu1 }
 0x62d   :  { %v2730_v38 = vadd.f32 %v2729_v3, %v9931_v7 }
 0x62e   :  { %v2731_v33 = vpop.f32.mrf.mxu0  ;;  %v5624_v30 = vpop.f32.mrf.mxu1 }
 0x62f   :  { %v2732_v56 = vadd.f32 %v2731_v33, %v7740_v32 }
 0x630   :  { %v2733_v27 = vpop.f32.mrf.mxu0  ;;  %v2773_v22 = vpop.f32.mrf.mxu1 }
 0x632   :  { %v2734_v31 = vpop.f32.mrf.mxu0  ;;  %v5625_v58 = vpop.f32.mrf.mxu1 }
 0x64c   :  { %v2811_v53 = vpop.f32.mrf.mxu0  ;;  %v2852_v40 = vpop.f32.mrf.mxu1 }
 0x64d   :  { %v2812_v55 = vadd.f32 %v2811_v53, %v9932_v10 }
 0x64e   :  { %v2813_v21 = vpop.f32.mrf.mxu0  ;;  %v5644_v52 = vpop.f32.mrf.mxu1 }
 0x64f   :  { %v2858_v20 = vadd.f32 %v2812_v55, %v2730_v38  ;;  %v2814_v59 = vadd.f32 %v2813_v21, %v7743_v4 }
 0x650   :  { %v2815_v37 = vpop.f32.mrf.mxu0  ;;  %v2855_v17 = vpop.f32.mrf.mxu1 }
 0x651   :  { %v5055_v30 = vmul.f32 -1.442695, %v2858_v20  ;;  %v2865_v27 = vadd.f32 %v2814_v59, %v2732_v56  ;;  %v2853_v17 = vadd.f32 %v2852_v40, %v9870_v12  ;;  %v9933_v37 = vld [vmem:[#allocation8_spill] sm:$0xff]  ;;  %v2771_v56 = vadd.f32 %v2770_v34, %v7753_v61 }
 0x652   :  { %v2816_v22 = vpop.f32.mrf.mxu0  ;;  %v5645_v31 = vpop.f32.mrf.mxu1 }
 0x653   :  { %6337 = vpow2.f32 %v5055_v30  ;;  %v5056_v58 = vmul.f32 -1.442695, %v2865_v27 }
 0x655   :  { %6339 = vpow2.f32 %v5056_v58 }
 0x660   :  { %v6338_v18 = vpop.eup %6337 }
 0x661   :  { %v2862_v3 = vadd.f32 1.0, %v6338_v18 }
 0x662   :  { %v6340_v53 = vpop.eup %6339 }
 0x663   :  { %6341 = vrcp.f32 %v2862_v3  ;;  %v2869_v7 = vadd.f32 1.0, %v6340_v53  ;;  %v9934_v3 = vld [vmem:[#allocation40_spill] sm:$0xff] }
 0x665   :  { %6343 = vrcp.f32 %v2869_v7 }
 0x66c   :  { %v2913_v10 = vpop.f32.mrf.mxu0  ;;  %v2954_v52 = vpop.f32.mrf.mxu1 }
 0x66d   :  { %v2914_v38 = vadd.f32 %v2913_v10, %v9831_v11  ;;  %v9935_v10 = vld [vmem:[#allocation11_spill] sm:$0xff] }
 0x66e   :  { %v2915_v33 = vpop.f32.mrf.mxu0  ;;  %v5664_v21 = vpop.f32.mrf.mxu1  ;;  %v8520_v53 = vadd.f32 %v9935_v10, %v9934_v3 }
 0x66f   :  { %v2960_v59 = vadd.f32 %v2914_v38, %v9933_v37  ;;  %v2916_v22 = vadd.f32 %v2915_v33, %v7472_v8 }
 0x670   :  { %v6342_v20 = vpop.eup %6341  ;;  %v2917_v55 = vpop.f32.mrf.mxu0 }
 0x671   :  { %v2957_v30 = vpop.f32.mrf.mxu1  ;;  %v2872_v27 = vmul.f32 %v6342_v20, %v2853_v17  ;;  %v5057_v18 = vmul.f32 -1.442695, %v2960_v59  ;;  %v2967_v40 = vadd.f32 %v2916_v22, %v8520_v53  ;;  %v9937_v22 = vld [vmem:[#allocation9_spill] sm:$0xff] }
 0x672   :  { %v2918_v31 = vpop.f32.mrf.mxu0  ;;  %v6344_v34 = vpop.eup %6343 }
 0x673   :  { %v5665_v58 = vpop.f32.mrf.mxu1  ;;  %v2873_v21 = vadd.f32 %v2872_v27, %v2771_v56  ;;  %6345 = vpow2.f32 %v5057_v18  ;;  %v5058_v38 = vmul.f32 -1.442695, %v2967_v40  ;;  %v2875_v7 = vsub.f32 1.0, %v6344_v34 }
 0x674   :  { %v2877_v20 = vmul.f32 %v6344_v34, %v8272_v1  ;;  %v2955_v56 = vadd.f32 %v2954_v52, %v7487_v24  ;;  %v8575_v52 = vld [vmem:[%s9581_s3 + $0xac] ss:$12 sps:$4 sm:$0xff]  }
 0x675   :  { %6347 = vtanh.f32 %v2873_v21  ;;  %v2980_v21 = vrot.slane %v8277_v51, 6 }
 0x676   :  { %6349 = vpow2.f32 %v5058_v38 }
 0x680   :  { %v6346_v55 = vpop.eup %6345 }
 0x681   :  { %v2964_v17 = vadd.f32 1.0, %v6346_v55 }
 0x682   :  { %v6348_v59 = vpop.eup %6347 }
 0x683   :  { %6351 = vrcp.f32 %v2964_v17  ;;  %v2876_v33 = vmul.f32 %v6348_v59, %v2875_v7  ;;  %v6350_v31 = vpop.eup %6349  ;;  %v8582_v59 = vld [vmem:[%s9581_s3 + $0xa8] ss:$12 sps:$4 sm:$0xff]  }
 0x684   :  { %v2971_v58 = vadd.f32 1.0, %v6350_v31  ;;  %v8604_v31 = vld [vmem:[%s9581_s3 + $0x90] ss:$12 sps:$4 sm:$0xff]  }
 0x685   :  { %v8524_v30 = vadd.f32 %v2877_v20, %v2876_v33  ;;  %v8588_v33 = vld [vmem:[%s9581_s3 + $0xb0] ss:$12 sps:$4 sm:$0xff]   ;;  %v8594_v20 = vld [vmem:[%s9581_s3 + $0x94] ss:$12 sps:$4 sm:$0xff]  }
 0x686   :  { %6353 = vrcp.f32 %v2971_v58  ;;  %v8610_v58 = vld [vmem:[%s9581_s3 + $0x98] ss:$12 sps:$4 sm:$0xff]  }
 0x687   :  { %9936 = vst [vmem:[#allocation44_spill] sm:$0xff] %v8524_v30  ;;  %v3066_v51 = vpack.c.bf16 %v8524_v30, %v8524_v30  ;;  %9938 = vst [vmem:[#allocation8_spill] sm:$0xff] %v8610_v58 }
 0x690   :  { %v6352_v27 = vpop.eup %6351 }
 0x691   :  { %v2974_v18 = vmul.f32 %v6352_v27, %v2955_v56  ;;  %v8616_v56 = vld [vmem:[%s9581_s3 + $0x7c] ss:$12 sps:$4 sm:$0xff]   ;;  %v8623_v27 = vld [vmem:[%s9581_s3 + $0x78] ss:$12 sps:$4 sm:$0xff]  }
 0x692   :  { %9939 = vst [vmem:[#allocation40_spill] sm:$0xff] %v8616_v56  ;;  %9940 = vst [vmem:[#allocation11_spill] sm:$0xff] %v8623_v27 }
 0x693   :  { %v2975_v3 = vadd.f32 %v2974_v18, %v9937_v22  ;;  %v6354_v10 = vpop.eup %6353  ;;  %v8629_v18 = vld [vmem:[%s9581_s3 + $0x80] ss:$12 sps:$4 sm:$0xff]  }
 0x694   :  { %v2977_v40 = vsub.f32 1.0, %v6354_v10  ;;  %v2982_v17 = vmul.f32 %v6354_v10, %v2980_v21  ;;  %9941 = vst [vmem:[#allocation9_spill] sm:$0xff] %v8629_v18  ;;  %v9943_v10 = vld [vmem:[#allocation46_spill] sm:$0xff]  ;;  %v9952_v21 = vld [vmem:[#allocation16_spill] sm:$0xff] }
 0x695   :  { %6355 = vtanh.f32 %v2975_v3  ;;  %v8635_v3 = vld [vmem:[%s9581_s3 + $0x64] ss:$12 sps:$4 sm:$0xff]  }
 0x696   :  { %9942 = vst [vmem:[#allocation54_spill] sm:$0xff] %v8635_v3 }
 0x6a2   :  { %v6356_v38 = vpop.eup %6355 }
 0x6a3   :  { %v2978_v55 = vmul.f32 %v6356_v38, %v2977_v40  ;;  %v9953_v40 = vld [vmem:[#allocation18_spill] sm:$0xff]  ;;  %v9954_v38 = vld [vmem:[#allocation19_spill] sm:$0xff] }
 0x6a5   :  { %v8529_v34 = vadd.f32 %v2982_v17, %v2978_v55  ;;  %v9955_v55 = vld [vmem:[#allocation20_spill] sm:$0xff]  ;;  %v9956_v17 = vld [vmem:[#allocation21_spill] sm:$0xff] }
 0x6a7   :  { %v8533_v7 = vpack.c.bf16 %v8529_v34, %v8529_v34 }
 0x6a9   :  { %3018 = vmatmul.mubr.bf16.vlgmr.msra.gmra.mxu0 %v8533_v7  ;;  %5683 = vmatmul.mubr.bf16.vlgmr.msra.gmra.mxu1 %v8533_v7 }
 0x6aa   :  { %3068 = vmatpush1.bf16.msra.mxu0 %v8288_v60  ;;  %5687 = vmatpush3.bf16.msra.mxu1 %v8294_v29 }
 0x6ab   :  { %3069 = vmatprep.subr.bf16.mxu0 %v8300_v49  ;;  %5688 = vmatprep.subr.bf16.mxu1 %v9806_v14 }
 0x6ac   :  { %3099 = vmatprep.mubr.bf16.mxu0 %v9807_v54  ;;  %5702 = vmatprep.mubr.msk.bf16.mxu1 %vm6596_vm2, %v9806_v14 }
 0x6ae   :  { %3070 = vmatpush1.bf16.msra.mxu0 %v8310_v50  ;;  %5689 = vmatpush3.bf16.msra.mxu1 %v8316_v43 }
 0x6af   :  { %3071 = vmatprep.subr.bf16.mxu0 %v8322_v47  ;;  %5690 = vmatprep.subr.bf16.mxu1 %v9806_v14 }
 0x6b2   :  { %3072 = vmatpush1.bf16.msra.mxu0 %v8329_v39  ;;  %5691 = vmatpush3.bf16.msra.mxu1 %v8335_v44 }
 0x6b3   :  { %3073 = vmatprep.subr.bf16.mxu0 %v8341_v48  ;;  %5692 = vmatprep.subr.bf16.mxu1 %v9806_v14 }
 0x6b6   :  { %3074 = vmatpush1.bf16.msra.mxu0 %v8348_v46  ;;  %5693 = vmatpush3.bf16.msra.mxu1 %v8354_v23 }
 0x6b7   :  { %3075 = vmatprep.subr.bf16.mxu0 %v8360_v36  ;;  %5694 = vmatprep.subr.bf16.mxu1 %v9806_v14 }
 0x6ba   :  { %3076 = vmatpush1.bf16.msra.mxu0 %v8367_v19  ;;  %5695 = vmatpush3.bf16.msra.mxu1 %v8373_v41 }
 0x6bb   :  { %3077 = vmatprep.subr.bf16.mxu0 %v8379_v13  ;;  %5696 = vmatprep.subr.bf16.mxu1 %v9806_v14 }
 0x6be   :  { %3078 = vmatpush1.bf16.msra.mxu0 %v8386_v35  ;;  %5697 = vmatpush3.bf16.msra.mxu1 %v8392_v6 }
 0x6bf   :  { %3079 = vmatprep.subr.bf16.mxu0 %v8398_v5  ;;  %5698 = vmatprep.subr.bf16.mxu1 %v9806_v14 }
 0x6c2   :  { %3080 = vmatpush1.bf16.msra.mxu0 %v8405_v0  ;;  %5699 = vmatpush3.bf16.msra.mxu1 %v8411_v45 }
 0x6c3   :  { %3081 = vmatprep.subr.bf16.mxu0 %v8417_v63  ;;  %5700 = vmatprep.subr.bf16.mxu1 %v9806_v14 }
 0x6c6   :  { %3082 = vmatpush1.bf16.msra.mxu0 %v8424_v28  ;;  %5701 = vmatpush3.bf16.msra.mxu1 %v8430_v42 }
 0x6c7   :  { %3169 = vmatprep.subr.bf16.mxu0 %v8575_v52  ;;  %5706 = vmatprep.subr.bf16.mxu1 %v9806_v14 }
 0x6c9   :  { %3100 = vmatmul.mubr.bf16.vlgmr.msra.gmra.mxu0 %v3066_v51  ;;  %5703 = vmatmul.mubr.bf16.vlgmr.msra.gmra.mxu1 %v3066_v51  ;;  %v9958_v51 = vld [vmem:[#allocation23_spill] sm:$0xff] }
 0x6ca   :  { %3170 = vmatpush1.bf16.msra.mxu0 %v8582_v59  ;;  %5707 = vmatpush3.bf16.msra.mxu1 %v8588_v33 }
 0x6cb   :  { %3171 = vmatprep.subr.bf16.mxu0 %v8594_v20  ;;  %5708 = vmatprep.subr.bf16.mxu1 %v9806_v14 }
 0x6cc   :  { %3201 = vmatprep.mubr.bf16.mxu0 %v9807_v54  ;;  %5722 = vmatprep.mubr.msk.bf16.mxu1 %vm6596_vm2, %v9806_v14 }
 0x6ce   :  { %3172 = vmatpush1.bf16.msra.mxu0 %v8604_v31  ;;  %5709 = vmatpush3.bf16.msra.mxu1 %v8610_v58 }
 0x6cf   :  { %3173 = vmatprep.subr.bf16.mxu0 %v8616_v56  ;;  %5710 = vmatprep.subr.bf16.mxu1 %v9806_v14 }
 0x6d2   :  { %3174 = vmatpush1.bf16.msra.mxu0 %v8623_v27  ;;  %5711 = vmatpush3.bf16.msra.mxu1 %v8629_v18 }
 0x6d3   :  { %3175 = vmatprep.subr.bf16.mxu0 %v8635_v3  ;;  %5712 = vmatprep.subr.bf16.mxu1 %v9806_v14 }
 0x6d6   :  { %3176 = vmatpush1.bf16.msra.mxu0 %v8012_v2  ;;  %5713 = vmatpush3.bf16.msra.mxu1 %v8018_v16  ;;  %v9944_v2 = vld [vmem:[#allocation47_spill] sm:$0xff]  ;;  %v9945_v16 = vld [vmem:[#allocation48_spill] sm:$0xff] }
 0x6d7   :  { %3177 = vmatprep.subr.bf16.mxu0 %v8024_v25  ;;  %5714 = vmatprep.subr.bf16.mxu1 %v9806_v14  ;;  %v9946_v25 = vld [vmem:[#allocation49_spill] sm:$0xff] }
 0x6da   :  { %3178 = vmatpush1.bf16.msra.mxu0 %v8031_v57  ;;  %5715 = vmatpush3.bf16.msra.mxu1 %v8037_v62  ;;  %v9947_v57 = vld [vmem:[#allocation50_spill] sm:$0xff] }
 0x6db   :  { %3179 = vmatprep.subr.bf16.mxu0 %v8043_v9  ;;  %5716 = vmatprep.subr.bf16.mxu1 %v9806_v14  ;;  %v9948_v62 = vld [vmem:[#allocation10_spill] sm:$0xff]  ;;  %v9949_v9 = vld [vmem:[#allocation12_spill] sm:$0xff] }
 0x6de   :  { %3180 = vmatpush1.bf16.msra.mxu0 %v8050_v15  ;;  %5717 = vmatpush3.bf16.msra.mxu1 %v8056_v26  ;;  %v9950_v15 = vld [vmem:[#allocation13_spill] sm:$0xff]  ;;  %v9951_v26 = vld [vmem:[#allocation14_spill] sm:$0xff] }
 0x6df   :  { %3181 = vmatprep.subr.bf16.mxu0 %v9943_v10  ;;  %5718 = vmatprep.subr.bf16.mxu1 %v9806_v14  ;;  %v9959_v10 = vld [vmem:[#allocation24_spill] sm:$0xff] }
 0x6e2   :  { %3182 = vmatpush1.bf16.msra.mxu0 %v9944_v2  ;;  %5719 = vmatpush3.bf16.msra.mxu1 %v9945_v16  ;;  %v9960_v2 = vld [vmem:[#allocation25_spill] sm:$0xff]  ;;  %v9961_v16 = vld [vmem:[#allocation26_spill] sm:$0xff] }
 0x6e3   :  { %3183 = vmatprep.subr.bf16.mxu0 %v9946_v25  ;;  %5720 = vmatprep.subr.bf16.mxu1 %v9806_v14  ;;  %v9962_v25 = vld [vmem:[#allocation27_spill] sm:$0xff] }
 0x6e6   :  { %3184 = vmatpush1.bf16.msra.mxu0 %v9947_v57  ;;  %5721 = vmatpush3.bf16.msra.mxu1 %v9948_v62  ;;  %v9963_v57 = vld [vmem:[#allocation28_spill] sm:$0xff]  ;;  %v9964_v62 = vld [vmem:[#allocation29_spill] sm:$0xff] }
 0x6e7   :  { %3287 = vmatprep.subr.bf16.mxu0 %v9949_v9  ;;  %5726 = vmatprep.subr.bf16.mxu1 %v9806_v14  ;;  %v9965_v9 = vld [vmem:[#allocation30_spill] sm:$0xff] }
 0x6e9   :  { %3202 = vmatmul.mubr.bf16.vlgmr.msra.gmra.mxu0 %v8533_v7  ;;  %5723 = vmatmul.mubr.bf16.vlgmr.msra.gmra.mxu1 %v8533_v7  ;;  %v9957_v7 = vld [vmem:[#allocation22_spill] sm:$0xff] }
 0x6ea   :  { %3288 = vmatpush1.bf16.msra.mxu0 %v9950_v15  ;;  %5727 = vmatpush3.bf16.msra.mxu1 %v9951_v26  ;;  %v9966_v15 = vld [vmem:[#allocation31_spill] sm:$0xff]  ;;  %v9967_v26 = vld [vmem:[#allocation32_spill] sm:$0xff] }
 0x6eb   :  { %3289 = vmatprep.subr.bf16.mxu0 %v9952_v21  ;;  %5728 = vmatprep.subr.bf16.mxu1 %v9806_v14  ;;  %v9968_v21 = vld [vmem:[#allocation33_spill] sm:$0xff] }
 0x6ec   :  { %3319 = vmatprep.mubr.bf16.mxu0 %v9807_v54  ;;  %5742 = vmatprep.mubr.msk.bf16.mxu1 %vm6596_vm2, %v9806_v14 }
 0x6ee   :  { %3290 = vmatpush1.bf16.msra.mxu0 %v9953_v40  ;;  %5729 = vmatpush3.bf16.msra.mxu1 %v9954_v38  ;;  %v9969_v40 = vld [vmem:[#allocation34_spill] sm:$0xff]  ;;  %v9970_v38 = vld [vmem:[#allocation35_spill] sm:$0xff] }
 0x6ef   :  { %3291 = vmatprep.subr.bf16.mxu0 %v9955_v55  ;;  %5730 = vmatprep.subr.bf16.mxu1 %v9806_v14  ;;  %v9971_v55 = vld [vmem:[#allocation53_spill] sm:$0xff] }
 0x6f2   :  { %3292 = vmatpush1.bf16.msra.mxu0 %v9956_v17  ;;  %5731 = vmatpush3.bf16.msra.mxu1 %v9957_v7  ;;  %v9972_v17 = vld [vmem:[#allocation41_spill] sm:$0xff]  ;;  %v9973_v7 = vld [vmem:[#allocation42_spill] sm:$0xff] }
 0x6f3   :  { %3293 = vmatprep.subr.bf16.mxu0 %v9958_v51  ;;  %5732 = vmatprep.subr.bf16.mxu1 %v9806_v14 }
 0x6f6   :  { %3294 = vmatpush1.bf16.msra.mxu0 %v9959_v10  ;;  %5733 = vmatpush3.bf16.msra.mxu1 %v9960_v2 }
 0x6f7   :  { %3295 = vmatprep.subr.bf16.mxu0 %v9961_v16  ;;  %5734 = vmatprep.subr.bf16.mxu1 %v9806_v14 }
 0x6fa   :  { %3296 = vmatpush1.bf16.msra.mxu0 %v9962_v25  ;;  %5735 = vmatpush3.bf16.msra.mxu1 %v9963_v57 }
 0x6fb   :  { %3297 = vmatprep.subr.bf16.mxu0 %v9964_v62  ;;  %5736 = vmatprep.subr.bf16.mxu1 %v9806_v14 }
 0x6fe   :  { %3298 = vmatpush1.bf16.msra.mxu0 %v9965_v9  ;;  %5737 = vmatpush3.bf16.msra.mxu1 %v9966_v15 }
 0x6ff   :  { %3299 = vmatprep.subr.bf16.mxu0 %v9967_v26  ;;  %5738 = vmatprep.subr.bf16.mxu1 %v9806_v14 }
 0x702   :  { %3300 = vmatpush1.bf16.msra.mxu0 %v9968_v21  ;;  %5739 = vmatpush3.bf16.msra.mxu1 %v9969_v40  ;;  %v9974_v21 = vld [vmem:[#allocation51_spill] sm:$0xff] }
 0x703   :  { %3301 = vmatprep.subr.bf16.mxu0 %v9970_v38  ;;  %5740 = vmatprep.subr.bf16.mxu1 %v9806_v14  ;;  %v9975_v38 = vld [vmem:[#allocation52_spill] sm:$0xff] }
 0x706   :  { %3302 = vmatpush1.bf16.msra.mxu0 %v9971_v55  ;;  %5741 = vmatpush3.bf16.msra.mxu1 %v9972_v17 }
 0x707   :  { %3369 = vmatprep.subr.bf16.mxu0 %v9973_v7  ;;  %5746 = vmatprep.subr.bf16.mxu1 %v9806_v14 }
 0x769   :  { %v3019_v51 = vpop.f32.mrf.mxu0  ;;  %v3060_v10 = vpop.f32.mrf.mxu1 }
 0x76a   :  { %v3020_v40 = vadd.f32 %v3019_v51, %v9974_v21 }
 0x76b   :  { %v3021_v2 = vpop.f32.mrf.mxu0  ;;  %v5684_v16 = vpop.f32.mrf.mxu1 }
 0x76c   :  { %v3022_v7 = vadd.f32 %v3021_v2, %v7740_v32 }
 0x76d   :  { %v3023_v25 = vpop.f32.mrf.mxu0  ;;  %v3063_v57 = vpop.f32.mrf.mxu1 }
 0x76f   :  { %v3024_v62 = vpop.f32.mrf.mxu0  ;;  %v5685_v9 = vpop.f32.mrf.mxu1 }
 0x789   :  { %v3101_v15 = vpop.f32.mrf.mxu0  ;;  %v3142_v26 = vpop.f32.mrf.mxu1 }
 0x78a   :  { %v3102_v55 = vadd.f32 %v3101_v15, %v9975_v38 }
 0x78b   :  { %v3103_v1 = vpop.f32.mrf.mxu0  ;;  %v5704_v17 = vpop.f32.mrf.mxu1 }
 0x78c   :  { %v3148_v3 = vadd.f32 %v3102_v55, %v3020_v40  ;;  %v3104_v18 = vadd.f32 %v3103_v1, %v7743_v4 }
 0x78d   :  { %v3105_v27 = vpop.f32.mrf.mxu0  ;;  %v3145_v56 = vpop.f32.mrf.mxu1 }
 0x78e   :  { %v5059_v16 = vmul.f32 -1.442695, %v3148_v3  ;;  %v3155_v25 = vadd.f32 %v3104_v18, %v3022_v7  ;;  %v3143_v56 = vadd.f32 %v3142_v26, %v9870_v12 }
 0x78f   :  { %v3106_v57 = vpop.f32.mrf.mxu0  ;;  %v5705_v62 = vpop.f32.mrf.mxu1 }
 0x790   :  { %6357 = vpow2.f32 %v5059_v16  ;;  %v5060_v9 = vmul.f32 -1.442695, %v3155_v25  ;;  %v3061_v16 = vadd.f32 %v3060_v10, %v7753_v61 }
 0x792   :  { %6359 = vpow2.f32 %v5060_v9 }
 0x79d   :  { %v6358_v58 = vpop.eup %6357 }
 0x79e   :  { %v3152_v51 = vadd.f32 1.0, %v6358_v58 }
 0x79f   :  { %v6360_v15 = vpop.eup %6359 }
 0x7a0   :  { %6361 = vrcp.f32 %v3152_v51  ;;  %v3159_v21 = vadd.f32 1.0, %v6360_v15 }
 0x7a2   :  { %6363 = vrcp.f32 %v3159_v21 }
 0x7a9   :  { %v3203_v38 = vpop.f32.mrf.mxu0  ;;  %v3244_v17 = vpop.f32.mrf.mxu1 }
 0x7aa   :  { %v3204_v2 = vadd.f32 %v3203_v38, %v9831_v11 }
 0x7ab   :  { %v3205_v40 = vpop.f32.mrf.mxu0  ;;  %v5724_v1 = vpop.f32.mrf.mxu1 }
 0x7ac   :  { %v3251_v27 = vrot.slane %v3204_v2, 6  ;;  %v3206_v3 = vadd.f32 %v3205_v40, %v7472_v8 }
 0x7ad   :  { %v6362_v18 = vpop.eup %6361  ;;  %v3207_v55 = vpop.f32.mrf.mxu0 }
 0x7ae   :  { %v3247_v7 = vpop.f32.mrf.mxu1  ;;  %v3162_v58 = vmul.f32 %v6362_v18, %v3143_v56  ;;  %v3253_v25 = vadd.f32 %v3251_v27, %v9933_v37  ;;  %v3261_v51 = vrot.slane %v3206_v3, 6  ;;  %v3245_v3 = vadd.f32 %v3244_v17, %v7487_v24 }
 0x7af   :  { %v3208_v57 = vpop.f32.mrf.mxu0  ;;  %v6364_v2 = vpop.eup %6363 }
 0x7b0   :  { %v5725_v62 = vpop.f32.mrf.mxu1  ;;  %v3163_v9 = vadd.f32 %v3162_v58, %v3061_v16  ;;  %v5061_v38 = vmul.f32 -1.442695, %v3253_v25  ;;  %v3263_v26 = vadd.f32 %v3261_v51, %v8520_v53  ;;  %v3165_v40 = vsub.f32 1.0, %v6364_v2 }
 0x7b1   :  { %v3167_v21 = vmul.f32 %v6364_v2, %v8524_v30  ;;  %v3271_v16 = vrot.slane %v3245_v3, 6  ;;  %v8932_v3 = vld [vmem:[%s9584_s6 + $0x60] ss:$12 sps:$4 sm:$0xff]  }
 0x7b2   :  { %6365 = vtanh.f32 %v3163_v9  ;;  %v5062_v15 = vmul.f32 -1.442695, %v3263_v26  ;;  %v3279_v9 = vrot.slane %v8529_v34, 6  ;;  %v8884_v34 = vld [vmem:[%s9584_s6 + $0x94] ss:$12 sps:$4 sm:$0xff]   ;;  %9988 = vst [vmem:[#allocation13_spill] sm:$0xff] %v8932_v3 }
 0x7b3   :  { %6367 = vpow2.f32 %v5061_v38 }
 0x7b4   :  { %6369 = vpow2.f32 %v5062_v15 }
 0x7bf   :  { %v6366_v1 = vpop.eup %6365 }
 0x7c0   :  { %v6368_v55 = vpop.eup %6367  ;;  %v3166_v10 = vmul.f32 %v6366_v1, %v3165_v40  ;;  %v8894_v1 = vld [vmem:[%s9584_s6 + $0x90] ss:$12 sps:$4 sm:$0xff]  }
 0x7c1   :  { %v3257_v56 = vadd.f32 1.0, %v6368_v55  ;;  %v6370_v18 = vpop.eup %6369  ;;  %9982 = vst [vmem:[#allocation47_spill] sm:$0xff] %v8894_v1  ;;  %v8900_v55 = vld [vmem:[%s9584_s6 + $0x98] ss:$12 sps:$4 sm:$0xff]  }
 0x7c2   :  { %v8707_v27 = vadd.f32 %v3167_v21, %v3166_v10  ;;  %v3267_v7 = vadd.f32 1.0, %v6370_v18  ;;  %9983 = vst [vmem:[#allocation48_spill] sm:$0xff] %v8900_v55  ;;  %v8906_v10 = vld [vmem:[%s9584_s6 + $0x7c] ss:$12 sps:$4 sm:$0xff]   ;;  %v8913_v21 = vld [vmem:[%s9584_s6 + $0x78] ss:$12 sps:$4 sm:$0xff]  }
 0x7c3   :  { %6371 = vrcp.f32 %v3257_v56  ;;  %9984 = vst [vmem:[#allocation49_spill] sm:$0xff] %v8906_v10  ;;  %9985 = vst [vmem:[#allocation50_spill] sm:$0xff] %v8913_v21  ;;  %v8919_v56 = vld [vmem:[%s9584_s6 + $0x80] ss:$12 sps:$4 sm:$0xff]   ;;  %v8925_v18 = vld [vmem:[%s9584_s6 + $0x64] ss:$12 sps:$4 sm:$0xff]  }
 0x7c4   :  { %9976 = vst [vmem:[#allocation46_spill] sm:$0xff] %v8707_v27  ;;  %6373 = vrcp.f32 %v3267_v7  ;;  %9986 = vst [vmem:[#allocation10_spill] sm:$0xff] %v8919_v56  ;;  %v8938_v7 = vld [vmem:[%s9584_s6 + $0x68] ss:$12 sps:$4 sm:$0xff]  }
 0x7c5   :  { %9987 = vst [vmem:[#allocation12_spill] sm:$0xff] %v8925_v18  ;;  %9989 = vst [vmem:[#allocation14_spill] sm:$0xff] %v8938_v7 }
 0x7d0   :  { %v6372_v58 = vpop.eup %6371 }
 0x7d1   :  { %v3273_v25 = vmul.f32 %v6372_v58, %v3271_v16  ;;  %v6374_v62 = vpop.eup %6373  ;;  %v8944_v16 = vld [vmem:[%s9584_s6 + $0x4c] ss:$12 sps:$4 sm:$0xff]   ;;  %v8951_v58 = vld [vmem:[%s9584_s6 + $0x48] ss:$12 sps:$4 sm:$0xff]  }
 0x7d2   :  { %v3276_v38 = vsub.f32 1.0, %v6374_v62  ;;  %v3281_v15 = vmul.f32 %v6374_v62, %v3279_v9  ;;  %9990 = vst [vmem:[#allocation16_spill] sm:$0xff] %v8944_v16  ;;  %9991 = vst [vmem:[#allocation18_spill] sm:$0xff] %v8951_v58  ;;  %v8970_v62 = vld [vmem:[%s9584_s6 + $0x30] ss:$12 sps:$4 sm:$0xff]  }
 0x7d3   :  { %v3274_v57 = vadd.f32 %v3273_v25, %v9937_v22  ;;  %v8957_v25 = vld [vmem:[%s9584_s6 + $0x50] ss:$12 sps:$4 sm:$0xff]   ;;  %9994 = vst [vmem:[#allocation21_spill] sm:$0xff] %v8970_v62  ;;  %v8976_v9 = vld [vmem:[%s9584_s6 + $0x38] ss:$12 sps:$4 sm:$0xff]  }
 0x7d4   :  { %9992 = vst [vmem:[#allocation19_spill] sm:$0xff] %v8957_v25  ;;  %9995 = vst [vmem:[#allocation22_spill] sm:$0xff] %v8976_v9 }
 0x7d5   :  { %6375 = vtanh.f32 %v3274_v57  ;;  %v8963_v57 = vld [vmem:[%s9584_s6 + $0x34] ss:$12 sps:$4 sm:$0xff]  }
 0x7d6   :  { %9993 = vst [vmem:[#allocation20_spill] sm:$0xff] %v8963_v57 }
 0x7e2   :  { %v6376_v51 = vpop.eup %6375 }
 0x7e3   :  { %v3277_v26 = vmul.f32 %v6376_v51, %v3276_v38  ;;  %v8982_v38 = vld [vmem:[%s9584_s6 + $0x1c] ss:$12 sps:$4 sm:$0xff]   ;;  %v8989_v51 = vld [vmem:[%s9584_s6 + $0x18] ss:$12 sps:$4 sm:$0xff]  }
 0x7e4   :  { %9996 = vst [vmem:[#allocation23_spill] sm:$0xff] %v8982_v38  ;;  %9997 = vst [vmem:[#allocation24_spill] sm:$0xff] %v8989_v51 }
 0x7e5   :  { %v8712_v2 = vadd.f32 %v3281_v15, %v3277_v26  ;;  %v8995_v26 = vld [vmem:[%s9584_s6 + $0x20] ss:$12 sps:$4 sm:$0xff]   ;;  %v9001_v15 = vld [vmem:[%s9584_s6 + $0x4] ss:$12 sps:$4 sm:$0xff]  }
 0x7e6   :  { %9998 = vst [vmem:[#allocation25_spill] sm:$0xff] %v8995_v26  ;;  %9999 = vst [vmem:[#allocation26_spill] sm:$0xff] %v9001_v15 }
 0x7e7   :  { %v3283_v17 = vpack.c.bf16 %v8712_v2, %v8712_v2 }
 0x7e9   :  { %v8716_v40 = vrot.slane %v3283_v17, 1  ;;  %v9008_v17 = vld [vmem:[%s9584_s6] ss:$12 sps:$4 sm:$0xff]  }
 0x7ea   :  { %10000 = vst [vmem:[#allocation27_spill] sm:$0xff] %v9008_v17 }
 0x7eb   :  { %3320 = vmatmul.mubr.bf16.vlgmr.msra.gmra.mxu0 %v8716_v40  ;;  %5743 = vmatmul.mubr.bf16.vlgmr.msra.gmra.mxu1 %v8716_v40 }
 0x7ec   :  { %3370 = vmatpush1.bf16.msra.mxu0 %v8288_v60  ;;  %5747 = vmatpush3.bf16.msra.mxu1 %v8294_v29  ;;  %v3368_v60 = vpack.c.bf16 %v8707_v27, %v8707_v27  ;;  %v9977_v29 = vld [vmem:[#allocation8_spill] sm:$0xff] }
 0x7ed   :  { %3371 = vmatprep.subr.bf16.mxu0 %v8300_v49  ;;  %5748 = vmatprep.subr.bf16.mxu1 %v9806_v14  ;;  %v9978_v49 = vld [vmem:[#allocation40_spill] sm:$0xff] }
 0x7ee   :  { %3401 = vmatprep.mubr.bf16.mxu0 %v9807_v54  ;;  %5762 = vmatprep.mubr.msk.bf16.mxu1 %vm6596_vm2, %v9806_v14 }
 0x7f0   :  { %3372 = vmatpush1.bf16.msra.mxu0 %v8310_v50  ;;  %5749 = vmatpush3.bf16.msra.mxu1 %v8316_v43  ;;  %v9979_v50 = vld [vmem:[#allocation11_spill] sm:$0xff]  ;;  %v9980_v43 = vld [vmem:[#allocation9_spill] sm:$0xff] }
 0x7f1   :  { %3373 = vmatprep.subr.bf16.mxu0 %v8322_v47  ;;  %5750 = vmatprep.subr.bf16.mxu1 %v9806_v14  ;;  %v9981_v47 = vld [vmem:[#allocation54_spill] sm:$0xff] }
 0x7f4   :  { %3374 = vmatpush1.bf16.msra.mxu0 %v8329_v39  ;;  %5751 = vmatpush3.bf16.msra.mxu1 %v8335_v44  ;;  %v8775_v39 = vld [vmem:[%s9581_s3 + $0x60] ss:$12 sps:$4 sm:$0xff]   ;;  %v8781_v44 = vld [vmem:[%s9581_s3 + $0x68] ss:$12 sps:$4 sm:$0xff]  }
 0x7f5   :  { %3375 = vmatprep.subr.bf16.mxu0 %v8341_v48  ;;  %5752 = vmatprep.subr.bf16.mxu1 %v9806_v14  ;;  %v8787_v48 = vld [vmem:[%s9581_s3 + $0x4c] ss:$12 sps:$4 sm:$0xff]  }
 0x7f8   :  { %3376 = vmatpush1.bf16.msra.mxu0 %v8348_v46  ;;  %5753 = vmatpush3.bf16.msra.mxu1 %v8354_v23  ;;  %v8794_v46 = vld [vmem:[%s9581_s3 + $0x48] ss:$12 sps:$4 sm:$0xff]   ;;  %v8800_v23 = vld [vmem:[%s9581_s3 + $0x50] ss:$12 sps:$4 sm:$0xff]  }
 0x7f9   :  { %3377 = vmatprep.subr.bf16.mxu0 %v8360_v36  ;;  %5754 = vmatprep.subr.bf16.mxu1 %v9806_v14  ;;  %v8806_v36 = vld [vmem:[%s9581_s3 + $0x34] ss:$12 sps:$4 sm:$0xff]  }
 0x7fc   :  { %3378 = vmatpush1.bf16.msra.mxu0 %v8367_v19  ;;  %5755 = vmatpush3.bf16.msra.mxu1 %v8373_v41  ;;  %v8813_v19 = vld [vmem:[%s9581_s3 + $0x30] ss:$12 sps:$4 sm:$0xff]   ;;  %v8819_v41 = vld [vmem:[%s9581_s3 + $0x38] ss:$12 sps:$4 sm:$0xff]  }
 0x7fd   :  { %3379 = vmatprep.subr.bf16.mxu0 %v8379_v13  ;;  %5756 = vmatprep.subr.bf16.mxu1 %v9806_v14  ;;  %v8825_v13 = vld [vmem:[%s9581_s3 + $0x1c] ss:$12 sps:$4 sm:$0xff]  }
 0x800   :  { %3380 = vmatpush1.bf16.msra.mxu0 %v8386_v35  ;;  %5757 = vmatpush3.bf16.msra.mxu1 %v8392_v6  ;;  %v8832_v35 = vld [vmem:[%s9581_s3 + $0x18] ss:$12 sps:$4 sm:$0xff]   ;;  %v8838_v6 = vld [vmem:[%s9581_s3 + $0x20] ss:$12 sps:$4 sm:$0xff]  }
 0x801   :  { %3381 = vmatprep.subr.bf16.mxu0 %v8398_v5  ;;  %5758 = vmatprep.subr.bf16.mxu1 %v9806_v14  ;;  %v8844_v5 = vld [vmem:[%s9581_s3 + $0x4] ss:$12 sps:$4 sm:$0xff]  }
 0x804   :  { %3382 = vmatpush1.bf16.msra.mxu0 %v8405_v0  ;;  %5759 = vmatpush3.bf16.msra.mxu1 %v8411_v45  ;;  %v8851_v0 = vld [vmem:[%s9581_s3] ss:$12 sps:$4 sm:$0xff]   ;;  %v8857_v45 = vld [vmem:[%s9581_s3 + $0x8] ss:$12 sps:$4 sm:$0xff]  }
 0x805   :  { %3383 = vmatprep.subr.bf16.mxu0 %v8417_v63  ;;  %5760 = vmatprep.subr.bf16.mxu1 %v9806_v14  ;;  %v8863_v63 = vld [vmem:[%s9584_s6 + $0xac] ss:$12 sps:$4 sm:$0xff]  }
 0x808   :  { %3384 = vmatpush1.bf16.msra.mxu0 %v8424_v28  ;;  %5761 = vmatpush3.bf16.msra.mxu1 %v8430_v42  ;;  %v8872_v28 = vld [vmem:[%s9584_s6 + $0xa8] ss:$12 sps:$4 sm:$0xff]   ;;  %v8878_v42 = vld [vmem:[%s9584_s6 + $0xb0] ss:$12 sps:$4 sm:$0xff]  }
 0x809   :  { %3471 = vmatprep.subr.bf16.mxu0 %v8575_v52  ;;  %5766 = vmatprep.subr.bf16.mxu1 %v9806_v14 }
 0x80b   :  { %3402 = vmatmul.mubr.bf16.vlgmr.msra.gmra.mxu0 %v3368_v60  ;;  %5763 = vmatmul.mubr.bf16.vlgmr.msra.gmra.mxu1 %v3368_v60  ;;  %v9020_v60 = vld [vmem:[%s9585_s7 + $0xac] ss:$12 sps:$4 sm:$0xff]  }
 0x80c   :  { %3472 = vmatpush1.bf16.msra.mxu0 %v8582_v59  ;;  %5767 = vmatpush3.bf16.msra.mxu1 %v8588_v33  ;;  %10002 = vst [vmem:[#allocation29_spill] sm:$0xff] %v9020_v60 }
 0x80d   :  { %3473 = vmatprep.subr.bf16.mxu0 %v8594_v20  ;;  %5768 = vmatprep.subr.bf16.mxu1 %v9806_v14 }
 0x80e   :  { %3503 = vmatprep.mubr.bf16.mxu0 %v9807_v54  ;;  %5782 = vmatprep.mubr.msk.bf16.mxu1 %vm6596_vm2, %v9806_v14 }
 0x810   :  { %3474 = vmatpush1.bf16.msra.mxu0 %v8604_v31  ;;  %5769 = vmatpush3.bf16.msra.mxu1 %v9977_v29 }
 0x811   :  { %3475 = vmatprep.subr.bf16.mxu0 %v9978_v49  ;;  %5770 = vmatprep.subr.bf16.mxu1 %v9806_v14 }
 0x814   :  { %3476 = vmatpush1.bf16.msra.mxu0 %v9979_v50  ;;  %5771 = vmatpush3.bf16.msra.mxu1 %v9980_v43 }
 0x815   :  { %3477 = vmatprep.subr.bf16.mxu0 %v9981_v47  ;;  %5772 = vmatprep.subr.bf16.mxu1 %v9806_v14 }
 0x818   :  { %3478 = vmatpush1.bf16.msra.mxu0 %v8775_v39  ;;  %5773 = vmatpush3.bf16.msra.mxu1 %v8781_v44 }
 0x819   :  { %3479 = vmatprep.subr.bf16.mxu0 %v8787_v48  ;;  %5774 = vmatprep.subr.bf16.mxu1 %v9806_v14 }
 0x81c   :  { %3480 = vmatpush1.bf16.msra.mxu0 %v8794_v46  ;;  %5775 = vmatpush3.bf16.msra.mxu1 %v8800_v23 }
 0x81d   :  { %3481 = vmatprep.subr.bf16.mxu0 %v8806_v36  ;;  %5776 = vmatprep.subr.bf16.mxu1 %v9806_v14 }
 0x820   :  { %3482 = vmatpush1.bf16.msra.mxu0 %v8813_v19  ;;  %5777 = vmatpush3.bf16.msra.mxu1 %v8819_v41 }
 0x821   :  { %3483 = vmatprep.subr.bf16.mxu0 %v8825_v13  ;;  %5778 = vmatprep.subr.bf16.mxu1 %v9806_v14 }
 0x824   :  { %3484 = vmatpush1.bf16.msra.mxu0 %v8832_v35  ;;  %5779 = vmatpush3.bf16.msra.mxu1 %v8838_v6 }
 0x825   :  { %3485 = vmatprep.subr.bf16.mxu0 %v8844_v5  ;;  %5780 = vmatprep.subr.bf16.mxu1 %v9806_v14 }
 0x828   :  { %3486 = vmatpush1.bf16.msra.mxu0 %v8851_v0  ;;  %5781 = vmatpush3.bf16.msra.mxu1 %v8857_v45 }
 0x829   :  { %3589 = vmatprep.subr.bf16.mxu0 %v8863_v63  ;;  %5786 = vmatprep.subr.bf16.mxu1 %v9806_v14 }
 0x82b   :  { %3504 = vmatmul.mubr.bf16.vlgmr.msra.gmra.mxu0 %v8716_v40  ;;  %5783 = vmatmul.mubr.bf16.vlgmr.msra.gmra.mxu1 %v8716_v40  ;;  %v9014_v40 = vld [vmem:[%s9584_s6 + $0x8] ss:$12 sps:$4 sm:$0xff]  }
 0x82c   :  { %3590 = vmatpush1.bf16.msra.mxu0 %v8872_v28  ;;  %5787 = vmatpush3.bf16.msra.mxu1 %v8878_v42  ;;  %10001 = vst [vmem:[#allocation28_spill] sm:$0xff] %v9014_v40 }
 0x82d   :  { %3591 = vmatprep.subr.bf16.mxu0 %v8884_v34  ;;  %5788 = vmatprep.subr.bf16.mxu1 %v9806_v14 }
 0x82e   :  { %3621 = vmatprep.mubr.bf16.mxu0 %v9807_v54  ;;  %5802 = vmatprep.mubr.msk.bf16.mxu1 %vm6596_vm2, %v9806_v14 }
 0x830   :  { %3592 = vmatpush1.bf16.msra.mxu0 %v8894_v1  ;;  %5789 = vmatpush3.bf16.msra.mxu1 %v8900_v55 }
 0x831   :  { %3593 = vmatprep.subr.bf16.mxu0 %v8906_v10  ;;  %5790 = vmatprep.subr.bf16.mxu1 %v9806_v14 }
 0x834   :  { %3594 = vmatpush1.bf16.msra.mxu0 %v8913_v21  ;;  %5791 = vmatpush3.bf16.msra.mxu1 %v8919_v56 }
 0x835   :  { %3595 = vmatprep.subr.bf16.mxu0 %v8925_v18  ;;  %5792 = vmatprep.subr.bf16.mxu1 %v9806_v14 }
 0x838   :  { %3596 = vmatpush1.bf16.msra.mxu0 %v8932_v3  ;;  %5793 = vmatpush3.bf16.msra.mxu1 %v8938_v7 }
 0x839   :  { %3597 = vmatprep.subr.bf16.mxu0 %v8944_v16  ;;  %5794 = vmatprep.subr.bf16.mxu1 %v9806_v14  ;;  %v10004_v16 = vld [vmem:[#allocation52_spill] sm:$0xff] }
 0x83c   :  { %3598 = vmatpush1.bf16.msra.mxu0 %v8951_v58  ;;  %5795 = vmatpush3.bf16.msra.mxu1 %v8957_v25 }
 0x83d   :  { %3599 = vmatprep.subr.bf16.mxu0 %v8963_v57  ;;  %5796 = vmatprep.subr.bf16.mxu1 %v9806_v14 }
 0x840   :  { %3600 = vmatpush1.bf16.msra.mxu0 %v8970_v62  ;;  %5797 = vmatpush3.bf16.msra.mxu1 %v8976_v9 }
 0x841   :  { %3601 = vmatprep.subr.bf16.mxu0 %v8982_v38  ;;  %5798 = vmatprep.subr.bf16.mxu1 %v9806_v14 }
 0x844   :  { %3602 = vmatpush1.bf16.msra.mxu0 %v8989_v51  ;;  %5799 = vmatpush3.bf16.msra.mxu1 %v8995_v26 }
 0x845   :  { %3603 = vmatprep.subr.bf16.mxu0 %v9001_v15  ;;  %5800 = vmatprep.subr.bf16.mxu1 %v9806_v14 }
 0x848   :  { %3604 = vmatpush1.bf16.msra.mxu0 %v9008_v17  ;;  %5801 = vmatpush3.bf16.msra.mxu1 %v9014_v40  ;;  %v10003_v40 = vld [vmem:[#allocation51_spill] sm:$0xff] }
 0x849   :  { %3671 = vmatprep.subr.bf16.mxu0 %v9020_v60  ;;  %5806 = vmatprep.subr.bf16.mxu1 %v9806_v14 }
 0x8ab   :  { %v3321_v30 = vpop.f32.mrf.mxu0  ;;  %v3362_v15 = vpop.f32.mrf.mxu1 }
 0x8ac   :  { %v3322_v58 = vadd.f32 %v3321_v30, %v10003_v40 }
 0x8ad   :  { %v3323_v26 = vpop.f32.mrf.mxu0  ;;  %v5744_v17 = vpop.f32.mrf.mxu1 }
 0x8ae   :  { %v3324_v60 = vadd.f32 %v3323_v26, %v7740_v32 }
 0x8af   :  { %v3325_v51 = vpop.f32.mrf.mxu0  ;;  %v3365_v38 = vpop.f32.mrf.mxu1 }
 0x8b1   :  { %v3326_v9 = vpop.f32.mrf.mxu0  ;;  %v5745_v62 = vpop.f32.mrf.mxu1 }
 0x8cb   :  { %v3403_v57 = vpop.f32.mrf.mxu0  ;;  %v3444_v25 = vpop.f32.mrf.mxu1 }
 0x8cc   :  { %v3404_v7 = vadd.f32 %v3403_v57, %v10004_v16 }
 0x8cd   :  { %v3405_v3 = vpop.f32.mrf.mxu0  ;;  %v5764_v18 = vpop.f32.mrf.mxu1 }
 0x8ce   :  { %v3450_v56 = vadd.f32 %v3404_v7, %v3322_v58  ;;  %v3406_v21 = vadd.f32 %v3405_v3, %v7743_v4 }
 0x8cf   :  { %v3407_v10 = vpop.f32.mrf.mxu0  ;;  %v3447_v55 = vpop.f32.mrf.mxu1 }
 0x8d0   :  { %v5063_v17 = vmul.f32 -1.442695, %v3450_v56  ;;  %v3457_v51 = vadd.f32 %v3406_v21, %v3324_v60  ;;  %v3445_v55 = vadd.f32 %v3444_v25, %v9870_v12 }
 0x8d1   :  { %v3408_v38 = vpop.f32.mrf.mxu0  ;;  %v5765_v9 = vpop.f32.mrf.mxu1 }
 0x8d2   :  { %6377 = vpow2.f32 %v5063_v17  ;;  %v5064_v62 = vmul.f32 -1.442695, %v3457_v51  ;;  %v3363_v17 = vadd.f32 %v3362_v15, %v7753_v61 }
 0x8d4   :  { %6379 = vpow2.f32 %v5064_v62 }
 0x8df   :  { %v6378_v1 = vpop.eup %6377 }
 0x8e0   :  { %v3454_v30 = vadd.f32 1.0, %v6378_v1 }
 0x8e1   :  { %v6380_v57 = vpop.eup %6379 }
 0x8e2   :  { %6381 = vrcp.f32 %v3454_v30  ;;  %v3461_v40 = vadd.f32 1.0, %v6380_v57 }
 0x8e4   :  { %6383 = vrcp.f32 %v3461_v40 }
 0x8eb   :  { %v3505_v16 = vpop.f32.mrf.mxu0  ;;  %v3546_v18 = vpop.f32.mrf.mxu1 }
 0x8ec   :  { %v3506_v7 = vadd.f32 %v3505_v16, %v9831_v11 }
 0x8ed   :  { %v3507_v58 = vpop.f32.mrf.mxu0  ;;  %v5784_v3 = vpop.f32.mrf.mxu1 }
 0x8ee   :  { %v3553_v10 = vrot.slane %v3506_v7, 4  ;;  %v3508_v56 = vadd.f32 %v3507_v58, %v7472_v8 }
 0x8ef   :  { %v6382_v21 = vpop.eup %6381  ;;  %v3509_v26 = vpop.f32.mrf.mxu0 }
 0x8f0   :  { %v3549_v60 = vpop.f32.mrf.mxu1  ;;  %v3464_v1 = vmul.f32 %v6382_v21, %v3445_v55  ;;  %v3555_v51 = vadd.f32 %v3553_v10, %v9933_v37  ;;  %v3563_v30 = vrot.slane %v3508_v56, 4  ;;  %v3547_v56 = vadd.f32 %v3546_v18, %v7487_v24 }
 0x8f1   :  { %v3510_v38 = vpop.f32.mrf.mxu0  ;;  %v6384_v7 = vpop.eup %6383 }
 0x8f2   :  { %v5785_v9 = vpop.f32.mrf.mxu1  ;;  %v3465_v62 = vadd.f32 %v3464_v1, %v3363_v17  ;;  %v5065_v16 = vmul.f32 -1.442695, %v3555_v51  ;;  %v3565_v25 = vadd.f32 %v3563_v30, %v8520_v53  ;;  %v3467_v58 = vsub.f32 1.0, %v6384_v7 }
 0x8f3   :  { %v3469_v40 = vmul.f32 %v6384_v7, %v8707_v27  ;;  %v3573_v17 = vrot.slane %v3547_v56, 4  ;;  %v9098_v56 = vld [vmem:[%s9585_s7 + $0x80] ss:$12 sps:$4 sm:$0xff]   ;;  %v9180_v27 = vld [vmem:[%s9585_s7 + $0x4] ss:$12 sps:$4 sm:$0xff]  }
 0x8f4   :  { %6385 = vtanh.f32 %v3465_v62  ;;  %v5066_v57 = vmul.f32 -1.442695, %v3565_v25  ;;  %v3581_v62 = vrot.slane %v8712_v2, 6  ;;  %v9057_v2 = vld [vmem:[%s9585_s7 + $0xb0] ss:$12 sps:$4 sm:$0xff]  }
 0x8f5   :  { %6387 = vpow2.f32 %v5065_v16 }
 0x8f6   :  { %6389 = vpow2.f32 %v5066_v57 }
 0x901   :  { %v6386_v3 = vpop.eup %6385 }
 0x902   :  { %v6388_v26 = vpop.eup %6387  ;;  %v3468_v15 = vmul.f32 %v6386_v3, %v3467_v58  ;;  %v9051_v3 = vld [vmem:[%s9585_s7 + $0xa8] ss:$12 sps:$4 sm:$0xff]  }
 0x903   :  { %v3559_v55 = vadd.f32 1.0, %v6388_v26  ;;  %v6390_v21 = vpop.eup %6389  ;;  %v9063_v26 = vld [vmem:[%s9585_s7 + $0x94] ss:$12 sps:$4 sm:$0xff]  }
 0x904   :  { %v9035_v10 = vadd.f32 %v3469_v40, %v3468_v15  ;;  %v3569_v60 = vadd.f32 1.0, %v6390_v21  ;;  %v9073_v15 = vld [vmem:[%s9585_s7 + $0x90] ss:$12 sps:$4 sm:$0xff]   ;;  %v9079_v40 = vld [vmem:[%s9585_s7 + $0x98] ss:$12 sps:$4 sm:$0xff]  }
 0x905   :  { %6391 = vrcp.f32 %v3559_v55  ;;  %v9085_v55 = vld [vmem:[%s9585_s7 + $0x7c] ss:$12 sps:$4 sm:$0xff]   ;;  %v9092_v21 = vld [vmem:[%s9585_s7 + $0x78] ss:$12 sps:$4 sm:$0xff]  }
 0x906   :  { %6393 = vrcp.f32 %v3569_v60  ;;  %v9104_v60 = vld [vmem:[%s9585_s7 + $0x64] ss:$12 sps:$4 sm:$0xff]  }
 0x912   :  { %v6392_v1 = vpop.eup %6391 }
 0x913   :  { %v3575_v51 = vmul.f32 %v6392_v1, %v3573_v17  ;;  %v6394_v9 = vpop.eup %6393  ;;  %v9111_v17 = vld [vmem:[%s9585_s7 + $0x60] ss:$12 sps:$4 sm:$0xff]   ;;  %v9117_v1 = vld [vmem:[%s9585_s7 + $0x68] ss:$12 sps:$4 sm:$0xff]  }
 0x914   :  { %v3578_v16 = vsub.f32 1.0, %v6394_v9  ;;  %v3583_v57 = vmul.f32 %v6394_v9, %v3581_v62  ;;  %v9136_v9 = vld [vmem:[%s9585_s7 + $0x50] ss:$12 sps:$4 sm:$0xff]   ;;  %v9142_v62 = vld [vmem:[%s9585_s7 + $0x34] ss:$12 sps:$4 sm:$0xff]  }
 0x915   :  { %v3576_v38 = vadd.f32 %v3575_v51, %v9937_v22  ;;  %v9123_v51 = vld [vmem:[%s9585_s7 + $0x4c] ss:$12 sps:$4 sm:$0xff]  }
 0x917   :  { %6395 = vtanh.f32 %v3576_v38  ;;  %v9130_v38 = vld [vmem:[%s9585_s7 + $0x48] ss:$12 sps:$4 sm:$0xff]  }
 0x924   :  { %v6396_v30 = vpop.eup %6395 }
 0x925   :  { %v3579_v25 = vmul.f32 %v6396_v30, %v3578_v16  ;;  %v9149_v16 = vld [vmem:[%s9585_s7 + $0x30] ss:$12 sps:$4 sm:$0xff]   ;;  %v9155_v30 = vld [vmem:[%s9585_s7 + $0x38] ss:$12 sps:$4 sm:$0xff]  }
 0x927   :  { %v9040_v7 = vadd.f32 %v3583_v57, %v3579_v25  ;;  %v9161_v25 = vld [vmem:[%s9585_s7 + $0x1c] ss:$12 sps:$4 sm:$0xff]   ;;  %v9168_v57 = vld [vmem:[%s9585_s7 + $0x18] ss:$12 sps:$4 sm:$0xff]  }
 0x928   :  { %10005 = vst [vmem:[#allocation30_spill] sm:$0xff] %v9161_v25  ;;  %10006 = vst [vmem:[#allocation31_spill] sm:$0xff] %v9168_v57 }
 0x929   :  { %v3585_v18 = vpack.c.bf16 %v9040_v7, %v9040_v7 }
 0x92b   :  { %v9044_v58 = vrot.slane %v3585_v18, 2  ;;  %v9174_v18 = vld [vmem:[%s9585_s7 + $0x20] ss:$12 sps:$4 sm:$0xff]  }
 0x92c   :  { %10007 = vst [vmem:[#allocation32_spill] sm:$0xff] %v9174_v18 }
 0x92d   :  { %3622 = vmatmul.mubr.bf16.vlgmr.msra.gmra.mxu0 %v9044_v58  ;;  %5803 = vmatmul.mubr.bf16.vlgmr.msra.gmra.mxu1 %v9044_v58 }
 0x92e   :  { %3672 = vmatpush1.bf16.msra.mxu0 %v9051_v3  ;;  %5807 = vmatpush3.bf16.msra.mxu1 %v9057_v2 }
 0x92f   :  { %3673 = vmatprep.subr.bf16.mxu0 %v9063_v26  ;;  %5808 = vmatprep.subr.bf16.mxu1 %v9806_v14 }
 0x930   :  { %3703 = vmatprep.mubr.bf16.mxu0 %v9807_v54  ;;  %5822 = vmatprep.mubr.msk.bf16.mxu1 %vm6596_vm2, %v9806_v14 }
 0x932   :  { %3674 = vmatpush1.bf16.msra.mxu0 %v9073_v15  ;;  %5809 = vmatpush3.bf16.msra.mxu1 %v9079_v40 }
 0x933   :  { %3675 = vmatprep.subr.bf16.mxu0 %v9085_v55  ;;  %5810 = vmatprep.subr.bf16.mxu1 %v9806_v14 }
 0x936   :  { %3676 = vmatpush1.bf16.msra.mxu0 %v9092_v21  ;;  %5811 = vmatpush3.bf16.msra.mxu1 %v9098_v56 }
 0x937   :  { %3677 = vmatprep.subr.bf16.mxu0 %v9104_v60  ;;  %5812 = vmatprep.subr.bf16.mxu1 %v9806_v14 }
 0x93a   :  { %3678 = vmatpush1.bf16.msra.mxu0 %v9111_v17  ;;  %5813 = vmatpush3.bf16.msra.mxu1 %v9117_v1 }
 0x93b   :  { %3679 = vmatprep.subr.bf16.mxu0 %v9123_v51  ;;  %5814 = vmatprep.subr.bf16.mxu1 %v9806_v14 }
 0x93e   :  { %3680 = vmatpush1.bf16.msra.mxu0 %v9130_v38  ;;  %5815 = vmatpush3.bf16.msra.mxu1 %v9136_v9 }
 0x93f   :  { %3681 = vmatprep.subr.bf16.mxu0 %v9142_v62  ;;  %5816 = vmatprep.subr.bf16.mxu1 %v9806_v14 }
 0x942   :  { %3682 = vmatpush1.bf16.msra.mxu0 %v9149_v16  ;;  %5817 = vmatpush3.bf16.msra.mxu1 %v9155_v30 }
 0x943   :  { %3683 = vmatprep.subr.bf16.mxu0 %v9161_v25  ;;  %5818 = vmatprep.subr.bf16.mxu1 %v9806_v14  ;;  %v3670_v25 = vpack.c.bf16 %v9035_v10, %v9035_v10 }
 0x946   :  { %3684 = vmatpush1.bf16.msra.mxu0 %v9168_v57  ;;  %5819 = vmatpush3.bf16.msra.mxu1 %v9174_v18  ;;  %v9187_v57 = vld [vmem:[%s9585_s7] ss:$12 sps:$4 sm:$0xff]   ;;  %v9193_v18 = vld [vmem:[%s9585_s7 + $0x8] ss:$12 sps:$4 sm:$0xff]  }
 0x947   :  { %3685 = vmatprep.subr.bf16.mxu0 %v9180_v27  ;;  %5820 = vmatprep.subr.bf16.mxu1 %v9806_v14 }
 0x94a   :  { %3686 = vmatpush1.bf16.msra.mxu0 %v9187_v57  ;;  %5821 = vmatpush3.bf16.msra.mxu1 %v9193_v18 }
 0x94b   :  { %3773 = vmatprep.subr.bf16.mxu0 %v8575_v52  ;;  %5826 = vmatprep.subr.bf16.mxu1 %v9806_v14  ;;  %v10008_v52 = vld [vmem:[#allocation47_spill] sm:$0xff] }
 0x94d   :  { %3704 = vmatmul.mubr.bf16.vlgmr.msra.gmra.mxu0 %v3670_v25  ;;  %5823 = vmatmul.mubr.bf16.vlgmr.msra.gmra.mxu1 %v3670_v25 }
 0x94e   :  { %3774 = vmatpush1.bf16.msra.mxu0 %v8582_v59  ;;  %5827 = vmatpush3.bf16.msra.mxu1 %v8588_v33  ;;  %v10009_v59 = vld [vmem:[#allocation48_spill] sm:$0xff]  ;;  %v10010_v33 = vld [vmem:[#allocation49_spill] sm:$0xff] }
 0x94f   :  { %3775 = vmatprep.subr.bf16.mxu0 %v8594_v20  ;;  %5828 = vmatprep.subr.bf16.mxu1 %v9806_v14  ;;  %v10011_v20 = vld [vmem:[#allocation50_spill] sm:$0xff] }
 0x950   :  { %3805 = vmatprep.mubr.bf16.mxu0 %v9807_v54  ;;  %5842 = vmatprep.mubr.msk.bf16.mxu1 %vm6596_vm2, %v9806_v14 }
 0x952   :  { %3776 = vmatpush1.bf16.msra.mxu0 %v8604_v31  ;;  %5829 = vmatpush3.bf16.msra.mxu1 %v9977_v29  ;;  %v10012_v31 = vld [vmem:[#allocation10_spill] sm:$0xff]  ;;  %v10013_v29 = vld [vmem:[#allocation12_spill] sm:$0xff] }
 0x953   :  { %3777 = vmatprep.subr.bf16.mxu0 %v9978_v49  ;;  %5830 = vmatprep.subr.bf16.mxu1 %v9806_v14  ;;  %v10014_v49 = vld [vmem:[#allocation13_spill] sm:$0xff] }
 0x956   :  { %3778 = vmatpush1.bf16.msra.mxu0 %v9979_v50  ;;  %5831 = vmatpush3.bf16.msra.mxu1 %v9980_v43  ;;  %v10015_v50 = vld [vmem:[#allocation14_spill] sm:$0xff]  ;;  %v10016_v43 = vld [vmem:[#allocation16_spill] sm:$0xff] }
 0x957   :  { %3779 = vmatprep.subr.bf16.mxu0 %v9981_v47  ;;  %5832 = vmatprep.subr.bf16.mxu1 %v9806_v14  ;;  %v10017_v47 = vld [vmem:[#allocation18_spill] sm:$0xff] }
 0x95a   :  { %3780 = vmatpush1.bf16.msra.mxu0 %v8775_v39  ;;  %5833 = vmatpush3.bf16.msra.mxu1 %v8781_v44  ;;  %v10018_v39 = vld [vmem:[#allocation19_spill] sm:$0xff]  ;;  %v10019_v44 = vld [vmem:[#allocation20_spill] sm:$0xff] }
 0x95b   :  { %3781 = vmatprep.subr.bf16.mxu0 %v8787_v48  ;;  %5834 = vmatprep.subr.bf16.mxu1 %v9806_v14  ;;  %v10020_v48 = vld [vmem:[#allocation21_spill] sm:$0xff] }
 0x95e   :  { %3782 = vmatpush1.bf16.msra.mxu0 %v8794_v46  ;;  %5835 = vmatpush3.bf16.msra.mxu1 %v8800_v23  ;;  %v10021_v46 = vld [vmem:[#allocation22_spill] sm:$0xff]  ;;  %v10022_v23 = vld [vmem:[#allocation23_spill] sm:$0xff] }
 0x95f   :  { %3783 = vmatprep.subr.bf16.mxu0 %v8806_v36  ;;  %5836 = vmatprep.subr.bf16.mxu1 %v9806_v14  ;;  %v10023_v36 = vld [vmem:[#allocation24_spill] sm:$0xff] }
 0x962   :  { %3784 = vmatpush1.bf16.msra.mxu0 %v8813_v19  ;;  %5837 = vmatpush3.bf16.msra.mxu1 %v8819_v41  ;;  %v10024_v19 = vld [vmem:[#allocation25_spill] sm:$0xff]  ;;  %v10025_v41 = vld [vmem:[#allocation26_spill] sm:$0xff] }
 0x963   :  { %3785 = vmatprep.subr.bf16.mxu0 %v8825_v13  ;;  %5838 = vmatprep.subr.bf16.mxu1 %v9806_v14  ;;  %v10026_v13 = vld [vmem:[#allocation27_spill] sm:$0xff] }
 0x966   :  { %3786 = vmatpush1.bf16.msra.mxu0 %v8832_v35  ;;  %5839 = vmatpush3.bf16.msra.mxu1 %v8838_v6  ;;  %v10027_v35 = vld [vmem:[#allocation28_spill] sm:$0xff]  ;;  %v10028_v6 = vld [vmem:[#allocation29_spill] sm:$0xff] }
 0x967   :  { %3787 = vmatprep.subr.bf16.mxu0 %v8844_v5  ;;  %5840 = vmatprep.subr.bf16.mxu1 %v9806_v14 }
 0x96a   :  { %3788 = vmatpush1.bf16.msra.mxu0 %v8851_v0  ;;  %5841 = vmatpush3.bf16.msra.mxu1 %v8857_v45 }
 0x96b   :  { %3891 = vmatprep.subr.bf16.mxu0 %v8863_v63  ;;  %5846 = vmatprep.subr.bf16.mxu1 %v9806_v14 }
 0x96d   :  { %3806 = vmatmul.mubr.bf16.vlgmr.msra.gmra.mxu0 %v9044_v58  ;;  %5843 = vmatmul.mubr.bf16.vlgmr.msra.gmra.mxu1 %v9044_v58 }
 0x96e   :  { %3892 = vmatpush1.bf16.msra.mxu0 %v8872_v28  ;;  %5847 = vmatpush3.bf16.msra.mxu1 %v8878_v42 }
 0x96f   :  { %3893 = vmatprep.subr.bf16.mxu0 %v8884_v34  ;;  %5848 = vmatprep.subr.bf16.mxu1 %v9806_v14 }
 0x970   :  { %3923 = vmatprep.mubr.bf16.mxu0 %v9807_v54  ;;  %5862 = vmatprep.mubr.msk.bf16.mxu1 %vm6596_vm2, %v9806_v14 }
 0x972   :  { %3894 = vmatpush1.bf16.msra.mxu0 %v10008_v52  ;;  %5849 = vmatpush3.bf16.msra.mxu1 %v10009_v59  ;;  %v10029_v59 = vld [vmem:[#allocation51_spill] sm:$0xff] }
 0x973   :  { %3895 = vmatprep.subr.bf16.mxu0 %v10010_v33  ;;  %5850 = vmatprep.subr.bf16.mxu1 %v9806_v14 }
 0x976   :  { %3896 = vmatpush1.bf16.msra.mxu0 %v10011_v20  ;;  %5851 = vmatpush3.bf16.msra.mxu1 %v10012_v31  ;;  %v10030_v20 = vld [vmem:[#allocation52_spill] sm:$0xff] }
 0x977   :  { %3897 = vmatprep.subr.bf16.mxu0 %v10013_v29  ;;  %5852 = vmatprep.subr.bf16.mxu1 %v9806_v14 }
 0x97a   :  { %3898 = vmatpush1.bf16.msra.mxu0 %v10014_v49  ;;  %5853 = vmatpush3.bf16.msra.mxu1 %v10015_v50 }
 0x97b   :  { %3899 = vmatprep.subr.bf16.mxu0 %v10016_v43  ;;  %5854 = vmatprep.subr.bf16.mxu1 %v9806_v14 }
 0x97e   :  { %3900 = vmatpush1.bf16.msra.mxu0 %v10017_v47  ;;  %5855 = vmatpush3.bf16.msra.mxu1 %v10018_v39 }
 0x97f   :  { %3901 = vmatprep.subr.bf16.mxu0 %v10019_v44  ;;  %5856 = vmatprep.subr.bf16.mxu1 %v9806_v14 }
 0x982   :  { %3902 = vmatpush1.bf16.msra.mxu0 %v10020_v48  ;;  %5857 = vmatpush3.bf16.msra.mxu1 %v10021_v46 }
 0x983   :  { %3903 = vmatprep.subr.bf16.mxu0 %v10022_v23  ;;  %5858 = vmatprep.subr.bf16.mxu1 %v9806_v14 }
 0x986   :  { %3904 = vmatpush1.bf16.msra.mxu0 %v10023_v36  ;;  %5859 = vmatpush3.bf16.msra.mxu1 %v10024_v19 }
 0x987   :  { %3905 = vmatprep.subr.bf16.mxu0 %v10025_v41  ;;  %5860 = vmatprep.subr.bf16.mxu1 %v9806_v14 }
 0x98a   :  { %3906 = vmatpush1.bf16.msra.mxu0 %v10026_v13  ;;  %5861 = vmatpush3.bf16.msra.mxu1 %v10027_v35 }
 0x98b   :  { %3973 = vmatprep.subr.bf16.mxu0 %v10028_v6  ;;  %5866 = vmatprep.subr.bf16.mxu1 %v9806_v14 }
 0x9ed   :  { %v3623_v5 = vpop.f32.mrf.mxu0  ;;  %v3664_v0 = vpop.f32.mrf.mxu1 }
 0x9ee   :  { %v3624_v33 = vadd.f32 %v3623_v5, %v10029_v59 }
 0x9ef   :  { %v3625_v45 = vpop.f32.mrf.mxu0  ;;  %v5804_v63 = vpop.f32.mrf.mxu1 }
 0x9f0   :  { %v3626_v50 = vadd.f32 %v3625_v45, %v7740_v32 }
 0x9f1   :  { %v3627_v28 = vpop.f32.mrf.mxu0  ;;  %v3667_v42 = vpop.f32.mrf.mxu1 }
 0x9f3   :  { %v3628_v34 = vpop.f32.mrf.mxu0  ;;  %v5805_v58 = vpop.f32.mrf.mxu1 }
 0xa0d   :  { %v3705_v25 = vpop.f32.mrf.mxu0  ;;  %v3746_v52 = vpop.f32.mrf.mxu1 }
 0xa0e   :  { %v3706_v31 = vadd.f32 %v3705_v25, %v10030_v20  ;;  %v3747_v34 = vadd.f32 %v3746_v52, %v9870_v12 }
 0xa0f   :  { %v3707_v29 = vpop.f32.mrf.mxu0  ;;  %v5824_v49 = vpop.f32.mrf.mxu1 }
 0xa10   :  { %v3752_v43 = vadd.f32 %v3706_v31, %v3624_v33  ;;  %v3708_v47 = vadd.f32 %v3707_v29, %v7743_v4  ;;  %v3665_v49 = vadd.f32 %v3664_v0, %v7753_v61 }
 0xa11   :  { %v3709_v39 = vpop.f32.mrf.mxu0  ;;  %v3749_v44 = vpop.f32.mrf.mxu1 }
 0xa12   :  { %v5067_v48 = vmul.f32 -1.442695, %v3752_v43  ;;  %v3759_v46 = vadd.f32 %v3708_v47, %v3626_v50 }
 0xa13   :  { %v3710_v23 = vpop.f32.mrf.mxu0  ;;  %v5825_v36 = vpop.f32.mrf.mxu1 }
 0xa14   :  { %6397 = vpow2.f32 %v5067_v48  ;;  %v5068_v19 = vmul.f32 -1.442695, %v3759_v46 }
 0xa16   :  { %6399 = vpow2.f32 %v5068_v19 }
 0xa21   :  { %v6398_v41 = vpop.eup %6397 }
 0xa22   :  { %v3756_v13 = vadd.f32 1.0, %v6398_v41 }
 0xa23   :  { %v6400_v35 = vpop.eup %6399 }
 0xa24   :  { %6401 = vrcp.f32 %v3756_v13  ;;  %v3763_v63 = vadd.f32 1.0, %v6400_v35 }
 0xa26   :  { %6403 = vrcp.f32 %v3763_v63 }
 0xa2d   :  { %v3807_v6 = vpop.f32.mrf.mxu0  ;;  %v3848_v5 = vpop.f32.mrf.mxu1 }
 0xa2e   :  { %v3808_v45 = vadd.f32 %v3807_v6, %v9831_v11  ;;  %v3849_v6 = vadd.f32 %v3848_v5, %v7487_v24  ;;  %v10031_v24 = vld [vmem:[#allocation30_spill] sm:$0xff] }
 0xa2f   :  { %v3809_v28 = vpop.f32.mrf.mxu0  ;;  %v5844_v42 = vpop.f32.mrf.mxu1  ;;  %v6222_v5 = vld [vmem:[%s9589_s11 + $0x4c] ss:$16 sps:$4 sm:$0xff]  }
 0xa30   :  { %v3855_v58 = vrot.slane %v3808_v45, 2  ;;  %v3810_v33 = vadd.f32 %v3809_v28, %v7472_v8  ;;  %v3875_v45 = vrot.slane %v3849_v6, 2 }
 0xa31   :  { %v6402_v25 = vpop.eup %6401  ;;  %v3811_v31 = vpop.f32.mrf.mxu0 }
 0xa32   :  { %v3851_v29 = vpop.f32.mrf.mxu1  ;;  %v3766_v50 = vmul.f32 %v6402_v25, %v3747_v34  ;;  %v3857_v43 = vadd.f32 %v3855_v58, %v9933_v37  ;;  %v3865_v48 = vrot.slane %v3810_v33, 2  ;;  %v3883_v58 = vrot.slane %v9040_v7, 6  ;;  %v10033_v7 = vld [vmem:[#allocation32_spill] sm:$0xff] }
 0xa33   :  { %v3812_v47 = vpop.f32.mrf.mxu0  ;;  %v6404_v23 = vpop.eup %6403 }
 0xa34   :  { %v5845_v39 = vpop.f32.mrf.mxu1  ;;  %v3767_v44 = vadd.f32 %v3766_v50, %v3665_v49  ;;  %v5069_v11 = vmul.f32 -1.442695, %v3857_v43  ;;  %v3867_v52 = vadd.f32 %v3865_v48, %v8520_v53  ;;  %v3769_v8 = vsub.f32 1.0, %v6404_v23  ;;  %v6217_v47 = vld [vmem:[%s9589_s11 + $0x40] ss:$16 sps:$4 sm:$0xff]  }
 0xa35   :  { %v3771_v41 = vmul.f32 %v6404_v23, %v9035_v10  ;;  %v6220_v39 = vld [vmem:[%s9589_s11 + $0x48] ss:$16 sps:$4 sm:$0xff]   ;;  %v6223_v48 = vld [vmem:[%s9589_s11 + $0x20] ss:$16 sps:$4 sm:$0xff]   ;;  %v6234_v23 = vld [vmem:[%s9589_s11 + $0xc] ss:$16 sps:$4 sm:$0xff]  }
 0xa36   :  { %6405 = vtanh.f32 %v3767_v44  ;;  %v5070_v46 = vmul.f32 -1.442695, %v3867_v52  ;;  %v6225_v44 = vld [vmem:[%s9589_s11 + $0x24] ss:$16 sps:$4 sm:$0xff]   ;;  %v6226_v52 = vld [vmem:[%s9589_s11 + $0x28] ss:$16 sps:$4 sm:$0xff]  }
 0xa37   :  { %6407 = vpow2.f32 %v5069_v11  ;;  %v6228_v11 = vld [vmem:[%s9589_s11 + $0x2c] ss:$16 sps:$4 sm:$0xff]  }
 0xa38   :  { %6409 = vpow2.f32 %v5070_v46  ;;  %v6231_v46 = vld [vmem:[%s9589_s11 + $0x4] ss:$16 sps:$4 sm:$0xff]  }
 0xa43   :  { %v6406_v36 = vpop.eup %6405 }
 0xa44   :  { %v6408_v19 = vpop.eup %6407  ;;  %v3770_v0 = vmul.f32 %v6406_v36, %v3769_v8  ;;  %v6229_v8 = vld [vmem:[%s9589_s11] ss:$16 sps:$4 sm:$0xff]   ;;  %v6232_v36 = vld [vmem:[%s9589_s11 + $0x8] ss:$16 sps:$4 sm:$0xff]  }
 0xa45   :  { %v3861_v13 = vadd.f32 1.0, %v6408_v19  ;;  %v6410_v35 = vpop.eup %6409  ;;  %v6235_v19 = vld [vmem:[%s9591_s13 + $0x78] sm:$0xff]  }
 0xa46   :  { %v9283_v37 = vadd.f32 %v3771_v41, %v3770_v0  ;;  %v3871_v63 = vadd.f32 1.0, %v6410_v35  ;;  %v6236_v0 = vld [vmem:[%s9591_s13 + $0xf8] sm:$0xff]  }
 0xa47   :  { %6411 = vrcp.f32 %v3861_v13 }
 0xa48   :  { %6413 = vrcp.f32 %v3871_v63 }
 0xa54   :  { %v6412_v28 = vpop.eup %6411 }
 0xa55   :  { %v3877_v53 = vmul.f32 %v6412_v28, %v3875_v45  ;;  %v6414_v34 = vpop.eup %6413 }
 0xa56   :  { %v3880_v25 = vsub.f32 1.0, %v6414_v34  ;;  %v3885_v29 = vmul.f32 %v6414_v34, %v3883_v58 }
 0xa57   :  { %v3878_v42 = vadd.f32 %v3877_v53, %v9937_v22  ;;  %v10032_v22 = vld [vmem:[#allocation31_spill] sm:$0xff] }
 0xa59   :  { %6415 = vtanh.f32 %v3878_v42 }
 0xa66   :  { %v6416_v33 = vpop.eup %6415 }
 0xa67   :  { %v3881_v31 = vmul.f32 %v6416_v33, %v3880_v25 }
 0xa69   :  { %v3886_v49 = vadd.f32 %v3885_v29, %v3881_v31 }
 0xa6b   :  { %v3887_v50 = vpack.c.bf16 %v3886_v49, %v3886_v49 }
 0xa6d   :  { %v3889_v43 = vrot.slane %v3887_v50, 3 }
 0xa6f   :  { %3924 = vmatmul.mubr.bf16.vlgmr.msra.gmra.mxu0 %v3889_v43  ;;  %5863 = vmatmul.mubr.bf16.vlgmr.msra.gmra.mxu1 %v3889_v43 }
 0xa70   :  { %3974 = vmatpush1.bf16.msra.mxu0 %v9051_v3  ;;  %5867 = vmatpush3.bf16.msra.mxu1 %v9057_v2  ;;  %v3972_v3 = vpack.c.bf16 %v9283_v37, %v9283_v37  ;;  %v6189_v2 = vld [vmem:[%s9589_s11 + $0xe4] ss:$16 sps:$4 sm:$0xff]  }
 0xa71   :  { %3975 = vmatprep.subr.bf16.mxu0 %v9063_v26  ;;  %5868 = vmatprep.subr.bf16.mxu1 %v9806_v14  ;;  %v6190_v26 = vld [vmem:[%s9589_s11 + $0xe8] ss:$16 sps:$4 sm:$0xff]  }
 0xa72   :  { %4005 = vmatprep.mubr.bf16.mxu0 %v9807_v54  ;;  %5882 = vmatprep.mubr.msk.bf16.mxu1 %vm6596_vm2, %v9806_v14 }
 0xa74   :  { %3976 = vmatpush1.bf16.msra.mxu0 %v9073_v15  ;;  %5869 = vmatpush3.bf16.msra.mxu1 %v9079_v40  ;;  %v6198_v15 = vld [vmem:[%s9589_s11 + $0xcc] ss:$16 sps:$4 sm:$0xff]   ;;  %v6193_v40 = vld [vmem:[%s9589_s11 + $0xc0] ss:$16 sps:$4 sm:$0xff]  }
 0xa75   :  { %3977 = vmatprep.subr.bf16.mxu0 %v9085_v55  ;;  %5870 = vmatprep.subr.bf16.mxu1 %v9806_v14  ;;  %v6196_v55 = vld [vmem:[%s9589_s11 + $0xc8] ss:$16 sps:$4 sm:$0xff]  }
 0xa78   :  { %3978 = vmatpush1.bf16.msra.mxu0 %v9092_v21  ;;  %5871 = vmatpush3.bf16.msra.mxu1 %v9098_v56  ;;  %v6201_v21 = vld [vmem:[%s9589_s11 + $0xa4] ss:$16 sps:$4 sm:$0xff]   ;;  %v6204_v56 = vld [vmem:[%s9589_s11 + $0xac] ss:$16 sps:$4 sm:$0xff]  }
 0xa79   :  { %3979 = vmatprep.subr.bf16.mxu0 %v9104_v60  ;;  %5872 = vmatprep.subr.bf16.mxu1 %v9806_v14  ;;  %v6199_v60 = vld [vmem:[%s9589_s11 + $0xa0] ss:$16 sps:$4 sm:$0xff]  }
 0xa7c   :  { %3980 = vmatpush1.bf16.msra.mxu0 %v9111_v17  ;;  %5873 = vmatpush3.bf16.msra.mxu1 %v9117_v1  ;;  %v6202_v17 = vld [vmem:[%s9589_s11 + $0xa8] ss:$16 sps:$4 sm:$0xff]   ;;  %v6205_v1 = vld [vmem:[%s9589_s11 + $0x80] ss:$16 sps:$4 sm:$0xff]  }
 0xa7d   :  { %3981 = vmatprep.subr.bf16.mxu0 %v9123_v51  ;;  %5874 = vmatprep.subr.bf16.mxu1 %v9806_v14  ;;  %v6207_v51 = vld [vmem:[%s9589_s11 + $0x84] ss:$16 sps:$4 sm:$0xff]  }
 0xa80   :  { %3982 = vmatpush1.bf16.msra.mxu0 %v9130_v38  ;;  %5875 = vmatpush3.bf16.msra.mxu1 %v9136_v9  ;;  %v6208_v38 = vld [vmem:[%s9589_s11 + $0x88] ss:$16 sps:$4 sm:$0xff]   ;;  %v6210_v9 = vld [vmem:[%s9589_s11 + $0x8c] ss:$16 sps:$4 sm:$0xff]  }
 0xa81   :  { %3983 = vmatprep.subr.bf16.mxu0 %v9142_v62  ;;  %5876 = vmatprep.subr.bf16.mxu1 %v9806_v14  ;;  %v6213_v62 = vld [vmem:[%s9589_s11 + $0x64] ss:$16 sps:$4 sm:$0xff]  }
 0xa84   :  { %3984 = vmatpush1.bf16.msra.mxu0 %v9149_v16  ;;  %5877 = vmatpush3.bf16.msra.mxu1 %v9155_v30  ;;  %v6216_v16 = vld [vmem:[%s9589_s11 + $0x6c] ss:$16 sps:$4 sm:$0xff]   ;;  %v6211_v30 = vld [vmem:[%s9589_s11 + $0x60] ss:$16 sps:$4 sm:$0xff]  }
 0xa85   :  { %3985 = vmatprep.subr.bf16.mxu0 %v10031_v24  ;;  %5878 = vmatprep.subr.bf16.mxu1 %v9806_v14 }
 0xa88   :  { %3986 = vmatpush1.bf16.msra.mxu0 %v10032_v22  ;;  %5879 = vmatpush3.bf16.msra.mxu1 %v10033_v7 }
 0xa89   :  { %3987 = vmatprep.subr.bf16.mxu0 %v9180_v27  ;;  %5880 = vmatprep.subr.bf16.mxu1 %v9806_v14  ;;  %v6192_v14 = vld [vmem:[%s9589_s11 + $0xec] ss:$16 sps:$4 sm:$0xff]   ;;  %v6187_v27 = vld [vmem:[%s9589_s11 + $0xe0] ss:$16 sps:$4 sm:$0xff]  }
 0xa8c   :  { %3988 = vmatpush1.bf16.msra.mxu0 %v9187_v57  ;;  %5881 = vmatpush3.bf16.msra.mxu1 %v9193_v18  ;;  %v6214_v57 = vld [vmem:[%s9589_s11 + $0x68] ss:$16 sps:$4 sm:$0xff]   ;;  %v6219_v18 = vld [vmem:[%s9589_s11 + $0x44] ss:$16 sps:$4 sm:$0xff]  }
 0xa8d   :  { %4334 = vmatprep.subr.bf16.mxu0 %v6189_v2  ;;  %4377 = vmatprep.subr.bf16.mxu1 %v6192_v14 }
 0xa8f   :  { %4006 = vmatmul.mubr.bf16.vlgmr.msra.gmra.mxu0 %v3972_v3  ;;  %5883 = vmatmul.mubr.bf16.vlgmr.msra.gmra.mxu1 %v3972_v3 }
 0xa90   :  { %4366 = vmatprep.mubr.bf16.mxu0 %v9807_v54  ;;  %4409 = vmatprep.mubr.bf16.mxu1 %v9807_v54  ;;  %v6195_v54 = vld [vmem:[%s9589_s11 + $0xc4] ss:$16 sps:$4 sm:$0xff]  }
 0xa91   :  { %4335 = vmatpush1.bf16.msra.mxu0 %v6187_v27  ;;  %4378 = vmatpush1.bf16.msra.mxu1 %v6190_v26 }
 0xa92   :  { %4336 = vmatprep.subr.bf16.mxu0 %v6195_v54  ;;  %4379 = vmatprep.subr.bf16.mxu1 %v6198_v15 }
 0xa95   :  { %4337 = vmatpush1.bf16.msra.mxu0 %v6193_v40  ;;  %4380 = vmatpush1.bf16.msra.mxu1 %v6196_v55 }
 0xa96   :  { %4338 = vmatprep.subr.bf16.mxu0 %v6201_v21  ;;  %4381 = vmatprep.subr.bf16.mxu1 %v6204_v56 }
 0xa99   :  { %4339 = vmatpush1.bf16.msra.mxu0 %v6199_v60  ;;  %4382 = vmatpush1.bf16.msra.mxu1 %v6202_v17  ;;  %v10034_v60 = vld [vmem:[#allocation45_spill] sm:$0xff] }
 0xa9a   :  { %4340 = vmatprep.subr.bf16.mxu0 %v6207_v51  ;;  %4383 = vmatprep.subr.bf16.mxu1 %v6210_v9  ;;  %v4076_v17 = vrot.slane %v10034_v60, 6  ;;  %v10035_v9 = vld [vmem:[#allocation43_spill] sm:$0xff] }
 0xa9d   :  { %4341 = vmatpush1.bf16.msra.mxu0 %v6205_v1  ;;  %4384 = vmatpush1.bf16.msra.mxu1 %v6208_v38  ;;  %v4085_v1 = vrot.slane %v9035_v10, 6 }
 0xa9e   :  { %4342 = vmatprep.subr.bf16.mxu0 %v6213_v62  ;;  %4385 = vmatprep.subr.bf16.mxu1 %v6216_v16  ;;  %v4079_v62 = vrot.slane %v10035_v9, 4 }
 0xaa1   :  { %4343 = vmatpush1.bf16.msra.mxu0 %v6211_v30  ;;  %4386 = vmatpush1.bf16.msra.mxu1 %v6214_v57 }
 0xaa2   :  { %4344 = vmatprep.subr.bf16.mxu0 %v6219_v18  ;;  %4387 = vmatprep.subr.bf16.mxu1 %v6222_v5  ;;  %v10037_v18 = vld [vmem:[#allocation38_spill] sm:$0xff] }
 0xaa3   :  { %v4094_v5 = vsel %vm4093_vm4, %v10037_v18, %v4076_v17 }
 0xaa4   :  { %v4095_v10 = vsel %vm97_vm0, %v4094_v5, %v4079_v62 }
 0xaa5   :  { %4345 = vmatpush1.bf16.msra.mxu0 %v6217_v47  ;;  %4388 = vmatpush1.bf16.msra.mxu1 %v6220_v39  ;;  %v10038_v47 = vld [vmem:[#allocation46_spill] sm:$0xff] }
 0xaa6   :  { %4346 = vmatprep.subr.bf16.mxu0 %v6225_v44  ;;  %4389 = vmatprep.subr.bf16.mxu1 %v6228_v11  ;;  %v4098_v39 = vsel %vm4093_vm4, %v10038_v47, %v4085_v1 }
 0xaa9   :  { %4347 = vmatpush1.bf16.msra.mxu0 %v6223_v48  ;;  %4390 = vmatpush1.bf16.msra.mxu1 %v6226_v52  ;;  %v6237_v48 = vld [vmem:[%s9591_s13 + $0x38] sm:$0xff]  }
 0xaaa   :  { %4348 = vmatprep.subr.bf16.mxu0 %v6231_v46  ;;  %4391 = vmatprep.subr.bf16.mxu1 %v6234_v23  ;;  %v6238_v52 = vld [vmem:[%s9591_s13 + $0xb8] sm:$0xff]   ;;  %v6239_v23 = vld [vmem:[%s9591_s13 + $0x70] sm:$0xff]  }
 0xaad   :  { %4349 = vmatpush1.bf16.msra.mxu0 %v6229_v8  ;;  %4392 = vmatpush1.bf16.msra.mxu1 %v6232_v36  ;;  %v6240_v8 = vld [vmem:[%s9591_s13 + $0xf0] sm:$0xff]  }
 0xaae   :  { %5356 = vmatprep.subr.bf16.mxu0 %v6235_v19  ;;  %5378 = vmatprep.subr.bf16.mxu1 %v6236_v0  ;;  %v6241_v36 = vld [vmem:[%s9591_s13 + $0x30] sm:$0xff]   ;;  %v6243_v0 = vld [vmem:[%s9591_s13 + $0x68] sm:$0xff]  }
 0xaaf   :  { %v6242_v19 = vld [vmem:[%s9591_s13 + $0xb0] sm:$0xff]  }
 0xb2f   :  { %v3925_v41 = vpop.f32.mrf.mxu0  ;;  %v3966_v13 = vpop.f32.mrf.mxu1 }
 0xb30   :  { %v3926_v58 = vadd.f32 %v3925_v41, %v10029_v59  ;;  %v3967_v40 = vadd.f32 %v3966_v13, %v7753_v61  ;;  %v10036_v61 = vld [vmem:[#allocation44_spill] sm:$0xff] }
 0xb31   :  { %v3927_v35 = vpop.f32.mrf.mxu0  ;;  %v5864_v6 = vpop.f32.mrf.mxu1  ;;  %v4082_v30 = vrot.slane %v10036_v61, 2  ;;  %v6244_v41 = vld [vmem:[%s9591_s13 + $0xe8] sm:$0xff]   ;;  %v10043_v61 = vld [vmem:[#allocation5_spill] sm:$0xff] }
 0xb32   :  { %v3928_v3 = vadd.f32 %v3927_v35, %v7740_v32  ;;  %v6245_v13 = vld [vmem:[%s9591_s13 + $0x28] sm:$0xff]   ;;  %v6247_v6 = vld [vmem:[%s9591_s13 + $0x60] sm:$0xff]  }
 0xb33   :  { %v3929_v63 = vpop.f32.mrf.mxu0  ;;  %v3969_v45 = vpop.f32.mrf.mxu1  ;;  %v4097_v11 = vsel %vm4096_vm5, %v4095_v10, %v4082_v30  ;;  %v6246_v35 = vld [vmem:[%s9591_s13 + $0xa8] sm:$0xff]   ;;  %v4444_v30 = vsub.s32 3, %v10043_v61 }
 0xb34   :  { %v6248_v63 = vld [vmem:[%s9591_s13 + $0xe0] sm:$0xff]  }
 0xb35   :  { %v3930_v28 = vpop.f32.mrf.mxu0  ;;  %v5865_v53 = vpop.f32.mrf.mxu1  ;;  %v6249_v45 = vld [vmem:[%s9591_s13 + $0x20] sm:$0xff]  }
 0xb36   :  { %v6250_v28 = vld [vmem:[%s9591_s13 + $0xa0] sm:$0xff]   ;;  %v6251_v53 = vld [vmem:[%s9591_s13 + $0x58] sm:$0xff]  }
 0xb4f   :  { %v4007_v42 = vpop.f32.mrf.mxu0  ;;  %v4048_v34 = vpop.f32.mrf.mxu1 }
 0xb50   :  { %v4008_v25 = vadd.f32 %v4007_v42, %v10030_v20  ;;  %v4049_v54 = vadd.f32 %v4048_v34, %v9870_v12  ;;  %v4088_v12 = vrot.slane %v9283_v37, 4  ;;  %v6252_v42 = vld [vmem:[%s9591_s13 + $0xd8] sm:$0xff]  }
 0xb51   :  { %v4009_v33 = vpop.f32.mrf.mxu0  ;;  %v5884_v31 = vpop.f32.mrf.mxu1  ;;  %v6253_v34 = vld [vmem:[%s9591_s13 + $0x18] sm:$0xff]  }
 0xb52   :  { %v4054_v29 = vadd.f32 %v4008_v25, %v3926_v58  ;;  %v4010_v24 = vadd.f32 %v4009_v33, %v7743_v4  ;;  %v4099_v44 = vsel %vm97_vm0, %v4098_v39, %v4088_v12  ;;  %v6254_v58 = vld [vmem:[%s9591_s13 + $0x98] sm:$0xff]   ;;  %v6255_v25 = vld [vmem:[%s9591_s13 + $0x50] sm:$0xff]   ;;  %v4428_v39 = vld [vmem:[%s9590_s12] sm:$0xf] }
 0xb53   :  { %v4011_v49 = vpop.f32.mrf.mxu0  ;;  %v4051_v50 = vpop.f32.mrf.mxu1  ;;  %v6256_v33 = vld [vmem:[%s9591_s13 + $0xd0] sm:$0xff]  }
 0xb54   :  { %v5071_v43 = vmul.f32 -1.442695, %v4054_v29  ;;  %v4061_v2 = vadd.f32 %v4010_v24, %v3928_v3  ;;  %v6257_v31 = vld [vmem:[%s9591_s13 + $0x10] sm:$0xff]   ;;  %v6259_v49 = vld [vmem:[%s9591_s13 + $0x48] sm:$0xff]   ;;  %v6265_v3 = vld [vmem:[%s9591_s13] sm:$0xff]  }
 0xb55   :  { %v4012_v22 = vpop.f32.mrf.mxu0  ;;  %v5885_v7 = vpop.f32.mrf.mxu1  ;;  %v6258_v29 = vld [vmem:[%s9591_s13 + $0x90] sm:$0xff]   ;;  %v6260_v50 = vld [vmem:[%s9591_s13 + $0xc8] sm:$0xff]  }
 0xb56   :  { %6417 = vpow2.f32 %v5071_v43  ;;  %v5072_v14 = vmul.f32 -1.442695, %v4061_v2  ;;  %v6261_v43 = vld [vmem:[%s9591_s13 + $0x8] sm:$0xff]   ;;  %v6263_v22 = vld [vmem:[%s9591_s13 + $0x40] sm:$0xff]  }
 0xb57   :  { %v6262_v24 = vld [vmem:[%s9591_s13 + $0x88] sm:$0xff]   ;;  %v6264_v7 = vld [vmem:[%s9591_s13 + $0xc0] sm:$0xff]  }
 0xb58   :  { %6419 = vpow2.f32 %v5072_v14  ;;  %v6266_v2 = vld [vmem:[%s9591_s13 + $0x80] sm:$0xff]  }
 0xb59   :  { %v10039_v14 = vld [vmem:[#allocation15_spill] sm:$0xff] }
 0xb63   :  { %v6418_v27 = vpop.eup %6417 }
 0xb64   :  { %v4058_v59 = vadd.f32 1.0, %v6418_v27  ;;  %v4106_v27 = vrot.slane %v10039_v14, 6 }
 0xb65   :  { %v6420_v20 = vpop.eup %6419 }
 0xb66   :  { %6421 = vrcp.f32 %v4058_v59  ;;  %v4065_v26 = vadd.f32 1.0, %v6420_v20  ;;  %v10040_v59 = vld [vmem:[#allocation17_spill] sm:$0xff] }
 0xb67   :  { %v4107_v20 = vrot.slane %v10040_v59, 6  ;;  %v4123_v5 = vrot.slane %v10040_v59, 2 }
 0xb68   :  { %6423 = vrcp.f32 %v4065_v26  ;;  %v10041_v26 = vld [vmem:[#allocation36_spill] sm:$0xff] }
 0xb69   :  { %v4131_v17 = vsel %vm4093_vm4, %v10040_v59, %v4107_v20  ;;  %v4124_v9 = vrot.slane %v10041_v26, 2 }
 0xb73   :  { %v6422_v15 = vpop.eup %6421 }
 0xb74   :  { %v4068_v55 = vmul.f32 %v6422_v15, %v4049_v54  ;;  %v4108_v54 = vrot.slane %v10041_v26, 6  ;;  %v10042_v15 = vld [vmem:[#allocation37_spill] sm:$0xff] }
 0xb75   :  { %v6424_v21 = vpop.eup %6423  ;;  %v4125_v47 = vrot.slane %v10042_v15, 2 }
 0xb76   :  { %v4069_v4 = vadd.f32 %v4068_v55, %v3967_v40  ;;  %v4071_v32 = vsub.f32 1.0, %v6424_v21  ;;  %v4073_v38 = vmul.f32 %v6424_v21, %v9283_v37  ;;  %v4109_v40 = vrot.slane %v10042_v15, 6 }
 0xb77   :  { %v4114_v55 = vrot.slane %v10039_v14, 4  ;;  %v4116_v21 = vrot.slane %v10041_v26, 4  ;;  %v4132_v60 = vsel %vm4093_vm4, %v10041_v26, %v4108_v54 }
 0xb78   :  { %6425 = vtanh.f32 %v4069_v4  ;;  %v4130_v4 = vsel %vm4093_vm4, %v10039_v14, %v4106_v27  ;;  %v4133_v1 = vsel %vm4093_vm4, %v10042_v15, %v4109_v40 }
 0xb79   :  { %v4136_v62 = vsel %vm97_vm0, %v4132_v60, %v4116_v21 }
 0xb85   :  { %v6426_v56 = vpop.eup %6425 }
 0xb86   :  { %v4072_v51 = vmul.f32 %v6426_v56, %v4071_v32  ;;  %v4115_v32 = vrot.slane %v10040_v59, 4  ;;  %v4117_v56 = vrot.slane %v10042_v15, 4 }
 0xb88   :  { %v4074_v16 = vadd.f32 %v4073_v38, %v4072_v51  ;;  %v4122_v51 = vrot.slane %v10039_v14, 2  ;;  %v4134_v38 = vsel %vm97_vm0, %v4130_v4, %v4114_v55  ;;  %v4135_v12 = vsel %vm97_vm0, %v4131_v17, %v4115_v32 }
 0xb8a   :  { %v4091_v57 = vrot.slane %v4074_v16, 2  ;;  %v4137_v16 = vsel %vm97_vm0, %v4133_v1, %v4117_v56  ;;  %v4138_v10 = vsel %vm4096_vm5, %v4134_v38, %v4122_v51  ;;  %v5105_v56 = vld [vmem:[%s9592_s14] ss:$0 sm:$0xff]  ;;  %s6571_s14 = scalar_lea.vmem %s4824_s29, 256 }
 0xb8b   :  { %p6572_p0 = scmp.ne.s32.totalorder %s4824_s29, %s6571_s14  ;;  %p6577_p2 = scmp.lt.s32.totalorder %s6571_s14, %s6571_s14 }
 0xb8c   :  { %v4100_v37 = vsel %vm4096_vm5, %v4099_v44, %v4091_v57  ;;  %v4140_v44 = vsel %vm4096_vm5, %v4136_v62, %v4124_v9 }
 0xb8d   :  { %v4101_v46 = vpack.c.bf16 %v4100_v37, %v4097_v11  ;;  %v4139_v11 = vsel %vm4096_vm5, %v4135_v12, %v4123_v5  ;;  %p6578_p3 = por %p6577_p2, %p6576_p1 }
 0xb8f   :  { %4367 = vmatmul.mubr.bf16.vlgmr.msra.gmra.mxu0 %v4101_v46  ;;  %4410 = vmatmul.mubr.bf16.vlgmr.msra.gmra.mxu1 %v4101_v46  ;;  %p6579_p4 = pnand %p6578_p3, %p6572_p0 }
 0xb90   :  { %5357 = vmatpush3.bf16.msra.mxu0 %v6237_v48  ;;  %5379 = vmatpush3.bf16.msra.mxu1 %v6238_v52  ;;  %v4141_v48 = vsel %vm4096_vm5, %v4137_v16, %v4125_v47 }
 0xb91   :  { %5358 = vmatprep.subr.bf16.mxu0 %v6239_v23  ;;  %5380 = vmatprep.subr.bf16.mxu1 %v6240_v8  ;;  %v10044_v23 = vld [vmem:[#allocation39_spill] sm:$0xff] }
 0xb92   :  { %v4437_v8 = vrot.slane %v4428_v39, %v10044_v23 }
 0xb94   :  { %5359 = vmatpush3.bf16.msra.mxu0 %v6241_v36  ;;  %5381 = vmatpush3.bf16.msra.mxu1 %v6242_v19  ;;  %v4445_v19 = vrot.slane %v4428_v39, %v4444_v30 }
 0xb95   :  { %5360 = vmatprep.subr.bf16.mxu0 %v6243_v0  ;;  %5382 = vmatprep.subr.bf16.mxu1 %v6244_v41  ;;  %v10045_v41 = vld [vmem:[#allocation7_spill] sm:$0xff] }
 0xb98   :  { %5361 = vmatpush3.bf16.msra.mxu0 %v6245_v13  ;;  %5383 = vmatpush3.bf16.msra.mxu1 %v6246_v35  ;;  %v4433_v13 = vrot.slane %v4428_v39, %v10045_v41 }
 0xb99   :  { %5362 = vmatprep.subr.bf16.mxu0 %v6247_v6  ;;  %5384 = vmatprep.subr.bf16.mxu1 %v6248_v63  ;;  %v10046_v6 = vld [vmem:[#allocation6_spill] sm:$0xff] }
 0xb9a   :  { %v4441_v63 = vrot.slane %v4428_v39, %v10046_v6 }
 0xb9c   :  { %5363 = vmatpush3.bf16.msra.mxu0 %v6249_v45  ;;  %5385 = vmatpush3.bf16.msra.mxu1 %v6250_v28 }
 0xb9d   :  { %5364 = vmatprep.subr.bf16.mxu0 %v6251_v53  ;;  %5386 = vmatprep.subr.bf16.mxu1 %v6252_v42 }
 0xba0   :  { %5365 = vmatpush3.bf16.msra.mxu0 %v6253_v34  ;;  %5387 = vmatpush3.bf16.msra.mxu1 %v6254_v58 }
 0xba1   :  { %5366 = vmatprep.subr.bf16.mxu0 %v6255_v25  ;;  %5388 = vmatprep.subr.bf16.mxu1 %v6256_v33 }
 0xba4   :  { %5367 = vmatpush3.bf16.msra.mxu0 %v6257_v31  ;;  %5389 = vmatpush3.bf16.msra.mxu1 %v6258_v29 }
 0xba5   :  { %5368 = vmatprep.subr.bf16.mxu0 %v6259_v49  ;;  %5390 = vmatprep.subr.bf16.mxu1 %v6260_v50 }
 0xba8   :  { %5369 = vmatpush3.bf16.msra.mxu0 %v6261_v43  ;;  %5391 = vmatpush3.bf16.msra.mxu1 %v6262_v24 }
 0xba9   :  { %5370 = vmatprep.subr.bf16.mxu0 %v6263_v22  ;;  %5392 = vmatprep.subr.bf16.mxu1 %v6264_v7 }
 0xbac   :  { %5371 = vmatpush3.bf16.msra.mxu0 %v6265_v3  ;;  %5393 = vmatpush3.bf16.msra.mxu1 %v6266_v2 }
 0xc4f   :  { %v4368_v57 = vpop.f32.mrf.mxu0  ;;  %v4411_v18 = vpop.f32.mrf.mxu1 }
 0xc50   :  { %v4420_v0 = vadd.f32 %v4368_v57, %v4138_v10  ;;  %v4422_v35 = vadd.f32 %v4411_v18, %v4140_v44 }
 0xc51   :  { %v4370_v37 = vpop.f32.mrf.mxu0  ;;  %v4413_v52 = vpop.f32.mrf.mxu1 }
 0xc52   :  { %v4421_v46 = vadd.f32 %v4370_v37, %v4139_v11  ;;  %v4423_v36 = vadd.f32 %v4413_v52, %v4141_v48  ;;  %v4450_v49 = vadd.f32 %v4433_v13, %v4420_v0  ;;  %v4452_v50 = vadd.f32 %v4441_v63, %v4422_v35 }
 0xc53   :  { %v4372_v45 = vpop.f32.mrf.mxu0  ;;  %v4415_v28 = vpop.f32.mrf.mxu1 }
 0xc54   :  { %v4424_v53 = vadd.f32 %v4372_v45, %v4138_v10  ;;  %v4426_v42 = vadd.f32 %v4415_v28, %v4140_v44  ;;  %v4451_v25 = vadd.f32 %v4437_v8, %v4421_v46  ;;  %v4453_v33 = vadd.f32 %v4445_v19, %v4423_v36 }
 0xc55   :  { %v4374_v34 = vpop.f32.mrf.mxu0  ;;  %v4417_v58 = vpop.f32.mrf.mxu1  ;;  %v4458_v26 = vmax.f32 %v4450_v49, 0.0  ;;  %v4460_v54 = vmax.f32 %v4452_v50, 0.0 }
 0xc56   :  { %v4425_v31 = vadd.f32 %v4374_v34, %v4139_v11  ;;  %v4427_v29 = vadd.f32 %v4417_v58, %v4141_v48  ;;  %v4454_v43 = vadd.f32 %v4433_v13, %v4424_v53  ;;  %v4456_v24 = vadd.f32 %v4441_v63, %v4426_v42 }
 0xc57   :  { %v4459_v14 = vmax.f32 %v4451_v25, 0.0  ;;  %v4461_v27 = vmax.f32 %v4453_v33, 0.0 }
 0xc58   :  { %v4455_v22 = vadd.f32 %v4437_v8, %v4425_v31  ;;  %v4457_v7 = vadd.f32 %v4445_v19, %v4427_v29  ;;  %v4462_v3 = vmax.f32 %v4454_v43, 0.0  ;;  %v4464_v2 = vmax.f32 %v4456_v24, 0.0 }
 0xc5a   :  { %v4463_v59 = vmax.f32 %v4455_v22, 0.0  ;;  %v4465_v20 = vmax.f32 %v4457_v7, 0.0  ;;  %v4466_v55 = vpack.c.bf16 %v4462_v3, %v4458_v26  ;;  %v4468_v4 = vpack.c.bf16 %v4464_v2, %v4460_v54 }
 0xc5c   :  { %v4467_v15 = vpack.c.bf16 %v4463_v59, %v4459_v14  ;;  %v4469_v40 = vpack.c.bf16 %v4465_v20, %v4461_v27 }
 0xc5e   :  { %4765 = vmatprep.mubr.bf16.mxu0 %v4467_v15  ;;  %4806 = vmatprep.mubr.bf16.mxu1 %v4469_v40 }
 0xc5f   :  { %4766 = vmatmul.mubr.bf16.vlgmr.msra.gmra.mxu0 %v4466_v55  ;;  %4807 = vmatmul.mubr.bf16.vlgmr.msra.gmra.mxu1 %v4468_v4 }
 0xd1f   :  { %v5372_v21 = vpop.f32.mrf.mxu0  ;;  %v5394_v32 = vpop.f32.mrf.mxu1 }
 0xd21   :  { %v5373_v60 = vpop.f32.mrf.mxu0  ;;  %v5395_v17 = vpop.f32.mrf.mxu1 }
 0xd22   :  { %v5374_v1 = vadd.f32 %v5373_v60, %v5372_v21  ;;  %v5396_v62 = vadd.f32 %v5395_v17, %v5394_v32 }
 0xd23   :  { %v5375_v51 = vpop.f32.mrf.mxu0  ;;  %v5397_v38 = vpop.f32.mrf.mxu1 }
 0xd24   :  { %v4768_v9 = vadd.f32 %v5374_v1, %v5105_v56 }
 0xd25   :  { %v5376_v12 = vpop.f32.mrf.mxu0  ;;  %v5398_v16 = vpop.f32.mrf.mxu1 }
 0xd26   :  { %v4809_v61 = vadd.f32 %v5396_v62, %v4768_v9  ;;  %v5377_v30 = vadd.f32 %v5376_v12, %v5375_v51  ;;  %v5399_v18 = vadd.f32 %v5398_v16, %v5397_v38 }
 0xd28   :  { %4816 = vst.msk [vmem:[#allocation2] sm:$0xff] %vm4815_vm6, %v4809_v61  ;;  %v4771_v57 = vadd.f32 %v5377_v30, %v5105_v56 }
 0xd2a   :  { %v4812_v5 = vadd.f32 %v5399_v18, %v4771_v57 }
 0xd2c   :  { %4817 = vst.msk [vmem:[#allocation2 + $0x8] sm:$0xff] %vm4815_vm6, %v4812_v5 }
 0xd2d   :  { %6582 = shalt.err (!%p6579_p4)
}
 0xd2e   :  { %s6599_s30 = smov 128   ;;  %s6600_s7 = smov 8  }
 0xd2f   :  { %4829 = dma.vmem_to_hbm [thread:$0]  %s4824_s29, 256, %s9593_s15, [#allocation3], %s6599_s30, %s6599_s30, %s6600_s7  }
 0xd30   :  { %6591 = dma.done.wait [#allocation3], 256  }
 0xd31   :  { %6592 = vsyncadd [#allocation3], 4294967040 }
 0xd32   :  { %4833 = vsyncpa [#allocation3], 1 }

// kernel: luxrnet_forward.6
= control target key start
LH: loop header
LB: loop body
LE: loop exit
PB: predicated region body
PF: predicated region fallthrough
CT: control target
= control target key end

     0   :  { %v821_v36 = vlaneseq  ;;  %v8145_v37 = vmov 1966171168   ;;  %s10851_s1 = inlined_call_operand.vmem [shape: bf16[3200,512], index: 1, kind: input, shape index: {}]   ;;  %s10852_s0 = inlined_call_operand.vmem [shape: bf16[2,3200], index: 0, kind: input, shape index: {}]   ;;  %s10853_s2 = inlined_call_operand.vmem [shape: f32[1,512], index: 2, kind: input, shape index: {}]   ;;  %s10854_s3 = inlined_call_operand.vmem [shape: bf16[2,512], index: 3, kind: output, shape index: {}]  }
   0x1   :  { %v6941_v0 = vld [vmem:[%s10851_s1 + $0xe4] ss:$16 sps:$4 sm:$0xff]   ;;  %v6945_v2 = vld [vmem:[%s10851_s1 + $0xe0] ss:$16 sps:$4 sm:$0xff]   ;;  %v847_v38 = vunpack.c.l.s4 %v8145_v37 }
   0x2   :  { %v6943_v1 = vld [vmem:[%s10851_s1 + $0x2e4] ss:$16 sps:$4 sm:$0xff]   ;;  %5031 = vmatprep.subr.bf16.mxu0 %v6941_v0  ;;  %v6946_v3 = vld [vmem:[%s10851_s1 + $0x2e0] ss:$16 sps:$4 sm:$0xff]   ;;  %v8284_v42 = vshrl.u32 %v821_v36, 7 }
   0x3   :  { %5072 = vmatprep.subr.bf16.mxu1 %v6943_v1  ;;  %v6947_v4 = vld [vmem:[%s10851_s1 + $0xc4] ss:$16 sps:$4 sm:$0xff]   ;;  %5032 = vmatpush1.bf16.msra.mxu0 %v6945_v2  ;;  %v6951_v6 = vld [vmem:[%s10851_s1 + $0xc0] ss:$16 sps:$4 sm:$0xff]   ;;  %v848_v43 = vunpack.c.0.s8 %v847_v38 }
   0x4   :  { %5073 = vmatpush1.bf16.msra.mxu1 %v6946_v3  ;;  %v6949_v5 = vld [vmem:[%s10851_s1 + $0x2c4] ss:$16 sps:$4 sm:$0xff]   ;;  %5033 = vmatprep.subr.bf16.mxu0 %v6947_v4  ;;  %v6952_v7 = vld [vmem:[%s10851_s1 + $0x2c0] ss:$16 sps:$4 sm:$0xff]  }
   0x5   :  { %5074 = vmatprep.subr.bf16.mxu1 %v6949_v5  ;;  %v6953_v8 = vld [vmem:[%s10851_s1 + $0xa4] ss:$16 sps:$4 sm:$0xff]   ;;  %v6957_v10 = vld [vmem:[%s10851_s1 + $0xa0] ss:$16 sps:$4 sm:$0xff]   ;;  %v8302_v49 = vsub.s32 %v848_v43, %v8284_v42 }
   0x6   :  { %v6955_v9 = vld [vmem:[%s10851_s1 + $0x2a4] ss:$16 sps:$4 sm:$0xff]   ;;  %v6958_v11 = vld [vmem:[%s10851_s1 + $0x2a0] ss:$16 sps:$4 sm:$0xff]  }
   0x7   :  { %5034 = vmatpush1.bf16.msra.mxu0 %v6951_v6  ;;  %v6959_v12 = vld [vmem:[%s10851_s1 + $0x84] ss:$16 sps:$4 sm:$0xff]   ;;  %v6963_v14 = vld [vmem:[%s10851_s1 + $0x80] ss:$16 sps:$4 sm:$0xff]  }
   0x8   :  { %5075 = vmatpush1.bf16.msra.mxu1 %v6952_v7  ;;  %5035 = vmatprep.subr.bf16.mxu0 %v6953_v8  ;;  %v6961_v13 = vld [vmem:[%s10851_s1 + $0x284] ss:$16 sps:$4 sm:$0xff]   ;;  %v6964_v15 = vld [vmem:[%s10851_s1 + $0x280] ss:$16 sps:$4 sm:$0xff]  }
   0x9   :  { %5076 = vmatprep.subr.bf16.mxu1 %v6955_v9  ;;  %v6965_v16 = vld [vmem:[%s10851_s1 + $0x64] ss:$16 sps:$4 sm:$0xff]   ;;  %v6969_v18 = vld [vmem:[%s10851_s1 + $0x60] ss:$16 sps:$4 sm:$0xff]  }
   0xa   :  { %v6967_v17 = vld [vmem:[%s10851_s1 + $0x264] ss:$16 sps:$4 sm:$0xff]   ;;  %v6970_v19 = vld [vmem:[%s10851_s1 + $0x260] ss:$16 sps:$4 sm:$0xff]  }
   0xb   :  { %5036 = vmatpush1.bf16.msra.mxu0 %v6957_v10  ;;  %v6971_v20 = vld [vmem:[%s10851_s1 + $0x44] ss:$16 sps:$4 sm:$0xff]   ;;  %v6975_v22 = vld [vmem:[%s10851_s1 + $0x40] ss:$16 sps:$4 sm:$0xff]  }
   0xc   :  { %5077 = vmatpush1.bf16.msra.mxu1 %v6958_v11  ;;  %5037 = vmatprep.subr.bf16.mxu0 %v6959_v12  ;;  %v6973_v21 = vld [vmem:[%s10851_s1 + $0x244] ss:$16 sps:$4 sm:$0xff]   ;;  %v6976_v23 = vld [vmem:[%s10851_s1 + $0x240] ss:$16 sps:$4 sm:$0xff]  }
   0xd   :  { %5078 = vmatprep.subr.bf16.mxu1 %v6961_v13  ;;  %v6977_v24 = vld [vmem:[%s10851_s1 + $0x24] ss:$16 sps:$4 sm:$0xff]   ;;  %v6981_v26 = vld [vmem:[%s10851_s1 + $0x20] ss:$16 sps:$4 sm:$0xff]  }
   0xe   :  { %v6979_v25 = vld [vmem:[%s10851_s1 + $0x224] ss:$16 sps:$4 sm:$0xff]   ;;  %v6982_v27 = vld [vmem:[%s10851_s1 + $0x220] ss:$16 sps:$4 sm:$0xff]  }
   0xf   :  { %5038 = vmatpush1.bf16.msra.mxu0 %v6963_v14  ;;  %v6983_v28 = vld [vmem:[%s10851_s1 + $0x4] ss:$16 sps:$4 sm:$0xff]   ;;  %v6987_v30 = vld [vmem:[%s10851_s1] ss:$16 sps:$4 sm:$0xff]  }
  0x10   :  { %5079 = vmatpush1.bf16.msra.mxu1 %v6964_v15  ;;  %5039 = vmatprep.subr.bf16.mxu0 %v6965_v16  ;;  %v6985_v29 = vld [vmem:[%s10851_s1 + $0x204] ss:$16 sps:$4 sm:$0xff]   ;;  %v6988_v31 = vld [vmem:[%s10851_s1 + $0x200] ss:$16 sps:$4 sm:$0xff]  }
  0x11   :  { %5080 = vmatprep.subr.bf16.mxu1 %v6967_v17  ;;  %v6989_v32 = vld [vmem:[%s10851_s1 + $0x1e4] ss:$16 sps:$4 sm:$0xff]   ;;  %v6993_v34 = vld [vmem:[%s10851_s1 + $0x1e0] ss:$16 sps:$4 sm:$0xff]  }
  0x12   :  { %v6991_v33 = vld [vmem:[%s10851_s1 + $0x3e4] ss:$16 sps:$4 sm:$0xff]   ;;  %v6994_v35 = vld [vmem:[%s10851_s1 + $0x3e0] ss:$16 sps:$4 sm:$0xff]  }
  0x13   :  { %5040 = vmatpush1.bf16.msra.mxu0 %v6969_v18  ;;  %v6995_v39 = vld [vmem:[%s10851_s1 + $0x1c4] ss:$16 sps:$4 sm:$0xff]   ;;  %v6999_v41 = vld [vmem:[%s10851_s1 + $0x1c0] ss:$16 sps:$4 sm:$0xff]  }
  0x14   :  { %5081 = vmatpush1.bf16.msra.mxu1 %v6970_v19  ;;  %5041 = vmatprep.subr.bf16.mxu0 %v6971_v20  ;;  %v6997_v40 = vld [vmem:[%s10851_s1 + $0x3c4] ss:$16 sps:$4 sm:$0xff]   ;;  %v7000_v44 = vld [vmem:[%s10851_s1 + $0x3c0] ss:$16 sps:$4 sm:$0xff]  }
  0x15   :  { %5082 = vmatprep.subr.bf16.mxu1 %v6973_v21  ;;  %v7001_v45 = vld [vmem:[%s10851_s1 + $0x1a4] ss:$16 sps:$4 sm:$0xff]   ;;  %v7005_v47 = vld [vmem:[%s10851_s1 + $0x1a0] ss:$16 sps:$4 sm:$0xff]  }
  0x16   :  { %v7003_v46 = vld [vmem:[%s10851_s1 + $0x3a4] ss:$16 sps:$4 sm:$0xff]   ;;  %v7006_v48 = vld [vmem:[%s10851_s1 + $0x3a0] ss:$16 sps:$4 sm:$0xff]  }
  0x17   :  { %5042 = vmatpush1.bf16.msra.mxu0 %v6975_v22  ;;  %v7007_v50 = vld [vmem:[%s10851_s1 + $0x184] ss:$16 sps:$4 sm:$0xff]   ;;  %v7011_v53 = vld [vmem:[%s10851_s1 + $0x180] ss:$16 sps:$4 sm:$0xff]  }
  0x18   :  { %5083 = vmatpush1.bf16.msra.mxu1 %v6976_v23  ;;  %5043 = vmatprep.subr.bf16.mxu0 %v6977_v24  ;;  %v7009_v51 = vld [vmem:[%s10851_s1 + $0x384] ss:$16 sps:$4 sm:$0xff]   ;;  %v7012_v55 = vld [vmem:[%s10851_s1 + $0x380] ss:$16 sps:$4 sm:$0xff]  }
  0x19   :  { %5084 = vmatprep.subr.bf16.mxu1 %v6979_v25  ;;  %v15_v52 = vld [vmem:[%s10852_s0] sm:$0xff] }
  0x1a   :  { %v852_v54 = vrot.slane %v15_v52, %v8302_v49  ;;  %v7013_v56 = vld [vmem:[%s10851_s1 + $0x164] ss:$16 sps:$4 sm:$0xff]   ;;  %v7017_v59 = vld [vmem:[%s10851_s1 + $0x160] ss:$16 sps:$4 sm:$0xff]   ;;  %v845_v1 = vcombine.high %v15_v52, %v15_v52 }
  0x1b   :  { %5044 = vmatpush1.bf16.msra.mxu0 %v6981_v26  ;;  %v7015_v57 = vld [vmem:[%s10851_s1 + $0x364] ss:$16 sps:$4 sm:$0xff]   ;;  %v7018_v61 = vld [vmem:[%s10851_s1 + $0x360] ss:$16 sps:$4 sm:$0xff]  }
  0x1c   :  { %5085 = vmatpush1.bf16.msra.mxu1 %v6982_v27  ;;  %5045 = vmatprep.subr.bf16.mxu0 %v6983_v28  ;;  %v860_v58 = vcombine.high %v852_v54, %v852_v54  ;;  %v7019_v62 = vld [vmem:[%s10851_s1 + $0x144] ss:$16 sps:$4 sm:$0xff]   ;;  %v7023_v2 = vld [vmem:[%s10851_s1 + $0x140] ss:$16 sps:$4 sm:$0xff]   ;;  %v8360_v6 = vrot.slane %v845_v1, %v8302_v49  ;;  %v8380_v13 = vrot.slane %v852_v54, %v8302_v49 }
  0x1d   :  { %5086 = vmatprep.subr.bf16.mxu1 %v6985_v29  ;;  %v7021_v63 = vld [vmem:[%s10851_s1 + $0x344] ss:$16 sps:$4 sm:$0xff]   ;;  %v7024_v3 = vld [vmem:[%s10851_s1 + $0x340] ss:$16 sps:$4 sm:$0xff]  }
  0x1e   :  { %v8330_v60 = vrot.slane %v860_v58, %v8302_v49  ;;  %v7025_v4 = vld [vmem:[%s10851_s1 + $0x124] ss:$16 sps:$4 sm:$0xff]   ;;  %v7029_v7 = vld [vmem:[%s10851_s1 + $0x120] ss:$16 sps:$4 sm:$0xff]   ;;  %v861_v11 = vcombine.high %v8360_v6, %v8360_v6  ;;  %v8396_v18 = vcombine.high %v8380_v13, %v8380_v13 }
  0x1f   :  { %5046 = vmatpush1.bf16.msra.mxu0 %v6987_v30  ;;  %v7027_v5 = vld [vmem:[%s10851_s1 + $0x324] ss:$16 sps:$4 sm:$0xff]   ;;  %v7030_v8 = vld [vmem:[%s10851_s1 + $0x320] ss:$16 sps:$4 sm:$0xff]  }
  0x20   :  { %5087 = vmatpush1.bf16.msra.mxu1 %v6988_v31  ;;  %5047 = vmatprep.subr.bf16.mxu0 %v6989_v32  ;;  %v8343_v0 = vcombine.high %v8330_v60, %v8330_v60  ;;  %v7031_v9 = vld [vmem:[%s10851_s1 + $0x104] ss:$16 sps:$4 sm:$0xff]   ;;  %v7035_v12 = vld [vmem:[%s10851_s1 + $0x100] ss:$16 sps:$4 sm:$0xff]   ;;  %v8392_v17 = vrot.slane %v861_v11, %v8302_v49 }
  0x21   :  { %5088 = vmatprep.subr.bf16.mxu1 %v6991_v33  ;;  %5063 = vmatprep.mubr.bf16.mxu0 %v8330_v60  ;;  %v7033_v10 = vld [vmem:[%s10851_s1 + $0x304] ss:$16 sps:$4 sm:$0xff]   ;;  %v7036_v14 = vld [vmem:[%s10851_s1 + $0x300] ss:$16 sps:$4 sm:$0xff]  }
  0x22   :  { %5104 = vmatprep.mubr.bf16.mxu1 %v8343_v0  ;;  %v7039_v15 = vld [vmem:[%s10851_s1 + $0x4e4] ss:$16 sps:$4 sm:$0xff]   ;;  %v7037_v19 = vld [vmem:[%s10851_s1 + $0x4e0] ss:$16 sps:$4 sm:$0xff]   ;;  %v8412_v23 = vcombine.high %v8392_v17, %v8392_v17 }
  0x23   :  { %5048 = vmatpush2.bf16.msra.mxu0 %v6993_v34  ;;  %v7042_v16 = vld [vmem:[%s10851_s1 + $0x6e4] ss:$16 sps:$4 sm:$0xff]   ;;  %v7040_v20 = vld [vmem:[%s10851_s1 + $0x6e0] ss:$16 sps:$4 sm:$0xff]  }
  0x24   :  { %5089 = vmatpush2.bf16.msra.mxu1 %v6994_v35  ;;  %5049 = vmatprep.subr.bf16.mxu0 %v6995_v39  ;;  %v7045_v21 = vld [vmem:[%s10851_s1 + $0x4c4] ss:$16 sps:$4 sm:$0xff]   ;;  %v7043_v24 = vld [vmem:[%s10851_s1 + $0x4c0] ss:$16 sps:$4 sm:$0xff]  }
  0x25   :  { %5090 = vmatprep.subr.bf16.mxu1 %v6997_v40  ;;  %v7048_v22 = vld [vmem:[%s10851_s1 + $0x6c4] ss:$16 sps:$4 sm:$0xff]   ;;  %v7046_v25 = vld [vmem:[%s10851_s1 + $0x6c0] ss:$16 sps:$4 sm:$0xff]  }
  0x26   :  { %v7051_v26 = vld [vmem:[%s10851_s1 + $0x4a4] ss:$16 sps:$4 sm:$0xff]   ;;  %v7049_v28 = vld [vmem:[%s10851_s1 + $0x4a0] ss:$16 sps:$4 sm:$0xff]  }
  0x27   :  { %5050 = vmatpush2.bf16.msra.mxu0 %v6999_v41  ;;  %v7054_v27 = vld [vmem:[%s10851_s1 + $0x6a4] ss:$16 sps:$4 sm:$0xff]   ;;  %v7052_v29 = vld [vmem:[%s10851_s1 + $0x6a0] ss:$16 sps:$4 sm:$0xff]  }
  0x28   :  { %5091 = vmatpush2.bf16.msra.mxu1 %v7000_v44  ;;  %5051 = vmatprep.subr.bf16.mxu0 %v7001_v45  ;;  %v7057_v30 = vld [vmem:[%s10851_s1 + $0x484] ss:$16 sps:$4 sm:$0xff]   ;;  %v7055_v32 = vld [vmem:[%s10851_s1 + $0x480] ss:$16 sps:$4 sm:$0xff]  }
  0x29   :  { %5092 = vmatprep.subr.bf16.mxu1 %v7003_v46  ;;  %v7060_v31 = vld [vmem:[%s10851_s1 + $0x684] ss:$16 sps:$4 sm:$0xff]   ;;  %v7058_v33 = vld [vmem:[%s10851_s1 + $0x680] ss:$16 sps:$4 sm:$0xff]  }
  0x2a   :  { %v7063_v34 = vld [vmem:[%s10851_s1 + $0x464] ss:$16 sps:$4 sm:$0xff]   ;;  %v7061_v36 = vld [vmem:[%s10851_s1 + $0x460] ss:$16 sps:$4 sm:$0xff]  }
  0x2b   :  { %5052 = vmatpush2.bf16.msra.mxu0 %v7005_v47  ;;  %v7066_v35 = vld [vmem:[%s10851_s1 + $0x664] ss:$16 sps:$4 sm:$0xff]   ;;  %v7064_v37 = vld [vmem:[%s10851_s1 + $0x660] ss:$16 sps:$4 sm:$0xff]  }
  0x2c   :  { %5093 = vmatpush2.bf16.msra.mxu1 %v7006_v48  ;;  %5053 = vmatprep.subr.bf16.mxu0 %v7007_v50  ;;  %v7069_v38 = vld [vmem:[%s10851_s1 + $0x444] ss:$16 sps:$4 sm:$0xff]   ;;  %v7067_v40 = vld [vmem:[%s10851_s1 + $0x440] ss:$16 sps:$4 sm:$0xff]  }
  0x2d   :  { %5094 = vmatprep.subr.bf16.mxu1 %v7009_v51  ;;  %v7072_v39 = vld [vmem:[%s10851_s1 + $0x644] ss:$16 sps:$4 sm:$0xff]   ;;  %v7070_v41 = vld [vmem:[%s10851_s1 + $0x640] ss:$16 sps:$4 sm:$0xff]  }
  0x2e   :  { %v7075_v43 = vld [vmem:[%s10851_s1 + $0x424] ss:$16 sps:$4 sm:$0xff]   ;;  %v7073_v45 = vld [vmem:[%s10851_s1 + $0x420] ss:$16 sps:$4 sm:$0xff]  }
  0x2f   :  { %5054 = vmatpush2.bf16.msra.mxu0 %v7011_v53  ;;  %v7078_v44 = vld [vmem:[%s10851_s1 + $0x624] ss:$16 sps:$4 sm:$0xff]   ;;  %v7076_v46 = vld [vmem:[%s10851_s1 + $0x620] ss:$16 sps:$4 sm:$0xff]  }
  0x30   :  { %5095 = vmatpush2.bf16.msra.mxu1 %v7012_v55  ;;  %5055 = vmatprep.subr.bf16.mxu0 %v7013_v56  ;;  %v7081_v47 = vld [vmem:[%s10851_s1 + $0x404] ss:$16 sps:$4 sm:$0xff]   ;;  %v7079_v50 = vld [vmem:[%s10851_s1 + $0x400] ss:$16 sps:$4 sm:$0xff]  }
  0x31   :  { %5096 = vmatprep.subr.bf16.mxu1 %v7015_v57  ;;  %v7084_v48 = vld [vmem:[%s10851_s1 + $0x604] ss:$16 sps:$4 sm:$0xff]   ;;  %v7082_v51 = vld [vmem:[%s10851_s1 + $0x600] ss:$16 sps:$4 sm:$0xff]  }
  0x32   :  { %v7087_v52 = vld [vmem:[%s10851_s1 + $0x5e4] ss:$16 sps:$4 sm:$0xff]   ;;  %v7085_v54 = vld [vmem:[%s10851_s1 + $0x5e0] ss:$16 sps:$4 sm:$0xff]  }
  0x33   :  { %5056 = vmatpush2.bf16.msra.mxu0 %v7017_v59  ;;  %v7090_v53 = vld [vmem:[%s10851_s1 + $0x7e4] ss:$16 sps:$4 sm:$0xff]   ;;  %v7088_v55 = vld [vmem:[%s10851_s1 + $0x7e0] ss:$16 sps:$4 sm:$0xff]  }
  0x34   :  { %5097 = vmatpush2.bf16.msra.mxu1 %v7018_v61  ;;  %5057 = vmatprep.subr.bf16.mxu0 %v7019_v62  ;;  %v7093_v56 = vld [vmem:[%s10851_s1 + $0x5c4] ss:$16 sps:$4 sm:$0xff]   ;;  %v7091_v58 = vld [vmem:[%s10851_s1 + $0x5c0] ss:$16 sps:$4 sm:$0xff]  }
  0x35   :  { %5098 = vmatprep.subr.bf16.mxu1 %v7021_v63  ;;  %v7096_v57 = vld [vmem:[%s10851_s1 + $0x7c4] ss:$16 sps:$4 sm:$0xff]   ;;  %v7094_v59 = vld [vmem:[%s10851_s1 + $0x7c0] ss:$16 sps:$4 sm:$0xff]  }
  0x36   :  { %v7099_v61 = vld [vmem:[%s10851_s1 + $0x5a4] ss:$16 sps:$4 sm:$0xff]   ;;  %v7097_v63 = vld [vmem:[%s10851_s1 + $0x5a0] ss:$16 sps:$4 sm:$0xff]  }
  0x37   :  { %5058 = vmatpush2.bf16.msra.mxu0 %v7023_v2  ;;  %v7102_v62 = vld [vmem:[%s10851_s1 + $0x7a4] ss:$16 sps:$4 sm:$0xff]   ;;  %v7100_v1 = vld [vmem:[%s10851_s1 + $0x7a0] ss:$16 sps:$4 sm:$0xff]  }
  0x38   :  { %5099 = vmatpush2.bf16.msra.mxu1 %v7024_v3  ;;  %5059 = vmatprep.subr.bf16.mxu0 %v7025_v4  ;;  %v7105_v2 = vld [vmem:[%s10851_s1 + $0x584] ss:$16 sps:$4 sm:$0xff]   ;;  %v7103_v4 = vld [vmem:[%s10851_s1 + $0x580] ss:$16 sps:$4 sm:$0xff]  }
  0x39   :  { %5100 = vmatprep.subr.bf16.mxu1 %v7027_v5  ;;  %v7108_v3 = vld [vmem:[%s10851_s1 + $0x784] ss:$16 sps:$4 sm:$0xff]   ;;  %v7106_v5 = vld [vmem:[%s10851_s1 + $0x780] ss:$16 sps:$4 sm:$0xff]  }
  0x3a   :  { %v7117_v11 = vld [vmem:[%s10851_s1 + $0x544] ss:$16 sps:$4 sm:$0xff]  }
  0x3b   :  { %5060 = vmatpush2.bf16.msra.mxu0 %v7029_v7  ;;  %v7111_v7 = vld [vmem:[%s10851_s1 + $0x564] ss:$16 sps:$4 sm:$0xff]  }
  0x3c   :  { %5101 = vmatpush2.bf16.msra.mxu1 %v7030_v8  ;;  %5061 = vmatprep.subr.bf16.mxu0 %v7031_v9  ;;  %v7114_v8 = vld [vmem:[%s10851_s1 + $0x764] ss:$16 sps:$4 sm:$0xff]   ;;  %v7109_v9 = vld [vmem:[%s10851_s1 + $0x560] ss:$16 sps:$4 sm:$0xff]  }
  0x3d   :  { %5102 = vmatprep.subr.bf16.mxu1 %v7033_v10  ;;  %v7112_v10 = vld [vmem:[%s10851_s1 + $0x760] ss:$16 sps:$4 sm:$0xff]  }
  0x3f   :  { %5062 = vmatpush2.bf16.msra.mxu0 %v7035_v12  ;;  %v7120_v12 = vld [vmem:[%s10851_s1 + $0x744] ss:$16 sps:$4 sm:$0xff]  }
  0x40   :  { %5103 = vmatpush2.bf16.msra.mxu1 %v7036_v14  ;;  %5113 = vmatprep.subr.bf16.mxu0 %v7039_v15  ;;  %v7115_v14 = vld [vmem:[%s10851_s1 + $0x540] ss:$16 sps:$4 sm:$0xff]  }
  0x41   :  { %5154 = vmatprep.subr.bf16.mxu1 %v7042_v16  ;;  %v7118_v15 = vld [vmem:[%s10851_s1 + $0x740] ss:$16 sps:$4 sm:$0xff]   ;;  %v7123_v16 = vld [vmem:[%s10851_s1 + $0x524] ss:$16 sps:$4 sm:$0xff]  }
  0x42   :  { %5064 = vmatmul.mubr.bf16.vlgmr.msra.gmra.mxu0 %v8380_v13 }
  0x43   :  { %5105 = vmatmul.mubr.bf16.vlgmr.msra.gmra.mxu1 %v8396_v18  ;;  %5114 = vmatpush1.bf16.msra.mxu0 %v7037_v19  ;;  %v7126_v19 = vld [vmem:[%s10851_s1 + $0x724] ss:$16 sps:$4 sm:$0xff]  }
  0x44   :  { %5155 = vmatpush1.bf16.msra.mxu1 %v7040_v20  ;;  %5115 = vmatprep.subr.bf16.mxu0 %v7045_v21  ;;  %v7121_v20 = vld [vmem:[%s10851_s1 + $0x520] ss:$16 sps:$4 sm:$0xff]  }
  0x45   :  { %5156 = vmatprep.subr.bf16.mxu1 %v7048_v22  ;;  %5145 = vmatprep.mubr.bf16.mxu0 %v8392_v17  ;;  %v7124_v21 = vld [vmem:[%s10851_s1 + $0x720] ss:$16 sps:$4 sm:$0xff]   ;;  %v7129_v22 = vld [vmem:[%s10851_s1 + $0x504] ss:$16 sps:$4 sm:$0xff]  }
  0x46   :  { %5186 = vmatprep.mubr.bf16.mxu1 %v8412_v23 }
  0x47   :  { %5116 = vmatpush1.bf16.msra.mxu0 %v7043_v24  ;;  %v7132_v24 = vld [vmem:[%s10851_s1 + $0x704] ss:$16 sps:$4 sm:$0xff]  }
  0x48   :  { %5157 = vmatpush1.bf16.msra.mxu1 %v7046_v25  ;;  %5117 = vmatprep.subr.bf16.mxu0 %v7051_v26  ;;  %v7127_v25 = vld [vmem:[%s10851_s1 + $0x500] ss:$16 sps:$4 sm:$0xff]   ;;  %v8591_v26 = vrot.slane %v8360_v6, %v8302_v49 }
  0x49   :  { %5158 = vmatprep.subr.bf16.mxu1 %v7054_v27  ;;  %v7130_v27 = vld [vmem:[%s10851_s1 + $0x700] ss:$16 sps:$4 sm:$0xff]  }
  0x4a   :  { %v8604_v6 = vcombine.high %v8591_v26, %v8591_v26 }
  0x4b   :  { %5118 = vmatpush1.bf16.msra.mxu0 %v7049_v28  ;;  %v7136_v28 = vld [vmem:[%s10851_s1 + $0x8e4] ss:$16 sps:$4 sm:$0xff]  }
  0x4c   :  { %5159 = vmatpush1.bf16.msra.mxu1 %v7052_v29  ;;  %5119 = vmatprep.subr.bf16.mxu0 %v7057_v30  ;;  %v7139_v29 = vld [vmem:[%s10851_s1 + $0xae4] ss:$16 sps:$4 sm:$0xff]   ;;  %v7134_v30 = vld [vmem:[%s10851_s1 + $0x8e0] ss:$16 sps:$4 sm:$0xff]  }
  0x4d   :  { %5160 = vmatprep.subr.bf16.mxu1 %v7060_v31  ;;  %v7137_v31 = vld [vmem:[%s10851_s1 + $0xae0] ss:$16 sps:$4 sm:$0xff]  }
  0x4f   :  { %5120 = vmatpush1.bf16.msra.mxu0 %v7055_v32  ;;  %v8615_v32 = vld [vmem:[%s10852_s0 + $0x8] sm:$0xff] }
  0x50   :  { %5161 = vmatpush1.bf16.msra.mxu1 %v7058_v33  ;;  %5121 = vmatprep.subr.bf16.mxu0 %v7063_v34  ;;  %v7142_v33 = vld [vmem:[%s10851_s1 + $0x8c4] ss:$16 sps:$4 sm:$0xff]  }
  0x51   :  { %5162 = vmatprep.subr.bf16.mxu1 %v7066_v35  ;;  %v7145_v34 = vld [vmem:[%s10851_s1 + $0xac4] ss:$16 sps:$4 sm:$0xff]   ;;  %v8625_v35 = vrot.slane %v8615_v32, %v8302_v49 }
  0x53   :  { %5122 = vmatpush1.bf16.msra.mxu0 %v7061_v36  ;;  %v909_v36 = vcombine.high %v8625_v35, %v8625_v35 }
  0x54   :  { %5163 = vmatpush1.bf16.msra.mxu1 %v7064_v37  ;;  %5123 = vmatprep.subr.bf16.mxu0 %v7069_v38  ;;  %v7140_v37 = vld [vmem:[%s10851_s1 + $0x8c0] ss:$16 sps:$4 sm:$0xff]  }
  0x55   :  { %5164 = vmatprep.subr.bf16.mxu1 %v7072_v39  ;;  %v7143_v38 = vld [vmem:[%s10851_s1 + $0xac0] ss:$16 sps:$4 sm:$0xff]   ;;  %v7148_v39 = vld [vmem:[%s10851_s1 + $0x8a4] ss:$16 sps:$4 sm:$0xff]  }
  0x57   :  { %5124 = vmatpush1.bf16.msra.mxu0 %v7067_v40  ;;  %v7151_v40 = vld [vmem:[%s10851_s1 + $0xaa4] ss:$16 sps:$4 sm:$0xff]  }
  0x58   :  { %5165 = vmatpush1.bf16.msra.mxu1 %v7070_v41  ;;  %5125 = vmatprep.subr.bf16.mxu0 %v7075_v43  ;;  %v8644_v41 = vrot.slane %v909_v36, %v8302_v49  ;;  %v7212_v36 = vld [vmem:[%s10851_s1 + $0x940] ss:$16 sps:$4 sm:$0xff]  }
  0x59   :  { %5166 = vmatprep.subr.bf16.mxu1 %v7078_v44  ;;  %v7146_v44 = vld [vmem:[%s10851_s1 + $0x8a0] ss:$16 sps:$4 sm:$0xff]  }
  0x5a   :  { %v8649_v43 = vcombine.high %v8644_v41, %v8644_v41 }
  0x5b   :  { %5126 = vmatpush1.bf16.msra.mxu0 %v7073_v45  ;;  %v7149_v45 = vld [vmem:[%s10851_s1 + $0xaa0] ss:$16 sps:$4 sm:$0xff]  }
  0x5c   :  { %5167 = vmatpush1.bf16.msra.mxu1 %v7076_v46  ;;  %5127 = vmatprep.subr.bf16.mxu0 %v7081_v47  ;;  %v7154_v46 = vld [vmem:[%s10851_s1 + $0x884] ss:$16 sps:$4 sm:$0xff]  }
  0x5d   :  { %5168 = vmatprep.subr.bf16.mxu1 %v7084_v48  ;;  %v7157_v47 = vld [vmem:[%s10851_s1 + $0xa84] ss:$16 sps:$4 sm:$0xff]   ;;  %v7152_v48 = vld [vmem:[%s10851_s1 + $0x880] ss:$16 sps:$4 sm:$0xff]  }
  0x5f   :  { %5128 = vmatpush1.bf16.msra.mxu0 %v7079_v50  ;;  %v7155_v50 = vld [vmem:[%s10851_s1 + $0xa80] ss:$16 sps:$4 sm:$0xff]  }
  0x60   :  { %5169 = vmatpush1.bf16.msra.mxu1 %v7082_v51  ;;  %5129 = vmatprep.subr.bf16.mxu0 %v7087_v52  ;;  %v7160_v51 = vld [vmem:[%s10851_s1 + $0x864] ss:$16 sps:$4 sm:$0xff]  }
  0x61   :  { %5170 = vmatprep.subr.bf16.mxu1 %v7090_v53  ;;  %v7163_v52 = vld [vmem:[%s10851_s1 + $0xa64] ss:$16 sps:$4 sm:$0xff]   ;;  %v7158_v53 = vld [vmem:[%s10851_s1 + $0x860] ss:$16 sps:$4 sm:$0xff]  }
  0x63   :  { %5130 = vmatpush2.bf16.msra.mxu0 %v7085_v54  ;;  %v7161_v54 = vld [vmem:[%s10851_s1 + $0xa60] ss:$16 sps:$4 sm:$0xff]  }
  0x64   :  { %5171 = vmatpush2.bf16.msra.mxu1 %v7088_v55  ;;  %5131 = vmatprep.subr.bf16.mxu0 %v7093_v56  ;;  %v7166_v55 = vld [vmem:[%s10851_s1 + $0x844] ss:$16 sps:$4 sm:$0xff]  }
  0x65   :  { %5172 = vmatprep.subr.bf16.mxu1 %v7096_v57  ;;  %v7169_v56 = vld [vmem:[%s10851_s1 + $0xa44] ss:$16 sps:$4 sm:$0xff]   ;;  %v7164_v57 = vld [vmem:[%s10851_s1 + $0x840] ss:$16 sps:$4 sm:$0xff]  }
  0x67   :  { %5132 = vmatpush2.bf16.msra.mxu0 %v7091_v58  ;;  %v7167_v58 = vld [vmem:[%s10851_s1 + $0xa40] ss:$16 sps:$4 sm:$0xff]  }
  0x68   :  { %5173 = vmatpush2.bf16.msra.mxu1 %v7094_v59  ;;  %5133 = vmatprep.subr.bf16.mxu0 %v7099_v61  ;;  %v7172_v59 = vld [vmem:[%s10851_s1 + $0x824] ss:$16 sps:$4 sm:$0xff]  }
  0x69   :  { %5174 = vmatprep.subr.bf16.mxu1 %v7102_v62  ;;  %v7175_v61 = vld [vmem:[%s10851_s1 + $0xa24] ss:$16 sps:$4 sm:$0xff]   ;;  %v7170_v62 = vld [vmem:[%s10851_s1 + $0x820] ss:$16 sps:$4 sm:$0xff]  }
  0x6b   :  { %5134 = vmatpush2.bf16.msra.mxu0 %v7097_v63  ;;  %v7173_v63 = vld [vmem:[%s10851_s1 + $0xa20] ss:$16 sps:$4 sm:$0xff]  }
  0x6c   :  { %5175 = vmatpush2.bf16.msra.mxu1 %v7100_v1  ;;  %5135 = vmatprep.subr.bf16.mxu0 %v7105_v2  ;;  %v7178_v1 = vld [vmem:[%s10851_s1 + $0x804] ss:$16 sps:$4 sm:$0xff]  }
  0x6d   :  { %5176 = vmatprep.subr.bf16.mxu1 %v7108_v3  ;;  %v7181_v2 = vld [vmem:[%s10851_s1 + $0xa04] ss:$16 sps:$4 sm:$0xff]   ;;  %v7176_v3 = vld [vmem:[%s10851_s1 + $0x800] ss:$16 sps:$4 sm:$0xff]  }
  0x6f   :  { %5136 = vmatpush2.bf16.msra.mxu0 %v7103_v4  ;;  %v7179_v4 = vld [vmem:[%s10851_s1 + $0xa00] ss:$16 sps:$4 sm:$0xff]  }
  0x70   :  { %5177 = vmatpush2.bf16.msra.mxu1 %v7106_v5  ;;  %5137 = vmatprep.subr.bf16.mxu0 %v7111_v7  ;;  %v7184_v5 = vld [vmem:[%s10851_s1 + $0x9e4] ss:$16 sps:$4 sm:$0xff]  }
  0x71   :  { %5178 = vmatprep.subr.bf16.mxu1 %v7114_v8  ;;  %v7187_v7 = vld [vmem:[%s10851_s1 + $0xbe4] ss:$16 sps:$4 sm:$0xff]   ;;  %v7182_v8 = vld [vmem:[%s10851_s1 + $0x9e0] ss:$16 sps:$4 sm:$0xff]  }
  0x73   :  { %5138 = vmatpush2.bf16.msra.mxu0 %v7109_v9  ;;  %v7185_v9 = vld [vmem:[%s10851_s1 + $0xbe0] ss:$16 sps:$4 sm:$0xff]  }
  0x74   :  { %5179 = vmatpush2.bf16.msra.mxu1 %v7112_v10  ;;  %5139 = vmatprep.subr.bf16.mxu0 %v7117_v11  ;;  %v7190_v10 = vld [vmem:[%s10851_s1 + $0x9c4] ss:$16 sps:$4 sm:$0xff]  }
  0x75   :  { %5180 = vmatprep.subr.bf16.mxu1 %v7120_v12  ;;  %v7193_v11 = vld [vmem:[%s10851_s1 + $0xbc4] ss:$16 sps:$4 sm:$0xff]   ;;  %v7188_v12 = vld [vmem:[%s10851_s1 + $0x9c0] ss:$16 sps:$4 sm:$0xff]  }
  0x77   :  { %5140 = vmatpush2.bf16.msra.mxu0 %v7115_v14  ;;  %v7191_v14 = vld [vmem:[%s10851_s1 + $0xbc0] ss:$16 sps:$4 sm:$0xff]  }
  0x78   :  { %5181 = vmatpush2.bf16.msra.mxu1 %v7118_v15  ;;  %5141 = vmatprep.subr.bf16.mxu0 %v7123_v16  ;;  %v7196_v15 = vld [vmem:[%s10851_s1 + $0x9a4] ss:$16 sps:$4 sm:$0xff]  }
  0x79   :  { %5182 = vmatprep.subr.bf16.mxu1 %v7126_v19  ;;  %v7199_v16 = vld [vmem:[%s10851_s1 + $0xba4] ss:$16 sps:$4 sm:$0xff]   ;;  %v7194_v19 = vld [vmem:[%s10851_s1 + $0x9a0] ss:$16 sps:$4 sm:$0xff]  }
  0x7b   :  { %5142 = vmatpush2.bf16.msra.mxu0 %v7121_v20  ;;  %v7197_v20 = vld [vmem:[%s10851_s1 + $0xba0] ss:$16 sps:$4 sm:$0xff]  }
  0x7c   :  { %5183 = vmatpush2.bf16.msra.mxu1 %v7124_v21  ;;  %5143 = vmatprep.subr.bf16.mxu0 %v7129_v22  ;;  %v7202_v21 = vld [vmem:[%s10851_s1 + $0x984] ss:$16 sps:$4 sm:$0xff]  }
  0x7d   :  { %5184 = vmatprep.subr.bf16.mxu1 %v7132_v24  ;;  %v7205_v22 = vld [vmem:[%s10851_s1 + $0xb84] ss:$16 sps:$4 sm:$0xff]   ;;  %v7200_v24 = vld [vmem:[%s10851_s1 + $0x980] ss:$16 sps:$4 sm:$0xff]  }
  0x7f   :  { %5144 = vmatpush2.bf16.msra.mxu0 %v7127_v25  ;;  %v7203_v25 = vld [vmem:[%s10851_s1 + $0xb80] ss:$16 sps:$4 sm:$0xff]  }
  0x80   :  { %5185 = vmatpush2.bf16.msra.mxu1 %v7130_v27  ;;  %5195 = vmatprep.subr.bf16.mxu0 %v7136_v28  ;;  %v7208_v27 = vld [vmem:[%s10851_s1 + $0x964] ss:$16 sps:$4 sm:$0xff]  }
  0x81   :  { %5236 = vmatprep.subr.bf16.mxu1 %v7139_v29  ;;  %v7211_v28 = vld [vmem:[%s10851_s1 + $0xb64] ss:$16 sps:$4 sm:$0xff]   ;;  %v7206_v29 = vld [vmem:[%s10851_s1 + $0x960] ss:$16 sps:$4 sm:$0xff]  }
  0x82   :  { %5146 = vmatmul.mubr.bf16.vlgmr.msra.gmra.mxu0 %v8591_v26 }
  0x83   :  { %5187 = vmatmul.mubr.bf16.vlgmr.msra.gmra.mxu1 %v8604_v6  ;;  %5196 = vmatpush1.bf16.msra.mxu0 %v7134_v30  ;;  %v7209_v30 = vld [vmem:[%s10851_s1 + $0xb60] ss:$16 sps:$4 sm:$0xff]  }
  0x84   :  { %5237 = vmatpush1.bf16.msra.mxu1 %v7137_v31  ;;  %5197 = vmatprep.subr.bf16.mxu0 %v7142_v33  ;;  %v7214_v31 = vld [vmem:[%s10851_s1 + $0x944] ss:$16 sps:$4 sm:$0xff]  }
  0x85   :  { %5238 = vmatprep.subr.bf16.mxu1 %v7145_v34  ;;  %5227 = vmatprep.mubr.bf16.mxu0 %v8644_v41  ;;  %v7217_v33 = vld [vmem:[%s10851_s1 + $0xb44] ss:$16 sps:$4 sm:$0xff]   ;;  %v894_v34 = vcombine.high %v8615_v32, %v8615_v32 }
  0x86   :  { %5268 = vmatprep.mubr.bf16.mxu1 %v8649_v43  ;;  %v7223_v32 = vld [vmem:[%s10851_s1 + $0xb24] ss:$16 sps:$4 sm:$0xff]  }
  0x87   :  { %5198 = vmatpush1.bf16.msra.mxu0 %v7140_v37  ;;  %v7215_v37 = vld [vmem:[%s10851_s1 + $0xb40] ss:$16 sps:$4 sm:$0xff]  }
  0x88   :  { %5239 = vmatpush1.bf16.msra.mxu1 %v7143_v38  ;;  %5199 = vmatprep.subr.bf16.mxu0 %v7148_v39  ;;  %v7220_v38 = vld [vmem:[%s10851_s1 + $0x924] ss:$16 sps:$4 sm:$0xff]   ;;  %v8799_v39 = vrot.slane %v894_v34, %v8302_v49  ;;  %v7281_v34 = vld [vmem:[%s10851_s1 + $0xfe0] ss:$16 sps:$4 sm:$0xff]  }
  0x89   :  { %5240 = vmatprep.subr.bf16.mxu1 %v7151_v40  ;;  %v7218_v40 = vld [vmem:[%s10851_s1 + $0x920] ss:$16 sps:$4 sm:$0xff]  }
  0x8b   :  { %5200 = vmatpush1.bf16.msra.mxu0 %v7146_v44  ;;  %v7221_v44 = vld [vmem:[%s10851_s1 + $0xb20] ss:$16 sps:$4 sm:$0xff]  }
  0x8c   :  { %5241 = vmatpush1.bf16.msra.mxu1 %v7149_v45  ;;  %5201 = vmatprep.subr.bf16.mxu0 %v7154_v46  ;;  %v7226_v45 = vld [vmem:[%s10851_s1 + $0x904] ss:$16 sps:$4 sm:$0xff]  }
  0x8d   :  { %5242 = vmatprep.subr.bf16.mxu1 %v7157_v47  ;;  %v7229_v46 = vld [vmem:[%s10851_s1 + $0xb04] ss:$16 sps:$4 sm:$0xff]   ;;  %v910_v47 = vcombine.high %v8799_v39, %v8799_v39 }
  0x8f   :  { %5202 = vmatpush1.bf16.msra.mxu0 %v7152_v48  ;;  %v7224_v48 = vld [vmem:[%s10851_s1 + $0x900] ss:$16 sps:$4 sm:$0xff]  }
  0x90   :  { %5243 = vmatpush1.bf16.msra.mxu1 %v7155_v50  ;;  %5203 = vmatprep.subr.bf16.mxu0 %v7160_v51  ;;  %v8820_v50 = vrot.slane %v8625_v35, %v8302_v49  ;;  %v7227_v51 = vld [vmem:[%s10851_s1 + $0xb00] ss:$16 sps:$4 sm:$0xff]  }
  0x91   :  { %5244 = vmatprep.subr.bf16.mxu1 %v7163_v52  ;;  %v7232_v52 = vld [vmem:[%s10851_s1 + $0xce4] ss:$16 sps:$4 sm:$0xff]  }
  0x92   :  { %v8836_v35 = vcombine.high %v8820_v50, %v8820_v50 }
  0x93   :  { %5204 = vmatpush1.bf16.msra.mxu0 %v7158_v53  ;;  %v7235_v53 = vld [vmem:[%s10851_s1 + $0xee4] ss:$16 sps:$4 sm:$0xff]  }
  0x94   :  { %5245 = vmatpush1.bf16.msra.mxu1 %v7161_v54  ;;  %5205 = vmatprep.subr.bf16.mxu0 %v7166_v55  ;;  %v8832_v54 = vrot.slane %v910_v47, %v8302_v49  ;;  %v7230_v55 = vld [vmem:[%s10851_s1 + $0xce0] ss:$16 sps:$4 sm:$0xff]   ;;  %v7298_v47 = vld [vmem:[%s10851_s1 + $0xd84] ss:$16 sps:$4 sm:$0xff]  }
  0x95   :  { %5246 = vmatprep.subr.bf16.mxu1 %v7169_v56  ;;  %v7233_v56 = vld [vmem:[%s10851_s1 + $0xee0] ss:$16 sps:$4 sm:$0xff]  }
  0x97   :  { %5206 = vmatpush1.bf16.msra.mxu0 %v7164_v57  ;;  %v7238_v57 = vld [vmem:[%s10851_s1 + $0xcc4] ss:$16 sps:$4 sm:$0xff]  }
  0x98   :  { %5247 = vmatpush1.bf16.msra.mxu1 %v7167_v58  ;;  %5207 = vmatprep.subr.bf16.mxu0 %v7172_v59  ;;  %v7241_v58 = vld [vmem:[%s10851_s1 + $0xec4] ss:$16 sps:$4 sm:$0xff]   ;;  %v8852_v59 = vcombine.high %v8832_v54, %v8832_v54 }
  0x99   :  { %5248 = vmatprep.subr.bf16.mxu1 %v7175_v61  ;;  %v7236_v61 = vld [vmem:[%s10851_s1 + $0xcc0] ss:$16 sps:$4 sm:$0xff]  }
  0x9b   :  { %5208 = vmatpush1.bf16.msra.mxu0 %v7170_v62  ;;  %v7239_v62 = vld [vmem:[%s10851_s1 + $0xec0] ss:$16 sps:$4 sm:$0xff]  }
  0x9c   :  { %5249 = vmatpush1.bf16.msra.mxu1 %v7173_v63  ;;  %5209 = vmatprep.subr.bf16.mxu0 %v7178_v1  ;;  %v7244_v63 = vld [vmem:[%s10851_s1 + $0xca4] ss:$16 sps:$4 sm:$0xff]  }
  0x9d   :  { %5250 = vmatprep.subr.bf16.mxu1 %v7181_v2  ;;  %v7247_v1 = vld [vmem:[%s10851_s1 + $0xea4] ss:$16 sps:$4 sm:$0xff]   ;;  %v7242_v2 = vld [vmem:[%s10851_s1 + $0xca0] ss:$16 sps:$4 sm:$0xff]  }
  0x9f   :  { %5210 = vmatpush1.bf16.msra.mxu0 %v7176_v3  ;;  %v7245_v3 = vld [vmem:[%s10851_s1 + $0xea0] ss:$16 sps:$4 sm:$0xff]  }
  0xa0   :  { %5251 = vmatpush1.bf16.msra.mxu1 %v7179_v4  ;;  %5211 = vmatprep.subr.bf16.mxu0 %v7184_v5  ;;  %v7250_v4 = vld [vmem:[%s10851_s1 + $0xc84] ss:$16 sps:$4 sm:$0xff]  }
  0xa1   :  { %5252 = vmatprep.subr.bf16.mxu1 %v7187_v7  ;;  %v7253_v5 = vld [vmem:[%s10851_s1 + $0xe84] ss:$16 sps:$4 sm:$0xff]   ;;  %v7248_v7 = vld [vmem:[%s10851_s1 + $0xc80] ss:$16 sps:$4 sm:$0xff]  }
  0xa3   :  { %5212 = vmatpush2.bf16.msra.mxu0 %v7182_v8  ;;  %v7251_v8 = vld [vmem:[%s10851_s1 + $0xe80] ss:$16 sps:$4 sm:$0xff]  }
  0xa4   :  { %5253 = vmatpush2.bf16.msra.mxu1 %v7185_v9  ;;  %5213 = vmatprep.subr.bf16.mxu0 %v7190_v10  ;;  %v7256_v9 = vld [vmem:[%s10851_s1 + $0xc64] ss:$16 sps:$4 sm:$0xff]  }
  0xa5   :  { %5254 = vmatprep.subr.bf16.mxu1 %v7193_v11  ;;  %v7259_v10 = vld [vmem:[%s10851_s1 + $0xe64] ss:$16 sps:$4 sm:$0xff]   ;;  %v7254_v11 = vld [vmem:[%s10851_s1 + $0xc60] ss:$16 sps:$4 sm:$0xff]  }
  0xa7   :  { %5214 = vmatpush2.bf16.msra.mxu0 %v7188_v12  ;;  %v7257_v12 = vld [vmem:[%s10851_s1 + $0xe60] ss:$16 sps:$4 sm:$0xff]  }
  0xa8   :  { %5255 = vmatpush2.bf16.msra.mxu1 %v7191_v14  ;;  %5215 = vmatprep.subr.bf16.mxu0 %v7196_v15  ;;  %v7262_v14 = vld [vmem:[%s10851_s1 + $0xc44] ss:$16 sps:$4 sm:$0xff]  }
  0xa9   :  { %5256 = vmatprep.subr.bf16.mxu1 %v7199_v16  ;;  %v7265_v15 = vld [vmem:[%s10851_s1 + $0xe44] ss:$16 sps:$4 sm:$0xff]   ;;  %v7260_v16 = vld [vmem:[%s10851_s1 + $0xc40] ss:$16 sps:$4 sm:$0xff]  }
  0xab   :  { %5216 = vmatpush2.bf16.msra.mxu0 %v7194_v19  ;;  %v7263_v19 = vld [vmem:[%s10851_s1 + $0xe40] ss:$16 sps:$4 sm:$0xff]  }
  0xac   :  { %5257 = vmatpush2.bf16.msra.mxu1 %v7197_v20  ;;  %5217 = vmatprep.subr.bf16.mxu0 %v7202_v21  ;;  %v7268_v20 = vld [vmem:[%s10851_s1 + $0xc24] ss:$16 sps:$4 sm:$0xff]  }
  0xad   :  { %5258 = vmatprep.subr.bf16.mxu1 %v7205_v22  ;;  %v7271_v21 = vld [vmem:[%s10851_s1 + $0xe24] ss:$16 sps:$4 sm:$0xff]   ;;  %v7266_v22 = vld [vmem:[%s10851_s1 + $0xc20] ss:$16 sps:$4 sm:$0xff]  }
  0xaf   :  { %5218 = vmatpush2.bf16.msra.mxu0 %v7200_v24  ;;  %v7269_v24 = vld [vmem:[%s10851_s1 + $0xe20] ss:$16 sps:$4 sm:$0xff]  }
  0xb0   :  { %5259 = vmatpush2.bf16.msra.mxu1 %v7203_v25  ;;  %5219 = vmatprep.subr.bf16.mxu0 %v7208_v27  ;;  %v7274_v25 = vld [vmem:[%s10851_s1 + $0xc04] ss:$16 sps:$4 sm:$0xff]  }
  0xb1   :  { %5260 = vmatprep.subr.bf16.mxu1 %v7211_v28  ;;  %v7277_v27 = vld [vmem:[%s10851_s1 + $0xe04] ss:$16 sps:$4 sm:$0xff]   ;;  %v7272_v28 = vld [vmem:[%s10851_s1 + $0xc00] ss:$16 sps:$4 sm:$0xff]  }
  0xb3   :  { %5220 = vmatpush2.bf16.msra.mxu0 %v7206_v29  ;;  %v7275_v29 = vld [vmem:[%s10851_s1 + $0xe00] ss:$16 sps:$4 sm:$0xff]  }
  0xb4   :  { %5261 = vmatpush2.bf16.msra.mxu1 %v7209_v30  ;;  %5221 = vmatprep.subr.bf16.mxu0 %v7214_v31  ;;  %v7280_v30 = vld [vmem:[%s10851_s1 + $0xde4] ss:$16 sps:$4 sm:$0xff]  }
  0xb5   :  { %5262 = vmatprep.subr.bf16.mxu1 %v7217_v33  ;;  %v7283_v31 = vld [vmem:[%s10851_s1 + $0xfe4] ss:$16 sps:$4 sm:$0xff]   ;;  %v7278_v33 = vld [vmem:[%s10851_s1 + $0xde0] ss:$16 sps:$4 sm:$0xff]  }
  0xb7   :  { %5222 = vmatpush2.bf16.msra.mxu0 %v7212_v36  ;;  %v7286_v36 = vld [vmem:[%s10851_s1 + $0xdc4] ss:$16 sps:$4 sm:$0xff]  }
  0xb8   :  { %5263 = vmatpush2.bf16.msra.mxu1 %v7215_v37  ;;  %5223 = vmatprep.subr.bf16.mxu0 %v7220_v38  ;;  %v7289_v37 = vld [vmem:[%s10851_s1 + $0xfc4] ss:$16 sps:$4 sm:$0xff]   ;;  %v7284_v38 = vld [vmem:[%s10851_s1 + $0xdc0] ss:$16 sps:$4 sm:$0xff]  }
  0xb9   :  { %5264 = vmatprep.subr.bf16.mxu1 %v7223_v32  ;;  %v7287_v32 = vld [vmem:[%s10851_s1 + $0xfc0] ss:$16 sps:$4 sm:$0xff]  }
  0xbb   :  { %5224 = vmatpush2.bf16.msra.mxu0 %v7218_v40  ;;  %v7292_v40 = vld [vmem:[%s10851_s1 + $0xda4] ss:$16 sps:$4 sm:$0xff]  }
  0xbc   :  { %5265 = vmatpush2.bf16.msra.mxu1 %v7221_v44  ;;  %5225 = vmatprep.subr.bf16.mxu0 %v7226_v45  ;;  %v7295_v44 = vld [vmem:[%s10851_s1 + $0xfa4] ss:$16 sps:$4 sm:$0xff]   ;;  %v7290_v45 = vld [vmem:[%s10851_s1 + $0xda0] ss:$16 sps:$4 sm:$0xff]  }
  0xbd   :  { %5266 = vmatprep.subr.bf16.mxu1 %v7229_v46  ;;  %v7293_v46 = vld [vmem:[%s10851_s1 + $0xfa0] ss:$16 sps:$4 sm:$0xff]  }
  0xbf   :  { %5226 = vmatpush2.bf16.msra.mxu0 %v7224_v48  ;;  %v7301_v48 = vld [vmem:[%s10851_s1 + $0xf84] ss:$16 sps:$4 sm:$0xff]  }
  0xc0   :  { %5267 = vmatpush2.bf16.msra.mxu1 %v7227_v51  ;;  %5277 = vmatprep.subr.bf16.mxu0 %v7232_v52  ;;  %v7296_v51 = vld [vmem:[%s10851_s1 + $0xd80] ss:$16 sps:$4 sm:$0xff]  }
  0xc1   :  { %5318 = vmatprep.subr.bf16.mxu1 %v7235_v53  ;;  %v7299_v52 = vld [vmem:[%s10851_s1 + $0xf80] ss:$16 sps:$4 sm:$0xff]   ;;  %v7304_v53 = vld [vmem:[%s10851_s1 + $0xd64] ss:$16 sps:$4 sm:$0xff]  }
  0xc2   :  { %5228 = vmatmul.mubr.bf16.vlgmr.msra.gmra.mxu0 %v8820_v50 }
  0xc3   :  { %5269 = vmatmul.mubr.bf16.vlgmr.msra.gmra.mxu1 %v8836_v35  ;;  %5278 = vmatpush1.bf16.msra.mxu0 %v7230_v55  ;;  %v7307_v55 = vld [vmem:[%s10851_s1 + $0xf64] ss:$16 sps:$4 sm:$0xff]  }
  0xc4   :  { %5319 = vmatpush1.bf16.msra.mxu1 %v7233_v56  ;;  %5279 = vmatprep.subr.bf16.mxu0 %v7238_v57  ;;  %v7302_v56 = vld [vmem:[%s10851_s1 + $0xd60] ss:$16 sps:$4 sm:$0xff]  }
  0xc5   :  { %5320 = vmatprep.subr.bf16.mxu1 %v7241_v58  ;;  %5309 = vmatprep.mubr.bf16.mxu0 %v8832_v54  ;;  %v7305_v57 = vld [vmem:[%s10851_s1 + $0xf60] ss:$16 sps:$4 sm:$0xff]   ;;  %v7310_v58 = vld [vmem:[%s10851_s1 + $0xd44] ss:$16 sps:$4 sm:$0xff]  }
  0xc6   :  { %5350 = vmatprep.mubr.bf16.mxu1 %v8852_v59 }
  0xc7   :  { %5280 = vmatpush1.bf16.msra.mxu0 %v7236_v61  ;;  %v7313_v61 = vld [vmem:[%s10851_s1 + $0xf44] ss:$16 sps:$4 sm:$0xff]  }
  0xc8   :  { %5321 = vmatpush1.bf16.msra.mxu1 %v7239_v62  ;;  %5281 = vmatprep.subr.bf16.mxu0 %v7244_v63  ;;  %v7308_v62 = vld [vmem:[%s10851_s1 + $0xd40] ss:$16 sps:$4 sm:$0xff]  }
  0xc9   :  { %5322 = vmatprep.subr.bf16.mxu1 %v7247_v1  ;;  %v7311_v63 = vld [vmem:[%s10851_s1 + $0xf40] ss:$16 sps:$4 sm:$0xff]  }
  0xca   :  { %v9011_v1 = vld [vmem:[%s10852_s0 + $0x10] sm:$0xff] }
  0xcb   :  { %5282 = vmatpush1.bf16.msra.mxu0 %v7242_v2  ;;  %v7316_v2 = vld [vmem:[%s10851_s1 + $0xd24] ss:$16 sps:$4 sm:$0xff]  }
  0xcc   :  { %5323 = vmatpush1.bf16.msra.mxu1 %v7245_v3  ;;  %5283 = vmatprep.subr.bf16.mxu0 %v7250_v4  ;;  %v7319_v3 = vld [vmem:[%s10851_s1 + $0xf24] ss:$16 sps:$4 sm:$0xff]   ;;  %v9021_v4 = vrot.slane %v9011_v1, %v8302_v49 }
  0xcd   :  { %5324 = vmatprep.subr.bf16.mxu1 %v7253_v5  ;;  %v7314_v5 = vld [vmem:[%s10851_s1 + $0xd20] ss:$16 sps:$4 sm:$0xff]  }
  0xcf   :  { %5284 = vmatpush1.bf16.msra.mxu0 %v7248_v7  ;;  %v7317_v7 = vld [vmem:[%s10851_s1 + $0xf20] ss:$16 sps:$4 sm:$0xff]  }
  0xd0   :  { %5325 = vmatpush1.bf16.msra.mxu1 %v7251_v8  ;;  %5285 = vmatprep.subr.bf16.mxu0 %v7256_v9  ;;  %v7322_v8 = vld [vmem:[%s10851_s1 + $0xd04] ss:$16 sps:$4 sm:$0xff]  }
  0xd1   :  { %5326 = vmatprep.subr.bf16.mxu1 %v7259_v10  ;;  %v7325_v9 = vld [vmem:[%s10851_s1 + $0xf04] ss:$16 sps:$4 sm:$0xff]   ;;  %v7320_v10 = vld [vmem:[%s10851_s1 + $0xd00] ss:$16 sps:$4 sm:$0xff]  }
  0xd3   :  { %5286 = vmatpush1.bf16.msra.mxu0 %v7254_v11  ;;  %v958_v11 = vcombine.high %v9021_v4, %v9021_v4 }
  0xd4   :  { %5327 = vmatpush1.bf16.msra.mxu1 %v7257_v12  ;;  %5287 = vmatprep.subr.bf16.mxu0 %v7262_v14  ;;  %v7323_v12 = vld [vmem:[%s10851_s1 + $0xf00] ss:$16 sps:$4 sm:$0xff]  }
  0xd5   :  { %5328 = vmatprep.subr.bf16.mxu1 %v7265_v15  ;;  %v819_v14 = vld [vmem:[%s10853_s2] sm:$0xf]  ;;  %v9048_v15 = vrot.slane %v8799_v39, %v8302_v49 }
  0xd7   :  { %5288 = vmatpush1.bf16.msra.mxu0 %v7260_v16  ;;  %v823_v16 = vsub.s32 0, %v8284_v42  ;;  %v9063_v39 = vcombine.high %v9048_v15, %v9048_v15 }
  0xd8   :  { %5329 = vmatpush1.bf16.msra.mxu1 %v7263_v19  ;;  %5289 = vmatprep.subr.bf16.mxu0 %v7268_v20  ;;  %v7329_v19 = vld [vmem:[%s10851_s1 + $0x10e4] ss:$16 sps:$4 sm:$0xff]  }
  0xd9   :  { %5330 = vmatprep.subr.bf16.mxu1 %v7271_v21  ;;  %v7332_v20 = vld [vmem:[%s10851_s1 + $0x12e4] ss:$16 sps:$4 sm:$0xff]   ;;  %v827_v21 = vsub.s32 1, %v8284_v42 }
  0xdb   :  { %5290 = vmatpush1.bf16.msra.mxu0 %v7266_v22  ;;  %v9059_v22 = vrot.slane %v958_v11, %v8302_v49  ;;  %v7360_v11 = vld [vmem:[%s10851_s1 + $0x1240] ss:$16 sps:$4 sm:$0xff]  }
  0xdc   :  { %5331 = vmatpush1.bf16.msra.mxu1 %v7269_v24  ;;  %5291 = vmatprep.subr.bf16.mxu0 %v7274_v25  ;;  %v7327_v24 = vld [vmem:[%s10851_s1 + $0x10e0] ss:$16 sps:$4 sm:$0xff]  }
  0xdd   :  { %5332 = vmatprep.subr.bf16.mxu1 %v7277_v27  ;;  %v7330_v25 = vld [vmem:[%s10851_s1 + $0x12e0] ss:$16 sps:$4 sm:$0xff]   ;;  %v824_v27 = vrot.slane %v819_v14, %v823_v16 }
  0xde   :  { %v7363_v16 = vld [vmem:[%s10851_s1 + $0x1020] ss:$16 sps:$4 sm:$0xff]  }
  0xdf   :  { %5292 = vmatpush1.bf16.msra.mxu0 %v7272_v28  ;;  %v7335_v28 = vld [vmem:[%s10851_s1 + $0x10c4] ss:$16 sps:$4 sm:$0xff]  }
  0xe0   :  { %5333 = vmatpush1.bf16.msra.mxu1 %v7275_v29  ;;  %5293 = vmatprep.subr.bf16.mxu0 %v7280_v30  ;;  %v7338_v29 = vld [vmem:[%s10851_s1 + $0x12c4] ss:$16 sps:$4 sm:$0xff]   ;;  %v828_v30 = vrot.slane %v819_v14, %v827_v21 }
  0xe1   :  { %5334 = vmatprep.subr.bf16.mxu1 %v7283_v31  ;;  %v9079_v31 = vcombine.high %v9059_v22, %v9059_v22  ;;  %v7368_v14 = vld [vmem:[%s10851_s1 + $0x1224] ss:$16 sps:$4 sm:$0xff]  }
  0xe2   :  { %v7374_v21 = vld [vmem:[%s10851_s1 + $0x1204] ss:$16 sps:$4 sm:$0xff]  }
  0xe3   :  { %5294 = vmatpush2.bf16.msra.mxu0 %v7278_v33 }
  0xe4   :  { %5335 = vmatpush2.bf16.msra.mxu1 %v7281_v34  ;;  %5295 = vmatprep.subr.bf16.mxu0 %v7286_v36  ;;  %v7333_v36 = vld [vmem:[%s10851_s1 + $0x10c0] ss:$16 sps:$4 sm:$0xff]  }
  0xe5   :  { %5336 = vmatprep.subr.bf16.mxu1 %v7289_v37  ;;  %v7336_v37 = vld [vmem:[%s10851_s1 + $0x12c0] ss:$16 sps:$4 sm:$0xff]  }
  0xe7   :  { %5296 = vmatpush2.bf16.msra.mxu0 %v7284_v38 }
  0xe8   :  { %5337 = vmatpush2.bf16.msra.mxu1 %v7287_v32  ;;  %5297 = vmatprep.subr.bf16.mxu0 %v7292_v40 }
  0xe9   :  { %5338 = vmatprep.subr.bf16.mxu1 %v7295_v44  ;;  %v7341_v44 = vld [vmem:[%s10851_s1 + $0x10a4] ss:$16 sps:$4 sm:$0xff]  }
  0xeb   :  { %5298 = vmatpush2.bf16.msra.mxu0 %v7290_v45  ;;  %v7344_v45 = vld [vmem:[%s10851_s1 + $0x12a4] ss:$16 sps:$4 sm:$0xff]  }
  0xec   :  { %5339 = vmatpush2.bf16.msra.mxu1 %v7293_v46  ;;  %5299 = vmatprep.subr.bf16.mxu0 %v7298_v47 }
  0xed   :  { %5340 = vmatprep.subr.bf16.mxu1 %v7301_v48  ;;  %v7339_v48 = vld [vmem:[%s10851_s1 + $0x10a0] ss:$16 sps:$4 sm:$0xff]  }
  0xef   :  { %5300 = vmatpush2.bf16.msra.mxu0 %v7296_v51  ;;  %v7342_v51 = vld [vmem:[%s10851_s1 + $0x12a0] ss:$16 sps:$4 sm:$0xff]  }
  0xf0   :  { %5341 = vmatpush2.bf16.msra.mxu1 %v7299_v52  ;;  %5301 = vmatprep.subr.bf16.mxu0 %v7304_v53 }
  0xf1   :  { %5342 = vmatprep.subr.bf16.mxu1 %v7307_v55 }
  0xf3   :  { %5302 = vmatpush2.bf16.msra.mxu0 %v7302_v56 }
  0xf4   :  { %5343 = vmatpush2.bf16.msra.mxu1 %v7305_v57  ;;  %5303 = vmatprep.subr.bf16.mxu0 %v7310_v58  ;;  %v7347_v58 = vld [vmem:[%s10851_s1 + $0x1084] ss:$16 sps:$4 sm:$0xff]  }
  0xf5   :  { %5344 = vmatprep.subr.bf16.mxu1 %v7313_v61  ;;  %v7350_v61 = vld [vmem:[%s10851_s1 + $0x1284] ss:$16 sps:$4 sm:$0xff]  }
  0xf7   :  { %5304 = vmatpush2.bf16.msra.mxu0 %v7308_v62  ;;  %v7345_v62 = vld [vmem:[%s10851_s1 + $0x1080] ss:$16 sps:$4 sm:$0xff]  }
  0xf8   :  { %5345 = vmatpush2.bf16.msra.mxu1 %v7311_v63  ;;  %5305 = vmatprep.subr.bf16.mxu0 %v7316_v2  ;;  %v7348_v63 = vld [vmem:[%s10851_s1 + $0x1280] ss:$16 sps:$4 sm:$0xff]   ;;  %v7353_v2 = vld [vmem:[%s10851_s1 + $0x1064] ss:$16 sps:$4 sm:$0xff]  }
  0xf9   :  { %5346 = vmatprep.subr.bf16.mxu1 %v7319_v3  ;;  %v7356_v3 = vld [vmem:[%s10851_s1 + $0x1264] ss:$16 sps:$4 sm:$0xff]  }
  0xfb   :  { %5306 = vmatpush2.bf16.msra.mxu0 %v7314_v5  ;;  %v7351_v5 = vld [vmem:[%s10851_s1 + $0x1060] ss:$16 sps:$4 sm:$0xff]  }
  0xfc   :  { %5347 = vmatpush2.bf16.msra.mxu1 %v7317_v7  ;;  %5307 = vmatprep.subr.bf16.mxu0 %v7322_v8  ;;  %v7354_v7 = vld [vmem:[%s10851_s1 + $0x1260] ss:$16 sps:$4 sm:$0xff]   ;;  %v7359_v8 = vld [vmem:[%s10851_s1 + $0x1044] ss:$16 sps:$4 sm:$0xff]  }
  0xfd   :  { %5348 = vmatprep.subr.bf16.mxu1 %v7325_v9  ;;  %v7362_v9 = vld [vmem:[%s10851_s1 + $0x1244] ss:$16 sps:$4 sm:$0xff]  }
  0xff   :  { %5308 = vmatpush2.bf16.msra.mxu0 %v7320_v10  ;;  %v7357_v10 = vld [vmem:[%s10851_s1 + $0x1040] ss:$16 sps:$4 sm:$0xff]  }
 0x100   :  { %5349 = vmatpush2.bf16.msra.mxu1 %v7323_v12  ;;  %5359 = vmatprep.subr.bf16.mxu0 %v7329_v19  ;;  %v7365_v12 = vld [vmem:[%s10851_s1 + $0x1024] ss:$16 sps:$4 sm:$0xff]   ;;  %v7366_v19 = vld [vmem:[%s10851_s1 + $0x1220] ss:$16 sps:$4 sm:$0xff]  }
 0x101   :  { %5400 = vmatprep.subr.bf16.mxu1 %v7332_v20  ;;  %v7371_v20 = vld [vmem:[%s10851_s1 + $0x1004] ss:$16 sps:$4 sm:$0xff]  }
 0x102   :  { %v5065_v33 = vpop.f32.mrf.mxu0  ;;  %5310 = vmatmul.mubr.bf16.vlgmr.msra.gmra.mxu0 %v9048_v15 }
 0x103   :  { %v5106_v34 = vpop.f32.mrf.mxu1  ;;  %5351 = vmatmul.mubr.bf16.vlgmr.msra.gmra.mxu1 %v9063_v39  ;;  %v5066_v38 = vadd.f32 %v5065_v33, %v824_v27  ;;  %5360 = vmatpush1.bf16.msra.mxu0 %v7327_v24  ;;  %v7369_v24 = vld [vmem:[%s10851_s1 + $0x1000] ss:$16 sps:$4 sm:$0xff]   ;;  %v7377_v27 = vld [vmem:[%s10851_s1 + $0x11e4] ss:$16 sps:$4 sm:$0xff]  }
 0x104   :  { %5401 = vmatpush1.bf16.msra.mxu1 %v7330_v25  ;;  %v5067_v32 = vpop.f32.mrf.mxu0  ;;  %5361 = vmatprep.subr.bf16.mxu0 %v7335_v28  ;;  %v7372_v25 = vld [vmem:[%s10851_s1 + $0x1200] ss:$16 sps:$4 sm:$0xff]   ;;  %v7380_v28 = vld [vmem:[%s10851_s1 + $0x13e4] ss:$16 sps:$4 sm:$0xff]  }
 0x105   :  { %v5108_v40 = vpop.f32.mrf.mxu1  ;;  %5402 = vmatprep.subr.bf16.mxu1 %v7338_v29  ;;  %v9095_v46 = vadd.f32 %v5106_v34, %v5066_v38  ;;  %v5068_v47 = vadd.f32 %v5067_v32, %v828_v30  ;;  %5391 = vmatprep.mubr.bf16.mxu0 %v9059_v22  ;;  %v7375_v29 = vld [vmem:[%s10851_s1 + $0x11e0] ss:$16 sps:$4 sm:$0xff]   ;;  %v7383_v33 = vld [vmem:[%s10851_s1 + $0x11c4] ss:$16 sps:$4 sm:$0xff]  }
 0x106   :  { %5432 = vmatprep.mubr.bf16.mxu1 %v9079_v31  ;;  %v5069_v52 = vpop.f32.mrf.mxu0  ;;  %v7378_v30 = vld [vmem:[%s10851_s1 + $0x13e0] ss:$16 sps:$4 sm:$0xff]   ;;  %v7386_v34 = vld [vmem:[%s10851_s1 + $0x13c4] ss:$16 sps:$4 sm:$0xff]  }
 0x107   :  { %v5110_v53 = vpop.f32.mrf.mxu1  ;;  %v9105_v55 = vadd.f32 %v5108_v40, %v5068_v47  ;;  %5362 = vmatpush1.bf16.msra.mxu0 %v7333_v36  ;;  %v7381_v36 = vld [vmem:[%s10851_s1 + $0x11c0] ss:$16 sps:$4 sm:$0xff]   ;;  %v7389_v38 = vld [vmem:[%s10851_s1 + $0x11a4] ss:$16 sps:$4 sm:$0xff]  }
 0x108   :  { %5403 = vmatpush1.bf16.msra.mxu1 %v7336_v37  ;;  %v5070_v56 = vpop.f32.mrf.mxu0  ;;  %5363 = vmatprep.subr.bf16.mxu0 %v7341_v44  ;;  %v7384_v37 = vld [vmem:[%s10851_s1 + $0x13c0] ss:$16 sps:$4 sm:$0xff]   ;;  %v7392_v32 = vld [vmem:[%s10851_s1 + $0x13a4] ss:$16 sps:$4 sm:$0xff]  }
 0x109   :  { %v5111_v57 = vpop.f32.mrf.mxu1  ;;  %5404 = vmatprep.subr.bf16.mxu1 %v7344_v45  ;;  %v7387_v40 = vld [vmem:[%s10851_s1 + $0x11a0] ss:$16 sps:$4 sm:$0xff]   ;;  %v7395_v45 = vld [vmem:[%s10851_s1 + $0x1184] ss:$16 sps:$4 sm:$0xff]  }
 0x10a   :  { %v7390_v44 = vld [vmem:[%s10851_s1 + $0x13a0] ss:$16 sps:$4 sm:$0xff]   ;;  %v7398_v47 = vld [vmem:[%s10851_s1 + $0x1384] ss:$16 sps:$4 sm:$0xff]  }
 0x10b   :  { %5364 = vmatpush1.bf16.msra.mxu0 %v7339_v48  ;;  %v7393_v48 = vld [vmem:[%s10851_s1 + $0x1180] ss:$16 sps:$4 sm:$0xff]   ;;  %v7401_v52 = vld [vmem:[%s10851_s1 + $0x1164] ss:$16 sps:$4 sm:$0xff]  }
 0x10c   :  { %5405 = vmatpush1.bf16.msra.mxu1 %v7342_v51  ;;  %5365 = vmatprep.subr.bf16.mxu0 %v7347_v58  ;;  %v7396_v51 = vld [vmem:[%s10851_s1 + $0x1380] ss:$16 sps:$4 sm:$0xff]   ;;  %v7404_v53 = vld [vmem:[%s10851_s1 + $0x1364] ss:$16 sps:$4 sm:$0xff]  }
 0x10d   :  { %5406 = vmatprep.subr.bf16.mxu1 %v7350_v61  ;;  %v7399_v56 = vld [vmem:[%s10851_s1 + $0x1160] ss:$16 sps:$4 sm:$0xff]   ;;  %v7407_v58 = vld [vmem:[%s10851_s1 + $0x1144] ss:$16 sps:$4 sm:$0xff]  }
 0x10e   :  { %v7402_v57 = vld [vmem:[%s10851_s1 + $0x1360] ss:$16 sps:$4 sm:$0xff]   ;;  %v7410_v61 = vld [vmem:[%s10851_s1 + $0x1344] ss:$16 sps:$4 sm:$0xff]  }
 0x10f   :  { %5366 = vmatpush1.bf16.msra.mxu0 %v7345_v62  ;;  %v943_v62 = vcombine.high %v9011_v1, %v9011_v1  ;;  %v7416_v1 = vld [vmem:[%s10851_s1 + $0x1324] ss:$16 sps:$4 sm:$0xff]  }
 0x110   :  { %5407 = vmatpush1.bf16.msra.mxu1 %v7348_v63  ;;  %5367 = vmatprep.subr.bf16.mxu0 %v7353_v2  ;;  %v7405_v63 = vld [vmem:[%s10851_s1 + $0x1140] ss:$16 sps:$4 sm:$0xff]  }
 0x111   :  { %5408 = vmatprep.subr.bf16.mxu1 %v7356_v3  ;;  %v7408_v2 = vld [vmem:[%s10851_s1 + $0x1340] ss:$16 sps:$4 sm:$0xff]   ;;  %v7413_v3 = vld [vmem:[%s10851_s1 + $0x1124] ss:$16 sps:$4 sm:$0xff]  }
 0x113   :  { %5368 = vmatpush1.bf16.msra.mxu0 %v7351_v5  ;;  %v9248_v5 = vrot.slane %v943_v62, %v8302_v49  ;;  %v7444_v62 = vld [vmem:[%s10851_s1 + $0x1680] ss:$16 sps:$4 sm:$0xff]  }
 0x114   :  { %5409 = vmatpush1.bf16.msra.mxu1 %v7354_v7  ;;  %5369 = vmatprep.subr.bf16.mxu0 %v7359_v8  ;;  %v7411_v7 = vld [vmem:[%s10851_s1 + $0x1120] ss:$16 sps:$4 sm:$0xff]  }
 0x115   :  { %5410 = vmatprep.subr.bf16.mxu1 %v7362_v9  ;;  %v7414_v8 = vld [vmem:[%s10851_s1 + $0x1320] ss:$16 sps:$4 sm:$0xff]   ;;  %v7419_v9 = vld [vmem:[%s10851_s1 + $0x1104] ss:$16 sps:$4 sm:$0xff]  }
 0x117   :  { %5370 = vmatpush1.bf16.msra.mxu0 %v7357_v10  ;;  %v7422_v10 = vld [vmem:[%s10851_s1 + $0x1304] ss:$16 sps:$4 sm:$0xff]  }
 0x118   :  { %5411 = vmatpush1.bf16.msra.mxu1 %v7360_v11  ;;  %5371 = vmatprep.subr.bf16.mxu0 %v7365_v12  ;;  %v959_v11 = vcombine.high %v9248_v5, %v9248_v5  ;;  %v9266_v12 = vrot.slane %v9021_v4, %v8302_v49  ;;  %v7428_v4 = vld [vmem:[%s10851_s1 + $0x16e4] ss:$16 sps:$4 sm:$0xff]  }
 0x119   :  { %5412 = vmatprep.subr.bf16.mxu1 %v7368_v14  ;;  %v7417_v14 = vld [vmem:[%s10851_s1 + $0x1100] ss:$16 sps:$4 sm:$0xff]  }
 0x11b   :  { %5372 = vmatpush1.bf16.msra.mxu0 %v7363_v16  ;;  %v7420_v16 = vld [vmem:[%s10851_s1 + $0x1300] ss:$16 sps:$4 sm:$0xff]  }
 0x11c   :  { %5413 = vmatpush1.bf16.msra.mxu1 %v7366_v19  ;;  %5373 = vmatprep.subr.bf16.mxu0 %v7371_v20  ;;  %v7425_v19 = vld [vmem:[%s10851_s1 + $0x14e4] ss:$16 sps:$4 sm:$0xff]   ;;  %v7423_v20 = vld [vmem:[%s10851_s1 + $0x14e0] ss:$16 sps:$4 sm:$0xff]  }
 0x11d   :  { %5414 = vmatprep.subr.bf16.mxu1 %v7374_v21  ;;  %v7426_v21 = vld [vmem:[%s10851_s1 + $0x16e0] ss:$16 sps:$4 sm:$0xff]  }
 0x11f   :  { %5374 = vmatpush1.bf16.msra.mxu0 %v7369_v24  ;;  %v9287_v24 = vrot.slane %v959_v11, %v8302_v49  ;;  %v7461_v11 = vld [vmem:[%s10851_s1 + $0x1424] ss:$16 sps:$4 sm:$0xff]  }
 0x120   :  { %5415 = vmatpush1.bf16.msra.mxu1 %v7372_v25  ;;  %5375 = vmatprep.subr.bf16.mxu0 %v7377_v27  ;;  %v9291_v25 = vcombine.high %v9266_v12, %v9266_v12  ;;  %v7431_v27 = vld [vmem:[%s10851_s1 + $0x14c4] ss:$16 sps:$4 sm:$0xff]  }
 0x121   :  { %5416 = vmatprep.subr.bf16.mxu1 %v7380_v28  ;;  %v7434_v28 = vld [vmem:[%s10851_s1 + $0x16c4] ss:$16 sps:$4 sm:$0xff]  }
 0x123   :  { %5376 = vmatpush2.bf16.msra.mxu0 %v7375_v29  ;;  %v7429_v29 = vld [vmem:[%s10851_s1 + $0x14c0] ss:$16 sps:$4 sm:$0xff]  }
 0x124   :  { %5417 = vmatpush2.bf16.msra.mxu1 %v7378_v30  ;;  %5377 = vmatprep.subr.bf16.mxu0 %v7383_v33  ;;  %v7432_v30 = vld [vmem:[%s10851_s1 + $0x16c0] ss:$16 sps:$4 sm:$0xff]   ;;  %v9307_v33 = vcombine.high %v9287_v24, %v9287_v24 }
 0x125   :  { %5418 = vmatprep.subr.bf16.mxu1 %v7386_v34 }
 0x127   :  { %5378 = vmatpush2.bf16.msra.mxu0 %v7381_v36 }
 0x128   :  { %5419 = vmatpush2.bf16.msra.mxu1 %v7384_v37  ;;  %5379 = vmatprep.subr.bf16.mxu0 %v7389_v38 }
 0x129   :  { %5420 = vmatprep.subr.bf16.mxu1 %v7392_v32 }
 0x12b   :  { %5380 = vmatpush2.bf16.msra.mxu0 %v7387_v40  ;;  %v7437_v40 = vld [vmem:[%s10851_s1 + $0x14a4] ss:$16 sps:$4 sm:$0xff]  }
 0x12c   :  { %5421 = vmatpush2.bf16.msra.mxu1 %v7390_v44  ;;  %5381 = vmatprep.subr.bf16.mxu0 %v7395_v45  ;;  %v7440_v44 = vld [vmem:[%s10851_s1 + $0x16a4] ss:$16 sps:$4 sm:$0xff]  }
 0x12d   :  { %5422 = vmatprep.subr.bf16.mxu1 %v7398_v47 }
 0x12f   :  { %5382 = vmatpush2.bf16.msra.mxu0 %v7393_v48  ;;  %v7438_v48 = vld [vmem:[%s10851_s1 + $0x16a0] ss:$16 sps:$4 sm:$0xff]  }
 0x130   :  { %5423 = vmatpush2.bf16.msra.mxu1 %v7396_v51  ;;  %5383 = vmatprep.subr.bf16.mxu0 %v7401_v52 }
 0x131   :  { %5424 = vmatprep.subr.bf16.mxu1 %v7404_v53 }
 0x133   :  { %5384 = vmatpush2.bf16.msra.mxu0 %v7399_v56 }
 0x134   :  { %5425 = vmatpush2.bf16.msra.mxu1 %v7402_v57  ;;  %5385 = vmatprep.subr.bf16.mxu0 %v7407_v58  ;;  %v7443_v57 = vld [vmem:[%s10851_s1 + $0x1484] ss:$16 sps:$4 sm:$0xff]  }
 0x135   :  { %5426 = vmatprep.subr.bf16.mxu1 %v7410_v61  ;;  %v7446_v58 = vld [vmem:[%s10851_s1 + $0x1684] ss:$16 sps:$4 sm:$0xff]   ;;  %v7441_v61 = vld [vmem:[%s10851_s1 + $0x1480] ss:$16 sps:$4 sm:$0xff]  }
 0x137   :  { %5386 = vmatpush2.bf16.msra.mxu0 %v7405_v63  ;;  %v7449_v63 = vld [vmem:[%s10851_s1 + $0x1464] ss:$16 sps:$4 sm:$0xff]  }
 0x138   :  { %5427 = vmatpush2.bf16.msra.mxu1 %v7408_v2  ;;  %5387 = vmatprep.subr.bf16.mxu0 %v7413_v3  ;;  %v7452_v2 = vld [vmem:[%s10851_s1 + $0x1664] ss:$16 sps:$4 sm:$0xff]   ;;  %v7447_v3 = vld [vmem:[%s10851_s1 + $0x1460] ss:$16 sps:$4 sm:$0xff]  }
 0x139   :  { %5428 = vmatprep.subr.bf16.mxu1 %v7416_v1  ;;  %v7450_v1 = vld [vmem:[%s10851_s1 + $0x1660] ss:$16 sps:$4 sm:$0xff]  }
 0x13b   :  { %5388 = vmatpush2.bf16.msra.mxu0 %v7411_v7  ;;  %v7455_v7 = vld [vmem:[%s10851_s1 + $0x1444] ss:$16 sps:$4 sm:$0xff]  }
 0x13c   :  { %5429 = vmatpush2.bf16.msra.mxu1 %v7414_v8  ;;  %5389 = vmatprep.subr.bf16.mxu0 %v7419_v9  ;;  %v7458_v8 = vld [vmem:[%s10851_s1 + $0x1644] ss:$16 sps:$4 sm:$0xff]   ;;  %v7453_v9 = vld [vmem:[%s10851_s1 + $0x1440] ss:$16 sps:$4 sm:$0xff]  }
 0x13d   :  { %5430 = vmatprep.subr.bf16.mxu1 %v7422_v10  ;;  %v7456_v10 = vld [vmem:[%s10851_s1 + $0x1640] ss:$16 sps:$4 sm:$0xff]  }
 0x13f   :  { %5390 = vmatpush2.bf16.msra.mxu0 %v7417_v14  ;;  %v7464_v14 = vld [vmem:[%s10851_s1 + $0x1624] ss:$16 sps:$4 sm:$0xff]  }
 0x140   :  { %5431 = vmatpush2.bf16.msra.mxu1 %v7420_v16  ;;  %5441 = vmatprep.subr.bf16.mxu0 %v7425_v19  ;;  %v7459_v16 = vld [vmem:[%s10851_s1 + $0x1420] ss:$16 sps:$4 sm:$0xff]  }
 0x141   :  { %5482 = vmatprep.subr.bf16.mxu1 %v7428_v4  ;;  %v7462_v19 = vld [vmem:[%s10851_s1 + $0x1620] ss:$16 sps:$4 sm:$0xff]   ;;  %v7467_v4 = vld [vmem:[%s10851_s1 + $0x1404] ss:$16 sps:$4 sm:$0xff]  }
 0x142   :  { %v5147_v34 = vpop.f32.mrf.mxu0  ;;  %5392 = vmatmul.mubr.bf16.vlgmr.msra.gmra.mxu0 %v9266_v12 }
 0x143   :  { %v5188_v36 = vpop.f32.mrf.mxu1  ;;  %5433 = vmatmul.mubr.bf16.vlgmr.msra.gmra.mxu1 %v9291_v25  ;;  %v5148_v37 = vadd.f32 %v5147_v34, %v9095_v46  ;;  %5442 = vmatpush1.bf16.msra.mxu0 %v7423_v20  ;;  %v7435_v46 = vld [vmem:[%s10851_s1 + $0x14a0] ss:$16 sps:$4 sm:$0xff]   ;;  %v7470_v20 = vld [vmem:[%s10851_s1 + $0x1604] ss:$16 sps:$4 sm:$0xff]  }
 0x144   :  { %5483 = vmatpush1.bf16.msra.mxu1 %v7426_v21  ;;  %v5149_v38 = vpop.f32.mrf.mxu0  ;;  %5443 = vmatprep.subr.bf16.mxu0 %v7431_v27  ;;  %v7465_v21 = vld [vmem:[%s10851_s1 + $0x1400] ss:$16 sps:$4 sm:$0xff]  }
 0x145   :  { %v5190_v32 = vpop.f32.mrf.mxu1  ;;  %5484 = vmatprep.subr.bf16.mxu1 %v7434_v28  ;;  %v9318_v45 = vadd.f32 %v5188_v36, %v5148_v37  ;;  %v5150_v47 = vadd.f32 %v5149_v38, %v9105_v55  ;;  %5473 = vmatprep.mubr.bf16.mxu0 %v9287_v24  ;;  %v7468_v27 = vld [vmem:[%s10851_s1 + $0x1600] ss:$16 sps:$4 sm:$0xff]   ;;  %v7473_v28 = vld [vmem:[%s10851_s1 + $0x15e4] ss:$16 sps:$4 sm:$0xff]  }
 0x146   :  { %5514 = vmatprep.mubr.bf16.mxu1 %v9307_v33  ;;  %v5151_v51 = vpop.f32.mrf.mxu0  ;;  %v7474_v34 = vld [vmem:[%s10851_s1 + $0x17e0] ss:$16 sps:$4 sm:$0xff]   ;;  %v7479_v36 = vld [vmem:[%s10851_s1 + $0x15c4] ss:$16 sps:$4 sm:$0xff]  }
 0x147   :  { %v5192_v52 = vpop.f32.mrf.mxu1  ;;  %v9329_v53 = vadd.f32 %v5190_v32, %v5150_v47  ;;  %5444 = vmatpush1.bf16.msra.mxu0 %v7429_v29  ;;  %v7476_v29 = vld [vmem:[%s10851_s1 + $0x17e4] ss:$16 sps:$4 sm:$0xff]   ;;  %v7477_v38 = vld [vmem:[%s10851_s1 + $0x15c0] ss:$16 sps:$4 sm:$0xff]  }
 0x148   :  { %5485 = vmatpush1.bf16.msra.mxu1 %v7432_v30  ;;  %v5152_v56 = vpop.f32.mrf.mxu0  ;;  %5445 = vmatprep.subr.bf16.mxu0 %v7437_v40  ;;  %v7471_v30 = vld [vmem:[%s10851_s1 + $0x15e0] ss:$16 sps:$4 sm:$0xff]   ;;  %v7482_v37 = vld [vmem:[%s10851_s1 + $0x17c4] ss:$16 sps:$4 sm:$0xff]  }
 0x149   :  { %v5193_v55 = vpop.f32.mrf.mxu1  ;;  %5486 = vmatprep.subr.bf16.mxu1 %v7440_v44  ;;  %v7480_v32 = vld [vmem:[%s10851_s1 + $0x17c0] ss:$16 sps:$4 sm:$0xff]   ;;  %v7485_v40 = vld [vmem:[%s10851_s1 + $0x15a4] ss:$16 sps:$4 sm:$0xff]  }
 0x14a   :  { %v7488_v44 = vld [vmem:[%s10851_s1 + $0x17a4] ss:$16 sps:$4 sm:$0xff]   ;;  %v7483_v47 = vld [vmem:[%s10851_s1 + $0x15a0] ss:$16 sps:$4 sm:$0xff]  }
 0x14b   :  { %5446 = vmatpush1.bf16.msra.mxu0 %v7435_v46  ;;  %v7486_v46 = vld [vmem:[%s10851_s1 + $0x17a0] ss:$16 sps:$4 sm:$0xff]   ;;  %v7494_v51 = vld [vmem:[%s10851_s1 + $0x1784] ss:$16 sps:$4 sm:$0xff]  }
 0x14c   :  { %5487 = vmatpush1.bf16.msra.mxu1 %v7438_v48  ;;  %5447 = vmatprep.subr.bf16.mxu0 %v7443_v57  ;;  %v7491_v48 = vld [vmem:[%s10851_s1 + $0x1584] ss:$16 sps:$4 sm:$0xff]   ;;  %v7489_v52 = vld [vmem:[%s10851_s1 + $0x1580] ss:$16 sps:$4 sm:$0xff]  }
 0x14d   :  { %5488 = vmatprep.subr.bf16.mxu1 %v7446_v58  ;;  %v7492_v56 = vld [vmem:[%s10851_s1 + $0x1780] ss:$16 sps:$4 sm:$0xff]   ;;  %v7497_v55 = vld [vmem:[%s10851_s1 + $0x1564] ss:$16 sps:$4 sm:$0xff]  }
 0x14e   :  { %v7500_v57 = vld [vmem:[%s10851_s1 + $0x1764] ss:$16 sps:$4 sm:$0xff]   ;;  %v7495_v58 = vld [vmem:[%s10851_s1 + $0x1560] ss:$16 sps:$4 sm:$0xff]  }
 0x14f   :  { %5448 = vmatpush1.bf16.msra.mxu0 %v7441_v61  ;;  %v7498_v61 = vld [vmem:[%s10851_s1 + $0x1760] ss:$16 sps:$4 sm:$0xff]  }
 0x150   :  { %5489 = vmatpush1.bf16.msra.mxu1 %v7444_v62  ;;  %5449 = vmatprep.subr.bf16.mxu0 %v7449_v63  ;;  %v7503_v62 = vld [vmem:[%s10851_s1 + $0x1544] ss:$16 sps:$4 sm:$0xff]  }
 0x151   :  { %5490 = vmatprep.subr.bf16.mxu1 %v7452_v2  ;;  %v7506_v63 = vld [vmem:[%s10851_s1 + $0x1744] ss:$16 sps:$4 sm:$0xff]   ;;  %v7501_v2 = vld [vmem:[%s10851_s1 + $0x1540] ss:$16 sps:$4 sm:$0xff]  }
 0x153   :  { %5450 = vmatpush1.bf16.msra.mxu0 %v7447_v3  ;;  %v7504_v3 = vld [vmem:[%s10851_s1 + $0x1740] ss:$16 sps:$4 sm:$0xff]  }
 0x154   :  { %5491 = vmatpush1.bf16.msra.mxu1 %v7450_v1  ;;  %5451 = vmatprep.subr.bf16.mxu0 %v7455_v7  ;;  %v7509_v1 = vld [vmem:[%s10851_s1 + $0x1524] ss:$16 sps:$4 sm:$0xff]  }
 0x155   :  { %5492 = vmatprep.subr.bf16.mxu1 %v7458_v8  ;;  %v7512_v7 = vld [vmem:[%s10851_s1 + $0x1724] ss:$16 sps:$4 sm:$0xff]   ;;  %v7507_v8 = vld [vmem:[%s10851_s1 + $0x1520] ss:$16 sps:$4 sm:$0xff]  }
 0x157   :  { %5452 = vmatpush1.bf16.msra.mxu0 %v7453_v9  ;;  %v7510_v9 = vld [vmem:[%s10851_s1 + $0x1720] ss:$16 sps:$4 sm:$0xff]  }
 0x158   :  { %5493 = vmatpush1.bf16.msra.mxu1 %v7456_v10  ;;  %5453 = vmatprep.subr.bf16.mxu0 %v7461_v11  ;;  %v7515_v10 = vld [vmem:[%s10851_s1 + $0x1504] ss:$16 sps:$4 sm:$0xff]  }
 0x159   :  { %5494 = vmatprep.subr.bf16.mxu1 %v7464_v14  ;;  %v7518_v11 = vld [vmem:[%s10851_s1 + $0x1704] ss:$16 sps:$4 sm:$0xff]   ;;  %v9483_v14 = vrot.slane %v9248_v5, %v8302_v49  ;;  %v7525_v5 = vld [vmem:[%s10851_s1 + $0xec] ss:$16 sps:$4 sm:$0xff]  }
 0x15b   :  { %5454 = vmatpush1.bf16.msra.mxu0 %v7459_v16  ;;  %v7513_v16 = vld [vmem:[%s10851_s1 + $0x1500] ss:$16 sps:$4 sm:$0xff]  }
 0x15c   :  { %5495 = vmatpush1.bf16.msra.mxu1 %v7462_v19  ;;  %5455 = vmatprep.subr.bf16.mxu0 %v7467_v4  ;;  %v7516_v19 = vld [vmem:[%s10851_s1 + $0x1700] ss:$16 sps:$4 sm:$0xff]   ;;  %v7522_v4 = vld [vmem:[%s10851_s1 + $0x18e4] ss:$16 sps:$4 sm:$0xff]  }
 0x15d   :  { %5496 = vmatprep.subr.bf16.mxu1 %v7470_v20  ;;  %v7520_v20 = vld [vmem:[%s10851_s1 + $0x18e0] ss:$16 sps:$4 sm:$0xff]  }
 0x15f   :  { %5456 = vmatpush1.bf16.msra.mxu0 %v7465_v21  ;;  %v7523_v21 = vld [vmem:[%s10851_s1 + $0xe8] ss:$16 sps:$4 sm:$0xff]  }
 0x160   :  { %5497 = vmatpush1.bf16.msra.mxu1 %v7468_v27  ;;  %5457 = vmatprep.subr.bf16.mxu0 %v7473_v28  ;;  %v9505_v27 = vcombine.high %v9483_v14, %v9483_v14  ;;  %v7528_v28 = vld [vmem:[%s10851_s1 + $0x18c4] ss:$16 sps:$4 sm:$0xff]  }
 0x161   :  { %5498 = vmatprep.subr.bf16.mxu1 %v7476_v29  ;;  %v7531_v29 = vld [vmem:[%s10851_s1 + $0xcc] ss:$16 sps:$4 sm:$0xff]  }
 0x163   :  { %5458 = vmatpush2.bf16.msra.mxu0 %v7471_v30  ;;  %v7526_v30 = vld [vmem:[%s10851_s1 + $0x18c0] ss:$16 sps:$4 sm:$0xff]  }
 0x164   :  { %5499 = vmatpush2.bf16.msra.mxu1 %v7474_v34  ;;  %5459 = vmatprep.subr.bf16.mxu0 %v7479_v36  ;;  %v7529_v34 = vld [vmem:[%s10851_s1 + $0xc8] ss:$16 sps:$4 sm:$0xff]  }
 0x165   :  { %5500 = vmatprep.subr.bf16.mxu1 %v7482_v37 }
 0x167   :  { %5460 = vmatpush2.bf16.msra.mxu0 %v7477_v38 }
 0x168   :  { %5501 = vmatpush2.bf16.msra.mxu1 %v7480_v32  ;;  %5461 = vmatprep.subr.bf16.mxu0 %v7485_v40 }
 0x169   :  { %5502 = vmatprep.subr.bf16.mxu1 %v7488_v44  ;;  %v7534_v44 = vld [vmem:[%s10851_s1 + $0x18a4] ss:$16 sps:$4 sm:$0xff]  }
 0x16b   :  { %5462 = vmatpush2.bf16.msra.mxu0 %v7483_v47  ;;  %v7537_v47 = vld [vmem:[%s10851_s1 + $0xac] ss:$16 sps:$4 sm:$0xff]  }
 0x16c   :  { %5503 = vmatpush2.bf16.msra.mxu1 %v7486_v46  ;;  %5463 = vmatprep.subr.bf16.mxu0 %v7491_v48 }
 0x16d   :  { %5504 = vmatprep.subr.bf16.mxu1 %v7494_v51  ;;  %v7535_v51 = vld [vmem:[%s10851_s1 + $0xa8] ss:$16 sps:$4 sm:$0xff]  }
 0x16f   :  { %5464 = vmatpush2.bf16.msra.mxu0 %v7489_v52  ;;  %v8146_v52 = vmov 0  }
 0x170   :  { %5505 = vmatpush2.bf16.msra.mxu1 %v7492_v56  ;;  %5465 = vmatprep.subr.bf16.mxu0 %v7497_v55 }
 0x171   :  { %5506 = vmatprep.subr.bf16.mxu1 %v7500_v57 }
 0x173   :  { %5466 = vmatpush2.bf16.msra.mxu0 %v7495_v58 }
 0x174   :  { %5507 = vmatpush2.bf16.msra.mxu1 %v7498_v61  ;;  %5467 = vmatprep.subr.bf16.mxu0 %v7503_v62  ;;  %v7540_v61 = vld [vmem:[%s10851_s1 + $0x1884] ss:$16 sps:$4 sm:$0xff]   ;;  %v7543_v62 = vld [vmem:[%s10851_s1 + $0x8c] ss:$16 sps:$4 sm:$0xff]  }
 0x175   :  { %5508 = vmatprep.subr.bf16.mxu1 %v7506_v63  ;;  %v7541_v63 = vld [vmem:[%s10851_s1 + $0x88] ss:$16 sps:$4 sm:$0xff]  }
 0x177   :  { %5468 = vmatpush2.bf16.msra.mxu0 %v7501_v2  ;;  %v7546_v2 = vld [vmem:[%s10851_s1 + $0x1864] ss:$16 sps:$4 sm:$0xff]  }
 0x178   :  { %5509 = vmatpush2.bf16.msra.mxu1 %v7504_v3  ;;  %5469 = vmatprep.subr.bf16.mxu0 %v7509_v1  ;;  %v7549_v3 = vld [vmem:[%s10851_s1 + $0x6c] ss:$16 sps:$4 sm:$0xff]   ;;  %v7544_v1 = vld [vmem:[%s10851_s1 + $0x1860] ss:$16 sps:$4 sm:$0xff]  }
 0x179   :  { %5510 = vmatprep.subr.bf16.mxu1 %v7512_v7  ;;  %v7547_v7 = vld [vmem:[%s10851_s1 + $0x68] ss:$16 sps:$4 sm:$0xff]  }
 0x17b   :  { %5470 = vmatpush2.bf16.msra.mxu0 %v7507_v8  ;;  %v7552_v8 = vld [vmem:[%s10851_s1 + $0x1844] ss:$16 sps:$4 sm:$0xff]  }
 0x17c   :  { %5511 = vmatpush2.bf16.msra.mxu1 %v7510_v9  ;;  %5471 = vmatprep.subr.bf16.mxu0 %v7515_v10  ;;  %v7555_v9 = vld [vmem:[%s10851_s1 + $0x4c] ss:$16 sps:$4 sm:$0xff]   ;;  %v7550_v10 = vld [vmem:[%s10851_s1 + $0x1840] ss:$16 sps:$4 sm:$0xff]  }
 0x17d   :  { %5512 = vmatprep.subr.bf16.mxu1 %v7518_v11  ;;  %v7553_v11 = vld [vmem:[%s10851_s1 + $0x48] ss:$16 sps:$4 sm:$0xff]  }
 0x17f   :  { %5472 = vmatpush2.bf16.msra.mxu0 %v7513_v16  ;;  %v7558_v16 = vld [vmem:[%s10851_s1 + $0x1824] ss:$16 sps:$4 sm:$0xff]  }
 0x180   :  { %5513 = vmatpush2.bf16.msra.mxu1 %v7516_v19  ;;  %5523 = vmatprep.subr.bf16.mxu0 %v7522_v4  ;;  %v7561_v19 = vld [vmem:[%s10851_s1 + $0x2c] ss:$16 sps:$4 sm:$0xff]   ;;  %v7556_v4 = vld [vmem:[%s10851_s1 + $0x1820] ss:$16 sps:$4 sm:$0xff]  }
 0x181   :  { %5564 = vmatprep.subr.bf16.mxu1 %v7525_v5  ;;  %v7559_v5 = vld [vmem:[%s10851_s1 + $0x28] ss:$16 sps:$4 sm:$0xff]  }
 0x182   :  { %v5229_v36 = vpop.f32.mrf.mxu0  ;;  %5474 = vmatmul.mubr.bf16.vlgmr.msra.gmra.mxu0 %v9483_v14 }
 0x183   :  { %v5270_v37 = vpop.f32.mrf.mxu1  ;;  %5515 = vmatmul.mubr.bf16.vlgmr.msra.gmra.mxu1 %v9505_v27  ;;  %v5230_v38 = vadd.f32 %v5229_v36, %v9318_v45  ;;  %5524 = vmatpush1.bf16.msra.mxu0 %v7520_v20  ;;  %v7532_v45 = vld [vmem:[%s10851_s1 + $0x18a0] ss:$16 sps:$4 sm:$0xff]   ;;  %v7564_v20 = vld [vmem:[%s10851_s1 + $0x1804] ss:$16 sps:$4 sm:$0xff]   ;;  %v7573_v36 = vld [vmem:[%s10851_s1 + $0x2ec] ss:$16 sps:$4 sm:$0xff]  }
 0x184   :  { %5565 = vmatpush1.bf16.msra.mxu1 %v7523_v21  ;;  %v5231_v32 = vpop.f32.mrf.mxu0  ;;  %5525 = vmatprep.subr.bf16.mxu0 %v7528_v28  ;;  %v7567_v21 = vld [vmem:[%s10851_s1 + $0xc] ss:$16 sps:$4 sm:$0xff]   ;;  %v7562_v28 = vld [vmem:[%s10851_s1 + $0x1800] ss:$16 sps:$4 sm:$0xff]  }
 0x185   :  { %v5272_v40 = vpop.f32.mrf.mxu1  ;;  %5566 = vmatprep.subr.bf16.mxu1 %v7531_v29  ;;  %v9528_v46 = vadd.f32 %v5270_v37, %v5230_v38  ;;  %v5232_v48 = vadd.f32 %v5231_v32, %v9329_v53  ;;  %5555 = vmatprep.mubr.bf16.mxu0 %v8146_v52  ;;  %v7565_v29 = vld [vmem:[%s10851_s1 + $0x8] ss:$16 sps:$4 sm:$0xff]  }
 0x186   :  { %5596 = vmatprep.mubr.bf16.mxu1 %v8330_v60  ;;  %v5233_v56 = vpop.f32.mrf.mxu0  ;;  %v7538_v60 = vld [vmem:[%s10851_s1 + $0x1880] ss:$16 sps:$4 sm:$0xff]   ;;  %v7568_v37 = vld [vmem:[%s10851_s1 + $0x1e8] ss:$16 sps:$4 sm:$0xff]  }
 0x187   :  { %v5274_v55 = vpop.f32.mrf.mxu1  ;;  %v9539_v57 = vadd.f32 %v5272_v40, %v5232_v48  ;;  %5526 = vmatpush1.bf16.msra.mxu0 %v7526_v30  ;;  %v6135_v30 = vld.sshfl [vmem:[%s10852_s0 + $0x18] sm:$0x1 pattern:$0x75316420]  ;;  %v7576_v40 = vld [vmem:[%s10851_s1 + $0x1cc] ss:$16 sps:$4 sm:$0xff]  }
 0x188   :  { %5567 = vmatpush1.bf16.msra.mxu1 %v7529_v34  ;;  %v5234_v53 = vpop.f32.mrf.mxu0  ;;  %5527 = vmatprep.subr.bf16.mxu0 %v7534_v44  ;;  %v7570_v34 = vld [vmem:[%s10851_s1 + $0x1ec] ss:$16 sps:$4 sm:$0xff]   ;;  %v7571_v38 = vld [vmem:[%s10851_s1 + $0x2e8] ss:$16 sps:$4 sm:$0xff]   ;;  %v9617_v32 = vrot.slane %v6135_v30, %v8302_v49 }
 0x189   :  { %v5275_v58 = vpop.f32.mrf.mxu1  ;;  %5568 = vmatprep.subr.bf16.mxu1 %v7537_v47  ;;  %v7579_v44 = vld [vmem:[%s10851_s1 + $0x2cc] ss:$16 sps:$4 sm:$0xff]   ;;  %v7574_v47 = vld [vmem:[%s10851_s1 + $0x1c8] ss:$16 sps:$4 sm:$0xff]  }
 0x18a   :  { %v7577_v48 = vld [vmem:[%s10851_s1 + $0x2c8] ss:$16 sps:$4 sm:$0xff]   ;;  %v7588_v53 = vld [vmem:[%s10851_s1 + $0x18c] ss:$16 sps:$4 sm:$0xff]  }
 0x18b   :  { %5528 = vmatpush1.bf16.msra.mxu0 %v7532_v45  ;;  %v7582_v45 = vld [vmem:[%s10851_s1 + $0x1ac] ss:$16 sps:$4 sm:$0xff]   ;;  %v7580_v56 = vld [vmem:[%s10851_s1 + $0x1a8] ss:$16 sps:$4 sm:$0xff]  }
 0x18c   :  { %5569 = vmatpush1.bf16.msra.mxu1 %v7535_v51  ;;  %5529 = vmatprep.subr.bf16.mxu0 %v7540_v61  ;;  %v7585_v51 = vld [vmem:[%s10851_s1 + $0x2ac] ss:$16 sps:$4 sm:$0xff]   ;;  %v7583_v55 = vld [vmem:[%s10851_s1 + $0x2a8] ss:$16 sps:$4 sm:$0xff]  }
 0x18d   :  { %5570 = vmatprep.subr.bf16.mxu1 %v7543_v62  ;;  %v7586_v58 = vld [vmem:[%s10851_s1 + $0x188] ss:$16 sps:$4 sm:$0xff]   ;;  %v7594_v62 = vld [vmem:[%s10851_s1 + $0x16c] ss:$16 sps:$4 sm:$0xff]  }
 0x18e   :  { %v7589_v61 = vld [vmem:[%s10851_s1 + $0x288] ss:$16 sps:$4 sm:$0xff]  }
 0x18f   :  { %5530 = vmatpush1.bf16.msra.mxu0 %v7538_v60  ;;  %v7597_v60 = vld [vmem:[%s10851_s1 + $0x26c] ss:$16 sps:$4 sm:$0xff]   ;;  %v7619_v30 = vld [vmem:[%s10851_s1 + $0x4e8] ss:$16 sps:$4 sm:$0xff]  }
 0x190   :  { %5571 = vmatpush1.bf16.msra.mxu1 %v7541_v63  ;;  %5531 = vmatprep.subr.bf16.mxu0 %v7546_v2  ;;  %v7592_v63 = vld [vmem:[%s10851_s1 + $0x168] ss:$16 sps:$4 sm:$0xff]  }
 0x191   :  { %5572 = vmatprep.subr.bf16.mxu1 %v7549_v3  ;;  %v7595_v2 = vld [vmem:[%s10851_s1 + $0x268] ss:$16 sps:$4 sm:$0xff]   ;;  %v7600_v3 = vld [vmem:[%s10851_s1 + $0x14c] ss:$16 sps:$4 sm:$0xff]  }
 0x193   :  { %5532 = vmatpush1.bf16.msra.mxu0 %v7544_v1  ;;  %v7603_v1 = vld [vmem:[%s10851_s1 + $0x24c] ss:$16 sps:$4 sm:$0xff]  }
 0x194   :  { %5573 = vmatpush1.bf16.msra.mxu1 %v7547_v7  ;;  %5533 = vmatprep.subr.bf16.mxu0 %v7552_v8  ;;  %v7598_v7 = vld [vmem:[%s10851_s1 + $0x148] ss:$16 sps:$4 sm:$0xff]  }
 0x195   :  { %5574 = vmatprep.subr.bf16.mxu1 %v7555_v9  ;;  %v7601_v8 = vld [vmem:[%s10851_s1 + $0x248] ss:$16 sps:$4 sm:$0xff]   ;;  %v7606_v9 = vld [vmem:[%s10851_s1 + $0x12c] ss:$16 sps:$4 sm:$0xff]  }
 0x197   :  { %5534 = vmatpush1.bf16.msra.mxu0 %v7550_v10  ;;  %v7609_v10 = vld [vmem:[%s10851_s1 + $0x22c] ss:$16 sps:$4 sm:$0xff]  }
 0x198   :  { %5575 = vmatpush1.bf16.msra.mxu1 %v7553_v11  ;;  %5535 = vmatprep.subr.bf16.mxu0 %v7558_v16  ;;  %v7604_v11 = vld [vmem:[%s10851_s1 + $0x128] ss:$16 sps:$4 sm:$0xff]  }
 0x199   :  { %5576 = vmatprep.subr.bf16.mxu1 %v7561_v19  ;;  %v7607_v16 = vld [vmem:[%s10851_s1 + $0x228] ss:$16 sps:$4 sm:$0xff]   ;;  %v7612_v19 = vld [vmem:[%s10851_s1 + $0x10c] ss:$16 sps:$4 sm:$0xff]  }
 0x19b   :  { %5536 = vmatpush1.bf16.msra.mxu0 %v7556_v4  ;;  %v7615_v4 = vld [vmem:[%s10851_s1 + $0x20c] ss:$16 sps:$4 sm:$0xff]  }
 0x19c   :  { %5577 = vmatpush1.bf16.msra.mxu1 %v7559_v5  ;;  %5537 = vmatprep.subr.bf16.mxu0 %v7564_v20  ;;  %v7610_v5 = vld [vmem:[%s10851_s1 + $0x108] ss:$16 sps:$4 sm:$0xff]  }
 0x19d   :  { %5578 = vmatprep.subr.bf16.mxu1 %v7567_v21  ;;  %v7613_v20 = vld [vmem:[%s10851_s1 + $0x208] ss:$16 sps:$4 sm:$0xff]   ;;  %v7618_v21 = vld [vmem:[%s10851_s1 + $0x3ec] ss:$16 sps:$4 sm:$0xff]  }
 0x19f   :  { %5538 = vmatpush1.bf16.msra.mxu0 %v7562_v28  ;;  %v7621_v28 = vld [vmem:[%s10851_s1 + $0x4ec] ss:$16 sps:$4 sm:$0xff]  }
 0x1a0   :  { %5579 = vmatpush1.bf16.msra.mxu1 %v7565_v29  ;;  %5605 = vmatprep.subr.bf16.mxu0 %v7573_v36  ;;  %v7616_v29 = vld [vmem:[%s10851_s1 + $0x3e8] ss:$16 sps:$4 sm:$0xff]   ;;  %v7627_v36 = vld [vmem:[%s10851_s1 + $0x4cc] ss:$16 sps:$4 sm:$0xff]  }
 0x1a1   :  { %5580 = vmatprep.subr.bf16.mxu1 %v7570_v34  ;;  %v7624_v34 = vld [vmem:[%s10851_s1 + $0x3cc] ss:$16 sps:$4 sm:$0xff]  }
 0x1a2   :  { %5556 = vmatmul.mubr.bf16.vlgmr.msra.gmra.mxu0 %v9617_v32 }
 0x1a3   :  { %5606 = vmatpush1.bf16.msra.mxu0 %v7571_v38  ;;  %5637 = vmatprep.mubr.bf16.mxu0 %v8343_v0  ;;  %v7591_v0 = vld [vmem:[%s10851_s1 + $0x28c] ss:$16 sps:$4 sm:$0xff]   ;;  %v7625_v38 = vld [vmem:[%s10851_s1 + $0x4c8] ss:$16 sps:$4 sm:$0xff]  }
 0x1a4   :  { %5581 = vmatpush2.bf16.msra.mxu1 %v7568_v37  ;;  %5607 = vmatprep.subr.bf16.mxu0 %v7579_v44  ;;  %v7622_v37 = vld [vmem:[%s10851_s1 + $0x3c8] ss:$16 sps:$4 sm:$0xff]  }
 0x1a5   :  { %5582 = vmatprep.subr.bf16.mxu1 %v7576_v40 }
 0x1a7   :  { %5608 = vmatpush1.bf16.msra.mxu0 %v7577_v48 }
 0x1a8   :  { %5583 = vmatpush2.bf16.msra.mxu1 %v7574_v47  ;;  %5609 = vmatprep.subr.bf16.mxu0 %v7585_v51  ;;  %v7630_v51 = vld [vmem:[%s10851_s1 + $0x3ac] ss:$16 sps:$4 sm:$0xff]  }
 0x1a9   :  { %5584 = vmatprep.subr.bf16.mxu1 %v7582_v45 }
 0x1ab   :  { %5610 = vmatpush1.bf16.msra.mxu0 %v7583_v55 }
 0x1ac   :  { %5585 = vmatpush2.bf16.msra.mxu1 %v7580_v56  ;;  %5611 = vmatprep.subr.bf16.mxu0 %v7591_v0  ;;  %v7633_v56 = vld [vmem:[%s10851_s1 + $0x4ac] ss:$16 sps:$4 sm:$0xff]  }
 0x1ad   :  { %5586 = vmatprep.subr.bf16.mxu1 %v7588_v53  ;;  %v7631_v53 = vld [vmem:[%s10851_s1 + $0x4a8] ss:$16 sps:$4 sm:$0xff]  }
 0x1af   :  { %5612 = vmatpush1.bf16.msra.mxu0 %v7589_v61 }
 0x1b0   :  { %5587 = vmatpush2.bf16.msra.mxu1 %v7586_v58  ;;  %5613 = vmatprep.subr.bf16.mxu0 %v7597_v60 }
 0x1b1   :  { %5588 = vmatprep.subr.bf16.mxu1 %v7594_v62 }
 0x1b3   :  { %5614 = vmatpush1.bf16.msra.mxu0 %v7595_v2  ;;  %v7637_v2 = vld [vmem:[%s10851_s1 + $0x488] ss:$16 sps:$4 sm:$0xff]  }
 0x1b4   :  { %5589 = vmatpush2.bf16.msra.mxu1 %v7592_v63  ;;  %5615 = vmatprep.subr.bf16.mxu0 %v7603_v1  ;;  %v7639_v63 = vld [vmem:[%s10851_s1 + $0x48c] ss:$16 sps:$4 sm:$0xff]  }
 0x1b5   :  { %5590 = vmatprep.subr.bf16.mxu1 %v7600_v3  ;;  %v7642_v3 = vld [vmem:[%s10851_s1 + $0x36c] ss:$16 sps:$4 sm:$0xff]  }
 0x1b6   :  { %v7645_v1 = vld [vmem:[%s10851_s1 + $0x46c] ss:$16 sps:$4 sm:$0xff]  }
 0x1b7   :  { %5616 = vmatpush1.bf16.msra.mxu0 %v7601_v8  ;;  %v7643_v8 = vld [vmem:[%s10851_s1 + $0x468] ss:$16 sps:$4 sm:$0xff]  }
 0x1b8   :  { %5591 = vmatpush2.bf16.msra.mxu1 %v7598_v7  ;;  %5617 = vmatprep.subr.bf16.mxu0 %v7609_v10  ;;  %v7640_v7 = vld [vmem:[%s10851_s1 + $0x368] ss:$16 sps:$4 sm:$0xff]   ;;  %v7651_v10 = vld [vmem:[%s10851_s1 + $0x44c] ss:$16 sps:$4 sm:$0xff]  }
 0x1b9   :  { %5592 = vmatprep.subr.bf16.mxu1 %v7606_v9  ;;  %v7648_v9 = vld [vmem:[%s10851_s1 + $0x34c] ss:$16 sps:$4 sm:$0xff]  }
 0x1bb   :  { %5618 = vmatpush1.bf16.msra.mxu0 %v7607_v16  ;;  %v7649_v16 = vld [vmem:[%s10851_s1 + $0x448] ss:$16 sps:$4 sm:$0xff]  }
 0x1bc   :  { %5593 = vmatpush2.bf16.msra.mxu1 %v7604_v11  ;;  %5619 = vmatprep.subr.bf16.mxu0 %v7615_v4  ;;  %v7646_v11 = vld [vmem:[%s10851_s1 + $0x348] ss:$16 sps:$4 sm:$0xff]   ;;  %v7657_v4 = vld [vmem:[%s10851_s1 + $0x42c] ss:$16 sps:$4 sm:$0xff]  }
 0x1bd   :  { %5594 = vmatprep.subr.bf16.mxu1 %v7612_v19  ;;  %v7654_v19 = vld [vmem:[%s10851_s1 + $0x32c] ss:$16 sps:$4 sm:$0xff]  }
 0x1bf   :  { %5620 = vmatpush1.bf16.msra.mxu0 %v7613_v20  ;;  %v7655_v20 = vld [vmem:[%s10851_s1 + $0x428] ss:$16 sps:$4 sm:$0xff]  }
 0x1c0   :  { %5595 = vmatpush2.bf16.msra.mxu1 %v7610_v5  ;;  %5621 = vmatprep.subr.bf16.mxu0 %v7618_v21  ;;  %v7652_v5 = vld [vmem:[%s10851_s1 + $0x328] ss:$16 sps:$4 sm:$0xff]   ;;  %v7660_v21 = vld [vmem:[%s10851_s1 + $0x30c] ss:$16 sps:$4 sm:$0xff]  }
 0x1c1   :  { %5646 = vmatprep.subr.bf16.mxu1 %v7621_v28  ;;  %v7663_v28 = vld [vmem:[%s10851_s1 + $0x40c] ss:$16 sps:$4 sm:$0xff]  }
 0x1c2   :  { %v5311_v40 = vpop.f32.mrf.mxu0 }
 0x1c3   :  { %v5352_v44 = vpop.f32.mrf.mxu1  ;;  %5597 = vmatmul.mubr.bf16.vlgmr.msra.gmra.mxu1 %v8380_v13  ;;  %v5312_v47 = vadd.f32 %v5311_v40, %v9528_v46  ;;  %5622 = vmatpush2.bf16.msra.mxu0 %v7616_v29  ;;  %v7628_v46 = vld [vmem:[%s10851_s1 + $0x3a8] ss:$16 sps:$4 sm:$0xff]   ;;  %v7672_v40 = vld [vmem:[%s10851_s1 + $0x5cc] ss:$16 sps:$4 sm:$0xff]  }
 0x1c4   :  { %5647 = vmatpush1.bf16.msra.mxu1 %v7619_v30  ;;  %v5313_v48 = vpop.f32.mrf.mxu0  ;;  %5623 = vmatprep.subr.bf16.mxu0 %v7624_v34  ;;  %v7658_v29 = vld [vmem:[%s10851_s1 + $0x308] ss:$16 sps:$4 sm:$0xff]   ;;  %v7666_v34 = vld [vmem:[%s10851_s1 + $0x5ec] ss:$16 sps:$4 sm:$0xff]  }
 0x1c5   :  { %v5354_v45 = vpop.f32.mrf.mxu1  ;;  %5648 = vmatprep.subr.bf16.mxu1 %v7627_v36  ;;  %v9737_v55 = vadd.f32 %v5352_v44, %v5312_v47  ;;  %v5314_v13 = vadd.f32 %v5313_v48, %v9539_v57  ;;  %5678 = vmatprep.mubr.bf16.mxu1 %v8392_v17  ;;  %v7636_v57 = vld [vmem:[%s10851_s1 + $0x38c] ss:$16 sps:$4 sm:$0xff]   ;;  %v7634_v17 = vld [vmem:[%s10851_s1 + $0x388] ss:$16 sps:$4 sm:$0xff]  }
 0x1c6   :  { %v5315_v0 = vpop.f32.mrf.mxu0  ;;  %v7661_v30 = vld [vmem:[%s10851_s1 + $0x408] ss:$16 sps:$4 sm:$0xff]   ;;  %v7669_v36 = vld [vmem:[%s10851_s1 + $0x6ec] ss:$16 sps:$4 sm:$0xff]  }
 0x1c7   :  { %v5356_v58 = vpop.f32.mrf.mxu1  ;;  %v9747_v61 = vadd.f32 %v5354_v45, %v5314_v13  ;;  %5624 = vmatpush2.bf16.msra.mxu0 %v7622_v37  ;;  %v7664_v37 = vld [vmem:[%s10851_s1 + $0x5e8] ss:$16 sps:$4 sm:$0xff]   ;;  %v7675_v44 = vld [vmem:[%s10851_s1 + $0x6cc] ss:$16 sps:$4 sm:$0xff]  }
 0x1c8   :  { %5649 = vmatpush1.bf16.msra.mxu1 %v7625_v38  ;;  %v5316_v62 = vpop.f32.mrf.mxu0  ;;  %5625 = vmatprep.subr.bf16.mxu0 %v7630_v51  ;;  %v7667_v38 = vld [vmem:[%s10851_s1 + $0x6e8] ss:$16 sps:$4 sm:$0xff]   ;;  %v7678_v45 = vld [vmem:[%s10851_s1 + $0x5ac] ss:$16 sps:$4 sm:$0xff]  }
 0x1c9   :  { %v5357_v60 = vpop.f32.mrf.mxu1  ;;  %5650 = vmatprep.subr.bf16.mxu1 %v7633_v56  ;;  %v7670_v47 = vld [vmem:[%s10851_s1 + $0x5c8] ss:$16 sps:$4 sm:$0xff]   ;;  %v7684_v13 = vld [vmem:[%s10851_s1 + $0x58c] ss:$16 sps:$4 sm:$0xff]  }
 0x1ca   :  { %v7673_v48 = vld [vmem:[%s10851_s1 + $0x6c8] ss:$16 sps:$4 sm:$0xff]   ;;  %v7690_v0 = vld [vmem:[%s10851_s1 + $0x56c] ss:$16 sps:$4 sm:$0xff]  }
 0x1cb   :  { %5626 = vmatpush2.bf16.msra.mxu0 %v7628_v46  ;;  %v7676_v51 = vld [vmem:[%s10851_s1 + $0x5a8] ss:$16 sps:$4 sm:$0xff]   ;;  %v7693_v58 = vld [vmem:[%s10851_s1 + $0x66c] ss:$16 sps:$4 sm:$0xff]  }
 0x1cc   :  { %5651 = vmatpush1.bf16.msra.mxu1 %v7631_v53  ;;  %5627 = vmatprep.subr.bf16.mxu0 %v7636_v57  ;;  %v7679_v56 = vld [vmem:[%s10851_s1 + $0x6a8] ss:$16 sps:$4 sm:$0xff]   ;;  %v7696_v57 = vld [vmem:[%s10851_s1 + $0x54c] ss:$16 sps:$4 sm:$0xff]  }
 0x1cd   :  { %5652 = vmatprep.subr.bf16.mxu1 %v7639_v63  ;;  %v7682_v46 = vld [vmem:[%s10851_s1 + $0x588] ss:$16 sps:$4 sm:$0xff]   ;;  %v7699_v63 = vld [vmem:[%s10851_s1 + $0x64c] ss:$16 sps:$4 sm:$0xff]  }
 0x1ce   :  { %v7685_v53 = vld [vmem:[%s10851_s1 + $0x688] ss:$16 sps:$4 sm:$0xff]  }
 0x1cf   :  { %5628 = vmatpush2.bf16.msra.mxu0 %v7634_v17  ;;  %v7688_v62 = vld [vmem:[%s10851_s1 + $0x568] ss:$16 sps:$4 sm:$0xff]  }
 0x1d0   :  { %5653 = vmatpush1.bf16.msra.mxu1 %v7637_v2  ;;  %5629 = vmatprep.subr.bf16.mxu0 %v7642_v3  ;;  %v7691_v60 = vld [vmem:[%s10851_s1 + $0x668] ss:$16 sps:$4 sm:$0xff]   ;;  %v7702_v3 = vld [vmem:[%s10851_s1 + $0x52c] ss:$16 sps:$4 sm:$0xff]  }
 0x1d1   :  { %5654 = vmatprep.subr.bf16.mxu1 %v7645_v1  ;;  %v7694_v17 = vld [vmem:[%s10851_s1 + $0x548] ss:$16 sps:$4 sm:$0xff]   ;;  %v7705_v1 = vld [vmem:[%s10851_s1 + $0x62c] ss:$16 sps:$4 sm:$0xff]  }
 0x1d2   :  { %v7697_v2 = vld [vmem:[%s10851_s1 + $0x648] ss:$16 sps:$4 sm:$0xff]  }
 0x1d3   :  { %5630 = vmatpush2.bf16.msra.mxu0 %v7640_v7  ;;  %v7700_v7 = vld [vmem:[%s10851_s1 + $0x528] ss:$16 sps:$4 sm:$0xff]  }
 0x1d4   :  { %5655 = vmatpush1.bf16.msra.mxu1 %v7643_v8  ;;  %5631 = vmatprep.subr.bf16.mxu0 %v7648_v9  ;;  %v7703_v8 = vld [vmem:[%s10851_s1 + $0x628] ss:$16 sps:$4 sm:$0xff]   ;;  %v7708_v9 = vld [vmem:[%s10851_s1 + $0x50c] ss:$16 sps:$4 sm:$0xff]  }
 0x1d5   :  { %5656 = vmatprep.subr.bf16.mxu1 %v7651_v10  ;;  %v7711_v10 = vld [vmem:[%s10851_s1 + $0x60c] ss:$16 sps:$4 sm:$0xff]  }
 0x1d7   :  { %5632 = vmatpush2.bf16.msra.mxu0 %v7646_v11  ;;  %v7706_v11 = vld [vmem:[%s10851_s1 + $0x508] ss:$16 sps:$4 sm:$0xff]  }
 0x1d8   :  { %5657 = vmatpush1.bf16.msra.mxu1 %v7649_v16  ;;  %5633 = vmatprep.subr.bf16.mxu0 %v7654_v19  ;;  %v7709_v16 = vld [vmem:[%s10851_s1 + $0x608] ss:$16 sps:$4 sm:$0xff]   ;;  %v7714_v19 = vld [vmem:[%s10851_s1 + $0x7ec] ss:$16 sps:$4 sm:$0xff]  }
 0x1d9   :  { %5658 = vmatprep.subr.bf16.mxu1 %v7657_v4  ;;  %v7717_v4 = vld [vmem:[%s10851_s1 + $0x8ec] ss:$16 sps:$4 sm:$0xff]  }
 0x1db   :  { %5634 = vmatpush2.bf16.msra.mxu0 %v7652_v5  ;;  %v7712_v5 = vld [vmem:[%s10851_s1 + $0x7e8] ss:$16 sps:$4 sm:$0xff]  }
 0x1dc   :  { %5659 = vmatpush1.bf16.msra.mxu1 %v7655_v20  ;;  %5635 = vmatprep.subr.bf16.mxu0 %v7660_v21  ;;  %v7715_v20 = vld [vmem:[%s10851_s1 + $0x8e8] ss:$16 sps:$4 sm:$0xff]   ;;  %v7720_v21 = vld [vmem:[%s10851_s1 + $0x7cc] ss:$16 sps:$4 sm:$0xff]  }
 0x1dd   :  { %5660 = vmatprep.subr.bf16.mxu1 %v7663_v28  ;;  %v7723_v28 = vld [vmem:[%s10851_s1 + $0x8cc] ss:$16 sps:$4 sm:$0xff]  }
 0x1df   :  { %5636 = vmatpush2.bf16.msra.mxu0 %v7658_v29 }
 0x1e0   :  { %5661 = vmatpush1.bf16.msra.mxu1 %v7661_v30  ;;  %5687 = vmatprep.subr.bf16.mxu0 %v7669_v36  ;;  %v7718_v36 = vld [vmem:[%s10851_s1 + $0x7c8] ss:$16 sps:$4 sm:$0xff]  }
 0x1e1   :  { %5662 = vmatprep.subr.bf16.mxu1 %v7666_v34 }
 0x1e2   :  { %5638 = vmatmul.mubr.bf16.vlgmr.msra.gmra.mxu0 %v8396_v18  ;;  %v7681_v18 = vld [vmem:[%s10851_s1 + $0x6ac] ss:$16 sps:$4 sm:$0xff]  }
 0x1e3   :  { %5688 = vmatpush1.bf16.msra.mxu0 %v7667_v38  ;;  %5719 = vmatprep.mubr.bf16.mxu0 %v8412_v23  ;;  %v7687_v23 = vld [vmem:[%s10851_s1 + $0x68c] ss:$16 sps:$4 sm:$0xff]  }
 0x1e4   :  { %5663 = vmatpush2.bf16.msra.mxu1 %v7664_v37  ;;  %5689 = vmatprep.subr.bf16.mxu0 %v7675_v44  ;;  %v7721_v37 = vld [vmem:[%s10851_s1 + $0x8c8] ss:$16 sps:$4 sm:$0xff]  }
 0x1e5   :  { %5664 = vmatprep.subr.bf16.mxu1 %v7672_v40 }
 0x1e7   :  { %5690 = vmatpush1.bf16.msra.mxu0 %v7673_v48 }
 0x1e8   :  { %5665 = vmatpush2.bf16.msra.mxu1 %v7670_v47  ;;  %5691 = vmatprep.subr.bf16.mxu0 %v7681_v18 }
 0x1e9   :  { %5666 = vmatprep.subr.bf16.mxu1 %v7678_v45 }
 0x1eb   :  { %5692 = vmatpush1.bf16.msra.mxu0 %v7679_v56  ;;  %v7727_v56 = vld [vmem:[%s10851_s1 + $0x8a8] ss:$16 sps:$4 sm:$0xff]  }
 0x1ec   :  { %5667 = vmatpush2.bf16.msra.mxu1 %v7676_v51  ;;  %5693 = vmatprep.subr.bf16.mxu0 %v7687_v23  ;;  %v7724_v51 = vld [vmem:[%s10851_s1 + $0x7a8] ss:$16 sps:$4 sm:$0xff]  }
 0x1ed   :  { %5668 = vmatprep.subr.bf16.mxu1 %v7684_v13 }
 0x1ef   :  { %5694 = vmatpush1.bf16.msra.mxu0 %v7685_v53  ;;  %v7733_v53 = vld [vmem:[%s10851_s1 + $0x888] ss:$16 sps:$4 sm:$0xff]  }
 0x1f0   :  { %5669 = vmatpush2.bf16.msra.mxu1 %v7682_v46  ;;  %5695 = vmatprep.subr.bf16.mxu0 %v7693_v58  ;;  %v7730_v46 = vld [vmem:[%s10851_s1 + $0x788] ss:$16 sps:$4 sm:$0xff]   ;;  %v7741_v58 = vld [vmem:[%s10851_s1 + $0x86c] ss:$16 sps:$4 sm:$0xff]  }
 0x1f1   :  { %5670 = vmatprep.subr.bf16.mxu1 %v7690_v0  ;;  %v7738_v0 = vld [vmem:[%s10851_s1 + $0x76c] ss:$16 sps:$4 sm:$0xff]  }
 0x1f3   :  { %5696 = vmatpush1.bf16.msra.mxu0 %v7691_v60  ;;  %v7739_v60 = vld [vmem:[%s10851_s1 + $0x868] ss:$16 sps:$4 sm:$0xff]  }
 0x1f4   :  { %5671 = vmatpush2.bf16.msra.mxu1 %v7688_v62  ;;  %5697 = vmatprep.subr.bf16.mxu0 %v7699_v63  ;;  %v7736_v62 = vld [vmem:[%s10851_s1 + $0x768] ss:$16 sps:$4 sm:$0xff]   ;;  %v7747_v63 = vld [vmem:[%s10851_s1 + $0x84c] ss:$16 sps:$4 sm:$0xff]  }
 0x1f5   :  { %5672 = vmatprep.subr.bf16.mxu1 %v7696_v57  ;;  %v7744_v57 = vld [vmem:[%s10851_s1 + $0x74c] ss:$16 sps:$4 sm:$0xff]  }
 0x1f7   :  { %5698 = vmatpush1.bf16.msra.mxu0 %v7697_v2  ;;  %v7745_v2 = vld [vmem:[%s10851_s1 + $0x848] ss:$16 sps:$4 sm:$0xff]  }
 0x1f8   :  { %5673 = vmatpush2.bf16.msra.mxu1 %v7694_v17  ;;  %5699 = vmatprep.subr.bf16.mxu0 %v7705_v1  ;;  %v7742_v17 = vld [vmem:[%s10851_s1 + $0x748] ss:$16 sps:$4 sm:$0xff]   ;;  %v7753_v1 = vld [vmem:[%s10851_s1 + $0x82c] ss:$16 sps:$4 sm:$0xff]  }
 0x1f9   :  { %5674 = vmatprep.subr.bf16.mxu1 %v7702_v3  ;;  %v7750_v3 = vld [vmem:[%s10851_s1 + $0x72c] ss:$16 sps:$4 sm:$0xff]  }
 0x1fb   :  { %5700 = vmatpush1.bf16.msra.mxu0 %v7703_v8  ;;  %v7751_v8 = vld [vmem:[%s10851_s1 + $0x828] ss:$16 sps:$4 sm:$0xff]  }
 0x1fc   :  { %5675 = vmatpush2.bf16.msra.mxu1 %v7700_v7  ;;  %5701 = vmatprep.subr.bf16.mxu0 %v7711_v10  ;;  %v7748_v7 = vld [vmem:[%s10851_s1 + $0x728] ss:$16 sps:$4 sm:$0xff]   ;;  %v7759_v10 = vld [vmem:[%s10851_s1 + $0x80c] ss:$16 sps:$4 sm:$0xff]  }
 0x1fd   :  { %5676 = vmatprep.subr.bf16.mxu1 %v7708_v9  ;;  %v7756_v9 = vld [vmem:[%s10851_s1 + $0x70c] ss:$16 sps:$4 sm:$0xff]  }
 0x1ff   :  { %5702 = vmatpush1.bf16.msra.mxu0 %v7709_v16  ;;  %v7757_v16 = vld [vmem:[%s10851_s1 + $0x808] ss:$16 sps:$4 sm:$0xff]  }
 0x200   :  { %5677 = vmatpush2.bf16.msra.mxu1 %v7706_v11  ;;  %5703 = vmatprep.subr.bf16.mxu0 %v7714_v19  ;;  %v7754_v11 = vld [vmem:[%s10851_s1 + $0x708] ss:$16 sps:$4 sm:$0xff]   ;;  %v7762_v19 = vld [vmem:[%s10851_s1 + $0x9ec] ss:$16 sps:$4 sm:$0xff]  }
 0x201   :  { %5728 = vmatprep.subr.bf16.mxu1 %v7717_v4  ;;  %v7765_v4 = vld [vmem:[%s10851_s1 + $0xaec] ss:$16 sps:$4 sm:$0xff]  }
 0x202   :  { %v5393_v29 = vpop.f32.mrf.mxu0 }
 0x203   :  { %v5434_v30 = vpop.f32.mrf.mxu1  ;;  %5679 = vmatmul.mubr.bf16.vlgmr.msra.gmra.mxu1 %v8591_v26  ;;  %v5394_v34 = vadd.f32 %v5393_v29, %v9737_v55  ;;  %5704 = vmatpush2.bf16.msra.mxu0 %v7712_v5  ;;  %v7726_v26 = vld [vmem:[%s10851_s1 + $0x7ac] ss:$16 sps:$4 sm:$0xff]   ;;  %v7760_v5 = vld [vmem:[%s10851_s1 + $0x9e8] ss:$16 sps:$4 sm:$0xff]  }
 0x204   :  { %5729 = vmatpush1.bf16.msra.mxu1 %v7715_v20  ;;  %v5395_v38 = vpop.f32.mrf.mxu0  ;;  %5705 = vmatprep.subr.bf16.mxu0 %v7720_v21  ;;  %v7729_v55 = vld [vmem:[%s10851_s1 + $0x8ac] ss:$16 sps:$4 sm:$0xff]   ;;  %v7763_v20 = vld [vmem:[%s10851_s1 + $0xae8] ss:$16 sps:$4 sm:$0xff]  }
 0x205   :  { %v5436_v40 = vpop.f32.mrf.mxu1  ;;  %5730 = vmatprep.subr.bf16.mxu1 %v7723_v28  ;;  %v9939_v44 = vadd.f32 %v5434_v30, %v5394_v34  ;;  %v5396_v47 = vadd.f32 %v5395_v38, %v9747_v61  ;;  %5760 = vmatprep.mubr.bf16.mxu1 %v8644_v41  ;;  %v7732_v41 = vld [vmem:[%s10851_s1 + $0x78c] ss:$16 sps:$4 sm:$0xff]   ;;  %v7766_v29 = vld [vmem:[%s10851_s1 + $0x9c8] ss:$16 sps:$4 sm:$0xff]  }
 0x206   :  { %v5397_v48 = vpop.f32.mrf.mxu0  ;;  %v7735_v61 = vld [vmem:[%s10851_s1 + $0x88c] ss:$16 sps:$4 sm:$0xff]   ;;  %v7769_v30 = vld [vmem:[%s10851_s1 + $0xac8] ss:$16 sps:$4 sm:$0xff]  }
 0x207   :  { %v5438_v45 = vpop.f32.mrf.mxu1  ;;  %v9943_v18 = vadd.f32 %v5436_v40, %v5396_v47  ;;  %5706 = vmatpush2.bf16.msra.mxu0 %v7718_v36  ;;  %v7768_v21 = vld [vmem:[%s10851_s1 + $0x9cc] ss:$16 sps:$4 sm:$0xff]   ;;  %v7772_v36 = vld [vmem:[%s10851_s1 + $0x9a8] ss:$16 sps:$4 sm:$0xff]  }
 0x208   :  { %5731 = vmatpush1.bf16.msra.mxu1 %v7721_v37  ;;  %v5398_v13 = vpop.f32.mrf.mxu0  ;;  %5707 = vmatprep.subr.bf16.mxu0 %v7726_v26  ;;  %v7771_v28 = vld [vmem:[%s10851_s1 + $0xacc] ss:$16 sps:$4 sm:$0xff]   ;;  %v7775_v37 = vld [vmem:[%s10851_s1 + $0xaa8] ss:$16 sps:$4 sm:$0xff]  }
 0x209   :  { %v5439_v23 = vpop.f32.mrf.mxu1  ;;  %5732 = vmatprep.subr.bf16.mxu1 %v7729_v55  ;;  %v7774_v34 = vld [vmem:[%s10851_s1 + $0x9ac] ss:$16 sps:$4 sm:$0xff]   ;;  %v7778_v40 = vld [vmem:[%s10851_s1 + $0x988] ss:$16 sps:$4 sm:$0xff]  }
 0x20a   :  { %v7780_v38 = vld [vmem:[%s10851_s1 + $0x98c] ss:$16 sps:$4 sm:$0xff]   ;;  %v7781_v26 = vld [vmem:[%s10851_s1 + $0xa88] ss:$16 sps:$4 sm:$0xff]  }
 0x20b   :  { %5708 = vmatpush2.bf16.msra.mxu0 %v7724_v51  ;;  %v7786_v55 = vld [vmem:[%s10851_s1 + $0x96c] ss:$16 sps:$4 sm:$0xff]   ;;  %v7784_v48 = vld [vmem:[%s10851_s1 + $0x968] ss:$16 sps:$4 sm:$0xff]  }
 0x20c   :  { %5733 = vmatpush1.bf16.msra.mxu1 %v7727_v56  ;;  %5709 = vmatprep.subr.bf16.mxu0 %v7732_v41  ;;  %v7789_v47 = vld [vmem:[%s10851_s1 + $0xa6c] ss:$16 sps:$4 sm:$0xff]   ;;  %v7787_v45 = vld [vmem:[%s10851_s1 + $0xa68] ss:$16 sps:$4 sm:$0xff]  }
 0x20d   :  { %5734 = vmatprep.subr.bf16.mxu1 %v7735_v61  ;;  %v7792_v51 = vld [vmem:[%s10851_s1 + $0x94c] ss:$16 sps:$4 sm:$0xff]   ;;  %v7790_v13 = vld [vmem:[%s10851_s1 + $0x948] ss:$16 sps:$4 sm:$0xff]  }
 0x20e   :  { %v7795_v56 = vld [vmem:[%s10851_s1 + $0xa4c] ss:$16 sps:$4 sm:$0xff]   ;;  %v7793_v23 = vld [vmem:[%s10851_s1 + $0xa48] ss:$16 sps:$4 sm:$0xff]  }
 0x20f   :  { %5710 = vmatpush2.bf16.msra.mxu0 %v7730_v46  ;;  %v7798_v41 = vld [vmem:[%s10851_s1 + $0x92c] ss:$16 sps:$4 sm:$0xff]   ;;  %v7796_v46 = vld [vmem:[%s10851_s1 + $0x928] ss:$16 sps:$4 sm:$0xff]  }
 0x210   :  { %5735 = vmatpush1.bf16.msra.mxu1 %v7733_v53  ;;  %5711 = vmatprep.subr.bf16.mxu0 %v7738_v0  ;;  %v7801_v61 = vld [vmem:[%s10851_s1 + $0xa2c] ss:$16 sps:$4 sm:$0xff]   ;;  %v7799_v53 = vld [vmem:[%s10851_s1 + $0xa28] ss:$16 sps:$4 sm:$0xff]  }
 0x211   :  { %5736 = vmatprep.subr.bf16.mxu1 %v7741_v58  ;;  %v7804_v0 = vld [vmem:[%s10851_s1 + $0x90c] ss:$16 sps:$4 sm:$0xff]  }
 0x212   :  { %v7807_v58 = vld [vmem:[%s10851_s1 + $0xa0c] ss:$16 sps:$4 sm:$0xff]  }
 0x213   :  { %5712 = vmatpush2.bf16.msra.mxu0 %v7736_v62  ;;  %v7802_v62 = vld [vmem:[%s10851_s1 + $0x908] ss:$16 sps:$4 sm:$0xff]  }
 0x214   :  { %5737 = vmatpush1.bf16.msra.mxu1 %v7739_v60  ;;  %5713 = vmatprep.subr.bf16.mxu0 %v7744_v57  ;;  %v7805_v60 = vld [vmem:[%s10851_s1 + $0xa08] ss:$16 sps:$4 sm:$0xff]   ;;  %v7810_v57 = vld [vmem:[%s10851_s1 + $0xbec] ss:$16 sps:$4 sm:$0xff]  }
 0x215   :  { %5738 = vmatprep.subr.bf16.mxu1 %v7747_v63  ;;  %v7813_v63 = vld [vmem:[%s10851_s1 + $0xcec] ss:$16 sps:$4 sm:$0xff]  }
 0x217   :  { %5714 = vmatpush2.bf16.msra.mxu0 %v7742_v17  ;;  %v7808_v17 = vld [vmem:[%s10851_s1 + $0xbe8] ss:$16 sps:$4 sm:$0xff]  }
 0x218   :  { %5739 = vmatpush1.bf16.msra.mxu1 %v7745_v2  ;;  %5715 = vmatprep.subr.bf16.mxu0 %v7750_v3  ;;  %v7811_v2 = vld [vmem:[%s10851_s1 + $0xce8] ss:$16 sps:$4 sm:$0xff]   ;;  %v7816_v3 = vld [vmem:[%s10851_s1 + $0xbcc] ss:$16 sps:$4 sm:$0xff]  }
 0x219   :  { %5740 = vmatprep.subr.bf16.mxu1 %v7753_v1  ;;  %v7819_v1 = vld [vmem:[%s10851_s1 + $0xccc] ss:$16 sps:$4 sm:$0xff]  }
 0x21b   :  { %5716 = vmatpush2.bf16.msra.mxu0 %v7748_v7 }
 0x21c   :  { %5741 = vmatpush1.bf16.msra.mxu1 %v7751_v8  ;;  %5717 = vmatprep.subr.bf16.mxu0 %v7756_v9 }
 0x21d   :  { %5742 = vmatprep.subr.bf16.mxu1 %v7759_v10  ;;  %v7814_v10 = vld [vmem:[%s10851_s1 + $0xbc8] ss:$16 sps:$4 sm:$0xff]  }
 0x21f   :  { %5718 = vmatpush2.bf16.msra.mxu0 %v7754_v11  ;;  %v7817_v11 = vld [vmem:[%s10851_s1 + $0xcc8] ss:$16 sps:$4 sm:$0xff]  }
 0x220   :  { %5743 = vmatpush1.bf16.msra.mxu1 %v7757_v16  ;;  %5769 = vmatprep.subr.bf16.mxu0 %v7765_v4 }
 0x221   :  { %5744 = vmatprep.subr.bf16.mxu1 %v7762_v19 }
 0x222   :  { %5720 = vmatmul.mubr.bf16.vlgmr.msra.gmra.mxu0 %v8604_v6  ;;  %v7777_v6 = vld [vmem:[%s10851_s1 + $0xaac] ss:$16 sps:$4 sm:$0xff]  }
 0x223   :  { %5770 = vmatpush1.bf16.msra.mxu0 %v7763_v20  ;;  %5801 = vmatprep.mubr.bf16.mxu0 %v8649_v43  ;;  %v7783_v43 = vld [vmem:[%s10851_s1 + $0xa8c] ss:$16 sps:$4 sm:$0xff]  }
 0x224   :  { %5745 = vmatpush2.bf16.msra.mxu1 %v7760_v5  ;;  %5771 = vmatprep.subr.bf16.mxu0 %v7771_v28 }
 0x225   :  { %5746 = vmatprep.subr.bf16.mxu1 %v7768_v21 }
 0x227   :  { %5772 = vmatpush1.bf16.msra.mxu0 %v7769_v30  ;;  %v7823_v30 = vld [vmem:[%s10851_s1 + $0xca8] ss:$16 sps:$4 sm:$0xff]  }
 0x228   :  { %5747 = vmatpush2.bf16.msra.mxu1 %v7766_v29  ;;  %5773 = vmatprep.subr.bf16.mxu0 %v7777_v6  ;;  %v7820_v29 = vld [vmem:[%s10851_s1 + $0xba8] ss:$16 sps:$4 sm:$0xff]  }
 0x229   :  { %5748 = vmatprep.subr.bf16.mxu1 %v7774_v34 }
 0x22b   :  { %5774 = vmatpush1.bf16.msra.mxu0 %v7775_v37  ;;  %v7829_v37 = vld [vmem:[%s10851_s1 + $0xc88] ss:$16 sps:$4 sm:$0xff]  }
 0x22c   :  { %5749 = vmatpush2.bf16.msra.mxu1 %v7772_v36  ;;  %5775 = vmatprep.subr.bf16.mxu0 %v7783_v43  ;;  %v7826_v36 = vld [vmem:[%s10851_s1 + $0xb88] ss:$16 sps:$4 sm:$0xff]   ;;  %v7837_v43 = vld [vmem:[%s10851_s1 + $0xc6c] ss:$16 sps:$4 sm:$0xff]  }
 0x22d   :  { %5750 = vmatprep.subr.bf16.mxu1 %v7780_v38  ;;  %v7834_v38 = vld [vmem:[%s10851_s1 + $0xb6c] ss:$16 sps:$4 sm:$0xff]  }
 0x22f   :  { %5776 = vmatpush1.bf16.msra.mxu0 %v7781_v26  ;;  %v7835_v26 = vld [vmem:[%s10851_s1 + $0xc68] ss:$16 sps:$4 sm:$0xff]  }
 0x230   :  { %5751 = vmatpush2.bf16.msra.mxu1 %v7778_v40  ;;  %5777 = vmatprep.subr.bf16.mxu0 %v7789_v47  ;;  %v7832_v40 = vld [vmem:[%s10851_s1 + $0xb68] ss:$16 sps:$4 sm:$0xff]   ;;  %v7843_v47 = vld [vmem:[%s10851_s1 + $0xc4c] ss:$16 sps:$4 sm:$0xff]  }
 0x231   :  { %5752 = vmatprep.subr.bf16.mxu1 %v7786_v55  ;;  %v7840_v55 = vld [vmem:[%s10851_s1 + $0xb4c] ss:$16 sps:$4 sm:$0xff]  }
 0x233   :  { %5778 = vmatpush1.bf16.msra.mxu0 %v7787_v45  ;;  %v7841_v45 = vld [vmem:[%s10851_s1 + $0xc48] ss:$16 sps:$4 sm:$0xff]  }
 0x234   :  { %5753 = vmatpush2.bf16.msra.mxu1 %v7784_v48  ;;  %5779 = vmatprep.subr.bf16.mxu0 %v7795_v56  ;;  %v7838_v48 = vld [vmem:[%s10851_s1 + $0xb48] ss:$16 sps:$4 sm:$0xff]   ;;  %v7849_v56 = vld [vmem:[%s10851_s1 + $0xc2c] ss:$16 sps:$4 sm:$0xff]  }
 0x235   :  { %5754 = vmatprep.subr.bf16.mxu1 %v7792_v51  ;;  %v7846_v51 = vld [vmem:[%s10851_s1 + $0xb2c] ss:$16 sps:$4 sm:$0xff]  }
 0x237   :  { %5780 = vmatpush1.bf16.msra.mxu0 %v7793_v23  ;;  %v7847_v23 = vld [vmem:[%s10851_s1 + $0xc28] ss:$16 sps:$4 sm:$0xff]  }
 0x238   :  { %5755 = vmatpush2.bf16.msra.mxu1 %v7790_v13  ;;  %5781 = vmatprep.subr.bf16.mxu0 %v7801_v61  ;;  %v7844_v13 = vld [vmem:[%s10851_s1 + $0xb28] ss:$16 sps:$4 sm:$0xff]   ;;  %v7855_v61 = vld [vmem:[%s10851_s1 + $0xc0c] ss:$16 sps:$4 sm:$0xff]  }
 0x239   :  { %5756 = vmatprep.subr.bf16.mxu1 %v7798_v41  ;;  %v7852_v41 = vld [vmem:[%s10851_s1 + $0xb0c] ss:$16 sps:$4 sm:$0xff]  }
 0x23b   :  { %5782 = vmatpush1.bf16.msra.mxu0 %v7799_v53  ;;  %v7853_v53 = vld [vmem:[%s10851_s1 + $0xc08] ss:$16 sps:$4 sm:$0xff]  }
 0x23c   :  { %5757 = vmatpush2.bf16.msra.mxu1 %v7796_v46  ;;  %5783 = vmatprep.subr.bf16.mxu0 %v7807_v58  ;;  %v7850_v46 = vld [vmem:[%s10851_s1 + $0xb08] ss:$16 sps:$4 sm:$0xff]   ;;  %v7861_v58 = vld [vmem:[%s10851_s1 + $0xeec] ss:$16 sps:$4 sm:$0xff]  }
 0x23d   :  { %5758 = vmatprep.subr.bf16.mxu1 %v7804_v0  ;;  %v7858_v0 = vld [vmem:[%s10851_s1 + $0xdec] ss:$16 sps:$4 sm:$0xff]  }
 0x23f   :  { %5784 = vmatpush1.bf16.msra.mxu0 %v7805_v60  ;;  %v7859_v60 = vld [vmem:[%s10851_s1 + $0xee8] ss:$16 sps:$4 sm:$0xff]  }
 0x240   :  { %5759 = vmatpush2.bf16.msra.mxu1 %v7802_v62  ;;  %5785 = vmatprep.subr.bf16.mxu0 %v7810_v57  ;;  %v7856_v62 = vld [vmem:[%s10851_s1 + $0xde8] ss:$16 sps:$4 sm:$0xff]   ;;  %v7864_v57 = vld [vmem:[%s10851_s1 + $0xdcc] ss:$16 sps:$4 sm:$0xff]  }
 0x241   :  { %5810 = vmatprep.subr.bf16.mxu1 %v7813_v63  ;;  %v7867_v63 = vld [vmem:[%s10851_s1 + $0xecc] ss:$16 sps:$4 sm:$0xff]  }
 0x242   :  { %v5475_v7 = vpop.f32.mrf.mxu0 }
 0x243   :  { %v5516_v8 = vpop.f32.mrf.mxu1  ;;  %5761 = vmatmul.mubr.bf16.vlgmr.msra.gmra.mxu1 %v8820_v50  ;;  %v5476_v9 = vadd.f32 %v5475_v7, %v9939_v44  ;;  %5786 = vmatpush2.bf16.msra.mxu0 %v7808_v17  ;;  %v7822_v50 = vld [vmem:[%s10851_s1 + $0xbac] ss:$16 sps:$4 sm:$0xff]  }
 0x244   :  { %5811 = vmatpush1.bf16.msra.mxu1 %v7811_v2  ;;  %v5477_v16 = vpop.f32.mrf.mxu0  ;;  %5787 = vmatprep.subr.bf16.mxu0 %v7816_v3  ;;  %v7825_v44 = vld [vmem:[%s10851_s1 + $0xcac] ss:$16 sps:$4 sm:$0xff]   ;;  %v7862_v3 = vld [vmem:[%s10851_s1 + $0xdc8] ss:$16 sps:$4 sm:$0xff]  }
 0x245   :  { %v5518_v19 = vpop.f32.mrf.mxu1  ;;  %5812 = vmatprep.subr.bf16.mxu1 %v7819_v1  ;;  %v10141_v4 = vadd.f32 %v5516_v8, %v5476_v9  ;;  %v5478_v5 = vadd.f32 %v5477_v16, %v9943_v18  ;;  %5842 = vmatprep.mubr.bf16.mxu1 %v8832_v54  ;;  %v7828_v54 = vld [vmem:[%s10851_s1 + $0xb8c] ss:$16 sps:$4 sm:$0xff]   ;;  %v7865_v1 = vld [vmem:[%s10851_s1 + $0xec8] ss:$16 sps:$4 sm:$0xff]  }
 0x246   :  { %v5479_v20 = vpop.f32.mrf.mxu0  ;;  %v7831_v18 = vld [vmem:[%s10851_s1 + $0xc8c] ss:$16 sps:$4 sm:$0xff]   ;;  %v7868_v16 = vld [vmem:[%s10851_s1 + $0xda8] ss:$16 sps:$4 sm:$0xff]  }
 0x247   :  { %v5520_v21 = vpop.f32.mrf.mxu1  ;;  %v10145_v28 = vadd.f32 %v5518_v19, %v5478_v5  ;;  %5788 = vmatpush2.bf16.msra.mxu0 %v7814_v10  ;;  %v7873_v8 = vld [vmem:[%s10851_s1 + $0xeac] ss:$16 sps:$4 sm:$0xff]   ;;  %v7871_v19 = vld [vmem:[%s10851_s1 + $0xea8] ss:$16 sps:$4 sm:$0xff]  }
 0x248   :  { %5813 = vmatpush1.bf16.msra.mxu1 %v7817_v11  ;;  %v5480_v34 = vpop.f32.mrf.mxu0  ;;  %5789 = vmatprep.subr.bf16.mxu0 %v7822_v50  ;;  %v7877_v5 = vld [vmem:[%s10851_s1 + $0xe88] ss:$16 sps:$4 sm:$0xff]   ;;  %v7882_v20 = vld [vmem:[%s10851_s1 + $0xd6c] ss:$16 sps:$4 sm:$0xff]  }
 0x249   :  { %v5521_v6 = vpop.f32.mrf.mxu1  ;;  %5814 = vmatprep.subr.bf16.mxu1 %v7825_v44  ;;  %v7879_v44 = vld [vmem:[%s10851_s1 + $0xe8c] ss:$16 sps:$4 sm:$0xff]  }
 0x24a   :  { %v7885_v21 = vld [vmem:[%s10851_s1 + $0xe6c] ss:$16 sps:$4 sm:$0xff]   ;;  %v7886_v6 = vld [vmem:[%s10851_s1 + $0xd48] ss:$16 sps:$4 sm:$0xff]  }
 0x24b   :  { %5790 = vmatpush2.bf16.msra.mxu0 %v7820_v29  ;;  %v7883_v29 = vld [vmem:[%s10851_s1 + $0xe68] ss:$16 sps:$4 sm:$0xff]   ;;  %v7891_v34 = vld [vmem:[%s10851_s1 + $0xe4c] ss:$16 sps:$4 sm:$0xff]  }
 0x24c   :  { %5815 = vmatpush1.bf16.msra.mxu1 %v7823_v30  ;;  %5791 = vmatprep.subr.bf16.mxu0 %v7828_v54  ;;  %v7888_v30 = vld [vmem:[%s10851_s1 + $0xd4c] ss:$16 sps:$4 sm:$0xff]   ;;  %v7889_v54 = vld [vmem:[%s10851_s1 + $0xe48] ss:$16 sps:$4 sm:$0xff]  }
 0x24d   :  { %5816 = vmatprep.subr.bf16.mxu1 %v7831_v18  ;;  %v7894_v18 = vld [vmem:[%s10851_s1 + $0xd2c] ss:$16 sps:$4 sm:$0xff]  }
 0x24f   :  { %5792 = vmatpush2.bf16.msra.mxu0 %v7826_v36  ;;  %v7897_v36 = vld [vmem:[%s10851_s1 + $0xe2c] ss:$16 sps:$4 sm:$0xff]  }
 0x250   :  { %5817 = vmatpush1.bf16.msra.mxu1 %v7829_v37  ;;  %5793 = vmatprep.subr.bf16.mxu0 %v7834_v38  ;;  %v7892_v37 = vld [vmem:[%s10851_s1 + $0xd28] ss:$16 sps:$4 sm:$0xff]  }
 0x251   :  { %5818 = vmatprep.subr.bf16.mxu1 %v7837_v43  ;;  %v7895_v38 = vld [vmem:[%s10851_s1 + $0xe28] ss:$16 sps:$4 sm:$0xff]   ;;  %v7900_v43 = vld [vmem:[%s10851_s1 + $0xd0c] ss:$16 sps:$4 sm:$0xff]  }
 0x253   :  { %5794 = vmatpush2.bf16.msra.mxu0 %v7832_v40  ;;  %v7903_v40 = vld [vmem:[%s10851_s1 + $0xe0c] ss:$16 sps:$4 sm:$0xff]  }
 0x254   :  { %5819 = vmatpush1.bf16.msra.mxu1 %v7835_v26  ;;  %5795 = vmatprep.subr.bf16.mxu0 %v7840_v55  ;;  %v7898_v26 = vld [vmem:[%s10851_s1 + $0xd08] ss:$16 sps:$4 sm:$0xff]  }
 0x255   :  { %5820 = vmatprep.subr.bf16.mxu1 %v7843_v47  ;;  %v7901_v55 = vld [vmem:[%s10851_s1 + $0xe08] ss:$16 sps:$4 sm:$0xff]   ;;  %v7906_v47 = vld [vmem:[%s10851_s1 + $0xfec] ss:$16 sps:$4 sm:$0xff]  }
 0x257   :  { %5796 = vmatpush2.bf16.msra.mxu0 %v7838_v48  ;;  %v7909_v48 = vld [vmem:[%s10851_s1 + $0x10ec] ss:$16 sps:$4 sm:$0xff]  }
 0x258   :  { %5821 = vmatpush1.bf16.msra.mxu1 %v7841_v45  ;;  %5797 = vmatprep.subr.bf16.mxu0 %v7846_v51  ;;  %v7904_v45 = vld [vmem:[%s10851_s1 + $0xfe8] ss:$16 sps:$4 sm:$0xff]  }
 0x259   :  { %5822 = vmatprep.subr.bf16.mxu1 %v7849_v56  ;;  %v7907_v51 = vld [vmem:[%s10851_s1 + $0x10e8] ss:$16 sps:$4 sm:$0xff]   ;;  %v7912_v56 = vld [vmem:[%s10851_s1 + $0xfcc] ss:$16 sps:$4 sm:$0xff]  }
 0x25b   :  { %5798 = vmatpush2.bf16.msra.mxu0 %v7844_v13  ;;  %v7915_v13 = vld [vmem:[%s10851_s1 + $0x10cc] ss:$16 sps:$4 sm:$0xff]  }
 0x25c   :  { %5823 = vmatpush1.bf16.msra.mxu1 %v7847_v23  ;;  %5799 = vmatprep.subr.bf16.mxu0 %v7852_v41  ;;  %v7910_v41 = vld [vmem:[%s10851_s1 + $0xfc8] ss:$16 sps:$4 sm:$0xff]  }
 0x25d   :  { %5824 = vmatprep.subr.bf16.mxu1 %v7855_v61  ;;  %v7913_v61 = vld [vmem:[%s10851_s1 + $0x10c8] ss:$16 sps:$4 sm:$0xff]  }
 0x25f   :  { %5800 = vmatpush2.bf16.msra.mxu0 %v7850_v46 }
 0x260   :  { %5825 = vmatpush1.bf16.msra.mxu1 %v7853_v53  ;;  %5851 = vmatprep.subr.bf16.mxu0 %v7861_v58  ;;  %v7918_v53 = vld [vmem:[%s10851_s1 + $0xfac] ss:$16 sps:$4 sm:$0xff]   ;;  %v7916_v58 = vld [vmem:[%s10851_s1 + $0xfa8] ss:$16 sps:$4 sm:$0xff]  }
 0x261   :  { %5826 = vmatprep.subr.bf16.mxu1 %v7858_v0 }
 0x262   :  { %v5557_v17 = vpop.f32.mrf.mxu0  ;;  %5802 = vmatmul.mubr.bf16.vlgmr.msra.gmra.mxu0 %v8836_v35  ;;  %v7870_v35 = vld [vmem:[%s10851_s1 + $0xdac] ss:$16 sps:$4 sm:$0xff]  }
 0x263   :  { %v10233_v2 = vadd.f32 %v5557_v17, %v10141_v4  ;;  %5852 = vmatpush1.bf16.msra.mxu0 %v7859_v60  ;;  %5883 = vmatprep.mubr.bf16.mxu0 %v8852_v59  ;;  %v7876_v59 = vld [vmem:[%s10851_s1 + $0xd8c] ss:$16 sps:$4 sm:$0xff]   ;;  %v7874_v4 = vld [vmem:[%s10851_s1 + $0xd88] ss:$16 sps:$4 sm:$0xff]  }
 0x264   :  { %5827 = vmatpush2.bf16.msra.mxu1 %v7856_v62  ;;  %v5559_v7 = vpop.f32.mrf.mxu0  ;;  %5853 = vmatprep.subr.bf16.mxu0 %v7867_v63  ;;  %v7919_v62 = vld [vmem:[%s10851_s1 + $0x10a8] ss:$16 sps:$4 sm:$0xff]  }
 0x265   :  { %5828 = vmatprep.subr.bf16.mxu1 %v7864_v57  ;;  %v10248_v9 = vadd.f32 %v5559_v7, %v10145_v28  ;;  %v7880_v28 = vld [vmem:[%s10851_s1 + $0xd68] ss:$16 sps:$4 sm:$0xff]   ;;  %v7924_v57 = vld [vmem:[%s10851_s1 + $0xf8c] ss:$16 sps:$4 sm:$0xff]  }
 0x266   :  { %v5561_v10 = vpop.f32.mrf.mxu0  ;;  %v7922_v63 = vld [vmem:[%s10851_s1 + $0xf88] ss:$16 sps:$4 sm:$0xff]  }
 0x267   :  { %v6936_v11 = vpack.c.bf16 %v10248_v9, %v10233_v2  ;;  %5854 = vmatpush1.bf16.msra.mxu0 %v7865_v1  ;;  %v7925_v17 = vld [vmem:[%s10851_s1 + $0x1088] ss:$16 sps:$4 sm:$0xff]   ;;  %v7933_v1 = vld [vmem:[%s10851_s1 + $0x106c] ss:$16 sps:$4 sm:$0xff]  }
 0x268   :  { %5829 = vmatpush2.bf16.msra.mxu1 %v7862_v3  ;;  %v5562_v50 = vpop.f32.mrf.mxu0  ;;  %5855 = vmatprep.subr.bf16.mxu0 %v7873_v8  ;;  %v7930_v3 = vld [vmem:[%s10851_s1 + $0xf6c] ss:$16 sps:$4 sm:$0xff]   ;;  %v7928_v7 = vld [vmem:[%s10851_s1 + $0xf68] ss:$16 sps:$4 sm:$0xff]  }
 0x269   :  { %5830 = vmatprep.subr.bf16.mxu1 %v7870_v35  ;;  %v7931_v35 = vld [vmem:[%s10851_s1 + $0x1068] ss:$16 sps:$4 sm:$0xff]   ;;  %v7936_v8 = vld [vmem:[%s10851_s1 + $0xf4c] ss:$16 sps:$4 sm:$0xff]  }
 0x26a   :  { %v7939_v10 = vld [vmem:[%s10851_s1 + $0x104c] ss:$16 sps:$4 sm:$0xff]  }
 0x26b   :  { %5856 = vmatpush1.bf16.msra.mxu0 %v7871_v19  ;;  %v7937_v19 = vld [vmem:[%s10851_s1 + $0x1048] ss:$16 sps:$4 sm:$0xff]   ;;  %v7942_v50 = vld [vmem:[%s10851_s1 + $0xf2c] ss:$16 sps:$4 sm:$0xff]  }
 0x26c   :  { %5831 = vmatpush2.bf16.msra.mxu1 %v7868_v16  ;;  %5857 = vmatprep.subr.bf16.mxu0 %v7879_v44  ;;  %v7934_v16 = vld [vmem:[%s10851_s1 + $0xf48] ss:$16 sps:$4 sm:$0xff]  }
 0x26d   :  { %5832 = vmatprep.subr.bf16.mxu1 %v7876_v59  ;;  %v7945_v59 = vld [vmem:[%s10851_s1 + $0x102c] ss:$16 sps:$4 sm:$0xff]   ;;  %v7940_v44 = vld [vmem:[%s10851_s1 + $0xf28] ss:$16 sps:$4 sm:$0xff]  }
 0x26f   :  { %5858 = vmatpush1.bf16.msra.mxu0 %v7877_v5  ;;  %v7948_v5 = vld [vmem:[%s10851_s1 + $0xf0c] ss:$16 sps:$4 sm:$0xff]  }
 0x270   :  { %5833 = vmatpush2.bf16.msra.mxu1 %v7874_v4  ;;  %5859 = vmatprep.subr.bf16.mxu0 %v7885_v21  ;;  %v7943_v4 = vld [vmem:[%s10851_s1 + $0x1028] ss:$16 sps:$4 sm:$0xff]   ;;  %v831_v21 = vsub.s32 2, %v8284_v42 }
 0x271   :  { %5834 = vmatprep.subr.bf16.mxu1 %v7882_v20  ;;  %v7951_v20 = vld [vmem:[%s10851_s1 + $0x100c] ss:$16 sps:$4 sm:$0xff]  }
 0x273   :  { %5860 = vmatpush1.bf16.msra.mxu0 %v7883_v29  ;;  %v7946_v29 = vld [vmem:[%s10851_s1 + $0xf08] ss:$16 sps:$4 sm:$0xff]  }
 0x274   :  { %5835 = vmatpush2.bf16.msra.mxu1 %v7880_v28  ;;  %5861 = vmatprep.subr.bf16.mxu0 %v7891_v34  ;;  %v835_v28 = vsub.s32 3, %v8284_v42  ;;  %v7954_v34 = vld [vmem:[%s10851_s1 + $0x11ec] ss:$16 sps:$4 sm:$0xff]  }
 0x275   :  { %5836 = vmatprep.subr.bf16.mxu1 %v7888_v30  ;;  %v7949_v30 = vld [vmem:[%s10851_s1 + $0x1008] ss:$16 sps:$4 sm:$0xff]   ;;  %v7957_v42 = vld [vmem:[%s10851_s1 + $0x12ec] ss:$16 sps:$4 sm:$0xff]  }
 0x277   :  { %5862 = vmatpush1.bf16.msra.mxu0 %v7889_v54 }
 0x278   :  { %5837 = vmatpush2.bf16.msra.mxu1 %v7886_v6  ;;  %5863 = vmatprep.subr.bf16.mxu0 %v7897_v36  ;;  %v8144_v6 = vld [vmem:[%s10853_s2] sm:$0xf]  ;;  %v7952_v36 = vld [vmem:[%s10851_s1 + $0x11e8] ss:$16 sps:$4 sm:$0xff]  }
 0x279   :  { %5838 = vmatprep.subr.bf16.mxu1 %v7894_v18  ;;  %v832_v54 = vrot.slane %v8144_v6, %v831_v21  ;;  %v836_v18 = vrot.slane %v8144_v6, %v835_v28  ;;  %v8011_v21 = vld [vmem:[%s10851_s1 + $0x14cc] ss:$16 sps:$4 sm:$0xff]  }
 0x27a   :  { %v8017_v6 = vld [vmem:[%s10851_s1 + $0x14ac] ss:$16 sps:$4 sm:$0xff]  }
 0x27b   :  { %5864 = vmatpush1.bf16.msra.mxu0 %v7895_v38  ;;  %v7960_v38 = vld [vmem:[%s10851_s1 + $0x11cc] ss:$16 sps:$4 sm:$0xff]  }
 0x27c   :  { %5839 = vmatpush2.bf16.msra.mxu1 %v7892_v37  ;;  %5865 = vmatprep.subr.bf16.mxu0 %v7903_v40  ;;  %v7955_v37 = vld [vmem:[%s10851_s1 + $0x12e8] ss:$16 sps:$4 sm:$0xff]  }
 0x27d   :  { %5840 = vmatprep.subr.bf16.mxu1 %v7900_v43  ;;  %v7963_v43 = vld [vmem:[%s10851_s1 + $0x12cc] ss:$16 sps:$4 sm:$0xff]  }
 0x27f   :  { %5866 = vmatpush1.bf16.msra.mxu0 %v7901_v55 }
 0x280   :  { %5841 = vmatpush2.bf16.msra.mxu1 %v7898_v26  ;;  %5867 = vmatprep.subr.bf16.mxu0 %v7906_v47 }
 0x281   :  { %5892 = vmatprep.subr.bf16.mxu1 %v7909_v48  ;;  %v7958_v48 = vld [vmem:[%s10851_s1 + $0x11c8] ss:$16 sps:$4 sm:$0xff]  }
 0x283   :  { %v10337_v23 = vpop.f32.mrf.mxu1  ;;  %5843 = vmatmul.mubr.bf16.vlgmr.msra.gmra.mxu1 %v9048_v15  ;;  %5868 = vmatpush2.bf16.msra.mxu0 %v7904_v45  ;;  %v7921_v15 = vld [vmem:[%s10851_s1 + $0x10ac] ss:$16 sps:$4 sm:$0xff]   ;;  %v7961_v45 = vld [vmem:[%s10851_s1 + $0x12c8] ss:$16 sps:$4 sm:$0xff]  }
 0x284   :  { %5893 = vmatpush1.bf16.msra.mxu1 %v7907_v51  ;;  %5869 = vmatprep.subr.bf16.mxu0 %v7912_v56  ;;  %v5599_v40 = vadd.f32 %v10337_v23, %v832_v54  ;;  %v7969_v56 = vld [vmem:[%s10851_s1 + $0x12ac] ss:$16 sps:$4 sm:$0xff]  }
 0x285   :  { %v10346_v46 = vpop.f32.mrf.mxu1  ;;  %5894 = vmatprep.subr.bf16.mxu1 %v7915_v13  ;;  %5924 = vmatprep.mubr.bf16.mxu1 %v9059_v22  ;;  %v7927_v22 = vld [vmem:[%s10851_s1 + $0x108c] ss:$16 sps:$4 sm:$0xff]  }
 0x286   :  { %v5601_v55 = vadd.f32 %v10346_v46, %v836_v18 }
 0x287   :  { %v5602_v0 = vpop.f32.mrf.mxu1  ;;  %5870 = vmatpush2.bf16.msra.mxu0 %v7910_v41  ;;  %v7964_v41 = vld [vmem:[%s10851_s1 + $0x11a8] ss:$16 sps:$4 sm:$0xff]  }
 0x288   :  { %5895 = vmatpush1.bf16.msra.mxu1 %v7913_v61  ;;  %5871 = vmatprep.subr.bf16.mxu0 %v7918_v53  ;;  %v7967_v61 = vld [vmem:[%s10851_s1 + $0x12a8] ss:$16 sps:$4 sm:$0xff]   ;;  %v7972_v53 = vld [vmem:[%s10851_s1 + $0x118c] ss:$16 sps:$4 sm:$0xff]  }
 0x289   :  { %v5603_v60 = vpop.f32.mrf.mxu1  ;;  %5896 = vmatprep.subr.bf16.mxu1 %v7921_v15  ;;  %v7970_v15 = vld [vmem:[%s10851_s1 + $0x1188] ss:$16 sps:$4 sm:$0xff]  }
 0x28a   :  { %v7973_v0 = vld [vmem:[%s10851_s1 + $0x1288] ss:$16 sps:$4 sm:$0xff]  }
 0x28b   :  { %5872 = vmatpush2.bf16.msra.mxu0 %v7916_v58  ;;  %v7978_v58 = vld [vmem:[%s10851_s1 + $0x116c] ss:$16 sps:$4 sm:$0xff]   ;;  %v7976_v60 = vld [vmem:[%s10851_s1 + $0x1168] ss:$16 sps:$4 sm:$0xff]  }
 0x28c   :  { %5897 = vmatpush1.bf16.msra.mxu1 %v7919_v62  ;;  %5873 = vmatprep.subr.bf16.mxu0 %v7924_v57  ;;  %v7981_v62 = vld [vmem:[%s10851_s1 + $0x126c] ss:$16 sps:$4 sm:$0xff]   ;;  %v7979_v57 = vld [vmem:[%s10851_s1 + $0x1268] ss:$16 sps:$4 sm:$0xff]  }
 0x28d   :  { %5898 = vmatprep.subr.bf16.mxu1 %v7927_v22  ;;  %v7984_v22 = vld [vmem:[%s10851_s1 + $0x114c] ss:$16 sps:$4 sm:$0xff]  }
 0x28f   :  { %5874 = vmatpush2.bf16.msra.mxu0 %v7922_v63  ;;  %v7987_v63 = vld [vmem:[%s10851_s1 + $0x124c] ss:$16 sps:$4 sm:$0xff]  }
 0x290   :  { %5899 = vmatpush1.bf16.msra.mxu1 %v7925_v17  ;;  %5875 = vmatprep.subr.bf16.mxu0 %v7930_v3  ;;  %v7982_v17 = vld [vmem:[%s10851_s1 + $0x1148] ss:$16 sps:$4 sm:$0xff]  }
 0x291   :  { %5900 = vmatprep.subr.bf16.mxu1 %v7933_v1  ;;  %v7985_v3 = vld [vmem:[%s10851_s1 + $0x1248] ss:$16 sps:$4 sm:$0xff]   ;;  %v7990_v1 = vld [vmem:[%s10851_s1 + $0x112c] ss:$16 sps:$4 sm:$0xff]  }
 0x293   :  { %5876 = vmatpush2.bf16.msra.mxu0 %v7928_v7  ;;  %v7993_v7 = vld [vmem:[%s10851_s1 + $0x122c] ss:$16 sps:$4 sm:$0xff]  }
 0x294   :  { %5901 = vmatpush1.bf16.msra.mxu1 %v7931_v35  ;;  %5877 = vmatprep.subr.bf16.mxu0 %v7936_v8  ;;  %v7988_v35 = vld [vmem:[%s10851_s1 + $0x1128] ss:$16 sps:$4 sm:$0xff]  }
 0x295   :  { %5902 = vmatprep.subr.bf16.mxu1 %v7939_v10  ;;  %v7991_v8 = vld [vmem:[%s10851_s1 + $0x1228] ss:$16 sps:$4 sm:$0xff]   ;;  %v7996_v10 = vld [vmem:[%s10851_s1 + $0x110c] ss:$16 sps:$4 sm:$0xff]  }
 0x297   :  { %5878 = vmatpush2.bf16.msra.mxu0 %v7934_v16  ;;  %v7999_v16 = vld [vmem:[%s10851_s1 + $0x120c] ss:$16 sps:$4 sm:$0xff]  }
 0x298   :  { %5903 = vmatpush1.bf16.msra.mxu1 %v7937_v19  ;;  %5879 = vmatprep.subr.bf16.mxu0 %v7942_v50  ;;  %v7994_v19 = vld [vmem:[%s10851_s1 + $0x1108] ss:$16 sps:$4 sm:$0xff]  }
 0x299   :  { %5904 = vmatprep.subr.bf16.mxu1 %v7945_v59  ;;  %v7997_v50 = vld [vmem:[%s10851_s1 + $0x1208] ss:$16 sps:$4 sm:$0xff]   ;;  %v8002_v59 = vld [vmem:[%s10851_s1 + $0x13ec] ss:$16 sps:$4 sm:$0xff]  }
 0x29b   :  { %5880 = vmatpush2.bf16.msra.mxu0 %v7940_v44  ;;  %v8005_v44 = vld [vmem:[%s10851_s1 + $0x14ec] ss:$16 sps:$4 sm:$0xff]  }
 0x29c   :  { %5905 = vmatpush1.bf16.msra.mxu1 %v7943_v4  ;;  %5881 = vmatprep.subr.bf16.mxu0 %v7948_v5  ;;  %v8000_v4 = vld [vmem:[%s10851_s1 + $0x13e8] ss:$16 sps:$4 sm:$0xff]  }
 0x29d   :  { %5906 = vmatprep.subr.bf16.mxu1 %v7951_v20  ;;  %v8003_v5 = vld [vmem:[%s10851_s1 + $0x14e8] ss:$16 sps:$4 sm:$0xff]   ;;  %v8008_v20 = vld [vmem:[%s10851_s1 + $0x13cc] ss:$16 sps:$4 sm:$0xff]  }
 0x29f   :  { %5882 = vmatpush2.bf16.msra.mxu0 %v7946_v29 }
 0x2a0   :  { %5907 = vmatpush1.bf16.msra.mxu1 %v7949_v30  ;;  %5933 = vmatprep.subr.bf16.mxu0 %v7957_v42  ;;  %v8006_v30 = vld [vmem:[%s10851_s1 + $0x13c8] ss:$16 sps:$4 sm:$0xff]  }
 0x2a1   :  { %5908 = vmatprep.subr.bf16.mxu1 %v7954_v34  ;;  %v8009_v34 = vld [vmem:[%s10851_s1 + $0x14c8] ss:$16 sps:$4 sm:$0xff]  }
 0x2a2   :  { %v5639_v26 = vpop.f32.mrf.mxu0  ;;  %5884 = vmatmul.mubr.bf16.vlgmr.msra.gmra.mxu0 %v9063_v39  ;;  %v7966_v39 = vld [vmem:[%s10851_s1 + $0x11ac] ss:$16 sps:$4 sm:$0xff]  }
 0x2a3   :  { %v10447_v47 = vadd.f32 %v5639_v26, %v5599_v40  ;;  %5934 = vmatpush1.bf16.msra.mxu0 %v7955_v37  ;;  %5965 = vmatprep.mubr.bf16.mxu0 %v9079_v31  ;;  %v7975_v31 = vld [vmem:[%s10851_s1 + $0x128c] ss:$16 sps:$4 sm:$0xff]   ;;  %v8015_v37 = vld [vmem:[%s10851_s1 + $0x14a8] ss:$16 sps:$4 sm:$0xff]  }
 0x2a4   :  { %5909 = vmatpush2.bf16.msra.mxu1 %v7952_v36  ;;  %v5641_v51 = vpop.f32.mrf.mxu0  ;;  %5935 = vmatprep.subr.bf16.mxu0 %v7963_v43  ;;  %v8012_v36 = vld [vmem:[%s10851_s1 + $0x13a8] ss:$16 sps:$4 sm:$0xff]   ;;  %v8020_v43 = vld [vmem:[%s10851_s1 + $0x138c] ss:$16 sps:$4 sm:$0xff]  }
 0x2a5   :  { %5910 = vmatprep.subr.bf16.mxu1 %v7960_v38  ;;  %v10461_v13 = vadd.f32 %v5641_v51, %v5601_v55  ;;  %v8018_v40 = vld [vmem:[%s10851_s1 + $0x1388] ss:$16 sps:$4 sm:$0xff]   ;;  %v8026_v55 = vld [vmem:[%s10851_s1 + $0x136c] ss:$16 sps:$4 sm:$0xff]  }
 0x2a6   :  { %v5643_v23 = vpop.f32.mrf.mxu0  ;;  %v8021_v26 = vld [vmem:[%s10851_s1 + $0x1488] ss:$16 sps:$4 sm:$0xff]   ;;  %v8032_v51 = vld [vmem:[%s10851_s1 + $0x134c] ss:$16 sps:$4 sm:$0xff]  }
 0x2a7   :  { %5936 = vmatpush1.bf16.msra.mxu0 %v7961_v45  ;;  %v8027_v45 = vld [vmem:[%s10851_s1 + $0x1468] ss:$16 sps:$4 sm:$0xff]   ;;  %v8038_v23 = vld [vmem:[%s10851_s1 + $0x132c] ss:$16 sps:$4 sm:$0xff]  }
 0x2a8   :  { %5911 = vmatpush2.bf16.msra.mxu1 %v7958_v48  ;;  %v5644_v46 = vpop.f32.mrf.mxu0  ;;  %5937 = vmatprep.subr.bf16.mxu0 %v7969_v56  ;;  %v8024_v48 = vld [vmem:[%s10851_s1 + $0x1368] ss:$16 sps:$4 sm:$0xff]  }
 0x2a9   :  { %5912 = vmatprep.subr.bf16.mxu1 %v7966_v39  ;;  %v8035_v39 = vld [vmem:[%s10851_s1 + $0x144c] ss:$16 sps:$4 sm:$0xff]   ;;  %v8030_v56 = vld [vmem:[%s10851_s1 + $0x1348] ss:$16 sps:$4 sm:$0xff]  }
 0x2aa   :  { %v8039_v46 = vld [vmem:[%s10851_s1 + $0x1428] ss:$16 sps:$4 sm:$0xff]  }
 0x2ab   :  { %5938 = vmatpush1.bf16.msra.mxu0 %v7967_v61  ;;  %v8036_v61 = vld [vmem:[%s10851_s1 + $0x1328] ss:$16 sps:$4 sm:$0xff]  }
 0x2ac   :  { %5913 = vmatpush2.bf16.msra.mxu1 %v7964_v41  ;;  %5939 = vmatprep.subr.bf16.mxu0 %v7975_v31  ;;  %v8041_v41 = vld [vmem:[%s10851_s1 + $0x142c] ss:$16 sps:$4 sm:$0xff]  }
 0x2ad   :  { %5914 = vmatprep.subr.bf16.mxu1 %v7972_v53  ;;  %v8044_v53 = vld [vmem:[%s10851_s1 + $0x130c] ss:$16 sps:$4 sm:$0xff]  }
 0x2ae   :  { %v8047_v31 = vld [vmem:[%s10851_s1 + $0x140c] ss:$16 sps:$4 sm:$0xff]  }
 0x2af   :  { %5940 = vmatpush1.bf16.msra.mxu0 %v7973_v0  ;;  %v8045_v0 = vld [vmem:[%s10851_s1 + $0x1408] ss:$16 sps:$4 sm:$0xff]  }
 0x2b0   :  { %5915 = vmatpush2.bf16.msra.mxu1 %v7970_v15  ;;  %5941 = vmatprep.subr.bf16.mxu0 %v7981_v62  ;;  %v8042_v15 = vld [vmem:[%s10851_s1 + $0x1308] ss:$16 sps:$4 sm:$0xff]   ;;  %v8053_v62 = vld [vmem:[%s10851_s1 + $0x16ec] ss:$16 sps:$4 sm:$0xff]  }
 0x2b1   :  { %5916 = vmatprep.subr.bf16.mxu1 %v7978_v58  ;;  %v8050_v58 = vld [vmem:[%s10851_s1 + $0x15ec] ss:$16 sps:$4 sm:$0xff]  }
 0x2b3   :  { %5942 = vmatpush1.bf16.msra.mxu0 %v7979_v57  ;;  %v8051_v57 = vld [vmem:[%s10851_s1 + $0x16e8] ss:$16 sps:$4 sm:$0xff]  }
 0x2b4   :  { %5917 = vmatpush2.bf16.msra.mxu1 %v7976_v60  ;;  %5943 = vmatprep.subr.bf16.mxu0 %v7987_v63  ;;  %v8048_v60 = vld [vmem:[%s10851_s1 + $0x15e8] ss:$16 sps:$4 sm:$0xff]   ;;  %v8059_v63 = vld [vmem:[%s10851_s1 + $0x16cc] ss:$16 sps:$4 sm:$0xff]  }
 0x2b5   :  { %5918 = vmatprep.subr.bf16.mxu1 %v7984_v22  ;;  %v8056_v22 = vld [vmem:[%s10851_s1 + $0x15cc] ss:$16 sps:$4 sm:$0xff]  }
 0x2b7   :  { %5944 = vmatpush1.bf16.msra.mxu0 %v7985_v3 }
 0x2b8   :  { %5919 = vmatpush2.bf16.msra.mxu1 %v7982_v17  ;;  %5945 = vmatprep.subr.bf16.mxu0 %v7993_v7  ;;  %v8057_v7 = vld [vmem:[%s10851_s1 + $0x16c8] ss:$16 sps:$4 sm:$0xff]  }
 0x2b9   :  { %5920 = vmatprep.subr.bf16.mxu1 %v7990_v1  ;;  %v8054_v1 = vld [vmem:[%s10851_s1 + $0x15c8] ss:$16 sps:$4 sm:$0xff]  }
 0x2bb   :  { %5946 = vmatpush1.bf16.msra.mxu0 %v7991_v8  ;;  %v8065_v8 = vld [vmem:[%s10851_s1 + $0x16ac] ss:$16 sps:$4 sm:$0xff]  }
 0x2bc   :  { %5921 = vmatpush2.bf16.msra.mxu1 %v7988_v35  ;;  %5947 = vmatprep.subr.bf16.mxu0 %v7999_v16 }
 0x2bd   :  { %5922 = vmatprep.subr.bf16.mxu1 %v7996_v10 }
 0x2bf   :  { %5948 = vmatpush1.bf16.msra.mxu0 %v7997_v50  ;;  %v8063_v50 = vld [vmem:[%s10851_s1 + $0x16a8] ss:$16 sps:$4 sm:$0xff]  }
 0x2c0   :  { %5923 = vmatpush2.bf16.msra.mxu1 %v7994_v19  ;;  %5949 = vmatprep.subr.bf16.mxu0 %v8002_v59  ;;  %v8060_v19 = vld [vmem:[%s10851_s1 + $0x15a8] ss:$16 sps:$4 sm:$0xff]  }
 0x2c1   :  { %5974 = vmatprep.subr.bf16.mxu1 %v8005_v44  ;;  %v8068_v44 = vld [vmem:[%s10851_s1 + $0x158c] ss:$16 sps:$4 sm:$0xff]  }
 0x2c3   :  { %v5680_v28 = vpop.f32.mrf.mxu1  ;;  %5925 = vmatmul.mubr.bf16.vlgmr.msra.gmra.mxu1 %v9266_v12  ;;  %5950 = vmatpush2.bf16.msra.mxu0 %v8000_v4  ;;  %v8014_v12 = vld [vmem:[%s10851_s1 + $0x13ac] ss:$16 sps:$4 sm:$0xff]   ;;  %v8066_v4 = vld [vmem:[%s10851_s1 + $0x1588] ss:$16 sps:$4 sm:$0xff]  }
 0x2c4   :  { %v10550_v29 = vadd.f32 %v5680_v28, %v10447_v47  ;;  %5975 = vmatpush1.bf16.msra.mxu1 %v8003_v5  ;;  %5951 = vmatprep.subr.bf16.mxu0 %v8008_v20  ;;  %v8029_v47 = vld [vmem:[%s10851_s1 + $0x146c] ss:$16 sps:$4 sm:$0xff]   ;;  %v8069_v5 = vld [vmem:[%s10851_s1 + $0x1688] ss:$16 sps:$4 sm:$0xff]  }
 0x2c5   :  { %v5682_v42 = vpop.f32.mrf.mxu1  ;;  %5976 = vmatprep.subr.bf16.mxu1 %v8011_v21  ;;  %6006 = vmatprep.mubr.bf16.mxu1 %v9287_v24  ;;  %v8023_v24 = vld [vmem:[%s10851_s1 + $0x148c] ss:$16 sps:$4 sm:$0xff]   ;;  %v8072_v28 = vld [vmem:[%s10851_s1 + $0x1568] ss:$16 sps:$4 sm:$0xff]  }
 0x2c6   :  { %v10565_v54 = vadd.f32 %v5682_v42, %v10461_v13  ;;  %v8033_v13 = vld [vmem:[%s10851_s1 + $0x1448] ss:$16 sps:$4 sm:$0xff]   ;;  %v8074_v20 = vld [vmem:[%s10851_s1 + $0x156c] ss:$16 sps:$4 sm:$0xff]  }
 0x2c7   :  { %v5684_v18 = vpop.f32.mrf.mxu1  ;;  %5952 = vmatpush2.bf16.msra.mxu0 %v8006_v30  ;;  %v8077_v21 = vld [vmem:[%s10851_s1 + $0x166c] ss:$16 sps:$4 sm:$0xff]   ;;  %v8078_v42 = vld [vmem:[%s10851_s1 + $0x1548] ss:$16 sps:$4 sm:$0xff]  }
 0x2c8   :  { %5977 = vmatpush1.bf16.msra.mxu1 %v8009_v34  ;;  %5953 = vmatprep.subr.bf16.mxu0 %v8014_v12  ;;  %v8080_v30 = vld [vmem:[%s10851_s1 + $0x154c] ss:$16 sps:$4 sm:$0xff]   ;;  %v8081_v12 = vld [vmem:[%s10851_s1 + $0x1648] ss:$16 sps:$4 sm:$0xff]  }
 0x2c9   :  { %v5685_v38 = vpop.f32.mrf.mxu1  ;;  %5978 = vmatprep.subr.bf16.mxu1 %v8017_v6  ;;  %v8083_v34 = vld [vmem:[%s10851_s1 + $0x164c] ss:$16 sps:$4 sm:$0xff]   ;;  %v8084_v18 = vld [vmem:[%s10851_s1 + $0x1528] ss:$16 sps:$4 sm:$0xff]  }
 0x2ca   :  { %v8086_v6 = vld [vmem:[%s10851_s1 + $0x152c] ss:$16 sps:$4 sm:$0xff]  }
 0x2cb   :  { %5954 = vmatpush2.bf16.msra.mxu0 %v8012_v36  ;;  %v8087_v36 = vld [vmem:[%s10851_s1 + $0x1628] ss:$16 sps:$4 sm:$0xff]   ;;  %v8095_v38 = vld [vmem:[%s10851_s1 + $0x160c] ss:$16 sps:$4 sm:$0xff]  }
 0x2cc   :  { %5979 = vmatpush1.bf16.msra.mxu1 %v8015_v37  ;;  %5955 = vmatprep.subr.bf16.mxu0 %v8020_v43  ;;  %v8092_v37 = vld [vmem:[%s10851_s1 + $0x150c] ss:$16 sps:$4 sm:$0xff]   ;;  %v8090_v43 = vld [vmem:[%s10851_s1 + $0x1508] ss:$16 sps:$4 sm:$0xff]  }
 0x2cd   :  { %5980 = vmatprep.subr.bf16.mxu1 %v8023_v24  ;;  %v8093_v24 = vld [vmem:[%s10851_s1 + $0x1608] ss:$16 sps:$4 sm:$0xff]  }
 0x2cf   :  { %5956 = vmatpush2.bf16.msra.mxu0 %v8018_v40  ;;  %v8098_v40 = vld [vmem:[%s10851_s1 + $0x17ec] ss:$16 sps:$4 sm:$0xff]  }
 0x2d0   :  { %5981 = vmatpush1.bf16.msra.mxu1 %v8021_v26  ;;  %5957 = vmatprep.subr.bf16.mxu0 %v8026_v55  ;;  %v8101_v26 = vld [vmem:[%s10851_s1 + $0x18ec] ss:$16 sps:$4 sm:$0xff]   ;;  %v8096_v55 = vld [vmem:[%s10851_s1 + $0x17e8] ss:$16 sps:$4 sm:$0xff]  }
 0x2d1   :  { %5982 = vmatprep.subr.bf16.mxu1 %v8029_v47  ;;  %v8099_v47 = vld [vmem:[%s10851_s1 + $0x18e8] ss:$16 sps:$4 sm:$0xff]  }
 0x2d3   :  { %5958 = vmatpush2.bf16.msra.mxu0 %v8024_v48  ;;  %v8104_v48 = vld [vmem:[%s10851_s1 + $0x17cc] ss:$16 sps:$4 sm:$0xff]  }
 0x2d4   :  { %5983 = vmatpush1.bf16.msra.mxu1 %v8027_v45  ;;  %5959 = vmatprep.subr.bf16.mxu0 %v8032_v51  ;;  %v8107_v45 = vld [vmem:[%s10851_s1 + $0x18cc] ss:$16 sps:$4 sm:$0xff]  }
 0x2d5   :  { %5984 = vmatprep.subr.bf16.mxu1 %v8035_v39 }
 0x2d7   :  { %5960 = vmatpush2.bf16.msra.mxu0 %v8030_v56  ;;  %v8102_v56 = vld [vmem:[%s10851_s1 + $0x17c8] ss:$16 sps:$4 sm:$0xff]  }
 0x2d8   :  { %5985 = vmatpush1.bf16.msra.mxu1 %v8033_v13  ;;  %5961 = vmatprep.subr.bf16.mxu0 %v8038_v23  ;;  %v8105_v13 = vld [vmem:[%s10851_s1 + $0x18c8] ss:$16 sps:$4 sm:$0xff]  }
 0x2d9   :  { %5986 = vmatprep.subr.bf16.mxu1 %v8041_v41  ;;  %v8113_v41 = vld [vmem:[%s10851_s1 + $0x18ac] ss:$16 sps:$4 sm:$0xff]  }
 0x2db   :  { %5962 = vmatpush2.bf16.msra.mxu0 %v8036_v61 }
 0x2dc   :  { %5987 = vmatpush1.bf16.msra.mxu1 %v8039_v46  ;;  %5963 = vmatprep.subr.bf16.mxu0 %v8044_v53  ;;  %v8108_v53 = vld [vmem:[%s10851_s1 + $0x17a8] ss:$16 sps:$4 sm:$0xff]  }
 0x2dd   :  { %5988 = vmatprep.subr.bf16.mxu1 %v8047_v31  ;;  %v8111_v31 = vld [vmem:[%s10851_s1 + $0x18a8] ss:$16 sps:$4 sm:$0xff]  }
 0x2df   :  { %5964 = vmatpush2.bf16.msra.mxu0 %v8042_v15 }
 0x2e0   :  { %5989 = vmatpush1.bf16.msra.mxu1 %v8045_v0  ;;  %6015 = vmatprep.subr.bf16.mxu0 %v8053_v62  ;;  %v8116_v0 = vld [vmem:[%s10851_s1 + $0x178c] ss:$16 sps:$4 sm:$0xff]   ;;  %v8117_v62 = vld [vmem:[%s10851_s1 + $0x1888] ss:$16 sps:$4 sm:$0xff]  }
 0x2e1   :  { %5990 = vmatprep.subr.bf16.mxu1 %v8050_v58  ;;  %v8114_v58 = vld [vmem:[%s10851_s1 + $0x1788] ss:$16 sps:$4 sm:$0xff]  }
 0x2e2   :  { %v5721_v17 = vpop.f32.mrf.mxu0  ;;  %5966 = vmatmul.mubr.bf16.vlgmr.msra.gmra.mxu0 %v9291_v25  ;;  %v8062_v25 = vld [vmem:[%s10851_s1 + $0x15ac] ss:$16 sps:$4 sm:$0xff]  }
 0x2e3   :  { %v10654_v3 = vadd.f32 %v5721_v17, %v10550_v29  ;;  %6016 = vmatpush1.bf16.msra.mxu0 %v8051_v57  ;;  %6047 = vmatprep.mubr.bf16.mxu0 %v9307_v33  ;;  %v8071_v33 = vld [vmem:[%s10851_s1 + $0x168c] ss:$16 sps:$4 sm:$0xff]   ;;  %v8075_v29 = vld [vmem:[%s10851_s1 + $0x1668] ss:$16 sps:$4 sm:$0xff]  }
 0x2e4   :  { %5991 = vmatpush2.bf16.msra.mxu1 %v8048_v60  ;;  %v5723_v35 = vpop.f32.mrf.mxu0  ;;  %6017 = vmatprep.subr.bf16.mxu0 %v8059_v63  ;;  %v8122_v60 = vld [vmem:[%s10851_s1 + $0x176c] ss:$16 sps:$4 sm:$0xff]   ;;  %v8123_v63 = vld [vmem:[%s10851_s1 + $0x1868] ss:$16 sps:$4 sm:$0xff]  }
 0x2e5   :  { %5992 = vmatprep.subr.bf16.mxu1 %v8056_v22  ;;  %v10669_v10 = vadd.f32 %v5723_v35, %v10565_v54  ;;  %v8089_v54 = vld [vmem:[%s10851_s1 + $0x162c] ss:$16 sps:$4 sm:$0xff]   ;;  %v8120_v22 = vld [vmem:[%s10851_s1 + $0x1768] ss:$16 sps:$4 sm:$0xff]  }
 0x2e6   :  { %v5725_v16 = vpop.f32.mrf.mxu0  ;;  %v8125_v57 = vld [vmem:[%s10851_s1 + $0x186c] ss:$16 sps:$4 sm:$0xff]  }
 0x2e7   :  { %6018 = vmatpush1.bf16.msra.mxu0 %v8057_v7  ;;  %v8128_v17 = vld [vmem:[%s10851_s1 + $0x174c] ss:$16 sps:$4 sm:$0xff]   ;;  %v8129_v7 = vld [vmem:[%s10851_s1 + $0x1848] ss:$16 sps:$4 sm:$0xff]  }
 0x2e8   :  { %5993 = vmatpush2.bf16.msra.mxu1 %v8054_v1  ;;  %v5726_v59 = vpop.f32.mrf.mxu0  ;;  %6019 = vmatprep.subr.bf16.mxu0 %v8065_v8  ;;  %v8126_v1 = vld [vmem:[%s10851_s1 + $0x1748] ss:$16 sps:$4 sm:$0xff]   ;;  %v8134_v35 = vld [vmem:[%s10851_s1 + $0x172c] ss:$16 sps:$4 sm:$0xff]  }
 0x2e9   :  { %5994 = vmatprep.subr.bf16.mxu1 %v8062_v25  ;;  %v8137_v25 = vld [vmem:[%s10851_s1 + $0x182c] ss:$16 sps:$4 sm:$0xff]   ;;  %v8132_v8 = vld [vmem:[%s10851_s1 + $0x1728] ss:$16 sps:$4 sm:$0xff]  }
 0x2ea   :  { %v8140_v16 = vld [vmem:[%s10851_s1 + $0x170c] ss:$16 sps:$4 sm:$0xff]   ;;  %v8141_v59 = vld [vmem:[%s10851_s1 + $0x1808] ss:$16 sps:$4 sm:$0xff]  }
 0x2eb   :  { %6020 = vmatpush1.bf16.msra.mxu0 %v8063_v50  ;;  %v8138_v50 = vld [vmem:[%s10851_s1 + $0x1708] ss:$16 sps:$4 sm:$0xff]  }
 0x2ec   :  { %5995 = vmatpush2.bf16.msra.mxu1 %v8060_v19  ;;  %6021 = vmatprep.subr.bf16.mxu0 %v8071_v33  ;;  %v8143_v19 = vld [vmem:[%s10851_s1 + $0x180c] ss:$16 sps:$4 sm:$0xff]  }
 0x2ed   :  { %5996 = vmatprep.subr.bf16.mxu1 %v8068_v44 }
 0x2ef   :  { %6022 = vmatpush1.bf16.msra.mxu0 %v8069_v5 }
 0x2f0   :  { %5997 = vmatpush2.bf16.msra.mxu1 %v8066_v4  ;;  %6023 = vmatprep.subr.bf16.mxu0 %v8077_v21 }
 0x2f1   :  { %5998 = vmatprep.subr.bf16.mxu1 %v8074_v20 }
 0x2f3   :  { %6024 = vmatpush1.bf16.msra.mxu0 %v8075_v29 }
 0x2f4   :  { %5999 = vmatpush2.bf16.msra.mxu1 %v8072_v28  ;;  %6025 = vmatprep.subr.bf16.mxu0 %v8083_v34 }
 0x2f5   :  { %6000 = vmatprep.subr.bf16.mxu1 %v8080_v30 }
 0x2f7   :  { %6026 = vmatpush1.bf16.msra.mxu0 %v8081_v12 }
 0x2f8   :  { %6001 = vmatpush2.bf16.msra.mxu1 %v8078_v42  ;;  %6027 = vmatprep.subr.bf16.mxu0 %v8089_v54 }
 0x2f9   :  { %6002 = vmatprep.subr.bf16.mxu1 %v8086_v6 }
 0x2fb   :  { %6028 = vmatpush1.bf16.msra.mxu0 %v8087_v36 }
 0x2fc   :  { %6003 = vmatpush2.bf16.msra.mxu1 %v8084_v18  ;;  %6029 = vmatprep.subr.bf16.mxu0 %v8095_v38 }
 0x2fd   :  { %6004 = vmatprep.subr.bf16.mxu1 %v8092_v37 }
 0x2ff   :  { %6030 = vmatpush1.bf16.msra.mxu0 %v8093_v24 }
 0x300   :  { %6005 = vmatpush2.bf16.msra.mxu1 %v8090_v43  ;;  %6031 = vmatprep.subr.bf16.mxu0 %v8098_v40 }
 0x301   :  { %6056 = vmatprep.subr.bf16.mxu1 %v8101_v26 }
 0x303   :  { %v5762_v51 = vpop.f32.mrf.mxu1  ;;  %6007 = vmatmul.mubr.bf16.vlgmr.msra.gmra.mxu1 %v9483_v14  ;;  %6032 = vmatpush2.bf16.msra.mxu0 %v8096_v55  ;;  %v8110_v14 = vld [vmem:[%s10851_s1 + $0x17ac] ss:$16 sps:$4 sm:$0xff]  }
 0x304   :  { %v10758_v39 = vadd.f32 %v5762_v51, %v10654_v3  ;;  %6057 = vmatpush1.bf16.msra.mxu1 %v8099_v47  ;;  %6033 = vmatprep.subr.bf16.mxu0 %v8104_v48  ;;  %v8131_v3 = vld [vmem:[%s10851_s1 + $0x184c] ss:$16 sps:$4 sm:$0xff]  }
 0x305   :  { %v5764_v23 = vpop.f32.mrf.mxu1  ;;  %6058 = vmatprep.subr.bf16.mxu1 %v8107_v45  ;;  %6088 = vmatprep.mubr.bf16.mxu1 %v8146_v52  ;;  %v8119_v52 = vld [vmem:[%s10851_s1 + $0x188c] ss:$16 sps:$4 sm:$0xff]  }
 0x306   :  { %v5765_v61 = vadd.f32 %v5764_v23, %v10669_v10  ;;  %v8135_v10 = vld [vmem:[%s10851_s1 + $0x1828] ss:$16 sps:$4 sm:$0xff]  }
 0x307   :  { %v5766_v46 = vpop.f32.mrf.mxu1  ;;  %6034 = vmatpush2.bf16.msra.mxu0 %v8102_v56 }
 0x308   :  { %6059 = vmatpush1.bf16.msra.mxu1 %v8105_v13  ;;  %6035 = vmatprep.subr.bf16.mxu0 %v8110_v14 }
 0x309   :  { %v5767_v15 = vpop.f32.mrf.mxu1  ;;  %6060 = vmatprep.subr.bf16.mxu1 %v8113_v41 }
 0x30b   :  { %6036 = vmatpush2.bf16.msra.mxu0 %v8108_v53 }
 0x30c   :  { %6061 = vmatpush1.bf16.msra.mxu1 %v8111_v31  ;;  %6037 = vmatprep.subr.bf16.mxu0 %v8116_v0 }
 0x30d   :  { %6062 = vmatprep.subr.bf16.mxu1 %v8119_v52 }
 0x30f   :  { %6038 = vmatpush2.bf16.msra.mxu0 %v8114_v58 }
 0x310   :  { %6063 = vmatpush1.bf16.msra.mxu1 %v8117_v62  ;;  %6039 = vmatprep.subr.bf16.mxu0 %v8122_v60 }
 0x311   :  { %6064 = vmatprep.subr.bf16.mxu1 %v8125_v57 }
 0x313   :  { %6040 = vmatpush2.bf16.msra.mxu0 %v8120_v22 }
 0x314   :  { %6065 = vmatpush1.bf16.msra.mxu1 %v8123_v63  ;;  %6041 = vmatprep.subr.bf16.mxu0 %v8128_v17 }
 0x315   :  { %6066 = vmatprep.subr.bf16.mxu1 %v8131_v3  ;;  %v6113_v3 = vrot.slane %v6936_v11, %v8302_v49 }
 0x317   :  { %6042 = vmatpush2.bf16.msra.mxu0 %v8126_v1 }
 0x318   :  { %6067 = vmatpush1.bf16.msra.mxu1 %v8129_v7  ;;  %6043 = vmatprep.subr.bf16.mxu0 %v8134_v35 }
 0x319   :  { %6068 = vmatprep.subr.bf16.mxu1 %v8137_v25 }
 0x31b   :  { %6044 = vmatpush2.bf16.msra.mxu0 %v8132_v8 }
 0x31c   :  { %6069 = vmatpush1.bf16.msra.mxu1 %v8135_v10  ;;  %6045 = vmatprep.subr.bf16.mxu0 %v8140_v16 }
 0x31d   :  { %6070 = vmatprep.subr.bf16.mxu1 %v8143_v19 }
 0x31f   :  { %6046 = vmatpush2.bf16.msra.mxu0 %v8138_v50 }
 0x320   :  { %6071 = vmatpush1.bf16.msra.mxu1 %v8141_v59 }
 0x322   :  { %v5803_v44 = vpop.f32.mrf.mxu0  ;;  %6048 = vmatmul.mubr.bf16.vlgmr.msra.gmra.mxu0 %v9505_v27 }
 0x323   :  { %6089 = vmatmul.mubr.bf16.vlgmr.msra.gmra.mxu1 %v9617_v32  ;;  %v5804_v33 = vadd.f32 %v5803_v44, %v10758_v39 }
 0x324   :  { %v5805_v4 = vpop.f32.mrf.mxu0 }
 0x325   :  { %v5806_v5 = vadd.f32 %v5805_v4, %v5765_v61 }
 0x326   :  { %v5807_v20 = vpop.f32.mrf.mxu0 }
 0x328   :  { %v5808_v21 = vpop.f32.mrf.mxu0 }
 0x343   :  { %v5844_v28 = vpop.f32.mrf.mxu1 }
 0x344   :  { %v5845_v29 = vadd.f32 %v5844_v28, %v5804_v33 }
 0x345   :  { %v5846_v30 = vpop.f32.mrf.mxu1 }
 0x346   :  { %v5847_v34 = vadd.f32 %v5846_v30, %v5806_v5 }
 0x347   :  { %v5848_v42 = vpop.f32.mrf.mxu1 }
 0x349   :  { %v5849_v12 = vpop.f32.mrf.mxu1 }
 0x362   :  { %v5885_v6 = vpop.f32.mrf.mxu0 }
 0x363   :  { %v5886_v54 = vadd.f32 %v5885_v6, %v5845_v29 }
 0x364   :  { %v5887_v18 = vpop.f32.mrf.mxu0 }
 0x365   :  { %v5888_v36 = vadd.f32 %v5887_v18, %v5847_v34 }
 0x366   :  { %v5889_v37 = vpop.f32.mrf.mxu0 }
 0x368   :  { %v5890_v27 = vpop.f32.mrf.mxu0 }
 0x383   :  { %v5926_v38 = vpop.f32.mrf.mxu1 }
 0x384   :  { %v5927_v32 = vadd.f32 %v5926_v38, %v5886_v54 }
 0x385   :  { %v5928_v43 = vpop.f32.mrf.mxu1 }
 0x386   :  { %v5929_v24 = vadd.f32 %v5928_v43, %v5888_v36 }
 0x387   :  { %v5930_v40 = vpop.f32.mrf.mxu1 }
 0x389   :  { %v5931_v26 = vpop.f32.mrf.mxu1 }
 0x3a2   :  { %v5967_v55 = vpop.f32.mrf.mxu0 }
 0x3a3   :  { %v5968_v23 = vadd.f32 %v5967_v55, %v5927_v32 }
 0x3a4   :  { %v5969_v47 = vpop.f32.mrf.mxu0 }
 0x3a5   :  { %v5970_v14 = vadd.f32 %v5969_v47, %v5929_v24 }
 0x3a6   :  { %v5971_v48 = vpop.f32.mrf.mxu0 }
 0x3a8   :  { %v5972_v45 = vpop.f32.mrf.mxu0 }
 0x3c3   :  { %v6008_v51 = vpop.f32.mrf.mxu1 }
 0x3c4   :  { %v6009_v41 = vadd.f32 %v6008_v51, %v5968_v23 }
 0x3c5   :  { %v6010_v39 = vpop.f32.mrf.mxu1 }
 0x3c6   :  { %v6011_v53 = vadd.f32 %v6010_v39, %v5970_v14 }
 0x3c7   :  { %v6012_v56 = vpop.f32.mrf.mxu1 }
 0x3c9   :  { %v6013_v13 = vpop.f32.mrf.mxu1 }
 0x3e2   :  { %v6049_v61 = vpop.f32.mrf.mxu0 }
 0x3e3   :  { %v6090_v46 = vpop.f32.mrf.mxu1  ;;  %v6050_v31 = vadd.f32 %v6049_v61, %v6009_v41 }
 0x3e4   :  { %v6051_v15 = vpop.f32.mrf.mxu0 }
 0x3e5   :  { %v6092_v0 = vpop.f32.mrf.mxu1  ;;  %v6052_v52 = vadd.f32 %v6051_v15, %v6011_v53  ;;  %v6091_v60 = vadd.f32 %v6090_v46, %v6050_v31 }
 0x3e6   :  { %v6053_v58 = vpop.f32.mrf.mxu0 }
 0x3e7   :  { %v6094_v62 = vpop.f32.mrf.mxu1  ;;  %v6093_v57 = vadd.f32 %v6092_v0, %v6052_v52 }
 0x3e8   :  { %v6054_v22 = vpop.f32.mrf.mxu0 }
 0x3e9   :  { %v6095_v63 = vpop.f32.mrf.mxu1  ;;  %v6937_v17 = vpack.c.bf16 %v6093_v57, %v6091_v60 }
 0x3eb   :  { %v6120_v1 = vrot.slane %v6937_v17, %v8302_v49 }
 0x3ed   :  { %v6121_v7 = vcombine.low %v6113_v3, %v6120_v1 }
 0x3ef   :  { %6938 = vst.sshfl [vmem:[%s10854_s3] sm:$0x55 pattern:$0x73625140] %v6121_v7 }

</bundles_post_ra>
